<compile_context>
chip_gen: v5e
topology: v5e:2x2
jax: 0.10.0
libtpu: 0.0.40
codegen_flags: <defaults>
</compile_context>

<pallas_src>
import math
import functools

import numpy as np
import jax
import jax.numpy as jnp
from jax.experimental import pallas as pl
from jax.experimental.pallas import tpu as pltpu


def _round_up(n, m):
    return ((n + m - 1) // m) * m


def _conv_out_hw(h, w):
    # Conv2d(kernel=3, stride=2, padding=1): OH = floor((H - 1) / 2) + 1
    return (h + 1) // 2, (w + 1) // 2


# ----------------------------------------------------------------------------
# Fused kernel: all convs (+LeakyReLU) and the EqualLinear in one invocation.
# ----------------------------------------------------------------------------
def _fused_block_kernel(*refs, num_layers, rows_pad):
    # refs = x, (sel, w, b) * num_layers, wlin, blin, out
    x_ref = refs[0]
    wlin_ref = refs[1 + 3 * num_layers]
    blin_ref = refs[2 + 3 * num_layers]
    out_ref = refs[3 + 3 * num_layers]

    x = x_ref[...]                                      # (R, Cp) bf16, lane-dense
    for layer in range(num_layers):
        s_ref = refs[1 + 3 * layer]                     # (9*r_out, R) one-hot bf16
        w_ref = refs[2 + 3 * layer]                     # (9*Cp_in, Cp_out) bf16
        b_ref = refs[3 + 3 * layer]                     # (1, Cp_out) f32
        r_out = rows_pad[layer]

        # Gather all 9 stride-2 / pad-1 taps with ONE MXU matmul: the one-hot
        # selection matrix encodes stride, the zero-padding ring and batch
        # boundaries, so no strided slicing / gathers are needed in-kernel.
        a_all = jnp.dot(s_ref[...], x, preferred_element_type=jnp.float32)
        a_all = a_all.astype(jnp.bfloat16)              # exact: rows are copies of x

        # (9*r_out, C) -> (r_out, 9*C) im2col slab, tap-major along lanes.
        a_col = jnp.concatenate(
            [a_all[t * r_out:(t + 1) * r_out, :] for t in range(9)], axis=-1)

        # Conv = one matmul; fused bias + LeakyReLU(0.01) epilogue in f32.
        y = jnp.dot(a_col, w_ref[...], preferred_element_type=jnp.float32)
        y = y + b_ref[...]
        y = jnp.where(y >= 0.0, y, y * jnp.float32(0.01))
        x = y.astype(jnp.bfloat16)

    # EqualLinear fused as the epilogue of the same kernel (f32 output).
    out = jnp.dot(x, wlin_ref[...], preferred_element_type=jnp.float32)
    out_ref[...] = out + blin_ref[...]


def _fused_block_call(sels, ws, bs, wlin, blin, x_rows_bf16):
    num_layers = len(sels)
    rows_pad = tuple(s.shape[0] // 9 for s in sels)

    operands = [x_rows_bf16]
    for s, wm, bm in zip(sels, ws, bs):
        operands += [s, wm, bm]
    operands += [wlin, blin]

    out_shape = jax.ShapeDtypeStruct((rows_pad[-1], wlin.shape[1]), jnp.float32)

    # Everything is resident in VMEM for a single invocation (no grid, no
    # double-buffering).  Keep well under v5e's 16 MiB default scoped VMEM.
    total_bytes = sum(int(op.size) * op.dtype.itemsize for op in operands)
    total_bytes += int(np.prod(out_shape.shape)) * 4
    assert total_bytes < 8 * 1024 * 1024, total_bytes

    kernel = functools.partial(_fused_block_kernel,
                               num_layers=num_layers, rows_pad=rows_pad)
    return pl.pallas_call(
        kernel,
        out_shape=out_shape,
        in_specs=[pl.BlockSpec(memory_space=pltpu.MemorySpace.VMEM)] * len(operands),
        out_specs=pl.BlockSpec(memory_space=pltpu.MemorySpace.VMEM),
    )(*operands)


# ----------------------------------------------------------------------------
# Host-side one-time packing (review: no per-call weight prep under jit).
# ----------------------------------------------------------------------------
def _build_selection(n, h, w, rows_in_pad, rows_out_pad):
    """One-hot matrix gathering the 9 taps of a 3x3 / stride-2 / pad-1 conv.

    Maps activation rows (row-major over (batch, h, w), rows_in_pad total) to
    9*rows_out_pad rows; block t corresponds to tap (di, dj) = (t//3, t%3).
    Out-of-image taps and padding rows stay all-zero.
    """
    oh, ow = _conv_out_hw(h, w)
    sel = np.zeros((9 * rows_out_pad, rows_in_pad), np.float32)
    for t in range(9):
        di, dj = t // 3, t % 3
        for b in range(n):
            for i in range(oh):
                ih = 2 * i + di - 1
                if not (0 <= ih < h):
                    continue
                for j in range(ow):
                    iw = 2 * j + dj - 1
                    if not (0 <= iw < w):
                        continue
                    r_out = t * rows_out_pad + (b * oh + i) * ow + j
                    r_in = (b * h + ih) * w + iw
                    sel[r_out, r_in] = 1.0
    return jnp.asarray(sel, jnp.bfloat16)


def pack_params(params, batch, in_c, out_c, spatial):
    """Pack weights once: selection matrices + tap-major, pre-scaled,
    lane-padded bf16 weight matrices.  Returns a pytree of device arrays."""
    cin_p = _round_up(in_c, 128)
    cout_p = _round_up(out_c, 128)

    h = w = spatial
    r_prev = _round_up(batch * h * w, 16)
    c_prev, c_prev_p = in_c, cin_p

    sels, ws, bs = [], [], []
    for layer in params["convs"]:
        oh, ow = _conv_out_hw(h, w)
        r_out = _round_up(batch * oh * ow, 16)
        sels.append(_build_selection(batch, h, w, r_prev, r_out))

        wt = np.asarray(layer["w"], np.float32)          # (O, I, 3, 3)
        wm = np.zeros((9 * c_prev_p, cout_p), np.float32)
        for t in range(9):
            di, dj = t // 3, t % 3
            wm[t * c_prev_p:t * c_prev_p + c_prev, :out_c] = wt[:, :, di, dj].T
        ws.append(jnp.asarray(wm, jnp.bfloat16))

        bias = np.zeros((1, cout_p), np.float32)         # padded cols stay 0
        bias[0, :out_c] = np.asarray(layer["b"], np.float32)
        bs.append(jnp.asarray(bias, jnp.float32))

        h, w = oh, ow
        r_prev = r_out
        c_prev, c_prev_p = out_c, cout_p

    if h != 1 or w != 1:
        # TODO(synk): spatial that does not collapse to 1x1 would make the
        # torch view(-1, out_c) interleave spatial into rows; not handled.
        raise ValueError("spatial must collapse to 1x1 after the conv stack")

    # EqualLinear(lr_mul=1): y = h @ (W / sqrt(in_dim)).T + bias
    lw = np.asarray(params["lin_w"], np.float32) * (1.0 / math.sqrt(out_c))
    wlin = np.zeros((cout_p, cout_p), np.float32)
    wlin[:out_c, :out_c] = lw.T
    blin = np.zeros((1, cout_p), np.float32)
    blin[0, :out_c] = np.asarray(params["lin_b"], np.float32)

    return {
        "sel": sels, "w": ws, "b": bs,
        "wlin": jnp.asarray(wlin, jnp.bfloat16),
        "blin": jnp.asarray(blin, jnp.float32),
    }


# ----------------------------------------------------------------------------
# GradualStyleBlock forward (jit this; `packed` is a pytree of arrays only).
# ----------------------------------------------------------------------------
def gradual_style_block_forward(packed, x_nchw, *, out_c):
    sels, ws, bs = packed["sel"], packed["w"], packed["b"]
    wlin, blin = packed["wlin"], packed["blin"]

    n, c, h, w = x_nchw.shape
    rows_in = sels[0].shape[1]
    cin_p = ws[0].shape[0] // 9

    # NCHW -> rows of per-position channel vectors (row-major over n, h, w),
    # channels on lanes; pad rows/channels ONCE, cast to bf16.
    x = jnp.transpose(x_nchw, (0, 2, 3, 1)).reshape(n * h * w, c)
    x = jnp.pad(x, ((0, rows_in - n * h * w), (0, cin_p - c))).astype(jnp.bfloat16)

    out = _fused_block_call(sels, ws, bs, wlin, blin, x)
    # Spatial has collapsed to 1x1, so view(-1, out_c) == first `n` rows.
    return out[:n, :out_c]


# ----------------------------------------------------------------------------
# Synthetic parameters (the real module loads checkpoint weights).
# ----------------------------------------------------------------------------
def init_params(in_c, out_c, spatial, seed=0):
    num_pools = int(math.log2(spatial))
    key = jax.random.PRNGKey(seed)
    convs = []
    c_in = in_c
    for _ in range(num_pools):
        key, kw, kb = jax.random.split(key, 3)
        convs.append({
            "w": jax.random.normal(kw, (out_c, c_in, 3, 3), jnp.float32)
                 * math.sqrt(2.0 / (c_in * 9)),
            "b": 0.1 * jax.random.normal(kb, (out_c,), jnp.float32),
        })
        c_in = out_c
    key, kw = jax.random.split(key)
    return {
        "convs": convs,
        "lin_w": jax.random.normal(kw, (out_c, out_c), jnp.float32),  # randn / lr_mul
        "lin_b": jnp.zeros((out_c,), jnp.float32),                    # bias_init = 0
    }


# ----------------------------------------------------------------------------
# Pure-JAX reference (f32) for a correctness spot-check.
# ----------------------------------------------------------------------------
def _reference_forward(params, x_nchw):
    x = jnp.transpose(x_nchw, (0, 2, 3, 1)).astype(jnp.float32)
    for layer in params["convs"]:
        w = jnp.transpose(layer["w"], (2, 3, 1, 0))                  # HWIO
        x = jax.lax.conv_general_dilated(
            x, w, window_strides=(2, 2), padding=((1, 1), (1, 1)),
            dimension_numbers=("NHWC", "HWIO", "NHWC"))
        x = x + layer["b"]
        x = jnp.where(x >= 0, x, 0.01 * x)
    out_c, in_c = params["lin_w"].shape
    h = x.reshape(-1, out_c)
    return h @ (params["lin_w"] * (1.0 / math.sqrt(in_c))).T + params["lin_b"]


if __name__ == "__main__":
    IN_C, OUT_C, SPATIAL, BATCH = 64, 64, 16, 2     # GradualStyleBlock(64, 64, 16)
    params = init_params(IN_C, OUT_C, SPATIAL, seed=42)
    packed = pack_params(params, BATCH, IN_C, OUT_C, SPATIAL)

    x = jax.random.normal(jax.random.PRNGKey(0),
                          (BATCH, IN_C, SPATIAL, SPATIAL), jnp.float32)

    fwd = jax.jit(functools.partial(gradual_style_block_forward, out_c=OUT_C))
    out = jax.block_until_ready(fwd(packed, x))
    assert out.shape == (BATCH, OUT_C), out.shape
    assert bool(jnp.all(jnp.isfinite(out)))

    ref = _reference_forward(params, x)
    err = float(jnp.max(jnp.abs(out - ref)) / jnp.maximum(1.0, jnp.max(jnp.abs(ref))))
    assert err < 5e-2, f"mismatch vs f32 reference: {err}"

    print("KERNEL_OK")
</pallas_src>

<mosaic_0001>
module attributes {stable_mosaic.version = 11 : i64} {
  func.func @_fused_block_kernel(%arg0: memref<512x128xbf16, #tpu.memory_space<vmem>>, %arg1: memref<1152x512xbf16, #tpu.memory_space<vmem>>, %arg2: memref<1152x128xbf16, #tpu.memory_space<vmem>>, %arg3: memref<1x128xf32, #tpu.memory_space<vmem>>, %arg4: memref<288x128xbf16, #tpu.memory_space<vmem>>, %arg5: memref<1152x128xbf16, #tpu.memory_space<vmem>>, %arg6: memref<1x128xf32, #tpu.memory_space<vmem>>, %arg7: memref<144x32xbf16, #tpu.memory_space<vmem>>, %arg8: memref<1152x128xbf16, #tpu.memory_space<vmem>>, %arg9: memref<1x128xf32, #tpu.memory_space<vmem>>, %arg10: memref<144x16xbf16, #tpu.memory_space<vmem>>, %arg11: memref<1152x128xbf16, #tpu.memory_space<vmem>>, %arg12: memref<1x128xf32, #tpu.memory_space<vmem>>, %arg13: memref<128x128xbf16, #tpu.memory_space<vmem>>, %arg14: memref<1x128xf32, #tpu.memory_space<vmem>>, %arg15: memref<16x128xf32, #tpu.memory_space<vmem>>) attributes {dimension_semantics = [], scalar_prefetch = 0 : i64, scratch_operands = 0 : i64, tpu.core_type = #tpu.core_type<tc>} {
    %c0 = arith.constant 0 : index
    %c0_0 = arith.constant 0 : index
    %0 = vector.load %arg0[%c0, %c0_0] : memref<512x128xbf16, #tpu.memory_space<vmem>>, vector<512x128xbf16>
    %c0_1 = arith.constant 0 : index
    %c0_2 = arith.constant 0 : index
    %1 = vector.load %arg1[%c0_1, %c0_2] : memref<1152x512xbf16, #tpu.memory_space<vmem>>, vector<1152x512xbf16>
    %cst = arith.constant dense<0.000000e+00> : vector<1152x128xf32>
    %2 = tpu.matmul %1, %0, %cst {dimension_numbers = #tpu.dot_dimension_numbers<[1], [0], [0], [1], [0, 0, 1, 1], [], []>} : vector<1152x512xbf16>, vector<512x128xbf16>, vector<1152x128xf32> -> vector<1152x128xf32>
    %3 = arith.truncf %2 : vector<1152x128xf32> to vector<1152x128xbf16>
    %4 = vector.extract_strided_slice %3 {offsets = [0, 0], sizes = [128, 128], strides = [1, 1]} : vector<1152x128xbf16> to vector<128x128xbf16>
    %5 = vector.extract_strided_slice %3 {offsets = [128, 0], sizes = [128, 128], strides = [1, 1]} : vector<1152x128xbf16> to vector<128x128xbf16>
    %6 = vector.extract_strided_slice %3 {offsets = [256, 0], sizes = [128, 128], strides = [1, 1]} : vector<1152x128xbf16> to vector<128x128xbf16>
    %7 = vector.extract_strided_slice %3 {offsets = [384, 0], sizes = [128, 128], strides = [1, 1]} : vector<1152x128xbf16> to vector<128x128xbf16>
    %8 = vector.extract_strided_slice %3 {offsets = [512, 0], sizes = [128, 128], strides = [1, 1]} : vector<1152x128xbf16> to vector<128x128xbf16>
    %9 = vector.extract_strided_slice %3 {offsets = [640, 0], sizes = [128, 128], strides = [1, 1]} : vector<1152x128xbf16> to vector<128x128xbf16>
    %10 = vector.extract_strided_slice %3 {offsets = [768, 0], sizes = [128, 128], strides = [1, 1]} : vector<1152x128xbf16> to vector<128x128xbf16>
    %11 = vector.extract_strided_slice %3 {offsets = [896, 0], sizes = [128, 128], strides = [1, 1]} : vector<1152x128xbf16> to vector<128x128xbf16>
    %12 = vector.extract_strided_slice %3 {offsets = [1024, 0], sizes = [128, 128], strides = [1, 1]} : vector<1152x128xbf16> to vector<128x128xbf16>
    %13 = tpu.concatenate %4, %5, %6, %7, %8, %9, %10, %11, %12 in 1 : vector<128x128xbf16>, vector<128x128xbf16>, vector<128x128xbf16>, vector<128x128xbf16>, vector<128x128xbf16>, vector<128x128xbf16>, vector<128x128xbf16>, vector<128x128xbf16>, vector<128x128xbf16> -> vector<128x1152xbf16>
    %c0_3 = arith.constant 0 : index
    %c0_4 = arith.constant 0 : index
    %14 = vector.load %arg2[%c0_3, %c0_4] : memref<1152x128xbf16, #tpu.memory_space<vmem>>, vector<1152x128xbf16>
    %cst_5 = arith.constant dense<0.000000e+00> : vector<128x128xf32>
    %15 = tpu.matmul %13, %14, %cst_5 {dimension_numbers = #tpu.dot_dimension_numbers<[1], [0], [0], [1], [0, 0, 1, 1], [], []>} : vector<128x1152xbf16>, vector<1152x128xbf16>, vector<128x128xf32> -> vector<128x128xf32>
    %c0_6 = arith.constant 0 : index
    %c0_7 = arith.constant 0 : index
    %16 = vector.load %arg3[%c0_6, %c0_7] : memref<1x128xf32, #tpu.memory_space<vmem>>, vector<1x128xf32>
    %17 = vector.broadcast %16 : vector<1x128xf32> to vector<128x128xf32>
    %18 = arith.addf %15, %17 : vector<128x128xf32>
    %cst_8 = arith.constant 0.000000e+00 : f32
    %19 = vector.broadcast %cst_8 : f32 to vector<128x128xf32>
    %20 = arith.cmpf oge, %18, %19 : vector<128x128xf32>
    %cst_9 = arith.constant 0.00999999977 : f32
    %21 = vector.broadcast %cst_9 : f32 to vector<128x128xf32>
    %22 = arith.mulf %18, %21 : vector<128x128xf32>
    %23 = arith.select %20, %18, %22 : vector<128x128xi1>, vector<128x128xf32>
    %24 = arith.truncf %23 : vector<128x128xf32> to vector<128x128xbf16>
    %c0_10 = arith.constant 0 : index
    %c0_11 = arith.constant 0 : index
    %25 = vector.load %arg4[%c0_10, %c0_11] : memref<288x128xbf16, #tpu.memory_space<vmem>>, vector<288x128xbf16>
    %cst_12 = arith.constant dense<0.000000e+00> : vector<288x128xf32>
    %26 = tpu.matmul %25, %24, %cst_12 {dimension_numbers = #tpu.dot_dimension_numbers<[1], [0], [0], [1], [0, 0, 1, 1], [], []>} : vector<288x128xbf16>, vector<128x128xbf16>, vector<288x128xf32> -> vector<288x128xf32>
    %27 = arith.truncf %26 : vector<288x128xf32> to vector<288x128xbf16>
    %28 = vector.extract_strided_slice %27 {offsets = [0, 0], sizes = [32, 128], strides = [1, 1]} : vector<288x128xbf16> to vector<32x128xbf16>
    %29 = vector.extract_strided_slice %27 {offsets = [32, 0], sizes = [32, 128], strides = [1, 1]} : vector<288x128xbf16> to vector<32x128xbf16>
    %30 = vector.extract_strided_slice %27 {offsets = [64, 0], sizes = [32, 128], strides = [1, 1]} : vector<288x128xbf16> to vector<32x128xbf16>
    %31 = vector.extract_strided_slice %27 {offsets = [96, 0], sizes = [32, 128], strides = [1, 1]} : vector<288x128xbf16> to vector<32x128xbf16>
    %32 = vector.extract_strided_slice %27 {offsets = [128, 0], sizes = [32, 128], strides = [1, 1]} : vector<288x128xbf16> to vector<32x128xbf16>
    %33 = vector.extract_strided_slice %27 {offsets = [160, 0], sizes = [32, 128], strides = [1, 1]} : vector<288x128xbf16> to vector<32x128xbf16>
    %34 = vector.extract_strided_slice %27 {offsets = [192, 0], sizes = [32, 128], strides = [1, 1]} : vector<288x128xbf16> to vector<32x128xbf16>
    %35 = vector.extract_strided_slice %27 {offsets = [224, 0], sizes = [32, 128], strides = [1, 1]} : vector<288x128xbf16> to vector<32x128xbf16>
    %36 = vector.extract_strided_slice %27 {offsets = [256, 0], sizes = [32, 128], strides = [1, 1]} : vector<288x128xbf16> to vector<32x128xbf16>
    %37 = tpu.concatenate %28, %29, %30, %31, %32, %33, %34, %35, %36 in 1 : vector<32x128xbf16>, vector<32x128xbf16>, vector<32x128xbf16>, vector<32x128xbf16>, vector<32x128xbf16>, vector<32x128xbf16>, vector<32x128xbf16>, vector<32x128xbf16>, vector<32x128xbf16> -> vector<32x1152xbf16>
    %c0_13 = arith.constant 0 : index
    %c0_14 = arith.constant 0 : index
    %38 = vector.load %arg5[%c0_13, %c0_14] : memref<1152x128xbf16, #tpu.memory_space<vmem>>, vector<1152x128xbf16>
    %cst_15 = arith.constant dense<0.000000e+00> : vector<32x128xf32>
    %39 = tpu.matmul %37, %38, %cst_15 {dimension_numbers = #tpu.dot_dimension_numbers<[1], [0], [0], [1], [0, 0, 1, 1], [], []>} : vector<32x1152xbf16>, vector<1152x128xbf16>, vector<32x128xf32> -> vector<32x128xf32>
    %c0_16 = arith.constant 0 : index
    %c0_17 = arith.constant 0 : index
    %40 = vector.load %arg6[%c0_16, %c0_17] : memref<1x128xf32, #tpu.memory_space<vmem>>, vector<1x128xf32>
    %41 = vector.broadcast %40 : vector<1x128xf32> to vector<32x128xf32>
    %42 = arith.addf %39, %41 : vector<32x128xf32>
    %cst_18 = arith.constant 0.000000e+00 : f32
    %43 = vector.broadcast %cst_18 : f32 to vector<32x128xf32>
    %44 = arith.cmpf oge, %42, %43 : vector<32x128xf32>
    %cst_19 = arith.constant 0.00999999977 : f32
    %45 = vector.broadcast %cst_19 : f32 to vector<32x128xf32>
    %46 = arith.mulf %42, %45 : vector<32x128xf32>
    %47 = arith.select %44, %42, %46 : vector<32x128xi1>, vector<32x128xf32>
    %48 = arith.truncf %47 : vector<32x128xf32> to vector<32x128xbf16>
    %c0_20 = arith.constant 0 : index
    %c0_21 = arith.constant 0 : index
    %49 = vector.load %arg7[%c0_20, %c0_21] : memref<144x32xbf16, #tpu.memory_space<vmem>>, vector<144x32xbf16>
    %cst_22 = arith.constant dense<0.000000e+00> : vector<144x128xf32>
    %50 = tpu.matmul %49, %48, %cst_22 {dimension_numbers = #tpu.dot_dimension_numbers<[1], [0], [0], [1], [0, 0, 1, 1], [], []>} : vector<144x32xbf16>, vector<32x128xbf16>, vector<144x128xf32> -> vector<144x128xf32>
    %51 = arith.truncf %50 : vector<144x128xf32> to vector<144x128xbf16>
    %52 = vector.extract_strided_slice %51 {offsets = [0, 0], sizes = [16, 128], strides = [1, 1]} : vector<144x128xbf16> to vector<16x128xbf16>
    %53 = vector.extract_strided_slice %51 {offsets = [16, 0], sizes = [16, 128], strides = [1, 1]} : vector<144x128xbf16> to vector<16x128xbf16>
    %54 = vector.extract_strided_slice %51 {offsets = [32, 0], sizes = [16, 128], strides = [1, 1]} : vector<144x128xbf16> to vector<16x128xbf16>
    %55 = vector.extract_strided_slice %51 {offsets = [48, 0], sizes = [16, 128], strides = [1, 1]} : vector<144x128xbf16> to vector<16x128xbf16>
    %56 = vector.extract_strided_slice %51 {offsets = [64, 0], sizes = [16, 128], strides = [1, 1]} : vector<144x128xbf16> to vector<16x128xbf16>
    %57 = vector.extract_strided_slice %51 {offsets = [80, 0], sizes = [16, 128], strides = [1, 1]} : vector<144x128xbf16> to vector<16x128xbf16>
    %58 = vector.extract_strided_slice %51 {offsets = [96, 0], sizes = [16, 128], strides = [1, 1]} : vector<144x128xbf16> to vector<16x128xbf16>
    %59 = vector.extract_strided_slice %51 {offsets = [112, 0], sizes = [16, 128], strides = [1, 1]} : vector<144x128xbf16> to vector<16x128xbf16>
    %60 = vector.extract_strided_slice %51 {offsets = [128, 0], sizes = [16, 128], strides = [1, 1]} : vector<144x128xbf16> to vector<16x128xbf16>
    %61 = tpu.concatenate %52, %53, %54, %55, %56, %57, %58, %59, %60 in 1 : vector<16x128xbf16>, vector<16x128xbf16>, vector<16x128xbf16>, vector<16x128xbf16>, vector<16x128xbf16>, vector<16x128xbf16>, vector<16x128xbf16>, vector<16x128xbf16>, vector<16x128xbf16> -> vector<16x1152xbf16>
    %c0_23 = arith.constant 0 : index
    %c0_24 = arith.constant 0 : index
    %62 = vector.load %arg8[%c0_23, %c0_24] : memref<1152x128xbf16, #tpu.memory_space<vmem>>, vector<1152x128xbf16>
    %cst_25 = arith.constant dense<0.000000e+00> : vector<16x128xf32>
    %63 = tpu.matmul %61, %62, %cst_25 {dimension_numbers = #tpu.dot_dimension_numbers<[1], [0], [0], [1], [0, 0, 1, 1], [], []>} : vector<16x1152xbf16>, vector<1152x128xbf16>, vector<16x128xf32> -> vector<16x128xf32>
    %c0_26 = arith.constant 0 : index
    %c0_27 = arith.constant 0 : index
    %64 = vector.load %arg9[%c0_26, %c0_27] : memref<1x128xf32, #tpu.memory_space<vmem>>, vector<1x128xf32>
    %65 = vector.broadcast %64 : vector<1x128xf32> to vector<16x128xf32>
    %66 = arith.addf %63, %65 : vector<16x128xf32>
    %cst_28 = arith.constant 0.000000e+00 : f32
    %67 = vector.broadcast %cst_28 : f32 to vector<16x128xf32>
    %68 = arith.cmpf oge, %66, %67 : vector<16x128xf32>
    %cst_29 = arith.constant 0.00999999977 : f32
    %69 = vector.broadcast %cst_29 : f32 to vector<16x128xf32>
    %70 = arith.mulf %66, %69 : vector<16x128xf32>
    %71 = arith.select %68, %66, %70 : vector<16x128xi1>, vector<16x128xf32>
    %72 = arith.truncf %71 : vector<16x128xf32> to vector<16x128xbf16>
    %c0_30 = arith.constant 0 : index
    %c0_31 = arith.constant 0 : index
    %73 = vector.load %arg10[%c0_30, %c0_31] : memref<144x16xbf16, #tpu.memory_space<vmem>>, vector<144x16xbf16>
    %cst_32 = arith.constant dense<0.000000e+00> : vector<144x128xf32>
    %74 = tpu.matmul %73, %72, %cst_32 {dimension_numbers = #tpu.dot_dimension_numbers<[1], [0], [0], [1], [0, 0, 1, 1], [], []>} : vector<144x16xbf16>, vector<16x128xbf16>, vector<144x128xf32> -> vector<144x128xf32>
    %75 = arith.truncf %74 : vector<144x128xf32> to vector<144x128xbf16>
    %76 = vector.extract_strided_slice %75 {offsets = [0, 0], sizes = [16, 128], strides = [1, 1]} : vector<144x128xbf16> to vector<16x128xbf16>
    %77 = vector.extract_strided_slice %75 {offsets = [16, 0], sizes = [16, 128], strides = [1, 1]} : vector<144x128xbf16> to vector<16x128xbf16>
    %78 = vector.extract_strided_slice %75 {offsets = [32, 0], sizes = [16, 128], strides = [1, 1]} : vector<144x128xbf16> to vector<16x128xbf16>
    %79 = vector.extract_strided_slice %75 {offsets = [48, 0], sizes = [16, 128], strides = [1, 1]} : vector<144x128xbf16> to vector<16x128xbf16>
    %80 = vector.extract_strided_slice %75 {offsets = [64, 0], sizes = [16, 128], strides = [1, 1]} : vector<144x128xbf16> to vector<16x128xbf16>
    %81 = vector.extract_strided_slice %75 {offsets = [80, 0], sizes = [16, 128], strides = [1, 1]} : vector<144x128xbf16> to vector<16x128xbf16>
    %82 = vector.extract_strided_slice %75 {offsets = [96, 0], sizes = [16, 128], strides = [1, 1]} : vector<144x128xbf16> to vector<16x128xbf16>
    %83 = vector.extract_strided_slice %75 {offsets = [112, 0], sizes = [16, 128], strides = [1, 1]} : vector<144x128xbf16> to vector<16x128xbf16>
    %84 = vector.extract_strided_slice %75 {offsets = [128, 0], sizes = [16, 128], strides = [1, 1]} : vector<144x128xbf16> to vector<16x128xbf16>
    %85 = tpu.concatenate %76, %77, %78, %79, %80, %81, %82, %83, %84 in 1 : vector<16x128xbf16>, vector<16x128xbf16>, vector<16x128xbf16>, vector<16x128xbf16>, vector<16x128xbf16>, vector<16x128xbf16>, vector<16x128xbf16>, vector<16x128xbf16>, vector<16x128xbf16> -> vector<16x1152xbf16>
    %c0_33 = arith.constant 0 : index
    %c0_34 = arith.constant 0 : index
    %86 = vector.load %arg11[%c0_33, %c0_34] : memref<1152x128xbf16, #tpu.memory_space<vmem>>, vector<1152x128xbf16>
    %cst_35 = arith.constant dense<0.000000e+00> : vector<16x128xf32>
    %87 = tpu.matmul %85, %86, %cst_35 {dimension_numbers = #tpu.dot_dimension_numbers<[1], [0], [0], [1], [0, 0, 1, 1], [], []>} : vector<16x1152xbf16>, vector<1152x128xbf16>, vector<16x128xf32> -> vector<16x128xf32>
    %c0_36 = arith.constant 0 : index
    %c0_37 = arith.constant 0 : index
    %88 = vector.load %arg12[%c0_36, %c0_37] : memref<1x128xf32, #tpu.memory_space<vmem>>, vector<1x128xf32>
    %89 = vector.broadcast %88 : vector<1x128xf32> to vector<16x128xf32>
    %90 = arith.addf %87, %89 : vector<16x128xf32>
    %cst_38 = arith.constant 0.000000e+00 : f32
    %91 = vector.broadcast %cst_38 : f32 to vector<16x128xf32>
    %92 = arith.cmpf oge, %90, %91 : vector<16x128xf32>
    %cst_39 = arith.constant 0.00999999977 : f32
    %93 = vector.broadcast %cst_39 : f32 to vector<16x128xf32>
    %94 = arith.mulf %90, %93 : vector<16x128xf32>
    %95 = arith.select %92, %90, %94 : vector<16x128xi1>, vector<16x128xf32>
    %96 = arith.truncf %95 : vector<16x128xf32> to vector<16x128xbf16>
    %c0_40 = arith.constant 0 : index
    %c0_41 = arith.constant 0 : index
    %97 = vector.load %arg13[%c0_40, %c0_41] : memref<128x128xbf16, #tpu.memory_space<vmem>>, vector<128x128xbf16>
    %cst_42 = arith.constant dense<0.000000e+00> : vector<16x128xf32>
    %98 = tpu.matmul %96, %97, %cst_42 {dimension_numbers = #tpu.dot_dimension_numbers<[1], [0], [0], [1], [0, 0, 1, 1], [], []>} : vector<16x128xbf16>, vector<128x128xbf16>, vector<16x128xf32> -> vector<16x128xf32>
    %c0_43 = arith.constant 0 : index
    %c0_44 = arith.constant 0 : index
    %99 = vector.load %arg14[%c0_43, %c0_44] : memref<1x128xf32, #tpu.memory_space<vmem>>, vector<1x128xf32>
    %100 = vector.broadcast %99 : vector<1x128xf32> to vector<16x128xf32>
    %101 = arith.addf %98, %100 : vector<16x128xf32>
    %c0_45 = arith.constant 0 : index
    %c0_46 = arith.constant 0 : index
    %102 = vector.load %arg15[%c0_45, %c0_46] : memref<16x128xf32, #tpu.memory_space<vmem>>, vector<16x128xf32>
    tpu.vector_store %arg15[%c0_45, %c0_46], %101 {strides = array<i32>} : memref<16x128xf32, #tpu.memory_space<vmem>>, vector<16x128xf32>,
    return
  }
}

</mosaic_0001>

<bundles_post_ra>
// kernel: gradual_style_block_forward.1
= control target key start
LH: loop header
LB: loop body
LE: loop exit
PB: predicated region body
PF: predicated region fallthrough
CT: control target
= control target key end

     0   :  { %20 = vsyncpa [#allocation3], 0  ;;  %s14262_s0 = inlined_call_operand.vmem [shape: bf16[512,128], index: 0, kind: input, shape index: {}]   ;;  %s14263_s1 = inlined_call_operand.hbm [shape: bf16[1152,512], index: 1, kind: input, shape index: {}]   ;;  %s14264_s2 = inlined_call_operand.hbm [shape: bf16[1152,128], index: 2, kind: input, shape index: {}]   ;;  %s14265_s3 = inlined_call_operand.hbm [shape: f32[1,128], index: 3, kind: input, shape index: {}]   ;;  %s14266_s4 = inlined_call_operand.hbm [shape: bf16[288,128], index: 4, kind: input, shape index: {}]   ;;  %s14267_s5 = inlined_call_operand.hbm [shape: bf16[1152,128], index: 5, kind: input, shape index: {}]   ;;  %s14268_s6 = inlined_call_operand.hbm [shape: f32[1,128], index: 6, kind: input, shape index: {}]   ;;  %s14269_s7 = inlined_call_operand.vmem [shape: bf16[144,32], index: 7, kind: input, shape index: {}]   ;;  %s14270_s8 = inlined_call_operand.hbm [shape: bf16[1152,128], index: 8, kind: input, shape index: {}]   ;;  %s14271_s9 = inlined_call_operand.hbm [shape: f32[1,128], index: 9, kind: input, shape index: {}]   ;;  %s14272_s10 = inlined_call_operand.vmem [shape: bf16[144,16], index: 10, kind: input, shape index: {}]   ;;  %s14273_s11 = inlined_call_operand.hbm [shape: bf16[1152,128], index: 11, kind: input, shape index: {}]   ;;  %s14274_s12 = inlined_call_operand.hbm [shape: f32[1,128], index: 12, kind: input, shape index: {}]   ;;  %s14275_s13 = inlined_call_operand.hbm [shape: bf16[128,128], index: 13, kind: input, shape index: {}]   ;;  %s14276_s14 = inlined_call_operand.hbm [shape: f32[1,128], index: 14, kind: input, shape index: {}]   ;;  %s14277_s15 = inlined_call_operand.vmem [shape: f32[16,128], index: 15, kind: output, shape index: {}]  }
   0x1   :  { %21 = vsyncpa [#allocation5], 0 }
   0x2   :  { %22 = vsyncpa [#allocation8], 0 }
   0x3   :  { %23 = vsyncpa [#allocation11], 0 }
   0x4   :  { %24 = vsyncpa [#allocation14], 0 }
   0x5   :  { %25 = vsyncpa [#allocation17], 0  ;;  %s46_s20 = sshll.u32 %s14264_s2, 4  ;;  %s47_s20 = int_to_ptr.hbm [resolvable:$true] %s46_s20 }
   0x6   :  { %26 = vsyncpa [#allocation20], 0  ;;  %s12057_s21 = smov [#allocation4]   ;;  %s70_s25 = sshll.u32 %s14266_s4, 4  ;;  %s71_s25 = int_to_ptr.hbm [resolvable:$true] %s70_s25 }
   0x7   :  { %s48_s22 = sshll.u32 %s12057_s21, 4  ;;  %s12058_s26 = smov 64   ;;  %s49_s22 = int_to_ptr.vmem [resolvable:$true] %s48_s22 }
   0x8   :  { %s12059_s27 = smov 4   ;;  %s12060_s28 = smov [#allocation7]  }
   0x9   :  { %54 = dma.hbm_to_vmem [thread:$0]  %s47_s20, 9216, %s49_s22, [#allocation5], %s12058_s26, %s12058_s26, %s12059_s27  }
   0xa   :  { %s72_s29 = sshll.u32 %s12060_s28, 4  ;;  %s97_s16 = sshll.u32 %s14268_s6, 4  ;;  %s73_s29 = int_to_ptr.vmem [resolvable:$true] %s72_s29  ;;  %s98_s16 = int_to_ptr.hbm [resolvable:$true] %s97_s16 }
   0xb   :  { %78 = dma.hbm_to_vmem [thread:$0]  %s71_s25, 2304, %s73_s29, [#allocation8], %s12058_s26, %s12058_s26, %s12059_s27  }
   0xc   :  { %s123_s18 = sshll.u32 %s14271_s9, 4  ;;  %s12061_s19 = smov [#allocation10]   ;;  %s124_s18 = int_to_ptr.hbm [resolvable:$true] %s123_s18 }
   0xd   :  { %s99_s21 = sshll.u32 %s12061_s19, 4  ;;  %s12062_s20 = smov [#allocation13]   ;;  %s100_s21 = int_to_ptr.vmem [resolvable:$true] %s99_s21 }
   0xe   :  { %102 = dma.hbm_to_vmem [thread:$0]  %s98_s16, 16, %s100_s21, [#allocation11]  }
   0xf   :  { %s125_s22 = sshll.u32 %s12062_s20, 4  ;;  %s149_s6 = sshll.u32 %s14274_s12, 4  ;;  %s126_s22 = int_to_ptr.vmem [resolvable:$true] %s125_s22  ;;  %s150_s6 = int_to_ptr.hbm [resolvable:$true] %s149_s6 }
  0x10   :  { %128 = dma.hbm_to_vmem [thread:$0]  %s124_s18, 16, %s126_s22, [#allocation14]  }
  0x11   :  { %s33_s29 = sshll.u32 %s14263_s1, 4  ;;  %s12063_s30 = smov [#allocation16]   ;;  %s34_s29 = int_to_ptr.hbm [resolvable:$true] %s33_s29 }
  0x12   :  { %s151_s9 = sshll.u32 %s12063_s30, 4  ;;  %s12064_s2 = smov [#allocation2]   ;;  %s152_s9 = int_to_ptr.vmem [resolvable:$true] %s151_s9 }
  0x13   :  { %154 = dma.hbm_to_vmem [thread:$0]  %s150_s6, 16, %s152_s9, [#allocation17]  }
  0x14   :  { %s35_s16 = sshll.u32 %s12064_s2, 4  ;;  %s12065_s4 = smov 256   ;;  %s36_s16 = int_to_ptr.vmem [resolvable:$true] %s35_s16 }
  0x15   :  { %s12066_s17 = smov 16   ;;  %s60_s21 = sshll.u32 %s14265_s3, 4  ;;  %s61_s21 = int_to_ptr.hbm [resolvable:$true] %s60_s21 }
  0x16   :  { %41 = dma.hbm_to_vmem [thread:$0]  %s34_s29, 36864, %s36_s16, [#allocation3], %s12065_s4, %s12065_s4, %s12066_s17  }
  0x17   :  { %s12067_s18 = smov [#allocation6]   ;;  %s83_s23 = sshll.u32 %s14267_s5, 4  ;;  %s84_s23 = int_to_ptr.hbm [resolvable:$true] %s83_s23 }
  0x18   :  { %s62_s20 = sshll.u32 %s12067_s18, 4  ;;  %s12068_s24 = smov [#allocation9]   ;;  %s63_s20 = int_to_ptr.vmem [resolvable:$true] %s62_s20 }
  0x19   :  { %65 = dma.hbm_to_vmem [thread:$0]  %s61_s21, 16, %s63_s20, [#allocation5]  }
  0x1a   :  { %s85_s6 = sshll.u32 %s12068_s24, 4  ;;  %s109_s29 = sshll.u32 %s14270_s8, 4  ;;  %s86_s6 = int_to_ptr.vmem [resolvable:$true] %s85_s6  ;;  %s110_s29 = int_to_ptr.hbm [resolvable:$true] %s109_s29 }
  0x1b   :  { %91 = dma.hbm_to_vmem [thread:$0]  %s84_s23, 9216, %s86_s6, [#allocation8], %s12058_s26, %s12058_s26, %s12059_s27  }
  0x1c   :  { %s135_s9 = sshll.u32 %s14273_s11, 4  ;;  %s12069_s2 = smov [#allocation12]   ;;  %s136_s9 = int_to_ptr.hbm [resolvable:$true] %s135_s9 }
  0x1d   :  { %s111_s5 = sshll.u32 %s12069_s2, 4  ;;  %s12070_s16 = smov [#allocation15]   ;;  %s112_s5 = int_to_ptr.vmem [resolvable:$true] %s111_s5 }
  0x1e   :  { %117 = dma.hbm_to_vmem [thread:$0]  %s110_s29, 9216, %s112_s5, [#allocation11], %s12058_s26, %s12058_s26, %s12059_s27  }
  0x1f   :  { %s137_s8 = sshll.u32 %s12070_s16, 4  ;;  %s159_s19 = sshll.u32 %s14275_s13, 4  ;;  %s138_s8 = int_to_ptr.vmem [resolvable:$true] %s137_s8  ;;  %s160_s19 = int_to_ptr.hbm [resolvable:$true] %s159_s19 }
  0x20   :  { %143 = dma.hbm_to_vmem [thread:$0]  %s136_s9, 9216, %s138_s8, [#allocation14], %s12058_s26, %s12058_s26, %s12059_s27  }
  0x21   :  { %s173_s21 = sshll.u32 %s14276_s14, 4  ;;  %s12071_s18 = smov [#allocation18]   ;;  %s174_s21 = int_to_ptr.hbm [resolvable:$true] %s173_s21 }
  0x22   :  { %s161_s20 = sshll.u32 %s12071_s18, 4  ;;  %s12072_s1 = smov [#allocation19]   ;;  %s162_s20 = int_to_ptr.vmem [resolvable:$true] %s161_s20 }
  0x23   :  { %167 = dma.hbm_to_vmem [thread:$0]  %s160_s19, 1024, %s162_s20, [#allocation17], %s12058_s26, %s12058_s26, %s12059_s27  }
  0x24   :  { %s175_s13 = sshll.u32 %s12072_s1, 4  ;;  %s176_s13 = int_to_ptr.vmem [resolvable:$true] %s175_s13 }
  0x25   :  { %178 = dma.hbm_to_vmem [thread:$0]  %s174_s21, 16, %s176_s13, [#allocation20]  }
  0x26   :  { %12043 = dma.done.wait [#allocation3], 36864  }
  0x27   :  { %12044 = vsyncadd [#allocation3], 4294930432 }
  0x28   :  { %12045 = dma.done.wait [#allocation5], 9232  }
  0x29   :  { %12046 = vsyncadd [#allocation5], 4294958064 }
  0x2a   :  { %12047 = dma.done.wait [#allocation8], 11520  }
  0x2b   :  { %12048 = vsyncadd [#allocation8], 4294955776 }
  0x2c   :  { %12049 = dma.done.wait [#allocation11], 9232  }
  0x2d   :  { %12050 = vsyncadd [#allocation11], 4294958064 }
  0x2e   :  { %12051 = dma.done.wait [#allocation14], 9232  }
  0x2f   :  { %12052 = vsyncadd [#allocation14], 4294958064 }
  0x30   :  { %12053 = dma.done.wait [#allocation17], 1040  }
  0x31   :  { %12054 = vsyncadd [#allocation17], 4294966256 }
  0x32   :  { %12055 = dma.done.wait [#allocation20], 16  }
  0x33   :  { %12056 = vsyncadd [#allocation20], 4294967280  ;;  %v11081_v0 = vld [vmem:[%s14262_s0 + $0x38] sm:$0xff]  ;;  %v11080_v3 = vld [vmem:[%s14262_s0 + $0x30] sm:$0xff] }
  0x34   :  { %v11097_v1 = vld [vmem:[%s14262_s0 + $0xb8] sm:$0xff]  ;;  %2212 = vmatpush.bf16.msra.mxu0 %v11081_v0  ;;  %11726 = vmatpush.bf16.msra.mxu1 %v11081_v0  ;;  %v11096_v4 = vld [vmem:[%s14262_s0 + $0xb0] sm:$0xff]  ;;  %v11079_v6 = vld [vmem:[%s14262_s0 + $0x28] sm:$0xff] }
  0x35   :  { %v11105_v2 = vld [vmem:[%s14262_s0 + $0xf8] sm:$0xff]  ;;  %2950 = vmatpush.bf16.msra.mxu2 %v11097_v1  ;;  %v11104_v5 = vld [vmem:[%s14262_s0 + $0xf0] sm:$0xff]  ;;  %v11095_v7 = vld [vmem:[%s14262_s0 + $0xa8] sm:$0xff] }
  0x36   :  { %3319 = vmatpush.bf16.msra.mxu3 %v11105_v2  ;;  %v11103_v8 = vld [vmem:[%s14262_s0 + $0xe8] sm:$0xff]  ;;  %v11078_v9 = vld [vmem:[%s14262_s0 + $0x20] sm:$0xff]  ;;  %v11077_v12 = vld [vmem:[%s14262_s0 + $0x18] sm:$0xff] }
  0x37   :  { %v11094_v10 = vld [vmem:[%s14262_s0 + $0xa0] sm:$0xff]  ;;  %v11093_v13 = vld [vmem:[%s14262_s0 + $0x98] sm:$0xff]  ;;  %v11076_v15 = vld [vmem:[%s14262_s0 + $0x10] sm:$0xff] }
  0x38   :  { %2213 = vmatpush.bf16.msra.mxu0 %v11080_v3  ;;  %11727 = vmatpush.bf16.msra.mxu1 %v11080_v3  ;;  %v11102_v11 = vld [vmem:[%s14262_s0 + $0xe0] sm:$0xff]  ;;  %v11101_v14 = vld [vmem:[%s14262_s0 + $0xd8] sm:$0xff]  ;;  %v11092_v16 = vld [vmem:[%s14262_s0 + $0x90] sm:$0xff] }
  0x39   :  { %2951 = vmatpush.bf16.msra.mxu2 %v11096_v4  ;;  %v11100_v17 = vld [vmem:[%s14262_s0 + $0xd0] sm:$0xff]  ;;  %v11075_v18 = vld [vmem:[%s14262_s0 + $0x8] sm:$0xff]  ;;  %v11074_v21 = vld [vmem:[%s14262_s0] sm:$0xff] }
  0x3a   :  { %3320 = vmatpush.bf16.msra.mxu3 %v11104_v5  ;;  %v11091_v19 = vld [vmem:[%s14262_s0 + $0x88] sm:$0xff]  ;;  %v11090_v22 = vld [vmem:[%s14262_s0 + $0x80] sm:$0xff]  ;;  %v11108_v25 = vld [vmem:[#allocation2 + $0xc] sm:$0xf0] }
  0x3b   :  { %v11099_v20 = vld [vmem:[%s14262_s0 + $0xc8] sm:$0xff]  ;;  %v11098_v23 = vld [vmem:[%s14262_s0 + $0xc0] sm:$0xff]  ;;  %v11388_v27 = vld [vmem:[#allocation2 + $0x8cc] sm:$0xf0] }
  0x3c   :  { %2214 = vmatpush.bf16.msra.mxu0 %v11079_v6  ;;  %11728 = vmatpush.bf16.msra.mxu1 %v11079_v6  ;;  %v8450_v24 = vld [vmem:[#allocation2] sm:$0xf]  ;;  %v8458_v28 = vld [vmem:[#allocation2 + $0x8] sm:$0xf]  ;;  %v11109_v29 = vld [vmem:[#allocation2 + $0x14] sm:$0xf0] }
  0x3d   :  { %2952 = vmatpush.bf16.msra.mxu2 %v11095_v7  ;;  %v9570_v26 = vld [vmem:[#allocation2 + $0x8c0] sm:$0xf]  ;;  %v11107_v30 = vld [vmem:[#allocation2 + $0xc] sm:$0xf]  ;;  %v8460_v31 = vld [vmem:[#allocation2 + $0x18] sm:$0xf0]  ;;  %v8451_v33 = vor.u32 %v11108_v25, %v8450_v24  ;;  %v8459_v35 = vor.u32 %v11109_v29, %v8458_v28 }
  0x3e   :  { %3321 = vmatpush.bf16.msra.mxu3 %v11103_v8  ;;  %v11089_v32 = vld [vmem:[%s14262_s0 + $0x78] sm:$0xff]  ;;  %v9571_v34 = vor.u32 %v11388_v27, %v9570_v26  ;;  %v8463_v36 = vor.u32 %v11107_v30, %v8460_v31  ;;  %v11088_v37 = vld [vmem:[%s14262_s0 + $0x70] sm:$0xff]  ;;  %v11087_v38 = vld [vmem:[%s14262_s0 + $0x68] sm:$0xff] }
  0x3f   :  { %v11086_v39 = vld [vmem:[%s14262_s0 + $0x60] sm:$0xff]  ;;  %v11112_v41 = vld [vmem:[#allocation2 + $0x2c] sm:$0xf0]  ;;  %v8474_v44 = vld [vmem:[#allocation2 + $0x28] sm:$0xf] }
  0x40   :  { %2215 = vmatpush.bf16.msra.mxu0 %v11078_v9  ;;  %11729 = vmatpush.bf16.msra.mxu1 %v11078_v9  ;;  %v8466_v40 = vld [vmem:[#allocation2 + $0x20] sm:$0xf]  ;;  %v11392_v43 = vld [vmem:[#allocation2 + $0x8ec] sm:$0xf0]  ;;  %v11113_v45 = vld [vmem:[#allocation2 + $0x34] sm:$0xf0] }
  0x41   :  { %2953 = vmatpush.bf16.msra.mxu2 %v11094_v10  ;;  %v9586_v42 = vld [vmem:[#allocation2 + $0x8e0] sm:$0xf]  ;;  %v11111_v46 = vld [vmem:[#allocation2 + $0x2c] sm:$0xf]  ;;  %v8476_v47 = vld [vmem:[#allocation2 + $0x38] sm:$0xf0]  ;;  %v8467_v49 = vor.u32 %v11112_v41, %v8466_v40  ;;  %v8475_v51 = vor.u32 %v11113_v45, %v8474_v44 }
  0x42   :  { %3322 = vmatpush.bf16.msra.mxu3 %v11102_v11  ;;  %v11085_v48 = vld [vmem:[%s14262_s0 + $0x58] sm:$0xff]  ;;  %v9587_v50 = vor.u32 %v11392_v43, %v9586_v42  ;;  %v8479_v52 = vor.u32 %v11111_v46, %v8476_v47  ;;  %v11084_v53 = vld [vmem:[%s14262_s0 + $0x50] sm:$0xff]  ;;  %v11083_v54 = vld [vmem:[%s14262_s0 + $0x48] sm:$0xff] }
  0x43   :  { %v11082_v55 = vld [vmem:[%s14262_s0 + $0x40] sm:$0xff]  ;;  %v11116_v57 = vld [vmem:[#allocation2 + $0x4c] sm:$0xf0]  ;;  %v8452_v59 = vld [vmem:[#allocation2 + $0x10] sm:$0xf0] }
  0x44   :  { %2216 = vmatpush.bf16.msra.mxu0 %v11077_v12  ;;  %11730 = vmatpush.bf16.msra.mxu1 %v11077_v12  ;;  %v8482_v56 = vld [vmem:[#allocation2 + $0x40] sm:$0xf]  ;;  %v11106_v58 = vld [vmem:[#allocation2 + $0x4] sm:$0xf]  ;;  %v8490_v60 = vld [vmem:[#allocation2 + $0x48] sm:$0xf] }
  0x45   :  { %2954 = vmatpush.bf16.msra.mxu2 %v11093_v13  ;;  %v11117_v61 = vld [vmem:[#allocation2 + $0x54] sm:$0xf0]  ;;  %v11115_v62 = vld [vmem:[#allocation2 + $0x4c] sm:$0xf]  ;;  %v8492_v63 = vld [vmem:[#allocation2 + $0x58] sm:$0xf0]  ;;  %v8483_v0 = vor.u32 %v11116_v57, %v8482_v56  ;;  %v8455_v1 = vor.u32 %v11106_v58, %v8452_v59 }
  0x46   :  { %3323 = vmatpush.bf16.msra.mxu3 %v11101_v14  ;;  %v8491_v2 = vor.u32 %v11117_v61, %v8490_v60  ;;  %v8495_v3 = vor.u32 %v11115_v62, %v8492_v63  ;;  %v8498_v4 = vld [vmem:[#allocation2 + $0x60] sm:$0xf]  ;;  %v11120_v5 = vld [vmem:[#allocation2 + $0x6c] sm:$0xf0]  ;;  %v11110_v6 = vld [vmem:[#allocation2 + $0x24] sm:$0xf] }
  0x47   :  { %v8468_v7 = vld [vmem:[#allocation2 + $0x30] sm:$0xf0]  ;;  %v8506_v8 = vld [vmem:[#allocation2 + $0x68] sm:$0xf]  ;;  %v11121_v9 = vld [vmem:[#allocation2 + $0x74] sm:$0xf0]  ;;  %v8499_v12 = vor.u32 %v11120_v5, %v8498_v4 }
  0x48   :  { %2217 = vmatpush.bf16.msra.mxu0 %v11076_v15  ;;  %11731 = vmatpush.bf16.msra.mxu1 %v11076_v15  ;;  %v11119_v10 = vld [vmem:[#allocation2 + $0x6c] sm:$0xf]  ;;  %v8508_v11 = vld [vmem:[#allocation2 + $0x78] sm:$0xf0]  ;;  %v8471_v13 = vor.u32 %v11110_v6, %v8468_v7  ;;  %v8507_v14 = vor.u32 %v11121_v9, %v8506_v8  ;;  %v8530_v29 = vld [vmem:[#allocation2 + $0xa0] sm:$0xf] }
  0x49   :  { %2955 = vmatpush.bf16.msra.mxu2 %v11092_v16  ;;  %v8511_v15 = vor.u32 %v11119_v10, %v8508_v11  ;;  %v8514_v16 = vld [vmem:[#allocation2 + $0x80] sm:$0xf]  ;;  %v11401_v28 = vld [vmem:[#allocation4 + $0x38] sm:$0xff]  ;;  %v11128_v30 = vld [vmem:[#allocation2 + $0xac] sm:$0xf0] }
  0x4a   :  { %3324 = vmatpush.bf16.msra.mxu3 %v11100_v17  ;;  %v11124_v17 = vld [vmem:[#allocation2 + $0x8c] sm:$0xf0]  ;;  %v11118_v31 = vld [vmem:[#allocation2 + $0x64] sm:$0xf]  ;;  %v8546_v41 = vld [vmem:[#allocation2 + $0xc0] sm:$0xf] }
  0x4b   :  { %v8515_v24 = vor.u32 %v11124_v17, %v8514_v16  ;;  %v11132_v42 = vld [vmem:[#allocation2 + $0xcc] sm:$0xf0]  ;;  %v11122_v43 = vld [vmem:[#allocation2 + $0x84] sm:$0xf]  ;;  %v8516_v44 = vld [vmem:[#allocation2 + $0x90] sm:$0xf0] }
  0x4c   :  { %2218 = vmatpush.bf16.msra.mxu0 %v11075_v18  ;;  %11732 = vmatpush.bf16.msra.mxu1 %v11075_v18  ;;  %v11114_v18 = vld [vmem:[#allocation2 + $0x44] sm:$0xf]  ;;  %v8554_v45 = vld [vmem:[#allocation2 + $0xc8] sm:$0xf]  ;;  %v11133_v46 = vld [vmem:[#allocation2 + $0xd4] sm:$0xf0] }
  0x4d   :  { %2956 = vmatpush.bf16.msra.mxu2 %v11091_v19  ;;  %v8484_v19 = vld [vmem:[#allocation2 + $0x50] sm:$0xf0]  ;;  %v11131_v47 = vld [vmem:[#allocation2 + $0xcc] sm:$0xf]  ;;  %v8570_v57 = vld [vmem:[#allocation2 + $0xe8] sm:$0xf] }
  0x4e   :  { %3325 = vmatpush.bf16.msra.mxu3 %v11099_v20  ;;  %v8522_v20 = vld [vmem:[#allocation2 + $0x88] sm:$0xf]  ;;  %v8487_v25 = vor.u32 %v11114_v18, %v8484_v19  ;;  %v8532_v56 = vld [vmem:[#allocation2 + $0xb0] sm:$0xf0]  ;;  %v11137_v58 = vld [vmem:[#allocation2 + $0xf4] sm:$0xf0] }
  0x4f   :  { %v11135_v59 = vld [vmem:[#allocation2 + $0xec] sm:$0xf]  ;;  %v8572_v60 = vld [vmem:[#allocation2 + $0xf8] sm:$0xf0]  ;;  %v8571_v63 = vor.u32 %v11137_v58, %v8570_v57  ;;  %v8548_v4 = vld [vmem:[#allocation2 + $0xd0] sm:$0xf0] }
  0x50   :  { %2219 = vmatpush.bf16.msra.mxu0 %v11074_v21  ;;  %11733 = vmatpush.bf16.msra.mxu1 %v11074_v21  ;;  %v11125_v21 = vld [vmem:[#allocation2 + $0x94] sm:$0xf0]  ;;  %v8586_v5 = vld [vmem:[#allocation2 + $0x108] sm:$0xf]  ;;  %v11139_v7 = vld [vmem:[#allocation2 + $0x10c] sm:$0xf] }
  0x51   :  { %2957 = vmatpush.bf16.msra.mxu2 %v11090_v22  ;;  %v11123_v22 = vld [vmem:[#allocation2 + $0x8c] sm:$0xf]  ;;  %v8523_v26 = vor.u32 %v11125_v21, %v8522_v20  ;;  %v11141_v6 = vld [vmem:[#allocation2 + $0x114] sm:$0xf0]  ;;  %v8588_v8 = vld [vmem:[#allocation2 + $0x118] sm:$0xf0] }
  0x52   :  { %3326 = vmatpush.bf16.msra.mxu3 %v11098_v23  ;;  %v8524_v23 = vld [vmem:[#allocation2 + $0x98] sm:$0xf0]  ;;  %v8594_v19 = vld [vmem:[#allocation2 + $0x120] sm:$0xf]  ;;  %v11144_v20 = vld [vmem:[#allocation2 + $0x12c] sm:$0xf0] }
  0x53   :  { %2220 = vmatmul.bf16.vlgmr.msra.gmra.mxu0 %v8451_v33  ;;  %2570 = vmatmul.bf16.vlgmr.msra.gmra.mxu1 %v9571_v34  ;;  %v8527_v27 = vor.u32 %v11123_v22, %v8524_v23  ;;  %v8538_v33 = vld [vmem:[#allocation2 + $0xa8] sm:$0xf]  ;;  %v11129_v34 = vld [vmem:[#allocation2 + $0xb4] sm:$0xf0]  ;;  %v11134_v21 = vld [vmem:[#allocation2 + $0xe4] sm:$0xf] }
  0x54   :  { %2581 = vmatpush.bf16.msrb.mxu1 %v11089_v32  ;;  %2958 = vmatmul.bf16.vlgmr.msra.gmra.mxu2 %v8459_v35  ;;  %v8500_v32 = vld [vmem:[#allocation2 + $0x70] sm:$0xf0]  ;;  %v11127_v35 = vld [vmem:[#allocation2 + $0xac] sm:$0xf]  ;;  %v8602_v23 = vld [vmem:[#allocation2 + $0x128] sm:$0xf] }
  0x55   :  { %3327 = vmatmul.bf16.vlgmr.msra.gmra.mxu3 %v8463_v36  ;;  %4844 = vmatpush.bf16.msrb.mxu0 %v11401_v28  ;;  %v8540_v36 = vld [vmem:[#allocation2 + $0xb8] sm:$0xf0]  ;;  %v8564_v22 = vld [vmem:[#allocation2 + $0xf0] sm:$0xf0] }
  0x56   :  { %v8543_v40 = vor.u32 %v11127_v35, %v8540_v36 }
  0x58   :  { %2582 = vmatpush.bf16.msrb.mxu1 %v11088_v37  ;;  %v8531_v37 = vor.u32 %v11128_v30, %v8530_v29  ;;  %v8595_v29 = vor.u32 %v11144_v20, %v8594_v19  ;;  %v8567_v30 = vor.u32 %v11134_v21, %v8564_v22 }
  0x5c   :  { %2583 = vmatpush.bf16.msrb.mxu1 %v11087_v38  ;;  %v8503_v38 = vor.u32 %v11118_v31, %v8500_v32 }
  0x60   :  { %2584 = vmatpush.bf16.msrb.mxu1 %v11086_v39  ;;  %v8539_v39 = vor.u32 %v11129_v34, %v8538_v33 }
  0x63   :  { %2225 = vmatmul.bf16.gmra.mxu0 %v8467_v49  ;;  %2575 = vmatmul.bf16.gmra.mxu1 %v9587_v50  ;;  %v8547_v49 = vor.u32 %v11132_v42, %v8546_v41  ;;  %v8519_v50 = vor.u32 %v11122_v43, %v8516_v44  ;;  %v11138_v41 = vld [vmem:[#allocation2 + $0x104] sm:$0xf]  ;;  %v8580_v42 = vld [vmem:[#allocation2 + $0x110] sm:$0xf0]  ;;  %v8618_v43 = vld [vmem:[#allocation2 + $0x148] sm:$0xf] }
  0x64   :  { %2585 = vmatpush.bf16.msrb.mxu1 %v11085_v48  ;;  %2963 = vmatmul.bf16.gmra.mxu2 %v8475_v51  ;;  %v8556_v48 = vld [vmem:[#allocation2 + $0xd8] sm:$0xf0]  ;;  %v8555_v51 = vor.u32 %v11133_v46, %v8554_v45  ;;  %v11149_v44 = vld [vmem:[#allocation2 + $0x154] sm:$0xf0]  ;;  %v11147_v45 = vld [vmem:[#allocation2 + $0x14c] sm:$0xf] }
  0x65   :  { %3332 = vmatmul.bf16.gmra.mxu3 %v8479_v52  ;;  %v8559_v52 = vor.u32 %v11131_v47, %v8556_v48  ;;  %v8620_v46 = vld [vmem:[#allocation2 + $0x158] sm:$0xf0] }
  0x66   :  { %v8623_v57 = vor.u32 %v11147_v45, %v8620_v46  ;;  %v11157_v46 = vld [vmem:[#allocation2 + $0x194] sm:$0xf0] }
  0x68   :  { %2586 = vmatpush.bf16.msrb.mxu1 %v11084_v53  ;;  %v8562_v53 = vld [vmem:[#allocation2 + $0xe0] sm:$0xf] }
  0x6c   :  { %2587 = vmatpush.bf16.msrb.mxu1 %v11083_v54  ;;  %v11136_v54 = vld [vmem:[#allocation2 + $0xec] sm:$0xf0] }
  0x6d   :  { %v8563_v61 = vor.u32 %v11136_v54, %v8562_v53  ;;  %v11409_v53 = vld [vmem:[#allocation4 + $0x78] sm:$0xff] }
  0x70   :  { %2588 = vmatpush.bf16.msrb.mxu1 %v11082_v55  ;;  %v11126_v55 = vld [vmem:[#allocation2 + $0xa4] sm:$0xf] }
  0x71   :  { %v8535_v62 = vor.u32 %v11126_v55, %v8532_v56  ;;  %v8619_v56 = vor.u32 %v11149_v44, %v8618_v43  ;;  %v8612_v43 = vld [vmem:[#allocation2 + $0x150] sm:$0xf0]  ;;  %v8650_v44 = vld [vmem:[#allocation2 + $0x188] sm:$0xf] }
  0x73   :  { %2230 = vmatmul.bf16.gmra.mxu0 %v8483_v0  ;;  %2589 = vmatmul.bf16.vlgmr.msrb.gmra.mxu1 %v8455_v1  ;;  %v8575_v0 = vor.u32 %v11135_v59, %v8572_v60  ;;  %v8578_v1 = vld [vmem:[#allocation2 + $0x100] sm:$0xf] }
  0x74   :  { %2968 = vmatmul.bf16.gmra.mxu2 %v8491_v2  ;;  %v11140_v2 = vld [vmem:[#allocation2 + $0x10c] sm:$0xf0]  ;;  %4893 = vmatpush.bf16.msra.mxu1 %v11409_v53 }
  0x75   :  { %3337 = vmatmul.bf16.gmra.mxu3 %v8495_v3  ;;  %v11130_v3 = vld [vmem:[#allocation2 + $0xc4] sm:$0xf]  ;;  %v8579_v9 = vor.u32 %v11140_v2, %v8578_v1 }
  0x76   :  { %v8551_v10 = vor.u32 %v11130_v3, %v8548_v4  ;;  %v8626_v3 = vld [vmem:[#allocation2 + $0x160] sm:$0xf]  ;;  %v11152_v4 = vld [vmem:[#allocation2 + $0x16c] sm:$0xf0] }
  0x77   :  { %v8627_v19 = vor.u32 %v11152_v4, %v8626_v3 }
  0x83   :  { %2235 = vmatmul.bf16.gmra.mxu0 %v8499_v12  ;;  %2594 = vmatmul.bf16.gmra.mxu1 %v8471_v13  ;;  %v8587_v13 = vor.u32 %v11141_v6, %v8586_v5  ;;  %v11142_v5 = vld [vmem:[#allocation2 + $0x124] sm:$0xf]  ;;  %v8596_v6 = vld [vmem:[#allocation2 + $0x130] sm:$0xf0] }
  0x84   :  { %2973 = vmatmul.bf16.gmra.mxu2 %v8507_v14  ;;  %v8591_v14 = vor.u32 %v11139_v7, %v8588_v8  ;;  %v8634_v7 = vld [vmem:[#allocation2 + $0x168] sm:$0xf]  ;;  %v8599_v20 = vor.u32 %v11142_v5, %v8596_v6 }
  0x85   :  { %3342 = vmatmul.bf16.gmra.mxu3 %v8511_v15 }
  0x93   :  { %2240 = vmatmul.bf16.gmra.mxu0 %v8515_v24  ;;  %2599 = vmatmul.bf16.gmra.mxu1 %v8487_v25  ;;  %v11145_v24 = vld [vmem:[#allocation2 + $0x134] sm:$0xf0]  ;;  %v11143_v25 = vld [vmem:[#allocation2 + $0x12c] sm:$0xf] }
  0x94   :  { %2978 = vmatmul.bf16.gmra.mxu2 %v8523_v26  ;;  %v8604_v26 = vld [vmem:[#allocation2 + $0x138] sm:$0xf0]  ;;  %v8603_v33 = vor.u32 %v11145_v24, %v8602_v23 }
  0x95   :  { %3347 = vmatmul.bf16.gmra.mxu3 %v8527_v27  ;;  %v8607_v34 = vor.u32 %v11143_v25, %v8604_v26 }
  0xa3   :  { %2245 = vmatmul.bf16.gmra.mxu0 %v8531_v37  ;;  %2604 = vmatmul.bf16.gmra.mxu1 %v8503_v38 }
  0xa4   :  { %2983 = vmatmul.bf16.gmra.mxu2 %v8539_v39  ;;  %v8610_v39 = vld [vmem:[#allocation2 + $0x140] sm:$0xf] }
  0xa5   :  { %3352 = vmatmul.bf16.gmra.mxu3 %v8543_v40  ;;  %v11148_v40 = vld [vmem:[#allocation2 + $0x14c] sm:$0xf0] }
  0xb3   :  { %2250 = vmatmul.bf16.gmra.mxu0 %v8547_v49  ;;  %2609 = vmatmul.bf16.gmra.mxu1 %v8519_v50  ;;  %v8611_v49 = vor.u32 %v11148_v40, %v8610_v39  ;;  %v8583_v50 = vor.u32 %v11138_v41, %v8580_v42  ;;  %v11156_v41 = vld [vmem:[#allocation2 + $0x18c] sm:$0xf0]  ;;  %v11146_v42 = vld [vmem:[#allocation2 + $0x144] sm:$0xf] }
  0xb4   :  { %2988 = vmatmul.bf16.gmra.mxu2 %v8555_v51  ;;  %v11417_v51 = vld [vmem:[#allocation4 + $0xb8] sm:$0xff] }
  0xb5   :  { %3357 = vmatmul.bf16.gmra.mxu3 %v8559_v52  ;;  %v11425_v52 = vld [vmem:[#allocation4 + $0xf8] sm:$0xff]  ;;  %4942 = vmatpush.bf16.msrb.mxu2 %v11417_v51 }
  0xb6   :  { %4991 = vmatpush.bf16.msrb.mxu3 %v11425_v52 }
  0xc3   :  { %2255 = vmatmul.bf16.gmra.mxu0 %v8563_v61  ;;  %2614 = vmatmul.bf16.gmra.mxu1 %v8535_v62 }
  0xc4   :  { %2993 = vmatmul.bf16.gmra.mxu2 %v8571_v63 }
  0xc5   :  { %3362 = vmatmul.bf16.gmra.mxu3 %v8575_v0 }
  0xd0   :  { %v2221_v11 = vpop.f32.mrf.mxu0  ;;  %v12303_v12 = vpop.f32.mrf.mxu1 }
  0xd1   :  { %14366 = vst [vmem:[#allocation28_spill] sm:$0xff] %v12303_v12 }
  0xd3   :  { %2260 = vmatmul.bf16.gmra.mxu0 %v8579_v9  ;;  %2619 = vmatmul.bf16.gmra.mxu1 %v8551_v10  ;;  %v11153_v9 = vld [vmem:[#allocation2 + $0x174] sm:$0xf0]  ;;  %v11151_v10 = vld [vmem:[#allocation2 + $0x16c] sm:$0xf] }
  0xd4   :  { %2998 = vmatmul.bf16.gmra.mxu2 %v8587_v13  ;;  %v8635_v22 = vor.u32 %v11153_v9, %v8634_v7  ;;  %v11150_v9 = vld [vmem:[#allocation2 + $0x164] sm:$0xf] }
  0xd5   :  { %3367 = vmatmul.bf16.gmra.mxu3 %v8591_v14 }
  0xd7   :  { %v2959_v15 = vpop.f32.mrf.mxu2 }
  0xd8   :  { %v3328_v16 = vpop.f32.mrf.mxu3  ;;  %v2223_v17 = vpop.f32.mrf.mxu0 }
  0xd9   :  { %v12305_v18 = vpop.f32.mrf.mxu1 }
  0xda   :  { %14367 = vst [vmem:[#allocation29_spill] sm:$0xff] %v12305_v18 }
  0xdf   :  { %v2961_v27 = vpop.f32.mrf.mxu2 }
  0xe0   :  { %v3330_v28 = vpop.f32.mrf.mxu3  ;;  %v12307_v31 = vpop.f32.mrf.mxu0 }
  0xe1   :  { %v12309_v32 = vpop.f32.mrf.mxu1 }
  0xe2   :  { %14368 = vst [vmem:[#allocation30_spill] sm:$0xff] %v12309_v32 }
  0xe3   :  { %2265 = vmatmul.bf16.gmra.mxu0 %v8595_v29  ;;  %2624 = vmatmul.bf16.gmra.mxu1 %v8567_v30 }
  0xe4   :  { %3003 = vmatmul.bf16.gmra.mxu2 %v8603_v33 }
  0xe5   :  { %3372 = vmatmul.bf16.gmra.mxu3 %v8607_v34 }
  0xe7   :  { %v2964_v35 = vpop.f32.mrf.mxu2 }
  0xe8   :  { %v12311_v36 = vpop.f32.mrf.mxu3  ;;  %v12313_v37 = vpop.f32.mrf.mxu0 }
  0xe9   :  { %v12315_v38 = vpop.f32.mrf.mxu1 }
  0xea   :  { %14369 = vst [vmem:[#allocation31_spill] sm:$0xff] %v12315_v38 }
  0xef   :  { %v2966_v47 = vpop.f32.mrf.mxu2 }
  0xf0   :  { %v12317_v48 = vpop.f32.mrf.mxu3  ;;  %v12319_v54 = vpop.f32.mrf.mxu0 }
  0xf1   :  { %v2590_v55 = vpop.f32.mrf.mxu1 }
  0xf2   :  { %v2591_v58 = vadd.f32 %v2590_v55, %v2221_v11  ;;  %v8636_v11 = vld [vmem:[#allocation2 + $0x178] sm:$0xf0] }
  0xf3   :  { %2270 = vmatmul.bf16.gmra.mxu0 %v8611_v49  ;;  %2629 = vmatmul.bf16.gmra.mxu1 %v8583_v50  ;;  %v8639_v23 = vor.u32 %v11151_v10, %v8636_v11  ;;  %v11155_v49 = vld [vmem:[#allocation2 + $0x18c] sm:$0xf]  ;;  %v8628_v10 = vld [vmem:[#allocation2 + $0x170] sm:$0xf0]  ;;  %v8666_v11 = vld [vmem:[#allocation2 + $0x1a8] sm:$0xf] }
  0xf4   :  { %v2960_v59 = vadd.f32 %v2959_v15, %v2591_v58  ;;  %3008 = vmatmul.bf16.gmra.mxu2 %v8619_v56  ;;  %v8615_v56 = vor.u32 %v11146_v42, %v8612_v43 }
  0xf5   :  { %3377 = vmatmul.bf16.gmra.mxu3 %v8623_v57 }
  0xf6   :  { %v3329_v60 = vadd.f32 %v3328_v16, %v2960_v59 }
  0xf7   :  { %v12321_v61 = vpop.f32.mrf.mxu2 }
  0xf8   :  { %v12323_v62 = vpop.f32.mrf.mxu3  ;;  %v12325_v63 = vpop.f32.mrf.mxu0  ;;  %v3688_v13 = vpack.c.bf16 %v3329_v60, %v3329_v60 }
  0xf9   :  { %v2592_v0 = vpop.f32.mrf.mxu1 }
  0xfa   :  { %v2593_v1 = vadd.f32 %v2592_v0, %v2223_v17  ;;  %v12334_v26 = vunpack.c.l.b16 %v3688_v13 }
  0xfc   :  { %v2962_v2 = vadd.f32 %v2961_v27, %v2593_v1 }
  0xfe   :  { %v3331_v8 = vadd.f32 %v3330_v28, %v2962_v2 }
  0xff   :  { %v2971_v15 = vpop.f32.mrf.mxu2 }
 0x100   :  { %v3689_v14 = vpack.c.bf16 %v3331_v8, %v3331_v8  ;;  %v12327_v16 = vpop.f32.mrf.mxu3  ;;  %v12329_v21 = vpop.f32.mrf.mxu0  ;;  %v11160_v8 = vld [vmem:[#allocation2 + $0x1ac] sm:$0xf0] }
 0x101   :  { %v2595_v17 = vpop.f32.mrf.mxu1 }
 0x102   :  { %v12331_v24 = vunpack.c.l.b16 %v3689_v14  ;;  %v2596_v25 = vadd.f32 %v2595_v17, %v12307_v31  ;;  %v11161_v14 = vld [vmem:[#allocation2 + $0x1b4] sm:$0xf0] }
 0x103   :  { %2275 = vmatmul.bf16.gmra.mxu0 %v8627_v19  ;;  %2634 = vmatmul.bf16.gmra.mxu1 %v8599_v20  ;;  %v11159_v19 = vld [vmem:[#allocation2 + $0x1ac] sm:$0xf] }
 0x104   :  { %v2965_v27 = vadd.f32 %v2964_v35, %v2596_v25  ;;  %3013 = vmatmul.bf16.gmra.mxu2 %v8635_v22  ;;  %v8642_v35 = vld [vmem:[#allocation2 + $0x180] sm:$0xf] }
 0x105   :  { %3382 = vmatmul.bf16.gmra.mxu3 %v8639_v23  ;;  %v8643_v55 = vor.u32 %v11156_v41, %v8642_v35 }
 0x106   :  { %v3334_v29 = vadd.f32 %v12311_v36, %v2965_v27  ;;  %v8652_v36 = vld [vmem:[#allocation2 + $0x198] sm:$0xf0]  ;;  %v8631_v27 = vor.u32 %v11150_v9, %v8628_v10 }
 0x107   :  { %v12339_v30 = vpop.f32.mrf.mxu2  ;;  %v8655_v58 = vor.u32 %v11155_v49, %v8652_v36  ;;  %v11400_v49 = vld [vmem:[#allocation4 + $0x30] sm:$0xff]  ;;  %v8674_v36 = vld [vmem:[#allocation2 + $0x1c0] sm:$0xf] }
 0x108   :  { %v12341_v33 = vpop.f32.mrf.mxu3  ;;  %v12343_v34 = vpop.f32.mrf.mxu0  ;;  %v3690_v50 = vpack.c.bf16 %v3334_v29, %v3334_v29  ;;  %4845 = vmatpush.bf16.msrb.mxu0 %v11400_v49 }
 0x109   :  { %v2597_v39 = vpop.f32.mrf.mxu1 }
 0x10a   :  { %v2598_v31 = vadd.f32 %v2597_v39, %v12313_v37 }
 0x10c   :  { %v2967_v40 = vadd.f32 %v2966_v47, %v2598_v31  ;;  %v8651_v47 = vor.u32 %v11157_v46, %v8650_v44 }
 0x10e   :  { %v3336_v45 = vadd.f32 %v12317_v48, %v2967_v40  ;;  %v12354_v48 = vunpack.c.l.b16 %v3690_v50  ;;  %v11164_v50 = vld [vmem:[#allocation2 + $0x1cc] sm:$0xf0] }
 0x10f   :  { %v2976_v52 = vpop.f32.mrf.mxu2 }
 0x110   :  { %v3691_v51 = vpack.c.bf16 %v3336_v45, %v3336_v45  ;;  %v12347_v53 = vpop.f32.mrf.mxu3  ;;  %v12349_v57 = vpop.f32.mrf.mxu0 }
 0x111   :  { %v2600_v37 = vpop.f32.mrf.mxu1 }
 0x112   :  { %v2601_v59 = vadd.f32 %v2600_v37, %v12319_v54  ;;  %v12352_v60 = vunpack.c.l.b16 %v3691_v51  ;;  %v11154_v51 = vld [vmem:[#allocation2 + $0x184] sm:$0xf] }
 0x113   :  { %2280 = vmatmul.bf16.gmra.mxu0 %v8643_v55  ;;  %2639 = vmatmul.bf16.gmra.mxu1 %v8615_v56  ;;  %v8644_v55 = vld [vmem:[#allocation2 + $0x190] sm:$0xf0]  ;;  %v8682_v56 = vld [vmem:[#allocation2 + $0x1c8] sm:$0xf] }
 0x114   :  { %v2970_v0 = vadd.f32 %v12321_v61, %v2601_v59  ;;  %3018 = vmatmul.bf16.gmra.mxu2 %v8651_v47  ;;  %v8658_v61 = vld [vmem:[#allocation2 + $0x1a0] sm:$0xf]  ;;  %v11163_v47 = vld [vmem:[#allocation2 + $0x1cc] sm:$0xf] }
 0x115   :  { %3387 = vmatmul.bf16.gmra.mxu3 %v8655_v58  ;;  %v8659_v25 = vor.u32 %v11160_v8, %v8658_v61  ;;  %v8684_v58 = vld [vmem:[#allocation2 + $0x1d8] sm:$0xf0] }
 0x116   :  { %v3339_v2 = vadd.f32 %v12323_v62, %v2970_v0  ;;  %v8668_v62 = vld [vmem:[#allocation2 + $0x1b8] sm:$0xf0]  ;;  %v8687_v8 = vor.u32 %v11163_v47, %v8684_v58 }
 0x117   :  { %v12360_v3 = vpop.f32.mrf.mxu2  ;;  %v8671_v39 = vor.u32 %v11159_v19, %v8668_v62 }
 0x118   :  { %v12362_v4 = vpop.f32.mrf.mxu3  ;;  %v12364_v54 = vpop.f32.mrf.mxu0  ;;  %v3692_v20 = vpack.c.bf16 %v3339_v2, %v3339_v2 }
 0x119   :  { %v2602_v5 = vpop.f32.mrf.mxu1 }
 0x11a   :  { %v2603_v6 = vadd.f32 %v2602_v5, %v12325_v63 }
 0x11c   :  { %v2972_v7 = vadd.f32 %v2971_v15, %v2603_v6  ;;  %v8667_v15 = vor.u32 %v11161_v14, %v8666_v11  ;;  %v8675_v6 = vor.u32 %v11164_v50, %v8674_v36 }
 0x11e   :  { %v3341_v13 = vadd.f32 %v12327_v16, %v2972_v7  ;;  %v12375_v16 = vunpack.c.l.b16 %v3692_v20 }
 0x11f   :  { %v2981_v22 = vpop.f32.mrf.mxu2 }
 0x120   :  { %v3693_v17 = vpack.c.bf16 %v3341_v13, %v3341_v13  ;;  %v12368_v23 = vpop.f32.mrf.mxu3  ;;  %v12370_v29 = vpop.f32.mrf.mxu0 }
 0x121   :  { %v2605_v63 = vpop.f32.mrf.mxu1 }
 0x122   :  { %v2606_v31 = vadd.f32 %v2605_v63, %v12329_v21  ;;  %v12373_v40 = vunpack.c.l.b16 %v3693_v17  ;;  %v11158_v63 = vld [vmem:[#allocation2 + $0x1a4] sm:$0xf] }
 0x123   :  { %2285 = vmatmul.bf16.gmra.mxu0 %v8659_v25  ;;  %2644 = vmatmul.bf16.gmra.mxu1 %v8631_v27  ;;  %v11168_v27 = vld [vmem:[#allocation2 + $0x1ec] sm:$0xf0] }
 0x124   :  { %v2975_v35 = vadd.f32 %v12339_v30, %v2606_v31  ;;  %3023 = vmatmul.bf16.gmra.mxu2 %v8667_v15  ;;  %v8660_v15 = vld [vmem:[#allocation2 + $0x1b0] sm:$0xf0] }
 0x125   :  { %3392 = vmatmul.bf16.gmra.mxu3 %v8671_v39  ;;  %v8698_v39 = vld [vmem:[#allocation2 + $0x1e8] sm:$0xf]  ;;  %v8663_v50 = vor.u32 %v11158_v63, %v8660_v15 }
 0x126   :  { %v3344_v42 = vadd.f32 %v12341_v33, %v2975_v35  ;;  %v11165_v33 = vld [vmem:[#allocation2 + $0x1d4] sm:$0xf0] }
 0x127   :  { %v12381_v43 = vpop.f32.mrf.mxu2  ;;  %v8683_v61 = vor.u32 %v11165_v33, %v8682_v56  ;;  %v11169_v35 = vld [vmem:[#allocation2 + $0x1f4] sm:$0xf0] }
 0x128   :  { %v12383_v44 = vpop.f32.mrf.mxu3  ;;  %v12385_v21 = vpop.f32.mrf.mxu0  ;;  %v3694_v59 = vpack.c.bf16 %v3344_v42, %v3344_v42  ;;  %v11167_v42 = vld [vmem:[#allocation2 + $0x1ec] sm:$0xf] }
 0x129   :  { %v2607_v45 = vpop.f32.mrf.mxu1 }
 0x12a   :  { %v2608_v46 = vadd.f32 %v2607_v45, %v12343_v34  ;;  %v8647_v34 = vor.u32 %v11154_v51, %v8644_v55 }
 0x12c   :  { %v2977_v30 = vadd.f32 %v2976_v52, %v2608_v46 }
 0x12e   :  { %v3346_v37 = vadd.f32 %v12347_v53, %v2977_v30  ;;  %v12396_v53 = vunpack.c.l.b16 %v3694_v59 }
 0x12f   :  { %v2986_v2 = vpop.f32.mrf.mxu2 }
 0x130   :  { %v3695_v0 = vpack.c.bf16 %v3346_v37, %v3346_v37  ;;  %v12389_v5 = vpop.f32.mrf.mxu3  ;;  %v12391_v7 = vpop.f32.mrf.mxu0 }
 0x131   :  { %v2610_v52 = vpop.f32.mrf.mxu1 }
 0x132   :  { %v2611_v9 = vadd.f32 %v2610_v52, %v12349_v57  ;;  %v12394_v10 = vunpack.c.l.b16 %v3695_v0 }
 0x133   :  { %2290 = vmatmul.bf16.gmra.mxu0 %v8675_v6  ;;  %2649 = vmatmul.bf16.gmra.mxu1 %v8647_v34 }
 0x134   :  { %v2980_v11 = vadd.f32 %v12360_v3, %v2611_v9  ;;  %3028 = vmatmul.bf16.gmra.mxu2 %v8683_v61  ;;  %v8690_v3 = vld [vmem:[#allocation2 + $0x1e0] sm:$0xf]  ;;  %v11172_v61 = vld [vmem:[#allocation2 + $0x20c] sm:$0xf0]  ;;  %v8676_v9 = vld [vmem:[#allocation2 + $0x1d0] sm:$0xf0] }
 0x135   :  { %3397 = vmatmul.bf16.gmra.mxu3 %v8687_v8  ;;  %v8691_v36 = vor.u32 %v11168_v27, %v8690_v3  ;;  %v11162_v8 = vld [vmem:[#allocation2 + $0x1c4] sm:$0xf] }
 0x136   :  { %v3349_v14 = vadd.f32 %v12362_v4, %v2980_v11  ;;  %v8700_v4 = vld [vmem:[#allocation2 + $0x1f8] sm:$0xf0]  ;;  %v8714_v11 = vld [vmem:[#allocation2 + $0x208] sm:$0xf] }
 0x137   :  { %v12402_v19 = vpop.f32.mrf.mxu2  ;;  %v8703_v55 = vor.u32 %v11167_v42, %v8700_v4 }
 0x138   :  { %v12404_v62 = vpop.f32.mrf.mxu3  ;;  %v12406_v57 = vpop.f32.mrf.mxu0  ;;  %v3696_v45 = vpack.c.bf16 %v3349_v14, %v3349_v14 }
 0x139   :  { %v2612_v20 = vpop.f32.mrf.mxu1 }
 0x13a   :  { %v2613_v17 = vadd.f32 %v2612_v20, %v12364_v54  ;;  %v11173_v20 = vld [vmem:[#allocation2 + $0x214] sm:$0xf0] }
 0x13c   :  { %v2982_v25 = vadd.f32 %v2981_v22, %v2613_v17  ;;  %v8699_v22 = vor.u32 %v11169_v35, %v8698_v39  ;;  %v11171_v17 = vld [vmem:[#allocation2 + $0x20c] sm:$0xf]  ;;  %v8679_v39 = vor.u32 %v11162_v8, %v8676_v9 }
 0x13e   :  { %v3351_v31 = vadd.f32 %v12368_v23, %v2982_v25  ;;  %v12417_v23 = vunpack.c.l.b16 %v3696_v45 }
 0x13f   :  { %v2991_v49 = vpop.f32.mrf.mxu2 }
 0x140   :  { %v3697_v46 = vpack.c.bf16 %v3351_v31, %v3351_v31  ;;  %v12410_v30 = vpop.f32.mrf.mxu3  ;;  %v12412_v51 = vpop.f32.mrf.mxu0 }
 0x141   :  { %v2615_v54 = vpop.f32.mrf.mxu1 }
 0x142   :  { %v2616_v56 = vadd.f32 %v2615_v54, %v12370_v29  ;;  %v12415_v37 = vunpack.c.l.b16 %v3697_v46 }
 0x143   :  { %2295 = vmatmul.bf16.gmra.mxu0 %v8691_v36  ;;  %2654 = vmatmul.bf16.gmra.mxu1 %v8663_v50 }
 0x144   :  { %v2985_v33 = vadd.f32 %v12381_v43, %v2616_v56  ;;  %3033 = vmatmul.bf16.gmra.mxu2 %v8699_v22  ;;  %v8706_v43 = vld [vmem:[#allocation2 + $0x200] sm:$0xf] }
 0x145   :  { %3402 = vmatmul.bf16.gmra.mxu3 %v8703_v55  ;;  %v8707_v15 = vor.u32 %v11172_v61, %v8706_v43  ;;  %v11177_v43 = vld [vmem:[#allocation2 + $0x234] sm:$0xf0]  ;;  %v11175_v61 = vld [vmem:[#allocation2 + $0x22c] sm:$0xf] }
 0x146   :  { %v3354_v58 = vadd.f32 %v12383_v44, %v2985_v33  ;;  %v8716_v44 = vld [vmem:[#allocation2 + $0x218] sm:$0xf0]  ;;  %v11176_v33 = vld [vmem:[#allocation2 + $0x22c] sm:$0xf0] }
 0x147   :  { %v12423_v59 = vpop.f32.mrf.mxu2  ;;  %v8719_v35 = vor.u32 %v11171_v17, %v8716_v44 }
 0x148   :  { %v12425_v0 = vpop.f32.mrf.mxu3  ;;  %v12427_v29 = vpop.f32.mrf.mxu0  ;;  %v3698_v25 = vpack.c.bf16 %v3354_v58, %v3354_v58  ;;  %v11166_v58 = vld [vmem:[#allocation2 + $0x1e4] sm:$0xf] }
 0x149   :  { %v2617_v6 = vpop.f32.mrf.mxu1 }
 0x14a   :  { %v2618_v34 = vadd.f32 %v2617_v6, %v12385_v21  ;;  %v8692_v6 = vld [vmem:[#allocation2 + $0x1f0] sm:$0xf0] }
 0x14b   :  { %v8695_v17 = vor.u32 %v11166_v58, %v8692_v6  ;;  %v11181_v6 = vld [vmem:[#allocation2 + $0x254] sm:$0xf0] }
 0x14c   :  { %v2987_v52 = vadd.f32 %v2986_v2, %v2618_v34  ;;  %v8715_v2 = vor.u32 %v11173_v20, %v8714_v11  ;;  %v8730_v34 = vld [vmem:[#allocation2 + $0x228] sm:$0xf] }
 0x14e   :  { %v3356_v14 = vadd.f32 %v12389_v5, %v2987_v52  ;;  %v12438_v5 = vunpack.c.l.b16 %v3698_v25 }
 0x14f   :  { %v2996_v27 = vpop.f32.mrf.mxu2 }
 0x150   :  { %v3699_v3 = vpack.c.bf16 %v3356_v14, %v3356_v14  ;;  %v12431_v63 = vpop.f32.mrf.mxu3  ;;  %v12433_v31 = vpop.f32.mrf.mxu0 }
 0x151   :  { %v2620_v21 = vpop.f32.mrf.mxu1 }
 0x152   :  { %v2621_v42 = vadd.f32 %v2620_v21, %v12391_v7  ;;  %v12436_v4 = vunpack.c.l.b16 %v3699_v3 }
 0x153   :  { %2300 = vmatmul.bf16.gmra.mxu0 %v8707_v15  ;;  %2659 = vmatmul.bf16.gmra.mxu1 %v8679_v39 }
 0x154   :  { %v2990_v45 = vadd.f32 %v12402_v19, %v2621_v42  ;;  %3038 = vmatmul.bf16.gmra.mxu2 %v8715_v2  ;;  %v8722_v19 = vld [vmem:[#allocation2 + $0x220] sm:$0xf] }
 0x155   :  { %3407 = vmatmul.bf16.gmra.mxu3 %v8719_v35  ;;  %v8723_v20 = vor.u32 %v11176_v33, %v8722_v19  ;;  %v8708_v19 = vld [vmem:[#allocation2 + $0x210] sm:$0xf0]  ;;  %v8746_v33 = vld [vmem:[#allocation2 + $0x248] sm:$0xf] }
 0x156   :  { %v3359_v36 = vadd.f32 %v12404_v62, %v2990_v45  ;;  %v8732_v62 = vld [vmem:[#allocation2 + $0x238] sm:$0xf0] }
 0x157   :  { %v12444_v50 = vpop.f32.mrf.mxu2  ;;  %v8735_v25 = vor.u32 %v11175_v61, %v8732_v62 }
 0x158   :  { %v12446_v54 = vpop.f32.mrf.mxu3  ;;  %v12448_v7 = vpop.f32.mrf.mxu0  ;;  %v3700_v8 = vpack.c.bf16 %v3359_v36, %v3359_v36 }
 0x159   :  { %v2622_v22 = vpop.f32.mrf.mxu1 }
 0x15a   :  { %v2623_v55 = vadd.f32 %v2622_v22, %v12406_v57 }
 0x15c   :  { %v2992_v56 = vadd.f32 %v2991_v49, %v2623_v55  ;;  %v8731_v49 = vor.u32 %v11177_v43, %v8730_v34  ;;  %v11180_v55 = vld [vmem:[#allocation2 + $0x24c] sm:$0xf0]  ;;  %v11179_v34 = vld [vmem:[#allocation2 + $0x24c] sm:$0xf] }
 0x15e   :  { %v3361_v52 = vadd.f32 %v12410_v30, %v2992_v56  ;;  %v12459_v30 = vunpack.c.l.b16 %v3700_v8  ;;  %v11170_v56 = vld [vmem:[#allocation2 + $0x204] sm:$0xf] }
 0x15f   :  { %v3001_v11 = vpop.f32.mrf.mxu2 }
 0x160   :  { %v3701_v9 = vpack.c.bf16 %v3361_v52, %v3361_v52  ;;  %v12452_v14 = vpop.f32.mrf.mxu3  ;;  %v12454_v44 = vpop.f32.mrf.mxu0  ;;  %14371 = vst [vmem:[#allocation33_spill] sm:$0xff] %v12459_v30 }
 0x161   :  { %v2625_v57 = vpop.f32.mrf.mxu1 }
 0x162   :  { %v2626_v3 = vadd.f32 %v2625_v57, %v12412_v51  ;;  %v12457_v15 = vunpack.c.l.b16 %v3701_v9  ;;  %v8711_v9 = vor.u32 %v11170_v56, %v8708_v19  ;;  %v11174_v56 = vld [vmem:[#allocation2 + $0x224] sm:$0xf]  ;;  %v8724_v19 = vld [vmem:[#allocation2 + $0x230] sm:$0xf0] }
 0x163   :  { %2305 = vmatmul.bf16.gmra.mxu0 %v8723_v20  ;;  %2664 = vmatmul.bf16.gmra.mxu1 %v8695_v17  ;;  %v8747_v20 = vor.u32 %v11181_v6, %v8746_v33  ;;  %v8762_v33 = vld [vmem:[#allocation2 + $0x268] sm:$0xf] }
 0x164   :  { %14370 = vst [vmem:[#allocation32_spill] sm:$0xff] %v12457_v15  ;;  %v2995_v39 = vadd.f32 %v12423_v59, %v2626_v3  ;;  %3043 = vmatmul.bf16.gmra.mxu2 %v8731_v49  ;;  %v8738_v59 = vld [vmem:[#allocation2 + $0x240] sm:$0xf] }
 0x165   :  { %3412 = vmatmul.bf16.gmra.mxu3 %v8735_v25  ;;  %v8739_v8 = vor.u32 %v11180_v55, %v8738_v59  ;;  %v11184_v55 = vld [vmem:[#allocation2 + $0x26c] sm:$0xf0] }
 0x166   :  { %v3364_v2 = vadd.f32 %v12425_v0, %v2995_v39  ;;  %v8748_v0 = vld [vmem:[#allocation2 + $0x258] sm:$0xf0] }
 0x167   :  { %v12465_v35 = vpop.f32.mrf.mxu2  ;;  %v8751_v17 = vor.u32 %v11179_v34, %v8748_v0  ;;  %v11185_v34 = vld [vmem:[#allocation2 + $0x274] sm:$0xf0]  ;;  %v8764_v0 = vld [vmem:[#allocation2 + $0x278] sm:$0xf0] }
 0x168   :  { %v12467_v42 = vpop.f32.mrf.mxu3  ;;  %v12469_v51 = vpop.f32.mrf.mxu0  ;;  %v3702_v52 = vpack.c.bf16 %v3364_v2, %v3364_v2 }
 0x169   :  { %v2627_v45 = vpop.f32.mrf.mxu1 }
 0x16a   :  { %v2628_v36 = vadd.f32 %v2627_v45, %v12427_v29 }
 0x16c   :  { %v2997_v22 = vadd.f32 %v2996_v27, %v2628_v36 }
 0x16e   :  { %v3366_v58 = vadd.f32 %v12431_v63, %v2997_v22  ;;  %v12482_v63 = vunpack.c.l.b16 %v3702_v52 }
 0x16f   :  { %v12473_v61 = vpop.f32.mrf.mxu2 }
 0x170   :  { %v3703_v43 = vpack.c.bf16 %v3366_v58, %v3366_v58  ;;  %v12475_v62 = vpop.f32.mrf.mxu3  ;;  %v12477_v29 = vpop.f32.mrf.mxu0  ;;  %14373 = vst [vmem:[#allocation35_spill] sm:$0xff] %v12482_v63 }
 0x171   :  { %v2630_v27 = vpop.f32.mrf.mxu1 }
 0x172   :  { %v2631_v57 = vadd.f32 %v2630_v27, %v12433_v31  ;;  %v12480_v49 = vunpack.c.l.b16 %v3703_v43  ;;  %v8727_v27 = vor.u32 %v11174_v56, %v8724_v19 }
 0x173   :  { %2310 = vmatmul.bf16.gmra.mxu0 %v8739_v8  ;;  %2669 = vmatmul.bf16.gmra.mxu1 %v8711_v9 }
 0x174   :  { %14372 = vst [vmem:[#allocation34_spill] sm:$0xff] %v12480_v49  ;;  %v3000_v25 = vadd.f32 %v12444_v50, %v2631_v57  ;;  %3048 = vmatmul.bf16.gmra.mxu2 %v8747_v20  ;;  %v8754_v50 = vld [vmem:[#allocation2 + $0x260] sm:$0xf]  ;;  %v11408_v20 = vld [vmem:[#allocation4 + $0x70] sm:$0xff] }
 0x175   :  { %3417 = vmatmul.bf16.gmra.mxu3 %v8751_v17  ;;  %v8755_v9 = vor.u32 %v11184_v55, %v8754_v50  ;;  %4894 = vmatpush.bf16.msra.mxu1 %v11408_v20 }
 0x176   :  { %v3369_v39 = vadd.f32 %v12446_v54, %v3000_v25  ;;  %v11183_v54 = vld [vmem:[#allocation2 + $0x26c] sm:$0xf]  ;;  %v8763_v25 = vor.u32 %v11185_v34, %v8762_v33  ;;  %v8770_v34 = vld [vmem:[#allocation2 + $0x280] sm:$0xf] }
 0x177   :  { %v12488_v2 = vpop.f32.mrf.mxu2 }
 0x178   :  { %v12490_v45 = vpop.f32.mrf.mxu3  ;;  %v12492_v31 = vpop.f32.mrf.mxu0  ;;  %v3704_v58 = vpack.c.bf16 %v3369_v39, %v3369_v39  ;;  %v8767_v39 = vor.u32 %v11183_v54, %v8764_v0  ;;  %v11188_v54 = vld [vmem:[#allocation2 + $0x28c] sm:$0xf0]  ;;  %v8740_v0 = vld [vmem:[#allocation2 + $0x250] sm:$0xf0] }
 0x179   :  { %v2632_v36 = vpop.f32.mrf.mxu1 }
 0x17a   :  { %v2633_v22 = vadd.f32 %v2632_v36, %v12448_v7  ;;  %v11416_v7 = vld [vmem:[#allocation4 + $0xb0] sm:$0xff]  ;;  %v12502_v36 = vunpack.c.l.b16 %v3704_v58 }
 0x17b   :  { %4943 = vmatpush.bf16.msrb.mxu2 %v11416_v7  ;;  %v8780_v7 = vld [vmem:[#allocation2 + $0x298] sm:$0xf0] }
 0x17c   :  { %v3002_v59 = vadd.f32 %v3001_v11, %v2633_v22  ;;  %v11424_v11 = vld [vmem:[#allocation4 + $0xf0] sm:$0xff] }
 0x17d   :  { %4992 = vmatpush.bf16.msrb.mxu3 %v11424_v11 }
 0x17e   :  { %v3371_v6 = vadd.f32 %v12452_v14, %v3002_v59  ;;  %v11399_v59 = vld [vmem:[#allocation4 + $0x28] sm:$0xff] }
 0x17f   :  { %v12496_v43 = vpop.f32.mrf.mxu2  ;;  %4846 = vmatpush.bf16.msrb.mxu0 %v11399_v59 }
 0x180   :  { %v3705_v52 = vpack.c.bf16 %v3371_v6, %v3371_v6  ;;  %v12498_v8 = vpop.f32.mrf.mxu3  ;;  %v12500_v17 = vpop.f32.mrf.mxu0 }
 0x181   :  { %v2635_v57 = vpop.f32.mrf.mxu1 }
 0x182   :  { %v12504_v14 = vunpack.c.l.b16 %v3705_v52  ;;  %v2636_v22 = vadd.f32 %v2635_v57, %v12454_v44  ;;  %v8778_v52 = vld [vmem:[#allocation2 + $0x288] sm:$0xf] }
 0x183   :  { %2315 = vmatmul.bf16.gmra.mxu0 %v8755_v9  ;;  %2674 = vmatmul.bf16.gmra.mxu1 %v8727_v27  ;;  %v11189_v27 = vld [vmem:[#allocation2 + $0x294] sm:$0xf0] }
 0x184   :  { %v3005_v50 = vadd.f32 %v12465_v35, %v2636_v22  ;;  %3053 = vmatmul.bf16.gmra.mxu2 %v8763_v25  ;;  %v11178_v35 = vld [vmem:[#allocation2 + $0x244] sm:$0xf] }
 0x185   :  { %3422 = vmatmul.bf16.gmra.mxu3 %v8767_v39  ;;  %v8771_v39 = vor.u32 %v11188_v54, %v8770_v34  ;;  %v8743_v22 = vor.u32 %v11178_v35, %v8740_v0 }
 0x186   :  { %v3374_v55 = vadd.f32 %v12467_v42, %v3005_v50  ;;  %v11187_v42 = vld [vmem:[#allocation2 + $0x28c] sm:$0xf]  ;;  %v8779_v50 = vor.u32 %v11189_v27, %v8778_v52  ;;  %v11192_v27 = vld [vmem:[#allocation2 + $0x2ac] sm:$0xf0] }
 0x187   :  { %v12511_v56 = vpop.f32.mrf.mxu2 }
 0x188   :  { %v12513_v19 = vpop.f32.mrf.mxu3  ;;  %v12515_v33 = vpop.f32.mrf.mxu0  ;;  %v3706_v11 = vpack.c.bf16 %v3374_v55, %v3374_v55 }
 0x189   :  { %v2637_v44 = vpop.f32.mrf.mxu1 }
 0x18a   :  { %v2638_v58 = vadd.f32 %v2637_v44, %v12469_v51  ;;  %v8783_v44 = vor.u32 %v11187_v42, %v8780_v7  ;;  %v11182_v42 = vld [vmem:[#allocation2 + $0x264] sm:$0xf]  ;;  %v8756_v7 = vld [vmem:[#allocation2 + $0x270] sm:$0xf0] }
 0x18b   :  { %v8759_v21 = vor.u32 %v11182_v42, %v8756_v7 }
 0x18c   :  { %v3007_v6 = vadd.f32 %v12473_v61, %v2638_v58 }
 0x18e   :  { %v3376_v9 = vadd.f32 %v12475_v62, %v3007_v6  ;;  %v12527_v62 = vunpack.c.l.b16 %v3706_v11  ;;  %v8794_v11 = vld [vmem:[#allocation2 + $0x2a8] sm:$0xf] }
 0x18f   :  { %v3016_v57 = vpop.f32.mrf.mxu2 }
 0x190   :  { %v3707_v20 = vpack.c.bf16 %v3376_v9, %v3376_v9  ;;  %v12520_v25 = vpop.f32.mrf.mxu3  ;;  %v12522_v51 = vpop.f32.mrf.mxu0  ;;  %v8786_v9 = vld [vmem:[#allocation2 + $0x2a0] sm:$0xf] }
 0x191   :  { %v2640_v61 = vpop.f32.mrf.mxu1 }
 0x192   :  { %v2641_v58 = vadd.f32 %v2640_v61, %v12477_v29  ;;  %v12525_v3 = vunpack.c.l.b16 %v3707_v20 }
 0x193   :  { %2320 = vmatmul.bf16.gmra.mxu0 %v8771_v39  ;;  %2679 = vmatmul.bf16.gmra.mxu1 %v8743_v22  ;;  %v11193_v39 = vld [vmem:[#allocation2 + $0x2b4] sm:$0xf0]  ;;  %v8796_v22 = vld [vmem:[#allocation2 + $0x2b8] sm:$0xf0] }
 0x194   :  { %v3010_v6 = vadd.f32 %v12488_v2, %v2641_v58  ;;  %3058 = vmatmul.bf16.gmra.mxu2 %v8779_v50 }
 0x195   :  { %3427 = vmatmul.bf16.gmra.mxu3 %v8783_v44 }
 0x196   :  { %v3379_v34 = vadd.f32 %v12490_v45, %v3010_v6  ;;  %v11191_v45 = vld [vmem:[#allocation2 + $0x2ac] sm:$0xf]  ;;  %v8787_v6 = vor.u32 %v11192_v27, %v8786_v9 }
 0x197   :  { %v12533_v54 = vpop.f32.mrf.mxu2 }
 0x198   :  { %v12535_v35 = vpop.f32.mrf.mxu3  ;;  %v12537_v29 = vpop.f32.mrf.mxu0  ;;  %v3708_v61 = vpack.c.bf16 %v3379_v34, %v3379_v34 }
 0x199   :  { %v2642_v0 = vpop.f32.mrf.mxu1 }
 0x19a   :  { %v2643_v52 = vadd.f32 %v2642_v0, %v12492_v31  ;;  %v8795_v0 = vor.u32 %v11193_v39, %v8794_v11  ;;  %v8772_v39 = vld [vmem:[#allocation2 + $0x290] sm:$0xf0] }
 0x19c   :  { %v3012_v2 = vadd.f32 %v12496_v43, %v2643_v52  ;;  %v8799_v52 = vor.u32 %v11191_v45, %v8796_v22  ;;  %v8810_v45 = vld [vmem:[#allocation2 + $0x2c8] sm:$0xf] }
 0x19e   :  { %v3381_v20 = vadd.f32 %v12498_v8, %v3012_v2  ;;  %v12549_v8 = vunpack.c.l.b16 %v3708_v61  ;;  %v11197_v61 = vld [vmem:[#allocation2 + $0x2d4] sm:$0xf0] }
 0x19f   :  { %v3021_v44 = vpop.f32.mrf.mxu2 }
 0x1a0   :  { %v3709_v50 = vpack.c.bf16 %v3381_v20, %v3381_v20  ;;  %v12542_v58 = vpop.f32.mrf.mxu3  ;;  %v12544_v31 = vpop.f32.mrf.mxu0  ;;  %14375 = vst [vmem:[#allocation37_spill] sm:$0xff] %v12549_v8 }
 0x1a1   :  { %v2645_v43 = vpop.f32.mrf.mxu1 }
 0x1a2   :  { %v2646_v55 = vadd.f32 %v2645_v43, %v12500_v17  ;;  %v12547_v46 = vunpack.c.l.b16 %v3709_v50  ;;  %v11195_v50 = vld [vmem:[#allocation2 + $0x2cc] sm:$0xf] }
 0x1a3   :  { %2325 = vmatmul.bf16.gmra.mxu0 %v8787_v6  ;;  %2684 = vmatmul.bf16.gmra.mxu1 %v8759_v21  ;;  %v11186_v21 = vld [vmem:[#allocation2 + $0x284] sm:$0xf] }
 0x1a4   :  { %14374 = vst [vmem:[#allocation36_spill] sm:$0xff] %v12547_v46  ;;  %v3015_v2 = vadd.f32 %v12511_v56, %v2646_v55  ;;  %3063 = vmatmul.bf16.gmra.mxu2 %v8795_v0  ;;  %v8802_v56 = vld [vmem:[#allocation2 + $0x2c0] sm:$0xf]  ;;  %v11196_v55 = vld [vmem:[#allocation2 + $0x2cc] sm:$0xf0]  ;;  %v8775_v34 = vor.u32 %v11186_v21, %v8772_v39 }
 0x1a5   :  { %3432 = vmatmul.bf16.gmra.mxu3 %v8799_v52 }
 0x1a6   :  { %v3384_v9 = vadd.f32 %v12513_v19, %v3015_v2  ;;  %v8812_v19 = vld [vmem:[#allocation2 + $0x2d8] sm:$0xf0]  ;;  %v8803_v2 = vor.u32 %v11196_v55, %v8802_v56 }
 0x1a7   :  { %v12555_v27 = vpop.f32.mrf.mxu2 }
 0x1a8   :  { %v12557_v42 = vpop.f32.mrf.mxu3  ;;  %v12559_v17 = vpop.f32.mrf.mxu0  ;;  %v3710_v6 = vpack.c.bf16 %v3384_v9, %v3384_v9 }
 0x1a9   :  { %v2647_v7 = vpop.f32.mrf.mxu1 }
 0x1aa   :  { %v2648_v11 = vadd.f32 %v2647_v7, %v12515_v33  ;;  %v8811_v7 = vor.u32 %v11197_v61, %v8810_v45  ;;  %v8788_v61 = vld [vmem:[#allocation2 + $0x2b0] sm:$0xf0] }
 0x1ac   :  { %v3017_v20 = vadd.f32 %v3016_v57, %v2648_v11  ;;  %v8815_v11 = vor.u32 %v11195_v50, %v8812_v19  ;;  %v8826_v50 = vld [vmem:[#allocation2 + $0x2e8] sm:$0xf] }
 0x1ae   :  { %v3386_v22 = vadd.f32 %v12520_v25, %v3017_v20  ;;  %v12570_v20 = vunpack.c.l.b16 %v3710_v6  ;;  %v11201_v6 = vld [vmem:[#allocation2 + $0x2f4] sm:$0xf0] }
 0x1af   :  { %v3026_v0 = vpop.f32.mrf.mxu2 }
 0x1b0   :  { %v3711_v43 = vpack.c.bf16 %v3386_v22, %v3386_v22  ;;  %v12563_v52 = vpop.f32.mrf.mxu3  ;;  %v12565_v33 = vpop.f32.mrf.mxu0  ;;  %14377 = vst [vmem:[#allocation39_spill] sm:$0xff] %v12570_v20  ;;  %v11398_v20 = vld [vmem:[#allocation4 + $0x20] sm:$0xff] }
 0x1b1   :  { %v2650_v57 = vpop.f32.mrf.mxu1  ;;  %4847 = vmatpush.bf16.msrb.mxu0 %v11398_v20 }
 0x1b2   :  { %v2651_v47 = vadd.f32 %v2650_v57, %v12522_v51  ;;  %v12568_v25 = vunpack.c.l.b16 %v3711_v43  ;;  %v11199_v43 = vld [vmem:[#allocation2 + $0x2ec] sm:$0xf] }
 0x1b3   :  { %2330 = vmatmul.bf16.gmra.mxu0 %v8803_v2  ;;  %2689 = vmatmul.bf16.gmra.mxu1 %v8775_v34  ;;  %v11190_v34 = vld [vmem:[#allocation2 + $0x2a4] sm:$0xf] }
 0x1b4   :  { %14376 = vst [vmem:[#allocation38_spill] sm:$0xff] %v12568_v25  ;;  %v3020_v9 = vadd.f32 %v12533_v54, %v2651_v47  ;;  %3068 = vmatmul.bf16.gmra.mxu2 %v8811_v7  ;;  %v8818_v47 = vld [vmem:[#allocation2 + $0x2e0] sm:$0xf]  ;;  %v11200_v54 = vld [vmem:[#allocation2 + $0x2ec] sm:$0xf0]  ;;  %v8791_v56 = vor.u32 %v11190_v34, %v8788_v61 }
 0x1b5   :  { %3437 = vmatmul.bf16.gmra.mxu3 %v8815_v11 }
 0x1b6   :  { %v3389_v55 = vadd.f32 %v12535_v35, %v3020_v9  ;;  %v8828_v35 = vld [vmem:[#allocation2 + $0x2f8] sm:$0xf0]  ;;  %v8819_v9 = vor.u32 %v11200_v54, %v8818_v47 }
 0x1b7   :  { %v12576_v21 = vpop.f32.mrf.mxu2 }
 0x1b8   :  { %v12578_v39 = vpop.f32.mrf.mxu3  ;;  %v12580_v59 = vpop.f32.mrf.mxu0  ;;  %v3712_v2 = vpack.c.bf16 %v3389_v55, %v3389_v55 }
 0x1b9   :  { %v2652_v51 = vpop.f32.mrf.mxu1 }
 0x1ba   :  { %v2653_v45 = vadd.f32 %v2652_v51, %v12537_v29  ;;  %v8831_v51 = vor.u32 %v11199_v43, %v8828_v35  ;;  %v8804_v43 = vld [vmem:[#allocation2 + $0x2d0] sm:$0xf0]  ;;  %v8842_v35 = vld [vmem:[#allocation2 + $0x308] sm:$0xf] }
 0x1bc   :  { %v3022_v22 = vadd.f32 %v3021_v44, %v2653_v45  ;;  %v8827_v44 = vor.u32 %v11201_v6, %v8826_v50  ;;  %v11204_v6 = vld [vmem:[#allocation2 + $0x30c] sm:$0xf0] }
 0x1be   :  { %v3391_v19 = vadd.f32 %v12542_v58, %v3022_v22  ;;  %v12591_v58 = vunpack.c.l.b16 %v3712_v2 }
 0x1bf   :  { %v3031_v7 = vpop.f32.mrf.mxu2 }
 0x1c0   :  { %v3713_v57 = vpack.c.bf16 %v3391_v19, %v3391_v19  ;;  %v12584_v11 = vpop.f32.mrf.mxu3  ;;  %v12586_v13 = vpop.f32.mrf.mxu0  ;;  %14379 = vst [vmem:[#allocation41_spill] sm:$0xff] %v12591_v58 }
 0x1c1   :  { %v2655_v29 = vpop.f32.mrf.mxu1 }
 0x1c2   :  { %v2656_v45 = vadd.f32 %v2655_v29, %v12544_v31  ;;  %v12589_v41 = vunpack.c.l.b16 %v3713_v57  ;;  %v11205_v57 = vld [vmem:[#allocation2 + $0x314] sm:$0xf0] }
 0x1c3   :  { %2335 = vmatmul.bf16.gmra.mxu0 %v8819_v9  ;;  %2694 = vmatmul.bf16.gmra.mxu1 %v8791_v56  ;;  %v11194_v56 = vld [vmem:[#allocation2 + $0x2c4] sm:$0xf]  ;;  %v11203_v9 = vld [vmem:[#allocation2 + $0x30c] sm:$0xf] }
 0x1c4   :  { %14378 = vst [vmem:[#allocation40_spill] sm:$0xff] %v12589_v41  ;;  %v3025_v22 = vadd.f32 %v12555_v27, %v2656_v45  ;;  %3073 = vmatmul.bf16.gmra.mxu2 %v8827_v44  ;;  %v8834_v27 = vld [vmem:[#allocation2 + $0x300] sm:$0xf]  ;;  %v8807_v55 = vor.u32 %v11194_v56, %v8804_v43 }
 0x1c5   :  { %3442 = vmatmul.bf16.gmra.mxu3 %v8831_v51 }
 0x1c6   :  { %v3394_v47 = vadd.f32 %v12557_v42, %v3025_v22  ;;  %v8844_v42 = vld [vmem:[#allocation2 + $0x318] sm:$0xf0]  ;;  %v8835_v22 = vor.u32 %v11204_v6, %v8834_v27 }
 0x1c7   :  { %v12597_v54 = vpop.f32.mrf.mxu2 }
 0x1c8   :  { %v12599_v34 = vpop.f32.mrf.mxu3  ;;  %v12601_v31 = vpop.f32.mrf.mxu0  ;;  %v3714_v29 = vpack.c.bf16 %v3394_v47, %v3394_v47 }
 0x1c9   :  { %v2657_v61 = vpop.f32.mrf.mxu1 }
 0x1ca   :  { %v2658_v50 = vadd.f32 %v2657_v61, %v12559_v17  ;;  %v8847_v61 = vor.u32 %v11203_v9, %v8844_v42  ;;  %v8820_v9 = vld [vmem:[#allocation2 + $0x2f0] sm:$0xf0]  ;;  %v8858_v42 = vld [vmem:[#allocation2 + $0x328] sm:$0xf] }
 0x1cc   :  { %v3027_v19 = vadd.f32 %v3026_v0, %v2658_v50  ;;  %v8843_v0 = vor.u32 %v11205_v57, %v8842_v35  ;;  %v11208_v57 = vld [vmem:[#allocation2 + $0x32c] sm:$0xf0] }
 0x1ce   :  { %v3396_v2 = vadd.f32 %v12563_v52, %v3027_v19  ;;  %v12612_v52 = vunpack.c.l.b16 %v3714_v29 }
 0x1cf   :  { %v3036_v51 = vpop.f32.mrf.mxu2 }
 0x1d0   :  { %v3715_v44 = vpack.c.bf16 %v3396_v2, %v3396_v2  ;;  %v12605_v45 = vpop.f32.mrf.mxu3  ;;  %v12607_v1 = vpop.f32.mrf.mxu0  ;;  %14381 = vst [vmem:[#allocation43_spill] sm:$0xff] %v12612_v52 }
 0x1d1   :  { %v2660_v17 = vpop.f32.mrf.mxu1 }
 0x1d2   :  { %v2661_v50 = vadd.f32 %v2660_v17, %v12565_v33  ;;  %v12610_v28 = vunpack.c.l.b16 %v3715_v44  ;;  %v11209_v44 = vld [vmem:[#allocation2 + $0x334] sm:$0xf0] }
 0x1d3   :  { %2340 = vmatmul.bf16.gmra.mxu0 %v8835_v22  ;;  %2699 = vmatmul.bf16.gmra.mxu1 %v8807_v55  ;;  %v11198_v55 = vld [vmem:[#allocation2 + $0x2e4] sm:$0xf]  ;;  %v11207_v22 = vld [vmem:[#allocation2 + $0x32c] sm:$0xf] }
 0x1d4   :  { %14380 = vst [vmem:[#allocation42_spill] sm:$0xff] %v12610_v28  ;;  %v3030_v19 = vadd.f32 %v12576_v21, %v2661_v50  ;;  %3078 = vmatmul.bf16.gmra.mxu2 %v8843_v0  ;;  %v8850_v21 = vld [vmem:[#allocation2 + $0x320] sm:$0xf]  ;;  %v8823_v47 = vor.u32 %v11198_v55, %v8820_v9 }
 0x1d5   :  { %3447 = vmatmul.bf16.gmra.mxu3 %v8847_v61 }
 0x1d6   :  { %v3399_v27 = vadd.f32 %v12578_v39, %v3030_v19  ;;  %v8860_v39 = vld [vmem:[#allocation2 + $0x338] sm:$0xf0]  ;;  %v8851_v19 = vor.u32 %v11208_v57, %v8850_v21 }
 0x1d7   :  { %v12618_v6 = vpop.f32.mrf.mxu2 }
 0x1d8   :  { %v12620_v56 = vpop.f32.mrf.mxu3  ;;  %v12622_v33 = vpop.f32.mrf.mxu0  ;;  %v3716_v17 = vpack.c.bf16 %v3399_v27, %v3399_v27 }
 0x1d9   :  { %v2662_v43 = vpop.f32.mrf.mxu1 }
 0x1da   :  { %v2663_v35 = vadd.f32 %v2662_v43, %v12580_v59  ;;  %v8863_v43 = vor.u32 %v11207_v22, %v8860_v39  ;;  %v8836_v22 = vld [vmem:[#allocation2 + $0x310] sm:$0xf0]  ;;  %v8874_v39 = vld [vmem:[#allocation2 + $0x348] sm:$0xf] }
 0x1dc   :  { %v3032_v2 = vadd.f32 %v3031_v7, %v2663_v35  ;;  %v8859_v7 = vor.u32 %v11209_v44, %v8858_v42  ;;  %v11212_v44 = vld [vmem:[#allocation2 + $0x34c] sm:$0xf0] }
 0x1de   :  { %v3401_v29 = vadd.f32 %v12584_v11, %v3032_v2  ;;  %v12633_v11 = vunpack.c.l.b16 %v3716_v17 }
 0x1df   :  { %v3041_v61 = vpop.f32.mrf.mxu2 }
 0x1e0   :  { %v3717_v0 = vpack.c.bf16 %v3401_v29, %v3401_v29  ;;  %v12626_v50 = vpop.f32.mrf.mxu3  ;;  %v12628_v38 = vpop.f32.mrf.mxu0  ;;  %14383 = vst [vmem:[#allocation45_spill] sm:$0xff] %v12633_v11 }
 0x1e1   :  { %v2665_v59 = vpop.f32.mrf.mxu1 }
 0x1e2   :  { %v2666_v35 = vadd.f32 %v2665_v59, %v12586_v13  ;;  %v12631_v32 = vunpack.c.l.b16 %v3717_v0  ;;  %v11213_v0 = vld [vmem:[#allocation2 + $0x354] sm:$0xf0] }
 0x1e3   :  { %2345 = vmatmul.bf16.gmra.mxu0 %v8851_v19  ;;  %2704 = vmatmul.bf16.gmra.mxu1 %v8823_v47  ;;  %v11202_v47 = vld [vmem:[#allocation2 + $0x304] sm:$0xf]  ;;  %v11211_v19 = vld [vmem:[#allocation2 + $0x34c] sm:$0xf] }
 0x1e4   :  { %14382 = vst [vmem:[#allocation44_spill] sm:$0xff] %v12631_v32  ;;  %v3035_v2 = vadd.f32 %v12597_v54, %v2666_v35  ;;  %3083 = vmatmul.bf16.gmra.mxu2 %v8859_v7  ;;  %v8866_v54 = vld [vmem:[#allocation2 + $0x340] sm:$0xf]  ;;  %v8839_v27 = vor.u32 %v11202_v47, %v8836_v22 }
 0x1e5   :  { %3452 = vmatmul.bf16.gmra.mxu3 %v8863_v43 }
 0x1e6   :  { %v3404_v21 = vadd.f32 %v12599_v34, %v3035_v2  ;;  %v8876_v34 = vld [vmem:[#allocation2 + $0x358] sm:$0xf0]  ;;  %v8867_v2 = vor.u32 %v11212_v44, %v8866_v54 }
 0x1e7   :  { %v12639_v57 = vpop.f32.mrf.mxu2 }
 0x1e8   :  { %v12641_v55 = vpop.f32.mrf.mxu3  ;;  %v12643_v13 = vpop.f32.mrf.mxu0  ;;  %v3718_v59 = vpack.c.bf16 %v3404_v21, %v3404_v21 }
 0x1e9   :  { %v2667_v9 = vpop.f32.mrf.mxu1 }
 0x1ea   :  { %v2668_v42 = vadd.f32 %v2667_v9, %v12601_v31  ;;  %v8879_v9 = vor.u32 %v11211_v19, %v8876_v34  ;;  %v8852_v19 = vld [vmem:[#allocation2 + $0x330] sm:$0xf0]  ;;  %v8890_v34 = vld [vmem:[#allocation2 + $0x368] sm:$0xf] }
 0x1ec   :  { %v3037_v29 = vadd.f32 %v3036_v51, %v2668_v42  ;;  %v8875_v51 = vor.u32 %v11213_v0, %v8874_v39  ;;  %v11216_v0 = vld [vmem:[#allocation2 + $0x36c] sm:$0xf0] }
 0x1ee   :  { %v3406_v17 = vadd.f32 %v12605_v45, %v3037_v29  ;;  %v12654_v45 = vunpack.c.l.b16 %v3718_v59 }
 0x1ef   :  { %v3046_v43 = vpop.f32.mrf.mxu2 }
 0x1f0   :  { %v3719_v7 = vpack.c.bf16 %v3406_v17, %v3406_v17  ;;  %v12647_v35 = vpop.f32.mrf.mxu3  ;;  %v12649_v18 = vpop.f32.mrf.mxu0  ;;  %14385 = vst [vmem:[#allocation47_spill] sm:$0xff] %v12654_v45 }
 0x1f1   :  { %v2670_v31 = vpop.f32.mrf.mxu1 }
 0x1f2   :  { %v2671_v42 = vadd.f32 %v2670_v31, %v12607_v1  ;;  %v12652_v11 = vunpack.c.l.b16 %v3719_v7  ;;  %v11217_v7 = vld [vmem:[#allocation2 + $0x374] sm:$0xf0] }
 0x1f3   :  { %2350 = vmatmul.bf16.gmra.mxu0 %v8867_v2  ;;  %2709 = vmatmul.bf16.gmra.mxu1 %v8839_v27  ;;  %v11206_v27 = vld [vmem:[#allocation2 + $0x324] sm:$0xf]  ;;  %v11215_v2 = vld [vmem:[#allocation2 + $0x36c] sm:$0xf] }
 0x1f4   :  { %14384 = vst [vmem:[#allocation46_spill] sm:$0xff] %v12652_v11  ;;  %v3040_v29 = vadd.f32 %v12618_v6, %v2671_v42  ;;  %3088 = vmatmul.bf16.gmra.mxu2 %v8875_v51  ;;  %v8882_v6 = vld [vmem:[#allocation2 + $0x360] sm:$0xf]  ;;  %v8855_v21 = vor.u32 %v11206_v27, %v8852_v19 }
 0x1f5   :  { %3457 = vmatmul.bf16.gmra.mxu3 %v8879_v9 }
 0x1f6   :  { %v3409_v54 = vadd.f32 %v12620_v56, %v3040_v29  ;;  %v8892_v56 = vld [vmem:[#allocation2 + $0x378] sm:$0xf0]  ;;  %v8883_v29 = vor.u32 %v11216_v0, %v8882_v6 }
 0x1f7   :  { %v12660_v44 = vpop.f32.mrf.mxu2 }
 0x1f8   :  { %v12662_v47 = vpop.f32.mrf.mxu3  ;;  %v12664_v1 = vpop.f32.mrf.mxu0  ;;  %v3720_v31 = vpack.c.bf16 %v3409_v54, %v3409_v54 }
 0x1f9   :  { %v2672_v22 = vpop.f32.mrf.mxu1 }
 0x1fa   :  { %v2673_v39 = vadd.f32 %v2672_v22, %v12622_v33  ;;  %v8891_v22 = vor.u32 %v11217_v7, %v8890_v34 }
 0x1fc   :  { %v3042_v17 = vadd.f32 %v3041_v61, %v2673_v39  ;;  %v8895_v39 = vor.u32 %v11215_v2, %v8892_v56  ;;  %v11220_v2 = vld [vmem:[#allocation2 + $0x38c] sm:$0xf0]  ;;  %v8868_v56 = vld [vmem:[#allocation2 + $0x350] sm:$0xf0] }
 0x1fe   :  { %v3411_v59 = vadd.f32 %v12626_v50, %v3042_v17  ;;  %v12677_v17 = vunpack.c.l.b16 %v3720_v31  ;;  %v8906_v31 = vld [vmem:[#allocation2 + $0x388] sm:$0xf] }
 0x1ff   :  { %v12668_v9 = vpop.f32.mrf.mxu2 }
 0x200   :  { %v3721_v51 = vpack.c.bf16 %v3411_v59, %v3411_v59  ;;  %v12670_v42 = vpop.f32.mrf.mxu3  ;;  %v12672_v33 = vpop.f32.mrf.mxu0 }
 0x201   :  { %v2675_v61 = vpop.f32.mrf.mxu1 }
 0x202   :  { %v12674_v45 = vunpack.c.l.b16 %v3721_v51  ;;  %v2676_v50 = vadd.f32 %v2675_v61, %v12628_v38  ;;  %v11219_v61 = vld [vmem:[#allocation2 + $0x38c] sm:$0xf] }
 0x203   :  { %2355 = vmatmul.bf16.gmra.mxu0 %v8883_v29  ;;  %2714 = vmatmul.bf16.gmra.mxu1 %v8855_v21  ;;  %v11210_v21 = vld [vmem:[#allocation2 + $0x344] sm:$0xf]  ;;  %v11221_v29 = vld [vmem:[#allocation2 + $0x394] sm:$0xf0] }
 0x204   :  { %v3045_v54 = vadd.f32 %v12639_v57, %v2676_v50  ;;  %3093 = vmatmul.bf16.gmra.mxu2 %v8891_v22  ;;  %v8898_v57 = vld [vmem:[#allocation2 + $0x380] sm:$0xf]  ;;  %v8871_v11 = vor.u32 %v11210_v21, %v8868_v56  ;;  %v8907_v12 = vor.u32 %v11221_v29, %v8906_v31  ;;  %v8922_v29 = vld [vmem:[#allocation2 + $0x3a8] sm:$0xf] }
 0x205   :  { %3462 = vmatmul.bf16.gmra.mxu3 %v8895_v39  ;;  %v8899_v6 = vor.u32 %v11220_v2, %v8898_v57 }
 0x206   :  { %v3414_v0 = vadd.f32 %v12641_v55, %v3045_v54  ;;  %v8908_v55 = vld [vmem:[#allocation2 + $0x398] sm:$0xf0] }
 0x207   :  { %v12683_v27 = vpop.f32.mrf.mxu2  ;;  %v8911_v52 = vor.u32 %v11219_v61, %v8908_v55  ;;  %v11225_v55 = vld [vmem:[#allocation2 + $0x3b4] sm:$0xf0] }
 0x208   :  { %v12685_v19 = vpop.f32.mrf.mxu3  ;;  %v12687_v34 = vpop.f32.mrf.mxu0  ;;  %v3722_v22 = vpack.c.bf16 %v3414_v0, %v3414_v0 }
 0x209   :  { %v2677_v38 = vpop.f32.mrf.mxu1 }
 0x20a   :  { %v2678_v59 = vadd.f32 %v2677_v38, %v12643_v13  ;;  %v11415_v13 = vld [vmem:[#allocation4 + $0xa8] sm:$0xff] }
 0x20b   :  { %v11407_v38 = vld [vmem:[#allocation4 + $0x68] sm:$0xff]  ;;  %4944 = vmatpush.bf16.msrb.mxu2 %v11415_v13 }
 0x20c   :  { %v3047_v7 = vadd.f32 %v3046_v43, %v2678_v59  ;;  %v11423_v43 = vld [vmem:[#allocation4 + $0xe8] sm:$0xff]  ;;  %4895 = vmatpush.bf16.msra.mxu1 %v11407_v38 }
 0x20d   :  { %4993 = vmatpush.bf16.msrb.mxu3 %v11423_v43 }
 0x20e   :  { %v3416_v51 = vadd.f32 %v12647_v35, %v3047_v7  ;;  %v12700_v7 = vunpack.c.l.b16 %v3722_v22  ;;  %v8924_v22 = vld [vmem:[#allocation2 + $0x3b8] sm:$0xf0] }
 0x20f   :  { %v12691_v50 = vpop.f32.mrf.mxu2 }
 0x210   :  { %v3723_v39 = vpack.c.bf16 %v3416_v51, %v3416_v51  ;;  %v12693_v54 = vpop.f32.mrf.mxu3  ;;  %v12695_v59 = vpop.f32.mrf.mxu0 }
 0x211   :  { %v2680_v32 = vpop.f32.mrf.mxu1 }
 0x212   :  { %v2681_v35 = vadd.f32 %v2680_v32, %v12649_v18  ;;  %v12698_v0 = vunpack.c.l.b16 %v3723_v39 }
 0x213   :  { %2360 = vmatmul.bf16.gmra.mxu0 %v8899_v6  ;;  %2719 = vmatmul.bf16.gmra.mxu1 %v8871_v11  ;;  %v8914_v6 = vld [vmem:[#allocation2 + $0x3a0] sm:$0xf]  ;;  %v11224_v11 = vld [vmem:[#allocation2 + $0x3ac] sm:$0xf0] }
 0x214   :  { %v3050_v57 = vadd.f32 %v12660_v44, %v2681_v35  ;;  %3098 = vmatmul.bf16.gmra.mxu2 %v8907_v12  ;;  %v11214_v12 = vld [vmem:[#allocation2 + $0x364] sm:$0xf]  ;;  %v8915_v35 = vor.u32 %v11224_v11, %v8914_v6 }
 0x215   :  { %3467 = vmatmul.bf16.gmra.mxu3 %v8911_v52  ;;  %v8884_v52 = vld [vmem:[#allocation2 + $0x370] sm:$0xf0] }
 0x216   :  { %v3419_v21 = vadd.f32 %v12662_v47, %v3050_v57  ;;  %v11223_v47 = vld [vmem:[#allocation2 + $0x3ac] sm:$0xf]  ;;  %v8887_v57 = vor.u32 %v11214_v12, %v8884_v52 }
 0x217   :  { %v12706_v56 = vpop.f32.mrf.mxu2 }
 0x218   :  { %v12708_v18 = vpop.f32.mrf.mxu3  ;;  %v12710_v32 = vpop.f32.mrf.mxu0  ;;  %v3724_v39 = vpack.c.bf16 %v3419_v21, %v3419_v21 }
 0x219   :  { %v2682_v31 = vpop.f32.mrf.mxu1 }
 0x21a   :  { %v2683_v51 = vadd.f32 %v2682_v31, %v12664_v1  ;;  %v8923_v31 = vor.u32 %v11225_v55, %v8922_v29  ;;  %v11218_v55 = vld [vmem:[#allocation2 + $0x384] sm:$0xf] }
 0x21c   :  { %v3052_v44 = vadd.f32 %v12668_v9, %v2683_v51  ;;  %v8927_v51 = vor.u32 %v11223_v47, %v8924_v22  ;;  %v8900_v47 = vld [vmem:[#allocation2 + $0x390] sm:$0xf0]  ;;  %v8938_v22 = vld [vmem:[#allocation2 + $0x3c8] sm:$0xf] }
 0x21d   :  { %v8903_v21 = vor.u32 %v11218_v55, %v8900_v47 }
 0x21e   :  { %v3421_v61 = vadd.f32 %v12670_v42, %v3052_v44  ;;  %v12722_v42 = vunpack.c.l.b16 %v3724_v39 }
 0x21f   :  { %v3061_v43 = vpop.f32.mrf.mxu2 }
 0x220   :  { %v3725_v13 = vpack.c.bf16 %v3421_v61, %v3421_v61  ;;  %v12715_v38 = vpop.f32.mrf.mxu3  ;;  %v12717_v1 = vpop.f32.mrf.mxu0  ;;  %v11228_v61 = vld [vmem:[#allocation2 + $0x3cc] sm:$0xf0] }
 0x221   :  { %v2685_v9 = vpop.f32.mrf.mxu1 }
 0x222   :  { %v2686_v2 = vadd.f32 %v2685_v9, %v12672_v33  ;;  %v12720_v28 = vunpack.c.l.b16 %v3725_v13  ;;  %v11229_v13 = vld [vmem:[#allocation2 + $0x3d4] sm:$0xf0] }
 0x223   :  { %2365 = vmatmul.bf16.gmra.mxu0 %v8915_v35  ;;  %2724 = vmatmul.bf16.gmra.mxu1 %v8887_v57  ;;  %v8940_v35 = vld [vmem:[#allocation2 + $0x3d8] sm:$0xf0] }
 0x224   :  { %v3055_v44 = vadd.f32 %v12683_v27, %v2686_v2  ;;  %3103 = vmatmul.bf16.gmra.mxu2 %v8923_v31  ;;  %v8930_v2 = vld [vmem:[#allocation2 + $0x3c0] sm:$0xf] }
 0x225   :  { %3472 = vmatmul.bf16.gmra.mxu3 %v8927_v51 }
 0x226   :  { %v3424_v6 = vadd.f32 %v12685_v19, %v3055_v44  ;;  %v11227_v19 = vld [vmem:[#allocation2 + $0x3cc] sm:$0xf]  ;;  %v8931_v44 = vor.u32 %v11228_v61, %v8930_v2 }
 0x227   :  { %v12728_v11 = vpop.f32.mrf.mxu2 }
 0x228   :  { %v12730_v12 = vpop.f32.mrf.mxu3  ;;  %v12732_v33 = vpop.f32.mrf.mxu0  ;;  %v3726_v57 = vpack.c.bf16 %v3424_v6, %v3424_v6 }
 0x229   :  { %v2687_v52 = vpop.f32.mrf.mxu1 }
 0x22a   :  { %v2688_v29 = vadd.f32 %v2687_v52, %v12687_v34  ;;  %v8939_v52 = vor.u32 %v11229_v13, %v8938_v22  ;;  %v8916_v13 = vld [vmem:[#allocation2 + $0x3b0] sm:$0xf0] }
 0x22c   :  { %v3057_v27 = vadd.f32 %v12691_v50, %v2688_v29  ;;  %v8943_v29 = vor.u32 %v11227_v19, %v8940_v35  ;;  %v8954_v19 = vld [vmem:[#allocation2 + $0x3e8] sm:$0xf] }
 0x22e   :  { %v3426_v39 = vadd.f32 %v12693_v54, %v3057_v27  ;;  %v12744_v54 = vunpack.c.l.b16 %v3726_v57  ;;  %v11233_v57 = vld [vmem:[#allocation2 + $0x3f4] sm:$0xf0] }
 0x22f   :  { %v3066_v31 = vpop.f32.mrf.mxu2 }
 0x230   :  { %v3727_v9 = vpack.c.bf16 %v3426_v39, %v3426_v39  ;;  %v12737_v51 = vpop.f32.mrf.mxu3  ;;  %v12739_v34 = vpop.f32.mrf.mxu0  ;;  %14386 = vst [vmem:[#allocation48_spill] sm:$0xff] %v12744_v54 }
 0x231   :  { %v2690_v50 = vpop.f32.mrf.mxu1 }
 0x232   :  { %v2691_v58 = vadd.f32 %v2690_v50, %v12695_v59  ;;  %v12742_v41 = vunpack.c.l.b16 %v3727_v9  ;;  %v11231_v9 = vld [vmem:[#allocation2 + $0x3ec] sm:$0xf] }
 0x233   :  { %2370 = vmatmul.bf16.gmra.mxu0 %v8931_v44  ;;  %2729 = vmatmul.bf16.gmra.mxu1 %v8903_v21  ;;  %v11222_v21 = vld [vmem:[#allocation2 + $0x3a4] sm:$0xf] }
 0x234   :  { %v3060_v27 = vadd.f32 %v12706_v56, %v2691_v58  ;;  %3108 = vmatmul.bf16.gmra.mxu2 %v8939_v52  ;;  %v8946_v58 = vld [vmem:[#allocation2 + $0x3e0] sm:$0xf]  ;;  %v11232_v56 = vld [vmem:[#allocation2 + $0x3ec] sm:$0xf0]  ;;  %v8919_v6 = vor.u32 %v11222_v21, %v8916_v13 }
 0x235   :  { %3477 = vmatmul.bf16.gmra.mxu3 %v8943_v29 }
 0x236   :  { %v3429_v2 = vadd.f32 %v12708_v18, %v3060_v27  ;;  %v8956_v18 = vld [vmem:[#allocation2 + $0x3f8] sm:$0xf0]  ;;  %v8947_v27 = vor.u32 %v11232_v56, %v8946_v58 }
 0x237   :  { %v12750_v61 = vpop.f32.mrf.mxu2 }
 0x238   :  { %v12752_v55 = vpop.f32.mrf.mxu3  ;;  %v12754_v59 = vpop.f32.mrf.mxu0  ;;  %v3728_v44 = vpack.c.bf16 %v3429_v2, %v3429_v2 }
 0x239   :  { %v2692_v47 = vpop.f32.mrf.mxu1 }
 0x23a   :  { %v2693_v22 = vadd.f32 %v2692_v47, %v12710_v32  ;;  %v8955_v47 = vor.u32 %v11233_v57, %v8954_v19  ;;  %v8932_v57 = vld [vmem:[#allocation2 + $0x3d0] sm:$0xf0] }
 0x23c   :  { %v3062_v39 = vadd.f32 %v3061_v43, %v2693_v22  ;;  %v8959_v22 = vor.u32 %v11231_v9, %v8956_v18  ;;  %v8970_v9 = vld [vmem:[#allocation2 + $0x408] sm:$0xf] }
 0x23e   :  { %v3431_v35 = vadd.f32 %v12715_v38, %v3062_v39  ;;  %v12765_v39 = vunpack.c.l.b16 %v3728_v44  ;;  %v11237_v44 = vld [vmem:[#allocation2 + $0x414] sm:$0xf0] }
 0x23f   :  { %v3071_v52 = vpop.f32.mrf.mxu2 }
 0x240   :  { %v3729_v50 = vpack.c.bf16 %v3431_v35, %v3431_v35  ;;  %v12758_v29 = vpop.f32.mrf.mxu3  ;;  %v12760_v32 = vpop.f32.mrf.mxu0  ;;  %14388 = vst [vmem:[#allocation50_spill] sm:$0xff] %v12765_v39 }
 0x241   :  { %v2695_v43 = vpop.f32.mrf.mxu1 }
 0x242   :  { %v2696_v25 = vadd.f32 %v2695_v43, %v12717_v1  ;;  %v12763_v38 = vunpack.c.l.b16 %v3729_v50  ;;  %v11235_v50 = vld [vmem:[#allocation2 + $0x40c] sm:$0xf] }
 0x243   :  { %2375 = vmatmul.bf16.gmra.mxu0 %v8947_v27  ;;  %2734 = vmatmul.bf16.gmra.mxu1 %v8919_v6  ;;  %v11226_v6 = vld [vmem:[#allocation2 + $0x3c4] sm:$0xf] }
 0x244   :  { %14387 = vst [vmem:[#allocation49_spill] sm:$0xff] %v12763_v38  ;;  %v3065_v2 = vadd.f32 %v12728_v11, %v2696_v25  ;;  %3113 = vmatmul.bf16.gmra.mxu2 %v8955_v47  ;;  %v8962_v25 = vld [vmem:[#allocation2 + $0x400] sm:$0xf]  ;;  %v11236_v11 = vld [vmem:[#allocation2 + $0x40c] sm:$0xf0]  ;;  %v8935_v58 = vor.u32 %v11226_v6, %v8932_v57 }
 0x245   :  { %3482 = vmatmul.bf16.gmra.mxu3 %v8959_v22 }
 0x246   :  { %v3434_v56 = vadd.f32 %v12730_v12, %v3065_v2  ;;  %v8972_v12 = vld [vmem:[#allocation2 + $0x418] sm:$0xf0]  ;;  %v8963_v2 = vor.u32 %v11236_v11, %v8962_v25 }
 0x247   :  { %v12771_v21 = vpop.f32.mrf.mxu2 }
 0x248   :  { %v12773_v13 = vpop.f32.mrf.mxu3  ;;  %v12775_v20 = vpop.f32.mrf.mxu0  ;;  %v3730_v27 = vpack.c.bf16 %v3434_v56, %v3434_v56 }
 0x249   :  { %v2697_v1 = vpop.f32.mrf.mxu1 }
 0x24a   :  { %v2698_v19 = vadd.f32 %v2697_v1, %v12732_v33  ;;  %v8975_v1 = vor.u32 %v11235_v50, %v8972_v12  ;;  %v8948_v50 = vld [vmem:[#allocation2 + $0x3f0] sm:$0xf0]  ;;  %v8986_v12 = vld [vmem:[#allocation2 + $0x428] sm:$0xf] }
 0x24c   :  { %v3067_v35 = vadd.f32 %v3066_v31, %v2698_v19  ;;  %v8971_v31 = vor.u32 %v11237_v44, %v8970_v9  ;;  %v11240_v44 = vld [vmem:[#allocation2 + $0x42c] sm:$0xf0] }
 0x24e   :  { %v3436_v18 = vadd.f32 %v12737_v51, %v3067_v35  ;;  %v12786_v51 = vunpack.c.l.b16 %v3730_v27 }
 0x24f   :  { %v3076_v47 = vpop.f32.mrf.mxu2 }
 0x250   :  { %v3731_v43 = vpack.c.bf16 %v3436_v18, %v3436_v18  ;;  %v12779_v22 = vpop.f32.mrf.mxu3  ;;  %v12781_v63 = vpop.f32.mrf.mxu0  ;;  %14390 = vst [vmem:[#allocation52_spill] sm:$0xff] %v12786_v51 }
 0x251   :  { %v2700_v33 = vpop.f32.mrf.mxu1 }
 0x252   :  { %v2701_v19 = vadd.f32 %v2700_v33, %v12739_v34  ;;  %v12784_v49 = vunpack.c.l.b16 %v3731_v43  ;;  %v11241_v43 = vld [vmem:[#allocation2 + $0x434] sm:$0xf0] }
 0x253   :  { %2380 = vmatmul.bf16.gmra.mxu0 %v8963_v2  ;;  %2739 = vmatmul.bf16.gmra.mxu1 %v8935_v58  ;;  %v11230_v58 = vld [vmem:[#allocation2 + $0x3e4] sm:$0xf]  ;;  %v11239_v2 = vld [vmem:[#allocation2 + $0x42c] sm:$0xf] }
 0x254   :  { %14389 = vst [vmem:[#allocation51_spill] sm:$0xff] %v12784_v49  ;;  %v3070_v35 = vadd.f32 %v12750_v61, %v2701_v19  ;;  %3118 = vmatmul.bf16.gmra.mxu2 %v8971_v31  ;;  %v8978_v61 = vld [vmem:[#allocation2 + $0x420] sm:$0xf]  ;;  %v8951_v56 = vor.u32 %v11230_v58, %v8948_v50 }
 0x255   :  { %3487 = vmatmul.bf16.gmra.mxu3 %v8975_v1 }
 0x256   :  { %v3439_v25 = vadd.f32 %v12752_v55, %v3070_v35  ;;  %v8988_v55 = vld [vmem:[#allocation2 + $0x438] sm:$0xf0]  ;;  %v8979_v35 = vor.u32 %v11240_v44, %v8978_v61 }
 0x257   :  { %v12792_v11 = vpop.f32.mrf.mxu2 }
 0x258   :  { %v12794_v6 = vpop.f32.mrf.mxu3  ;;  %v12796_v34 = vpop.f32.mrf.mxu0  ;;  %v3732_v33 = vpack.c.bf16 %v3439_v25, %v3439_v25 }
 0x259   :  { %v2702_v57 = vpop.f32.mrf.mxu1 }
 0x25a   :  { %v2703_v9 = vadd.f32 %v2702_v57, %v12754_v59  ;;  %v8991_v57 = vor.u32 %v11239_v2, %v8988_v55  ;;  %v8964_v2 = vld [vmem:[#allocation2 + $0x410] sm:$0xf0]  ;;  %v9002_v55 = vld [vmem:[#allocation2 + $0x448] sm:$0xf] }
 0x25c   :  { %v3072_v18 = vadd.f32 %v3071_v52, %v2703_v9  ;;  %v8987_v52 = vor.u32 %v11241_v43, %v8986_v12  ;;  %v11244_v43 = vld [vmem:[#allocation2 + $0x44c] sm:$0xf0] }
 0x25e   :  { %v3441_v27 = vadd.f32 %v12758_v29, %v3072_v18  ;;  %v12807_v29 = vunpack.c.l.b16 %v3732_v33 }
 0x25f   :  { %v3081_v1 = vpop.f32.mrf.mxu2 }
 0x260   :  { %v3733_v31 = vpack.c.bf16 %v3441_v27, %v3441_v27  ;;  %v12800_v19 = vpop.f32.mrf.mxu3  ;;  %v12802_v51 = vpop.f32.mrf.mxu0  ;;  %14392 = vst [vmem:[#allocation54_spill] sm:$0xff] %v12807_v29 }
 0x261   :  { %v2705_v59 = vpop.f32.mrf.mxu1 }
 0x262   :  { %v2706_v9 = vadd.f32 %v2705_v59, %v12760_v32  ;;  %v12805_v49 = vunpack.c.l.b16 %v3733_v31  ;;  %v11245_v31 = vld [vmem:[#allocation2 + $0x454] sm:$0xf0] }
 0x263   :  { %2385 = vmatmul.bf16.gmra.mxu0 %v8979_v35  ;;  %2744 = vmatmul.bf16.gmra.mxu1 %v8951_v56  ;;  %v11234_v56 = vld [vmem:[#allocation2 + $0x404] sm:$0xf]  ;;  %v11243_v35 = vld [vmem:[#allocation2 + $0x44c] sm:$0xf] }
 0x264   :  { %14391 = vst [vmem:[#allocation53_spill] sm:$0xff] %v12805_v49  ;;  %v3075_v18 = vadd.f32 %v12771_v21, %v2706_v9  ;;  %3123 = vmatmul.bf16.gmra.mxu2 %v8987_v52  ;;  %v8994_v21 = vld [vmem:[#allocation2 + $0x440] sm:$0xf]  ;;  %v8967_v25 = vor.u32 %v11234_v56, %v8964_v2 }
 0x265   :  { %3492 = vmatmul.bf16.gmra.mxu3 %v8991_v57 }
 0x266   :  { %v3444_v61 = vadd.f32 %v12773_v13, %v3075_v18  ;;  %v9004_v13 = vld [vmem:[#allocation2 + $0x458] sm:$0xf0]  ;;  %v8995_v18 = vor.u32 %v11244_v43, %v8994_v21 }
 0x267   :  { %v12813_v44 = vpop.f32.mrf.mxu2 }
 0x268   :  { %v12815_v58 = vpop.f32.mrf.mxu3  ;;  %v12817_v32 = vpop.f32.mrf.mxu0  ;;  %v3734_v59 = vpack.c.bf16 %v3444_v61, %v3444_v61 }
 0x269   :  { %v2707_v50 = vpop.f32.mrf.mxu1 }
 0x26a   :  { %v2708_v12 = vadd.f32 %v2707_v50, %v12775_v20  ;;  %v9007_v50 = vor.u32 %v11243_v35, %v9004_v13  ;;  %v8980_v35 = vld [vmem:[#allocation2 + $0x430] sm:$0xf0]  ;;  %v9018_v13 = vld [vmem:[#allocation2 + $0x468] sm:$0xf] }
 0x26c   :  { %v3077_v27 = vadd.f32 %v3076_v47, %v2708_v12  ;;  %v9003_v47 = vor.u32 %v11245_v31, %v9002_v55  ;;  %v11248_v31 = vld [vmem:[#allocation2 + $0x46c] sm:$0xf0] }
 0x26e   :  { %v3446_v33 = vadd.f32 %v12779_v22, %v3077_v27  ;;  %v12828_v22 = vunpack.c.l.b16 %v3734_v59 }
 0x26f   :  { %v3086_v57 = vpop.f32.mrf.mxu2 }
 0x270   :  { %v3735_v52 = vpack.c.bf16 %v3446_v33, %v3446_v33  ;;  %v12821_v9 = vpop.f32.mrf.mxu3  ;;  %v12823_v29 = vpop.f32.mrf.mxu0  ;;  %14394 = vst [vmem:[#allocation56_spill] sm:$0xff] %v12828_v22 }
 0x271   :  { %v2710_v20 = vpop.f32.mrf.mxu1 }
 0x272   :  { %v2711_v12 = vadd.f32 %v2710_v20, %v12781_v63  ;;  %v12826_v49 = vunpack.c.l.b16 %v3735_v52  ;;  %v11249_v52 = vld [vmem:[#allocation2 + $0x474] sm:$0xf0] }
 0x273   :  { %2390 = vmatmul.bf16.gmra.mxu0 %v8995_v18  ;;  %2749 = vmatmul.bf16.gmra.mxu1 %v8967_v25  ;;  %v11238_v25 = vld [vmem:[#allocation2 + $0x424] sm:$0xf]  ;;  %v11247_v18 = vld [vmem:[#allocation2 + $0x46c] sm:$0xf] }
 0x274   :  { %14393 = vst [vmem:[#allocation55_spill] sm:$0xff] %v12826_v49  ;;  %v3080_v27 = vadd.f32 %v12792_v11, %v2711_v12  ;;  %3128 = vmatmul.bf16.gmra.mxu2 %v9003_v47  ;;  %v9010_v11 = vld [vmem:[#allocation2 + $0x460] sm:$0xf]  ;;  %v8983_v61 = vor.u32 %v11238_v25, %v8980_v35 }
 0x275   :  { %3497 = vmatmul.bf16.gmra.mxu3 %v9007_v50 }
 0x276   :  { %v3449_v21 = vadd.f32 %v12794_v6, %v3080_v27  ;;  %v9020_v6 = vld [vmem:[#allocation2 + $0x478] sm:$0xf0]  ;;  %v9011_v27 = vor.u32 %v11248_v31, %v9010_v11 }
 0x277   :  { %v12834_v43 = vpop.f32.mrf.mxu2 }
 0x278   :  { %v12836_v56 = vpop.f32.mrf.mxu3  ;;  %v12838_v63 = vpop.f32.mrf.mxu0  ;;  %v3736_v20 = vpack.c.bf16 %v3449_v21, %v3449_v21 }
 0x279   :  { %v2712_v2 = vpop.f32.mrf.mxu1 }
 0x27a   :  { %v2713_v55 = vadd.f32 %v2712_v2, %v12796_v34  ;;  %v9023_v2 = vor.u32 %v11247_v18, %v9020_v6  ;;  %v9034_v18 = vld [vmem:[#allocation2 + $0x488] sm:$0xf] }
 0x27c   :  { %v3082_v33 = vadd.f32 %v3081_v1, %v2713_v55  ;;  %v9019_v1 = vor.u32 %v11249_v52, %v9018_v13  ;;  %v8996_v52 = vld [vmem:[#allocation2 + $0x450] sm:$0xf0] }
 0x27e   :  { %v3451_v59 = vadd.f32 %v12800_v19, %v3082_v33  ;;  %v12849_v19 = vunpack.c.l.b16 %v3736_v20  ;;  %v11253_v20 = vld [vmem:[#allocation2 + $0x494] sm:$0xf0] }
 0x27f   :  { %v3091_v50 = vpop.f32.mrf.mxu2 }
 0x280   :  { %v3737_v47 = vpack.c.bf16 %v3451_v59, %v3451_v59  ;;  %v12842_v12 = vpop.f32.mrf.mxu3  ;;  %v12844_v22 = vpop.f32.mrf.mxu0 }
 0x281   :  { %v2715_v34 = vpop.f32.mrf.mxu1 }
 0x282   :  { %v12846_v55 = vunpack.c.l.b16 %v3737_v47  ;;  %v2716_v49 = vadd.f32 %v2715_v34, %v12802_v51  ;;  %v11251_v47 = vld [vmem:[#allocation2 + $0x48c] sm:$0xf] }
 0x283   :  { %2395 = vmatmul.bf16.gmra.mxu0 %v9011_v27  ;;  %2754 = vmatmul.bf16.gmra.mxu1 %v8983_v61  ;;  %v11242_v61 = vld [vmem:[#allocation2 + $0x444] sm:$0xf] }
 0x284   :  { %v3085_v33 = vadd.f32 %v12813_v44, %v2716_v49  ;;  %3133 = vmatmul.bf16.gmra.mxu2 %v9019_v1  ;;  %v9026_v49 = vld [vmem:[#allocation2 + $0x480] sm:$0xf]  ;;  %v11252_v44 = vld [vmem:[#allocation2 + $0x48c] sm:$0xf0]  ;;  %v8999_v21 = vor.u32 %v11242_v61, %v8996_v52 }
 0x285   :  { %3502 = vmatmul.bf16.gmra.mxu3 %v9023_v2 }
 0x286   :  { %v3454_v11 = vadd.f32 %v12815_v58, %v3085_v33  ;;  %v9036_v58 = vld [vmem:[#allocation2 + $0x498] sm:$0xf0]  ;;  %v9027_v33 = vor.u32 %v11252_v44, %v9026_v49 }
 0x287   :  { %v12855_v31 = vpop.f32.mrf.mxu2 }
 0x288   :  { %v12857_v25 = vpop.f32.mrf.mxu3  ;;  %v12859_v35 = vpop.f32.mrf.mxu0  ;;  %v3738_v27 = vpack.c.bf16 %v3454_v11, %v3454_v11 }
 0x289   :  { %v2717_v51 = vpop.f32.mrf.mxu1 }
 0x28a   :  { %v2718_v13 = vadd.f32 %v2717_v51, %v12817_v32  ;;  %v9035_v51 = vor.u32 %v11253_v20, %v9034_v18  ;;  %v9012_v20 = vld [vmem:[#allocation2 + $0x470] sm:$0xf0] }
 0x28c   :  { %v3087_v59 = vadd.f32 %v3086_v57, %v2718_v13  ;;  %v9039_v13 = vor.u32 %v11251_v47, %v9036_v58  ;;  %v9050_v47 = vld [vmem:[#allocation2 + $0x4a8] sm:$0xf] }
 0x28e   :  { %v3456_v6 = vadd.f32 %v12821_v9, %v3087_v59  ;;  %v12872_v9 = vunpack.c.l.b16 %v3738_v27  ;;  %v11257_v27 = vld [vmem:[#allocation2 + $0x4b4] sm:$0xf0] }
 0x28f   :  { %v12863_v1 = vpop.f32.mrf.mxu2  ;;  %v9051_v46 = vor.u32 %v11257_v27, %v9050_v47  ;;  %v9058_v27 = vld [vmem:[#allocation2 + $0x4c0] sm:$0xf] }
 0x290   :  { %v3739_v34 = vpack.c.bf16 %v3456_v6, %v3456_v6  ;;  %v12865_v2 = vpop.f32.mrf.mxu3  ;;  %v12867_v32 = vpop.f32.mrf.mxu0 }
 0x291   :  { %v2720_v57 = vpop.f32.mrf.mxu1 }
 0x292   :  { %v2721_v39 = vadd.f32 %v2720_v57, %v12823_v29  ;;  %v12870_v38 = vunpack.c.l.b16 %v3739_v34  ;;  %v11255_v34 = vld [vmem:[#allocation2 + $0x4ac] sm:$0xf] }
 0x293   :  { %2400 = vmatmul.bf16.gmra.mxu0 %v9027_v33  ;;  %2759 = vmatmul.bf16.gmra.mxu1 %v8999_v21  ;;  %v11246_v21 = vld [vmem:[#allocation2 + $0x464] sm:$0xf] }
 0x294   :  { %v3090_v11 = vadd.f32 %v12834_v43, %v2721_v39  ;;  %3138 = vmatmul.bf16.gmra.mxu2 %v9035_v51  ;;  %v9042_v39 = vld [vmem:[#allocation2 + $0x4a0] sm:$0xf]  ;;  %v11256_v43 = vld [vmem:[#allocation2 + $0x4ac] sm:$0xf0]  ;;  %v9015_v59 = vor.u32 %v11246_v21, %v9012_v20 }
 0x295   :  { %3507 = vmatmul.bf16.gmra.mxu3 %v9039_v13 }
 0x296   :  { %v3459_v49 = vadd.f32 %v12836_v56, %v3090_v11  ;;  %v9052_v56 = vld [vmem:[#allocation2 + $0x4b8] sm:$0xf0]  ;;  %v9043_v11 = vor.u32 %v11256_v43, %v9042_v39 }
 0x297   :  { %v12878_v44 = vpop.f32.mrf.mxu2  ;;  %v9055_v30 = vor.u32 %v11255_v34, %v9052_v56  ;;  %v9066_v34 = vld [vmem:[#allocation2 + $0x4c8] sm:$0xf] }
 0x298   :  { %v12880_v61 = vpop.f32.mrf.mxu3  ;;  %v12882_v29 = vpop.f32.mrf.mxu0  ;;  %v3740_v33 = vpack.c.bf16 %v3459_v49, %v3459_v49 }
 0x299   :  { %v2722_v52 = vpop.f32.mrf.mxu1 }
 0x29a   :  { %v2723_v18 = vadd.f32 %v2722_v52, %v12838_v63  ;;  %v11414_v63 = vld [vmem:[#allocation4 + $0xa0] sm:$0xff] }
 0x29b   :  { %v11406_v52 = vld [vmem:[#allocation4 + $0x60] sm:$0xff]  ;;  %4945 = vmatpush.bf16.msrb.mxu2 %v11414_v63 }
 0x29c   :  { %v3092_v6 = vadd.f32 %v3091_v50, %v2723_v18  ;;  %v11422_v50 = vld [vmem:[#allocation4 + $0xe0] sm:$0xff]  ;;  %4896 = vmatpush.bf16.msra.mxu1 %v11406_v52 }
 0x29d   :  { %4994 = vmatpush.bf16.msrb.mxu3 %v11422_v50 }
 0x29e   :  { %v3461_v58 = vadd.f32 %v12842_v12, %v3092_v6  ;;  %v12895_v6 = vunpack.c.l.b16 %v3740_v33  ;;  %v11261_v33 = vld [vmem:[#allocation2 + $0x4d4] sm:$0xf0] }
 0x29f   :  { %v12886_v51 = vpop.f32.mrf.mxu2 }
 0x2a0   :  { %v3741_v57 = vpack.c.bf16 %v3461_v58, %v3461_v58  ;;  %v12888_v13 = vpop.f32.mrf.mxu3  ;;  %v12890_v18 = vpop.f32.mrf.mxu0 }
 0x2a1   :  { %v2725_v8 = vpop.f32.mrf.mxu1 }
 0x2a2   :  { %v2726_v12 = vadd.f32 %v2725_v8, %v12844_v22  ;;  %v12893_v49 = vunpack.c.l.b16 %v3741_v57  ;;  %v9068_v57 = vld [vmem:[#allocation2 + $0x4d8] sm:$0xf0] }
 0x2a3   :  { %2405 = vmatmul.bf16.gmra.mxu0 %v9043_v11  ;;  %2764 = vmatmul.bf16.gmra.mxu1 %v9015_v59  ;;  %v11260_v59 = vld [vmem:[#allocation2 + $0x4cc] sm:$0xf0] }
 0x2a4   :  { %v3095_v39 = vadd.f32 %v12855_v31, %v2726_v12  ;;  %3143 = vmatmul.bf16.gmra.mxu2 %v9051_v46  ;;  %v11250_v46 = vld [vmem:[#allocation2 + $0x484] sm:$0xf]  ;;  %v9059_v12 = vor.u32 %v11260_v59, %v9058_v27 }
 0x2a5   :  { %3512 = vmatmul.bf16.gmra.mxu3 %v9055_v30  ;;  %v9028_v30 = vld [vmem:[#allocation2 + $0x490] sm:$0xf0] }
 0x2a6   :  { %v3464_v21 = vadd.f32 %v12857_v25, %v3095_v39  ;;  %v11259_v25 = vld [vmem:[#allocation2 + $0x4cc] sm:$0xf]  ;;  %v9031_v39 = vor.u32 %v11250_v46, %v9028_v30 }
 0x2a7   :  { %v12901_v20 = vpop.f32.mrf.mxu2 }
 0x2a8   :  { %v12903_v8 = vpop.f32.mrf.mxu3  ;;  %v12905_v22 = vpop.f32.mrf.mxu0  ;;  %v3742_v11 = vpack.c.bf16 %v3464_v21, %v3464_v21 }
 0x2a9   :  { %v2727_v47 = vpop.f32.mrf.mxu1 }
 0x2aa   :  { %v2728_v58 = vadd.f32 %v2727_v47, %v12859_v35  ;;  %v9067_v47 = vor.u32 %v11261_v33, %v9066_v34  ;;  %v11254_v33 = vld [vmem:[#allocation2 + $0x4a4] sm:$0xf] }
 0x2ac   :  { %v3097_v31 = vadd.f32 %v12863_v1, %v2728_v58  ;;  %v9071_v58 = vor.u32 %v11259_v25, %v9068_v57  ;;  %v9044_v25 = vld [vmem:[#allocation2 + $0x4b0] sm:$0xf0]  ;;  %v9082_v57 = vld [vmem:[#allocation2 + $0x4e8] sm:$0xf] }
 0x2ad   :  { %v9047_v21 = vor.u32 %v11254_v33, %v9044_v25 }
 0x2ae   :  { %v3466_v56 = vadd.f32 %v12865_v2, %v3097_v31  ;;  %v12917_v2 = vunpack.c.l.b16 %v3742_v11 }
 0x2af   :  { %v3106_v50 = vpop.f32.mrf.mxu2 }
 0x2b0   :  { %v3743_v63 = vpack.c.bf16 %v3466_v56, %v3466_v56  ;;  %v12910_v52 = vpop.f32.mrf.mxu3  ;;  %v12912_v35 = vpop.f32.mrf.mxu0  ;;  %14396 = vst [vmem:[#allocation58_spill] sm:$0xff] %v12917_v2  ;;  %v11264_v56 = vld [vmem:[#allocation2 + $0x4ec] sm:$0xf0] }
 0x2b1   :  { %v2730_v1 = vpop.f32.mrf.mxu1 }
 0x2b2   :  { %v2731_v43 = vadd.f32 %v2730_v1, %v12867_v32  ;;  %v12915_v15 = vunpack.c.l.b16 %v3743_v63  ;;  %v11265_v63 = vld [vmem:[#allocation2 + $0x4f4] sm:$0xf0] }
 0x2b3   :  { %2410 = vmatmul.bf16.gmra.mxu0 %v9059_v12  ;;  %2769 = vmatmul.bf16.gmra.mxu1 %v9031_v39  ;;  %v9084_v12 = vld [vmem:[#allocation2 + $0x4f8] sm:$0xf0] }
 0x2b4   :  { %14395 = vst [vmem:[#allocation57_spill] sm:$0xff] %v12915_v15  ;;  %v3100_v31 = vadd.f32 %v12878_v44, %v2731_v43  ;;  %3148 = vmatmul.bf16.gmra.mxu2 %v9067_v47  ;;  %v9074_v43 = vld [vmem:[#allocation2 + $0x4e0] sm:$0xf] }
 0x2b5   :  { %3517 = vmatmul.bf16.gmra.mxu3 %v9071_v58 }
 0x2b6   :  { %v3469_v27 = vadd.f32 %v12880_v61, %v3100_v31  ;;  %v11263_v61 = vld [vmem:[#allocation2 + $0x4ec] sm:$0xf]  ;;  %v9075_v31 = vor.u32 %v11264_v56, %v9074_v43 }
 0x2b7   :  { %v12923_v59 = vpop.f32.mrf.mxu2 }
 0x2b8   :  { %v12925_v46 = vpop.f32.mrf.mxu3  ;;  %v12927_v32 = vpop.f32.mrf.mxu0  ;;  %v3744_v39 = vpack.c.bf16 %v3469_v27, %v3469_v27 }
 0x2b9   :  { %v2732_v30 = vpop.f32.mrf.mxu1 }
 0x2ba   :  { %v2733_v34 = vadd.f32 %v2732_v30, %v12882_v29  ;;  %v9083_v30 = vor.u32 %v11265_v63, %v9082_v57  ;;  %v11258_v63 = vld [vmem:[#allocation2 + $0x4c4] sm:$0xf] }
 0x2bc   :  { %v3102_v44 = vadd.f32 %v12886_v51, %v2733_v34  ;;  %v9087_v34 = vor.u32 %v11263_v61, %v9084_v12  ;;  %v9060_v61 = vld [vmem:[#allocation2 + $0x4d0] sm:$0xf0]  ;;  %v9098_v12 = vld [vmem:[#allocation2 + $0x508] sm:$0xf] }
 0x2be   :  { %v3471_v11 = vadd.f32 %v12888_v13, %v3102_v44  ;;  %v12939_v13 = vunpack.c.l.b16 %v3744_v39 }
 0x2bf   :  { %v3111_v47 = vpop.f32.mrf.mxu2 }
 0x2c0   :  { %v3745_v1 = vpack.c.bf16 %v3471_v11, %v3471_v11  ;;  %v12932_v58 = vpop.f32.mrf.mxu3  ;;  %v12934_v29 = vpop.f32.mrf.mxu0  ;;  %14398 = vst [vmem:[#allocation60_spill] sm:$0xff] %v12939_v13  ;;  %v11397_v11 = vld [vmem:[#allocation4 + $0x18] sm:$0xff] }
 0x2c1   :  { %v2735_v51 = vpop.f32.mrf.mxu1  ;;  %4848 = vmatpush.bf16.msrb.mxu0 %v11397_v11 }
 0x2c2   :  { %v2736_v2 = vadd.f32 %v2735_v51, %v12890_v18  ;;  %v12937_v15 = vunpack.c.l.b16 %v3745_v1  ;;  %v11267_v1 = vld [vmem:[#allocation2 + $0x50c] sm:$0xf] }
 0x2c3   :  { %2415 = vmatmul.bf16.gmra.mxu0 %v9075_v31  ;;  %2774 = vmatmul.bf16.gmra.mxu1 %v9047_v21  ;;  %v11268_v21 = vld [vmem:[#allocation2 + $0x50c] sm:$0xf0]  ;;  %v9100_v31 = vld [vmem:[#allocation2 + $0x518] sm:$0xf0] }
 0x2c4   :  { %14397 = vst [vmem:[#allocation59_spill] sm:$0xff] %v12937_v15  ;;  %v3105_v44 = vadd.f32 %v12901_v20, %v2736_v2  ;;  %3153 = vmatmul.bf16.gmra.mxu2 %v9083_v30  ;;  %v9090_v2 = vld [vmem:[#allocation2 + $0x500] sm:$0xf]  ;;  %v9103_v11 = vor.u32 %v11267_v1, %v9100_v31  ;;  %v9114_v1 = vld [vmem:[#allocation2 + $0x528] sm:$0xf] }
 0x2c5   :  { %3522 = vmatmul.bf16.gmra.mxu3 %v9087_v34  ;;  %v9091_v27 = vor.u32 %v11268_v21, %v9090_v2 }
 0x2c6   :  { %v3474_v43 = vadd.f32 %v12903_v8, %v3105_v44  ;;  %v11269_v8 = vld [vmem:[#allocation2 + $0x514] sm:$0xf0] }
 0x2c7   :  { %v12945_v56 = vpop.f32.mrf.mxu2 }
 0x2c8   :  { %v12947_v33 = vpop.f32.mrf.mxu3  ;;  %v12949_v18 = vpop.f32.mrf.mxu0  ;;  %v3746_v51 = vpack.c.bf16 %v3474_v43, %v3474_v43 }
 0x2c9   :  { %v2737_v25 = vpop.f32.mrf.mxu1 }
 0x2ca   :  { %v2738_v57 = vadd.f32 %v2737_v25, %v12905_v22  ;;  %v9063_v22 = vor.u32 %v11258_v63, %v9060_v61 }
 0x2cc   :  { %v3107_v20 = vadd.f32 %v3106_v50, %v2738_v57  ;;  %v9099_v57 = vor.u32 %v11269_v8, %v9098_v12  ;;  %v9076_v8 = vld [vmem:[#allocation2 + $0x4f0] sm:$0xf0] }
 0x2ce   :  { %v3476_v39 = vadd.f32 %v12910_v52, %v3107_v20  ;;  %v12960_v52 = vunpack.c.l.b16 %v3746_v51  ;;  %v11273_v51 = vld [vmem:[#allocation2 + $0x534] sm:$0xf0] }
 0x2cf   :  { %v3116_v34 = vpop.f32.mrf.mxu2 }
 0x2d0   :  { %v3747_v30 = vpack.c.bf16 %v3476_v39, %v3476_v39  ;;  %v12953_v44 = vpop.f32.mrf.mxu3  ;;  %v12955_v25 = vpop.f32.mrf.mxu0  ;;  %14400 = vst [vmem:[#allocation62_spill] sm:$0xff] %v12960_v52 }
 0x2d1   :  { %v2740_v50 = vpop.f32.mrf.mxu1 }
 0x2d2   :  { %v2741_v13 = vadd.f32 %v2740_v50, %v12912_v35  ;;  %v12958_v15 = vunpack.c.l.b16 %v3747_v30  ;;  %v11271_v30 = vld [vmem:[#allocation2 + $0x52c] sm:$0xf] }
 0x2d3   :  { %2420 = vmatmul.bf16.gmra.mxu0 %v9091_v27  ;;  %2779 = vmatmul.bf16.gmra.mxu1 %v9063_v22  ;;  %v11262_v27 = vld [vmem:[#allocation2 + $0x4e4] sm:$0xf] }
 0x2d4   :  { %14399 = vst [vmem:[#allocation61_spill] sm:$0xff] %v12958_v15  ;;  %v3110_v20 = vadd.f32 %v12923_v59, %v2741_v13  ;;  %3158 = vmatmul.bf16.gmra.mxu2 %v9099_v57  ;;  %v9106_v59 = vld [vmem:[#allocation2 + $0x520] sm:$0xf]  ;;  %v11272_v13 = vld [vmem:[#allocation2 + $0x52c] sm:$0xf0]  ;;  %v9079_v43 = vor.u32 %v11262_v27, %v9076_v8 }
 0x2d5   :  { %3527 = vmatmul.bf16.gmra.mxu3 %v9103_v11 }
 0x2d6   :  { %v3479_v2 = vadd.f32 %v12925_v46, %v3110_v20  ;;  %v9116_v46 = vld [vmem:[#allocation2 + $0x538] sm:$0xf0]  ;;  %v9107_v20 = vor.u32 %v11272_v13, %v9106_v59 }
 0x2d7   :  { %v12966_v21 = vpop.f32.mrf.mxu2 }
 0x2d8   :  { %v12968_v63 = vpop.f32.mrf.mxu3  ;;  %v12970_v35 = vpop.f32.mrf.mxu0  ;;  %v3748_v22 = vpack.c.bf16 %v3479_v2, %v3479_v2 }
 0x2d9   :  { %v2742_v61 = vpop.f32.mrf.mxu1 }
 0x2da   :  { %v2743_v12 = vadd.f32 %v2742_v61, %v12927_v32  ;;  %v9119_v61 = vor.u32 %v11271_v30, %v9116_v46  ;;  %v9092_v30 = vld [vmem:[#allocation2 + $0x510] sm:$0xf0]  ;;  %v9130_v46 = vld [vmem:[#allocation2 + $0x548] sm:$0xf] }
 0x2dc   :  { %v3112_v39 = vadd.f32 %v3111_v47, %v2743_v12  ;;  %v9115_v47 = vor.u32 %v11273_v51, %v9114_v1  ;;  %v11276_v51 = vld [vmem:[#allocation2 + $0x54c] sm:$0xf0] }
 0x2de   :  { %v3481_v31 = vadd.f32 %v12932_v58, %v3112_v39  ;;  %v12981_v58 = vunpack.c.l.b16 %v3748_v22 }
 0x2df   :  { %v3121_v57 = vpop.f32.mrf.mxu2 }
 0x2e0   :  { %v3749_v50 = vpack.c.bf16 %v3481_v31, %v3481_v31  ;;  %v12974_v11 = vpop.f32.mrf.mxu3  ;;  %v12976_v52 = vpop.f32.mrf.mxu0  ;;  %14402 = vst [vmem:[#allocation64_spill] sm:$0xff] %v12981_v58 }
 0x2e1   :  { %v2745_v32 = vpop.f32.mrf.mxu1 }
 0x2e2   :  { %v2746_v12 = vadd.f32 %v2745_v32, %v12934_v29  ;;  %v12979_v15 = vunpack.c.l.b16 %v3749_v50  ;;  %v11277_v50 = vld [vmem:[#allocation2 + $0x554] sm:$0xf0] }
 0x2e3   :  { %2425 = vmatmul.bf16.gmra.mxu0 %v9107_v20  ;;  %2784 = vmatmul.bf16.gmra.mxu1 %v9079_v43  ;;  %v11266_v43 = vld [vmem:[#allocation2 + $0x504] sm:$0xf]  ;;  %v11275_v20 = vld [vmem:[#allocation2 + $0x54c] sm:$0xf] }
 0x2e4   :  { %14401 = vst [vmem:[#allocation63_spill] sm:$0xff] %v12979_v15  ;;  %v3115_v39 = vadd.f32 %v12945_v56, %v2746_v12  ;;  %3163 = vmatmul.bf16.gmra.mxu2 %v9115_v47  ;;  %v9122_v56 = vld [vmem:[#allocation2 + $0x540] sm:$0xf]  ;;  %v9095_v2 = vor.u32 %v11266_v43, %v9092_v30 }
 0x2e5   :  { %3532 = vmatmul.bf16.gmra.mxu3 %v9119_v61 }
 0x2e6   :  { %v3484_v59 = vadd.f32 %v12947_v33, %v3115_v39  ;;  %v9132_v33 = vld [vmem:[#allocation2 + $0x558] sm:$0xf0]  ;;  %v9123_v39 = vor.u32 %v11276_v51, %v9122_v56 }
 0x2e7   :  { %v12987_v13 = vpop.f32.mrf.mxu2 }
 0x2e8   :  { %v12989_v27 = vpop.f32.mrf.mxu3  ;;  %v12991_v29 = vpop.f32.mrf.mxu0  ;;  %v3750_v32 = vpack.c.bf16 %v3484_v59, %v3484_v59 }
 0x2e9   :  { %v2747_v8 = vpop.f32.mrf.mxu1 }
 0x2ea   :  { %v2748_v1 = vadd.f32 %v2747_v8, %v12949_v18  ;;  %v9135_v8 = vor.u32 %v11275_v20, %v9132_v33  ;;  %v9108_v20 = vld [vmem:[#allocation2 + $0x530] sm:$0xf0]  ;;  %v9146_v33 = vld [vmem:[#allocation2 + $0x568] sm:$0xf] }
 0x2ec   :  { %v3117_v31 = vadd.f32 %v3116_v34, %v2748_v1  ;;  %v9131_v34 = vor.u32 %v11277_v50, %v9130_v46  ;;  %v11280_v50 = vld [vmem:[#allocation2 + $0x56c] sm:$0xf0] }
 0x2ee   :  { %v3486_v22 = vadd.f32 %v12953_v44, %v3117_v31  ;;  %v13002_v44 = vunpack.c.l.b16 %v3750_v32 }
 0x2ef   :  { %v3126_v61 = vpop.f32.mrf.mxu2 }
 0x2f0   :  { %v3751_v47 = vpack.c.bf16 %v3486_v22, %v3486_v22  ;;  %v12995_v12 = vpop.f32.mrf.mxu3  ;;  %v12997_v58 = vpop.f32.mrf.mxu0  ;;  %14404 = vst [vmem:[#allocation66_spill] sm:$0xff] %v13002_v44 }
 0x2f1   :  { %v2750_v18 = vpop.f32.mrf.mxu1 }
 0x2f2   :  { %v2751_v1 = vadd.f32 %v2750_v18, %v12955_v25  ;;  %v13000_v15 = vunpack.c.l.b16 %v3751_v47  ;;  %v9148_v18 = vld [vmem:[#allocation2 + $0x578] sm:$0xf0] }
 0x2f3   :  { %2430 = vmatmul.bf16.gmra.mxu0 %v9123_v39  ;;  %2789 = vmatmul.bf16.gmra.mxu1 %v9095_v2  ;;  %v11270_v2 = vld [vmem:[#allocation2 + $0x524] sm:$0xf]  ;;  %v11281_v39 = vld [vmem:[#allocation2 + $0x574] sm:$0xf0] }
 0x2f4   :  { %14403 = vst [vmem:[#allocation65_spill] sm:$0xff] %v13000_v15  ;;  %v3120_v31 = vadd.f32 %v12966_v21, %v2751_v1  ;;  %3168 = vmatmul.bf16.gmra.mxu2 %v9131_v34  ;;  %v9138_v21 = vld [vmem:[#allocation2 + $0x560] sm:$0xf]  ;;  %v9111_v59 = vor.u32 %v11270_v2, %v9108_v20 }
 0x2f5   :  { %3537 = vmatmul.bf16.gmra.mxu3 %v9135_v8 }
 0x2f6   :  { %v3489_v56 = vadd.f32 %v12968_v63, %v3120_v31  ;;  %v11279_v63 = vld [vmem:[#allocation2 + $0x56c] sm:$0xf]  ;;  %v9139_v31 = vor.u32 %v11280_v50, %v9138_v21 }
 0x2f7   :  { %v13008_v51 = vpop.f32.mrf.mxu2 }
 0x2f8   :  { %v13010_v43 = vpop.f32.mrf.mxu3  ;;  %v13012_v25 = vpop.f32.mrf.mxu0  ;;  %v3752_v32 = vpack.c.bf16 %v3489_v56, %v3489_v56 }
 0x2f9   :  { %v2752_v30 = vpop.f32.mrf.mxu1 }
 0x2fa   :  { %v2753_v46 = vadd.f32 %v2752_v30, %v12970_v35  ;;  %v9151_v30 = vor.u32 %v11279_v63, %v9148_v18  ;;  %v11274_v63 = vld [vmem:[#allocation2 + $0x544] sm:$0xf]  ;;  %v9162_v18 = vld [vmem:[#allocation2 + $0x588] sm:$0xf] }
 0x2fc   :  { %v3122_v22 = vadd.f32 %v3121_v57, %v2753_v46  ;;  %v9147_v57 = vor.u32 %v11281_v39, %v9146_v33  ;;  %v13020_v46 = vunpack.c.l.b16 %v3752_v32  ;;  %v11284_v39 = vld [vmem:[#allocation2 + $0x58c] sm:$0xf0] }
 0x2fe   :  { %v3491_v47 = vadd.f32 %v12974_v11, %v3122_v22  ;;  %14405 = vst [vmem:[#allocation67_spill] sm:$0xff] %v13020_v46 }
 0x2ff   :  { %v3131_v8 = vpop.f32.mrf.mxu2 }
 0x300   :  { %v3753_v34 = vpack.c.bf16 %v3491_v47, %v3491_v47  ;;  %v13016_v1 = vpop.f32.mrf.mxu3  ;;  %v13018_v44 = vpop.f32.mrf.mxu0  ;;  %v9154_v47 = vld [vmem:[#allocation2 + $0x580] sm:$0xf] }
 0x301   :  { %v2755_v35 = vpop.f32.mrf.mxu1 }
 0x302   :  { %v13022_v15 = vunpack.c.l.b16 %v3753_v34  ;;  %v2756_v11 = vadd.f32 %v2755_v35, %v12976_v52  ;;  %v11285_v34 = vld [vmem:[#allocation2 + $0x594] sm:$0xf0] }
 0x303   :  { %2435 = vmatmul.bf16.gmra.mxu0 %v9139_v31  ;;  %2794 = vmatmul.bf16.gmra.mxu1 %v9111_v59  ;;  %v11283_v31 = vld [vmem:[#allocation2 + $0x58c] sm:$0xf] }
 0x304   :  { %14406 = vst [vmem:[#allocation68_spill] sm:$0xff] %v13022_v15  ;;  %v3125_v22 = vadd.f32 %v12987_v13, %v2756_v11  ;;  %3173 = vmatmul.bf16.gmra.mxu2 %v9147_v57  ;;  %v9124_v13 = vld [vmem:[#allocation2 + $0x550] sm:$0xf0] }
 0x305   :  { %3542 = vmatmul.bf16.gmra.mxu3 %v9151_v30  ;;  %v9127_v56 = vor.u32 %v11274_v63, %v9124_v13 }
 0x306   :  { %v3494_v21 = vadd.f32 %v12989_v27, %v3125_v22  ;;  %v9164_v27 = vld [vmem:[#allocation2 + $0x598] sm:$0xf0]  ;;  %v9155_v22 = vor.u32 %v11284_v39, %v9154_v47 }
 0x307   :  { %v13029_v50 = vpop.f32.mrf.mxu2 }
 0x308   :  { %v13031_v2 = vpop.f32.mrf.mxu3  ;;  %v13033_v20 = vpop.f32.mrf.mxu0  ;;  %v3754_v35 = vpack.c.bf16 %v3494_v21, %v3494_v21 }
 0x309   :  { %v2757_v33 = vpop.f32.mrf.mxu1 }
 0x30a   :  { %v2758_v52 = vadd.f32 %v2757_v33, %v12991_v29  ;;  %v9167_v33 = vor.u32 %v11283_v31, %v9164_v27  ;;  %v9140_v31 = vld [vmem:[#allocation2 + $0x570] sm:$0xf0]  ;;  %v9178_v27 = vld [vmem:[#allocation2 + $0x5a8] sm:$0xf] }
 0x30c   :  { %v3127_v32 = vadd.f32 %v3126_v61, %v2758_v52  ;;  %v9163_v61 = vor.u32 %v11285_v34, %v9162_v18  ;;  %v11288_v34 = vld [vmem:[#allocation2 + $0x5ac] sm:$0xf0] }
 0x30e   :  { %v3496_v59 = vadd.f32 %v12995_v12, %v3127_v32  ;;  %v13044_v12 = vunpack.c.l.b16 %v3754_v35 }
 0x30f   :  { %v3136_v30 = vpop.f32.mrf.mxu2 }
 0x310   :  { %v3755_v57 = vpack.c.bf16 %v3496_v59, %v3496_v59  ;;  %v13037_v11 = vpop.f32.mrf.mxu3  ;;  %v13039_v46 = vpop.f32.mrf.mxu0  ;;  %14408 = vst [vmem:[#allocation70_spill] sm:$0xff] %v13044_v12 }
 0x311   :  { %v2760_v29 = vpop.f32.mrf.mxu1 }
 0x312   :  { %v2761_v52 = vadd.f32 %v2760_v29, %v12997_v58  ;;  %v13042_v15 = vunpack.c.l.b16 %v3755_v57  ;;  %v11289_v57 = vld [vmem:[#allocation2 + $0x5b4] sm:$0xf0] }
 0x313   :  { %2440 = vmatmul.bf16.gmra.mxu0 %v9155_v22  ;;  %2799 = vmatmul.bf16.gmra.mxu1 %v9127_v56  ;;  %v11278_v56 = vld [vmem:[#allocation2 + $0x564] sm:$0xf]  ;;  %v11287_v22 = vld [vmem:[#allocation2 + $0x5ac] sm:$0xf] }
 0x314   :  { %14407 = vst [vmem:[#allocation69_spill] sm:$0xff] %v13042_v15  ;;  %v3130_v32 = vadd.f32 %v13008_v51, %v2761_v52  ;;  %3178 = vmatmul.bf16.gmra.mxu2 %v9163_v61  ;;  %v9170_v51 = vld [vmem:[#allocation2 + $0x5a0] sm:$0xf]  ;;  %v9143_v21 = vor.u32 %v11278_v56, %v9140_v31 }
 0x315   :  { %3547 = vmatmul.bf16.gmra.mxu3 %v9167_v33 }
 0x316   :  { %v3499_v47 = vadd.f32 %v13010_v43, %v3130_v32  ;;  %v9180_v43 = vld [vmem:[#allocation2 + $0x5b8] sm:$0xf0]  ;;  %v9171_v32 = vor.u32 %v11288_v34, %v9170_v51 }
 0x317   :  { %v13050_v39 = vpop.f32.mrf.mxu2 }
 0x318   :  { %v13052_v63 = vpop.f32.mrf.mxu3  ;;  %v13054_v58 = vpop.f32.mrf.mxu0  ;;  %v3756_v29 = vpack.c.bf16 %v3499_v47, %v3499_v47 }
 0x319   :  { %v2762_v13 = vpop.f32.mrf.mxu1 }
 0x31a   :  { %v2763_v18 = vadd.f32 %v2762_v13, %v13012_v25  ;;  %v9179_v13 = vor.u32 %v11289_v57, %v9178_v27  ;;  %v9156_v57 = vld [vmem:[#allocation2 + $0x590] sm:$0xf0] }
 0x31c   :  { %v3132_v59 = vadd.f32 %v3131_v8, %v2763_v18  ;;  %v9183_v18 = vor.u32 %v11287_v22, %v9180_v43  ;;  %v9194_v22 = vld [vmem:[#allocation2 + $0x5c8] sm:$0xf] }
 0x31e   :  { %v3501_v35 = vadd.f32 %v13016_v1, %v3132_v59  ;;  %v13067_v1 = vunpack.c.l.b16 %v3756_v29  ;;  %v11293_v29 = vld [vmem:[#allocation2 + $0x5d4] sm:$0xf0] }
 0x31f   :  { %v13058_v33 = vpop.f32.mrf.mxu2 }
 0x320   :  { %v3757_v61 = vpack.c.bf16 %v3501_v35, %v3501_v35  ;;  %v13060_v52 = vpop.f32.mrf.mxu3  ;;  %v13062_v25 = vpop.f32.mrf.mxu0  ;;  %14410 = vst [vmem:[#allocation72_spill] sm:$0xff] %v13067_v1 }
 0x321   :  { %v2765_v8 = vpop.f32.mrf.mxu1 }
 0x322   :  { %v2766_v12 = vadd.f32 %v2765_v8, %v13018_v44  ;;  %v13065_v15 = vunpack.c.l.b16 %v3757_v61  ;;  %v11291_v61 = vld [vmem:[#allocation2 + $0x5cc] sm:$0xf] }
 0x323   :  { %2445 = vmatmul.bf16.gmra.mxu0 %v9171_v32  ;;  %2804 = vmatmul.bf16.gmra.mxu1 %v9143_v21  ;;  %v11282_v21 = vld [vmem:[#allocation2 + $0x584] sm:$0xf] }
 0x324   :  { %14409 = vst [vmem:[#allocation71_spill] sm:$0xff] %v13065_v15  ;;  %v3135_v47 = vadd.f32 %v13029_v50, %v2766_v12  ;;  %3183 = vmatmul.bf16.gmra.mxu2 %v9179_v13  ;;  %v9186_v50 = vld [vmem:[#allocation2 + $0x5c0] sm:$0xf]  ;;  %v11292_v12 = vld [vmem:[#allocation2 + $0x5cc] sm:$0xf0]  ;;  %v9159_v59 = vor.u32 %v11282_v21, %v9156_v57  ;;  %v9195_v15 = vor.u32 %v11293_v29, %v9194_v22 }
 0x325   :  { %3552 = vmatmul.bf16.gmra.mxu3 %v9183_v18  ;;  %v9202_v29 = vld [vmem:[#allocation2 + $0x5e0] sm:$0xf] }
 0x326   :  { %v3504_v51 = vadd.f32 %v13031_v2, %v3135_v47  ;;  %v9196_v2 = vld [vmem:[#allocation2 + $0x5d8] sm:$0xf0]  ;;  %v9187_v47 = vor.u32 %v11292_v12, %v9186_v50 }
 0x327   :  { %v13073_v34 = vpop.f32.mrf.mxu2  ;;  %v9199_v54 = vor.u32 %v11291_v61, %v9196_v2  ;;  %v9210_v61 = vld [vmem:[#allocation2 + $0x5e8] sm:$0xf] }
 0x328   :  { %v13075_v56 = vpop.f32.mrf.mxu3  ;;  %v13077_v44 = vpop.f32.mrf.mxu0  ;;  %v3758_v32 = vpack.c.bf16 %v3504_v51, %v3504_v51 }
 0x329   :  { %v2767_v31 = vpop.f32.mrf.mxu1 }
 0x32a   :  { %v2768_v27 = vadd.f32 %v2767_v31, %v13033_v20  ;;  %v11413_v20 = vld [vmem:[#allocation4 + $0x98] sm:$0xff] }
 0x32b   :  { %v11405_v31 = vld [vmem:[#allocation4 + $0x58] sm:$0xff]  ;;  %4946 = vmatpush.bf16.msrb.mxu2 %v11413_v20 }
 0x32c   :  { %v3137_v35 = vadd.f32 %v3136_v30, %v2768_v27  ;;  %v11421_v30 = vld [vmem:[#allocation4 + $0xd8] sm:$0xff]  ;;  %4897 = vmatpush.bf16.msra.mxu1 %v11405_v31 }
 0x32d   :  { %4995 = vmatpush.bf16.msrb.mxu3 %v11421_v30 }
 0x32e   :  { %v3506_v43 = vadd.f32 %v13037_v11, %v3137_v35  ;;  %v13090_v35 = vunpack.c.l.b16 %v3758_v32  ;;  %v11297_v32 = vld [vmem:[#allocation2 + $0x5f4] sm:$0xf0] }
 0x32f   :  { %v13081_v13 = vpop.f32.mrf.mxu2 }
 0x330   :  { %v3759_v8 = vpack.c.bf16 %v3506_v43, %v3506_v43  ;;  %v13083_v18 = vpop.f32.mrf.mxu3  ;;  %v13085_v27 = vpop.f32.mrf.mxu0  ;;  %14412 = vst [vmem:[#allocation74_spill] sm:$0xff] %v13090_v35 }
 0x331   :  { %v2770_v1 = vpop.f32.mrf.mxu1 }
 0x332   :  { %v2771_v11 = vadd.f32 %v2770_v1, %v13039_v46  ;;  %v13088_v51 = vunpack.c.l.b16 %v3759_v8  ;;  %v9212_v8 = vld [vmem:[#allocation2 + $0x5f8] sm:$0xf0] }
 0x333   :  { %2450 = vmatmul.bf16.gmra.mxu0 %v9187_v47  ;;  %2809 = vmatmul.bf16.gmra.mxu1 %v9159_v59  ;;  %v11296_v59 = vld [vmem:[#allocation2 + $0x5ec] sm:$0xf0] }
 0x334   :  { %14411 = vst [vmem:[#allocation73_spill] sm:$0xff] %v13088_v51  ;;  %v3140_v50 = vadd.f32 %v13050_v39, %v2771_v11  ;;  %3188 = vmatmul.bf16.gmra.mxu2 %v9195_v15  ;;  %v11286_v15 = vld [vmem:[#allocation2 + $0x5a4] sm:$0xf]  ;;  %v9203_v11 = vor.u32 %v11296_v59, %v9202_v29 }
 0x335   :  { %3557 = vmatmul.bf16.gmra.mxu3 %v9199_v54  ;;  %v9172_v54 = vld [vmem:[#allocation2 + $0x5b0] sm:$0xf0] }
 0x336   :  { %v3509_v21 = vadd.f32 %v13052_v63, %v3140_v50  ;;  %v11295_v63 = vld [vmem:[#allocation2 + $0x5ec] sm:$0xf]  ;;  %v9175_v50 = vor.u32 %v11286_v15, %v9172_v54 }
 0x337   :  { %v13096_v57 = vpop.f32.mrf.mxu2 }
 0x338   :  { %v13098_v46 = vpop.f32.mrf.mxu3  ;;  %v13100_v1 = vpop.f32.mrf.mxu0  ;;  %v3760_v47 = vpack.c.bf16 %v3509_v21, %v3509_v21 }
 0x339   :  { %v2772_v22 = vpop.f32.mrf.mxu1 }
 0x33a   :  { %v2773_v43 = vadd.f32 %v2772_v22, %v13054_v58  ;;  %v9211_v22 = vor.u32 %v11297_v32, %v9210_v61  ;;  %v11290_v32 = vld [vmem:[#allocation2 + $0x5c4] sm:$0xf] }
 0x33c   :  { %v3142_v39 = vadd.f32 %v13058_v33, %v2773_v43  ;;  %v9215_v43 = vor.u32 %v11295_v63, %v9212_v8  ;;  %v9188_v63 = vld [vmem:[#allocation2 + $0x5d0] sm:$0xf0]  ;;  %v9226_v8 = vld [vmem:[#allocation2 + $0x608] sm:$0xf] }
 0x33d   :  { %v9191_v21 = vor.u32 %v11290_v32, %v9188_v63 }
 0x33e   :  { %v3511_v2 = vadd.f32 %v13060_v52, %v3142_v39  ;;  %v13112_v52 = vunpack.c.l.b16 %v3760_v47 }
 0x33f   :  { %v3151_v30 = vpop.f32.mrf.mxu2 }
 0x340   :  { %v3761_v20 = vpack.c.bf16 %v3511_v2, %v3511_v2  ;;  %v13105_v31 = vpop.f32.mrf.mxu3  ;;  %v13107_v58 = vpop.f32.mrf.mxu0  ;;  %14414 = vst [vmem:[#allocation76_spill] sm:$0xff] %v13112_v52  ;;  %v11300_v2 = vld [vmem:[#allocation2 + $0x60c] sm:$0xf0] }
 0x341   :  { %v2775_v33 = vpop.f32.mrf.mxu1 }
 0x342   :  { %v2776_v12 = vadd.f32 %v2775_v33, %v13062_v25  ;;  %v13110_v35 = vunpack.c.l.b16 %v3761_v20  ;;  %v11301_v20 = vld [vmem:[#allocation2 + $0x614] sm:$0xf0] }
 0x343   :  { %2455 = vmatmul.bf16.gmra.mxu0 %v9203_v11  ;;  %2814 = vmatmul.bf16.gmra.mxu1 %v9175_v50  ;;  %v9228_v11 = vld [vmem:[#allocation2 + $0x618] sm:$0xf0] }
 0x344   :  { %14413 = vst [vmem:[#allocation75_spill] sm:$0xff] %v13110_v35  ;;  %v3145_v39 = vadd.f32 %v13073_v34, %v2776_v12  ;;  %3193 = vmatmul.bf16.gmra.mxu2 %v9211_v22  ;;  %v9218_v12 = vld [vmem:[#allocation2 + $0x600] sm:$0xf] }
 0x345   :  { %3562 = vmatmul.bf16.gmra.mxu3 %v9215_v43 }
 0x346   :  { %v3514_v29 = vadd.f32 %v13075_v56, %v3145_v39  ;;  %v11299_v56 = vld [vmem:[#allocation2 + $0x60c] sm:$0xf]  ;;  %v9219_v39 = vor.u32 %v11300_v2, %v9218_v12 }
 0x347   :  { %v13118_v59 = vpop.f32.mrf.mxu2 }
 0x348   :  { %v13120_v15 = vpop.f32.mrf.mxu3  ;;  %v13122_v25 = vpop.f32.mrf.mxu0  ;;  %v3762_v50 = vpack.c.bf16 %v3514_v29, %v3514_v29 }
 0x349   :  { %v2777_v54 = vpop.f32.mrf.mxu1 }
 0x34a   :  { %v2778_v61 = vadd.f32 %v2777_v54, %v13077_v44  ;;  %v9227_v54 = vor.u32 %v11301_v20, %v9226_v8  ;;  %v11294_v20 = vld [vmem:[#allocation2 + $0x5e4] sm:$0xf] }
 0x34c   :  { %v3147_v34 = vadd.f32 %v13081_v13, %v2778_v61  ;;  %v9231_v61 = vor.u32 %v11299_v56, %v9228_v11  ;;  %v9204_v56 = vld [vmem:[#allocation2 + $0x5f0] sm:$0xf0]  ;;  %v9242_v11 = vld [vmem:[#allocation2 + $0x628] sm:$0xf] }
 0x34e   :  { %v3516_v47 = vadd.f32 %v13083_v18, %v3147_v34  ;;  %v13134_v18 = vunpack.c.l.b16 %v3762_v50 }
 0x34f   :  { %v3156_v22 = vpop.f32.mrf.mxu2 }
 0x350   :  { %v3763_v33 = vpack.c.bf16 %v3516_v47, %v3516_v47  ;;  %v13127_v43 = vpop.f32.mrf.mxu3  ;;  %v13129_v44 = vpop.f32.mrf.mxu0  ;;  %14416 = vst [vmem:[#allocation78_spill] sm:$0xff] %v13134_v18  ;;  %v11396_v47 = vld [vmem:[#allocation4 + $0x10] sm:$0xff] }
 0x351   :  { %v2780_v13 = vpop.f32.mrf.mxu1  ;;  %4849 = vmatpush.bf16.msrb.mxu0 %v11396_v47 }
 0x352   :  { %v2781_v52 = vadd.f32 %v2780_v13, %v13085_v27  ;;  %v13132_v35 = vunpack.c.l.b16 %v3763_v33  ;;  %v11303_v33 = vld [vmem:[#allocation2 + $0x62c] sm:$0xf] }
 0x353   :  { %2460 = vmatmul.bf16.gmra.mxu0 %v9219_v39  ;;  %2819 = vmatmul.bf16.gmra.mxu1 %v9191_v21  ;;  %v11304_v21 = vld [vmem:[#allocation2 + $0x62c] sm:$0xf0]  ;;  %v9244_v39 = vld [vmem:[#allocation2 + $0x638] sm:$0xf0] }
 0x354   :  { %14415 = vst [vmem:[#allocation77_spill] sm:$0xff] %v13132_v35  ;;  %v3150_v34 = vadd.f32 %v13096_v57, %v2781_v52  ;;  %3198 = vmatmul.bf16.gmra.mxu2 %v9227_v54  ;;  %v9234_v52 = vld [vmem:[#allocation2 + $0x620] sm:$0xf]  ;;  %v9247_v47 = vor.u32 %v11303_v33, %v9244_v39  ;;  %v9258_v33 = vld [vmem:[#allocation2 + $0x648] sm:$0xf] }
 0x355   :  { %3567 = vmatmul.bf16.gmra.mxu3 %v9231_v61  ;;  %v9235_v29 = vor.u32 %v11304_v21, %v9234_v52 }
 0x356   :  { %v3519_v12 = vadd.f32 %v13098_v46, %v3150_v34  ;;  %v11305_v46 = vld [vmem:[#allocation2 + $0x634] sm:$0xf0] }
 0x357   :  { %v13140_v2 = vpop.f32.mrf.mxu2 }
 0x358   :  { %v13142_v32 = vpop.f32.mrf.mxu3  ;;  %v13144_v27 = vpop.f32.mrf.mxu0  ;;  %v3764_v13 = vpack.c.bf16 %v3519_v12, %v3519_v12 }
 0x359   :  { %v2782_v63 = vpop.f32.mrf.mxu1 }
 0x35a   :  { %v2783_v8 = vadd.f32 %v2782_v63, %v13100_v1  ;;  %v9207_v1 = vor.u32 %v11294_v20, %v9204_v56 }
 0x35c   :  { %v3152_v57 = vadd.f32 %v3151_v30, %v2783_v8  ;;  %v9243_v8 = vor.u32 %v11305_v46, %v9242_v11  ;;  %v9220_v46 = vld [vmem:[#allocation2 + $0x610] sm:$0xf0] }
 0x35e   :  { %v3521_v50 = vadd.f32 %v13105_v31, %v3152_v57  ;;  %v13155_v31 = vunpack.c.l.b16 %v3764_v13  ;;  %v11309_v13 = vld [vmem:[#allocation2 + $0x654] sm:$0xf0] }
 0x35f   :  { %v3161_v61 = vpop.f32.mrf.mxu2 }
 0x360   :  { %v3765_v54 = vpack.c.bf16 %v3521_v50, %v3521_v50  ;;  %v13148_v34 = vpop.f32.mrf.mxu3  ;;  %v13150_v63 = vpop.f32.mrf.mxu0  ;;  %14418 = vst [vmem:[#allocation80_spill] sm:$0xff] %v13155_v31 }
 0x361   :  { %v2785_v30 = vpop.f32.mrf.mxu1 }
 0x362   :  { %v2786_v18 = vadd.f32 %v2785_v30, %v13107_v58  ;;  %v13153_v35 = vunpack.c.l.b16 %v3765_v54  ;;  %v11307_v54 = vld [vmem:[#allocation2 + $0x64c] sm:$0xf] }
 0x363   :  { %2465 = vmatmul.bf16.gmra.mxu0 %v9235_v29  ;;  %2824 = vmatmul.bf16.gmra.mxu1 %v9207_v1  ;;  %v11298_v29 = vld [vmem:[#allocation2 + $0x604] sm:$0xf] }
 0x364   :  { %14417 = vst [vmem:[#allocation79_spill] sm:$0xff] %v13153_v35  ;;  %v3155_v57 = vadd.f32 %v13118_v59, %v2786_v18  ;;  %3203 = vmatmul.bf16.gmra.mxu2 %v9243_v8  ;;  %v9250_v59 = vld [vmem:[#allocation2 + $0x640] sm:$0xf]  ;;  %v11308_v18 = vld [vmem:[#allocation2 + $0x64c] sm:$0xf0]  ;;  %v9223_v12 = vor.u32 %v11298_v29, %v9220_v46 }
 0x365   :  { %3572 = vmatmul.bf16.gmra.mxu3 %v9247_v47 }
 0x366   :  { %v3524_v52 = vadd.f32 %v13120_v15, %v3155_v57  ;;  %v9260_v15 = vld [vmem:[#allocation2 + $0x658] sm:$0xf0]  ;;  %v9251_v57 = vor.u32 %v11308_v18, %v9250_v59 }
 0x367   :  { %v13161_v21 = vpop.f32.mrf.mxu2 }
 0x368   :  { %v13163_v20 = vpop.f32.mrf.mxu3  ;;  %v13165_v58 = vpop.f32.mrf.mxu0  ;;  %v3766_v1 = vpack.c.bf16 %v3524_v52, %v3524_v52 }
 0x369   :  { %v2787_v56 = vpop.f32.mrf.mxu1 }
 0x36a   :  { %v2788_v11 = vadd.f32 %v2787_v56, %v13122_v25  ;;  %v9263_v56 = vor.u32 %v11307_v54, %v9260_v15  ;;  %v9236_v54 = vld [vmem:[#allocation2 + $0x630] sm:$0xf0]  ;;  %v9274_v15 = vld [vmem:[#allocation2 + $0x668] sm:$0xf] }
 0x36c   :  { %v3157_v50 = vadd.f32 %v3156_v22, %v2788_v11  ;;  %v9259_v22 = vor.u32 %v11309_v13, %v9258_v33  ;;  %v11312_v13 = vld [vmem:[#allocation2 + $0x66c] sm:$0xf0] }
 0x36e   :  { %v3526_v39 = vadd.f32 %v13127_v43, %v3157_v50  ;;  %v13176_v43 = vunpack.c.l.b16 %v3766_v1 }
 0x36f   :  { %v3166_v8 = vpop.f32.mrf.mxu2 }
 0x370   :  { %v3767_v30 = vpack.c.bf16 %v3526_v39, %v3526_v39  ;;  %v13169_v47 = vpop.f32.mrf.mxu3  ;;  %v13171_v31 = vpop.f32.mrf.mxu0  ;;  %14420 = vst [vmem:[#allocation82_spill] sm:$0xff] %v13176_v43 }
 0x371   :  { %v2790_v25 = vpop.f32.mrf.mxu1 }
 0x372   :  { %v2791_v11 = vadd.f32 %v2790_v25, %v13129_v44  ;;  %v13174_v35 = vunpack.c.l.b16 %v3767_v30  ;;  %v9276_v25 = vld [vmem:[#allocation2 + $0x678] sm:$0xf0] }
 0x373   :  { %2470 = vmatmul.bf16.gmra.mxu0 %v9251_v57  ;;  %2829 = vmatmul.bf16.gmra.mxu1 %v9223_v12  ;;  %v11302_v12 = vld [vmem:[#allocation2 + $0x624] sm:$0xf]  ;;  %v11313_v57 = vld [vmem:[#allocation2 + $0x674] sm:$0xf0] }
 0x374   :  { %14419 = vst [vmem:[#allocation81_spill] sm:$0xff] %v13174_v35  ;;  %v3160_v50 = vadd.f32 %v13140_v2, %v2791_v11  ;;  %3208 = vmatmul.bf16.gmra.mxu2 %v9259_v22  ;;  %v9266_v2 = vld [vmem:[#allocation2 + $0x660] sm:$0xf]  ;;  %v9239_v52 = vor.u32 %v11302_v12, %v9236_v54 }
 0x375   :  { %3577 = vmatmul.bf16.gmra.mxu3 %v9263_v56 }
 0x376   :  { %v3529_v59 = vadd.f32 %v13142_v32, %v3160_v50  ;;  %v11311_v32 = vld [vmem:[#allocation2 + $0x66c] sm:$0xf]  ;;  %v9267_v50 = vor.u32 %v11312_v13, %v9266_v2 }
 0x377   :  { %v13182_v18 = vpop.f32.mrf.mxu2 }
 0x378   :  { %v13184_v29 = vpop.f32.mrf.mxu3  ;;  %v13186_v44 = vpop.f32.mrf.mxu0  ;;  %v3768_v1 = vpack.c.bf16 %v3529_v59, %v3529_v59 }
 0x379   :  { %v2792_v46 = vpop.f32.mrf.mxu1 }
 0x37a   :  { %v2793_v33 = vadd.f32 %v2792_v46, %v13144_v27  ;;  %v9279_v46 = vor.u32 %v11311_v32, %v9276_v25  ;;  %v11306_v32 = vld [vmem:[#allocation2 + $0x644] sm:$0xf]  ;;  %v9290_v25 = vld [vmem:[#allocation2 + $0x688] sm:$0xf] }
 0x37c   :  { %v3162_v39 = vadd.f32 %v3161_v61, %v2793_v33  ;;  %v9275_v61 = vor.u32 %v11313_v57, %v9274_v15  ;;  %v13194_v33 = vunpack.c.l.b16 %v3768_v1  ;;  %v11316_v57 = vld [vmem:[#allocation2 + $0x68c] sm:$0xf0] }
 0x37e   :  { %v3531_v30 = vadd.f32 %v13148_v34, %v3162_v39  ;;  %14421 = vst [vmem:[#allocation83_spill] sm:$0xff] %v13194_v33 }
 0x37f   :  { %v3171_v56 = vpop.f32.mrf.mxu2 }
 0x380   :  { %v3769_v22 = vpack.c.bf16 %v3531_v30, %v3531_v30  ;;  %v13190_v11 = vpop.f32.mrf.mxu3  ;;  %v13192_v43 = vpop.f32.mrf.mxu0  ;;  %v9282_v30 = vld [vmem:[#allocation2 + $0x680] sm:$0xf] }
 0x381   :  { %v2795_v27 = vpop.f32.mrf.mxu1 }
 0x382   :  { %v13196_v35 = vunpack.c.l.b16 %v3769_v22  ;;  %v2796_v34 = vadd.f32 %v2795_v27, %v13150_v63  ;;  %v11317_v22 = vld [vmem:[#allocation2 + $0x694] sm:$0xf0] }
 0x383   :  { %2475 = vmatmul.bf16.gmra.mxu0 %v9267_v50  ;;  %2834 = vmatmul.bf16.gmra.mxu1 %v9239_v52  ;;  %v11315_v50 = vld [vmem:[#allocation2 + $0x68c] sm:$0xf] }
 0x384   :  { %14422 = vst [vmem:[#allocation84_spill] sm:$0xff] %v13196_v35  ;;  %v3165_v39 = vadd.f32 %v13161_v21, %v2796_v34  ;;  %3213 = vmatmul.bf16.gmra.mxu2 %v9275_v61  ;;  %v9252_v21 = vld [vmem:[#allocation2 + $0x650] sm:$0xf0] }
 0x385   :  { %3582 = vmatmul.bf16.gmra.mxu3 %v9279_v46  ;;  %v9255_v59 = vor.u32 %v11306_v32, %v9252_v21 }
 0x386   :  { %v3534_v2 = vadd.f32 %v13163_v20, %v3165_v39  ;;  %v9292_v20 = vld [vmem:[#allocation2 + $0x698] sm:$0xf0]  ;;  %v9283_v39 = vor.u32 %v11316_v57, %v9282_v30 }
 0x387   :  { %v13203_v13 = vpop.f32.mrf.mxu2 }
 0x388   :  { %v13205_v12 = vpop.f32.mrf.mxu3  ;;  %v13207_v54 = vpop.f32.mrf.mxu0  ;;  %v3770_v27 = vpack.c.bf16 %v3534_v2, %v3534_v2 }
 0x389   :  { %v2797_v15 = vpop.f32.mrf.mxu1 }
 0x38a   :  { %v2798_v63 = vadd.f32 %v2797_v15, %v13165_v58  ;;  %v9295_v15 = vor.u32 %v11315_v50, %v9292_v20  ;;  %v9268_v50 = vld [vmem:[#allocation2 + $0x670] sm:$0xf0]  ;;  %v9306_v20 = vld [vmem:[#allocation2 + $0x6a8] sm:$0xf] }
 0x38c   :  { %v3167_v1 = vadd.f32 %v3166_v8, %v2798_v63  ;;  %v9291_v8 = vor.u32 %v11317_v22, %v9290_v25  ;;  %v11320_v22 = vld [vmem:[#allocation2 + $0x6ac] sm:$0xf0] }
 0x38e   :  { %v3536_v52 = vadd.f32 %v13169_v47, %v3167_v1  ;;  %v13218_v47 = vunpack.c.l.b16 %v3770_v27 }
 0x38f   :  { %v3176_v46 = vpop.f32.mrf.mxu2 }
 0x390   :  { %v3771_v61 = vpack.c.bf16 %v3536_v52, %v3536_v52  ;;  %v13211_v34 = vpop.f32.mrf.mxu3  ;;  %v13213_v33 = vpop.f32.mrf.mxu0  ;;  %14424 = vst [vmem:[#allocation86_spill] sm:$0xff] %v13218_v47 }
 0x391   :  { %v2800_v58 = vpop.f32.mrf.mxu1 }
 0x392   :  { %v2801_v63 = vadd.f32 %v2800_v58, %v13171_v31  ;;  %v13216_v35 = vunpack.c.l.b16 %v3771_v61  ;;  %v11321_v61 = vld [vmem:[#allocation2 + $0x6b4] sm:$0xf0] }
 0x393   :  { %2480 = vmatmul.bf16.gmra.mxu0 %v9283_v39  ;;  %2839 = vmatmul.bf16.gmra.mxu1 %v9255_v59  ;;  %v11310_v59 = vld [vmem:[#allocation2 + $0x664] sm:$0xf]  ;;  %v11319_v39 = vld [vmem:[#allocation2 + $0x6ac] sm:$0xf] }
 0x394   :  { %14423 = vst [vmem:[#allocation85_spill] sm:$0xff] %v13216_v35  ;;  %v3170_v1 = vadd.f32 %v13182_v18, %v2801_v63  ;;  %3218 = vmatmul.bf16.gmra.mxu2 %v9291_v8  ;;  %v9298_v18 = vld [vmem:[#allocation2 + $0x6a0] sm:$0xf]  ;;  %v9271_v2 = vor.u32 %v11310_v59, %v9268_v50 }
 0x395   :  { %3587 = vmatmul.bf16.gmra.mxu3 %v9295_v15 }
 0x396   :  { %v3539_v30 = vadd.f32 %v13184_v29, %v3170_v1  ;;  %v9308_v29 = vld [vmem:[#allocation2 + $0x6b8] sm:$0xf0]  ;;  %v9299_v1 = vor.u32 %v11320_v22, %v9298_v18 }
 0x397   :  { %v13224_v57 = vpop.f32.mrf.mxu2 }
 0x398   :  { %v13226_v32 = vpop.f32.mrf.mxu3  ;;  %v13228_v31 = vpop.f32.mrf.mxu0  ;;  %v3772_v58 = vpack.c.bf16 %v3539_v30, %v3539_v30 }
 0x399   :  { %v2802_v21 = vpop.f32.mrf.mxu1 }
 0x39a   :  { %v2803_v25 = vadd.f32 %v2802_v21, %v13186_v44  ;;  %v9311_v21 = vor.u32 %v11319_v39, %v9308_v29  ;;  %v9284_v39 = vld [vmem:[#allocation2 + $0x690] sm:$0xf0]  ;;  %v9322_v29 = vld [vmem:[#allocation2 + $0x6c8] sm:$0xf] }
 0x39c   :  { %v3172_v52 = vadd.f32 %v3171_v56, %v2803_v25  ;;  %v9307_v56 = vor.u32 %v11321_v61, %v9306_v20  ;;  %v11324_v61 = vld [vmem:[#allocation2 + $0x6cc] sm:$0xf0] }
 0x39e   :  { %v3541_v27 = vadd.f32 %v13190_v11, %v3172_v52  ;;  %v13239_v11 = vunpack.c.l.b16 %v3772_v58 }
 0x39f   :  { %v3181_v15 = vpop.f32.mrf.mxu2 }
 0x3a0   :  { %v3773_v8 = vpack.c.bf16 %v3541_v27, %v3541_v27  ;;  %v13232_v63 = vpop.f32.mrf.mxu3  ;;  %v13234_v47 = vpop.f32.mrf.mxu0  ;;  %14426 = vst [vmem:[#allocation88_spill] sm:$0xff] %v13239_v11 }
 0x3a1   :  { %v2805_v44 = vpop.f32.mrf.mxu1 }
 0x3a2   :  { %v2806_v25 = vadd.f32 %v2805_v44, %v13192_v43  ;;  %v13237_v35 = vunpack.c.l.b16 %v3773_v8  ;;  %v11325_v8 = vld [vmem:[#allocation2 + $0x6d4] sm:$0xf0] }
 0x3a3   :  { %2485 = vmatmul.bf16.gmra.mxu0 %v9299_v1  ;;  %2844 = vmatmul.bf16.gmra.mxu1 %v9271_v2  ;;  %v11314_v2 = vld [vmem:[#allocation2 + $0x684] sm:$0xf]  ;;  %v11323_v1 = vld [vmem:[#allocation2 + $0x6cc] sm:$0xf] }
 0x3a4   :  { %14425 = vst [vmem:[#allocation87_spill] sm:$0xff] %v13237_v35  ;;  %v3175_v52 = vadd.f32 %v13203_v13, %v2806_v25  ;;  %3223 = vmatmul.bf16.gmra.mxu2 %v9307_v56  ;;  %v9314_v13 = vld [vmem:[#allocation2 + $0x6c0] sm:$0xf]  ;;  %v9287_v30 = vor.u32 %v11314_v2, %v9284_v39 }
 0x3a5   :  { %3592 = vmatmul.bf16.gmra.mxu3 %v9311_v21 }
 0x3a6   :  { %v3544_v18 = vadd.f32 %v13205_v12, %v3175_v52  ;;  %v9324_v12 = vld [vmem:[#allocation2 + $0x6d8] sm:$0xf0]  ;;  %v9315_v52 = vor.u32 %v11324_v61, %v9314_v13 }
 0x3a7   :  { %v13245_v22 = vpop.f32.mrf.mxu2 }
 0x3a8   :  { %v13247_v59 = vpop.f32.mrf.mxu3  ;;  %v13249_v43 = vpop.f32.mrf.mxu0  ;;  %v3774_v44 = vpack.c.bf16 %v3544_v18, %v3544_v18 }
 0x3a9   :  { %v2807_v50 = vpop.f32.mrf.mxu1 }
 0x3aa   :  { %v2808_v20 = vadd.f32 %v2807_v50, %v13207_v54  ;;  %v9323_v50 = vor.u32 %v11325_v8, %v9322_v29  ;;  %v9300_v8 = vld [vmem:[#allocation2 + $0x6b0] sm:$0xf0] }
 0x3ac   :  { %v3177_v27 = vadd.f32 %v3176_v46, %v2808_v20  ;;  %v9327_v20 = vor.u32 %v11323_v1, %v9324_v12  ;;  %v9338_v1 = vld [vmem:[#allocation2 + $0x6e8] sm:$0xf] }
 0x3ae   :  { %v3546_v58 = vadd.f32 %v13211_v34, %v3177_v27  ;;  %v13262_v34 = vunpack.c.l.b16 %v3774_v44  ;;  %v11329_v44 = vld [vmem:[#allocation2 + $0x6f4] sm:$0xf0] }
 0x3af   :  { %v13253_v21 = vpop.f32.mrf.mxu2 }
 0x3b0   :  { %v3775_v56 = vpack.c.bf16 %v3546_v58, %v3546_v58  ;;  %v13255_v25 = vpop.f32.mrf.mxu3  ;;  %v13257_v54 = vpop.f32.mrf.mxu0  ;;  %14428 = vst [vmem:[#allocation90_spill] sm:$0xff] %v13262_v34 }
 0x3b1   :  { %v2810_v46 = vpop.f32.mrf.mxu1 }
 0x3b2   :  { %v2811_v11 = vadd.f32 %v2810_v46, %v13213_v33  ;;  %v13260_v35 = vunpack.c.l.b16 %v3775_v56  ;;  %v11327_v56 = vld [vmem:[#allocation2 + $0x6ec] sm:$0xf] }
 0x3b3   :  { %2490 = vmatmul.bf16.gmra.mxu0 %v9315_v52  ;;  %2849 = vmatmul.bf16.gmra.mxu1 %v9287_v30  ;;  %v11318_v30 = vld [vmem:[#allocation2 + $0x6a4] sm:$0xf] }
 0x3b4   :  { %14427 = vst [vmem:[#allocation89_spill] sm:$0xff] %v13260_v35  ;;  %v3180_v18 = vadd.f32 %v13224_v57, %v2811_v11  ;;  %3228 = vmatmul.bf16.gmra.mxu2 %v9323_v50  ;;  %v9330_v57 = vld [vmem:[#allocation2 + $0x6e0] sm:$0xf]  ;;  %v11328_v11 = vld [vmem:[#allocation2 + $0x6ec] sm:$0xf0]  ;;  %v9303_v27 = vor.u32 %v11318_v30, %v9300_v8  ;;  %v9339_v35 = vor.u32 %v11329_v44, %v9338_v1 }
 0x3b5   :  { %3597 = vmatmul.bf16.gmra.mxu3 %v9327_v20  ;;  %v9346_v44 = vld [vmem:[#allocation2 + $0x700] sm:$0xf] }
 0x3b6   :  { %v3549_v13 = vadd.f32 %v13226_v32, %v3180_v18  ;;  %v9340_v32 = vld [vmem:[#allocation2 + $0x6f8] sm:$0xf0]  ;;  %v9331_v18 = vor.u32 %v11328_v11, %v9330_v57 }
 0x3b7   :  { %v13268_v61 = vpop.f32.mrf.mxu2  ;;  %v9343_v51 = vor.u32 %v11327_v56, %v9340_v32  ;;  %v9354_v56 = vld [vmem:[#allocation2 + $0x708] sm:$0xf] }
 0x3b8   :  { %v13270_v2 = vpop.f32.mrf.mxu3  ;;  %v13272_v33 = vpop.f32.mrf.mxu0  ;;  %v3776_v52 = vpack.c.bf16 %v3549_v13, %v3549_v13 }
 0x3b9   :  { %v2812_v39 = vpop.f32.mrf.mxu1 }
 0x3ba   :  { %v2813_v29 = vadd.f32 %v2812_v39, %v13228_v31  ;;  %v11412_v31 = vld [vmem:[#allocation4 + $0x90] sm:$0xff] }
 0x3bb   :  { %v11404_v39 = vld [vmem:[#allocation4 + $0x50] sm:$0xff]  ;;  %4947 = vmatpush.bf16.msrb.mxu2 %v11412_v31 }
 0x3bc   :  { %v3182_v58 = vadd.f32 %v3181_v15, %v2813_v29  ;;  %v11420_v15 = vld [vmem:[#allocation4 + $0xd0] sm:$0xff]  ;;  %4898 = vmatpush.bf16.msra.mxu1 %v11404_v39 }
 0x3bd   :  { %4996 = vmatpush.bf16.msrb.mxu3 %v11420_v15 }
 0x3be   :  { %v3551_v12 = vadd.f32 %v13232_v63, %v3182_v58  ;;  %v13285_v58 = vunpack.c.l.b16 %v3776_v52  ;;  %v11333_v52 = vld [vmem:[#allocation2 + $0x714] sm:$0xf0] }
 0x3bf   :  { %v13276_v50 = vpop.f32.mrf.mxu2 }
 0x3c0   :  { %v3777_v46 = vpack.c.bf16 %v3551_v12, %v3551_v12  ;;  %v13278_v20 = vpop.f32.mrf.mxu3  ;;  %v13280_v29 = vpop.f32.mrf.mxu0  ;;  %14430 = vst [vmem:[#allocation92_spill] sm:$0xff] %v13285_v58 }
 0x3c1   :  { %v2815_v34 = vpop.f32.mrf.mxu1 }
 0x3c2   :  { %v2816_v63 = vadd.f32 %v2815_v34, %v13234_v47  ;;  %v13283_v13 = vunpack.c.l.b16 %v3777_v46  ;;  %v9356_v46 = vld [vmem:[#allocation2 + $0x718] sm:$0xf0] }
 0x3c3   :  { %2495 = vmatmul.bf16.gmra.mxu0 %v9331_v18  ;;  %2854 = vmatmul.bf16.gmra.mxu1 %v9303_v27  ;;  %v11332_v27 = vld [vmem:[#allocation2 + $0x70c] sm:$0xf0] }
 0x3c4   :  { %14429 = vst [vmem:[#allocation91_spill] sm:$0xff] %v13283_v13  ;;  %v3185_v57 = vadd.f32 %v13245_v22, %v2816_v63  ;;  %3233 = vmatmul.bf16.gmra.mxu2 %v9339_v35  ;;  %v11322_v35 = vld [vmem:[#allocation2 + $0x6c4] sm:$0xf]  ;;  %v9347_v63 = vor.u32 %v11332_v27, %v9346_v44 }
 0x3c5   :  { %3602 = vmatmul.bf16.gmra.mxu3 %v9343_v51  ;;  %v9316_v51 = vld [vmem:[#allocation2 + $0x6d0] sm:$0xf0] }
 0x3c6   :  { %v3554_v30 = vadd.f32 %v13247_v59, %v3185_v57  ;;  %v11331_v59 = vld [vmem:[#allocation2 + $0x70c] sm:$0xf]  ;;  %v9319_v57 = vor.u32 %v11322_v35, %v9316_v51 }
 0x3c7   :  { %v13291_v8 = vpop.f32.mrf.mxu2 }
 0x3c8   :  { %v13293_v47 = vpop.f32.mrf.mxu3  ;;  %v13295_v34 = vpop.f32.mrf.mxu0  ;;  %v3778_v18 = vpack.c.bf16 %v3554_v30, %v3554_v30 }
 0x3c9   :  { %v2817_v1 = vpop.f32.mrf.mxu1 }
 0x3ca   :  { %v2818_v12 = vadd.f32 %v2817_v1, %v13249_v43  ;;  %v9355_v1 = vor.u32 %v11333_v52, %v9354_v56  ;;  %v11326_v52 = vld [vmem:[#allocation2 + $0x6e4] sm:$0xf] }
 0x3cc   :  { %v3187_v22 = vadd.f32 %v13253_v21, %v2818_v12  ;;  %v9359_v12 = vor.u32 %v11331_v59, %v9356_v46  ;;  %v9332_v59 = vld [vmem:[#allocation2 + $0x6f0] sm:$0xf0]  ;;  %v9370_v46 = vld [vmem:[#allocation2 + $0x728] sm:$0xf] }
 0x3cd   :  { %v9335_v30 = vor.u32 %v11326_v52, %v9332_v59 }
 0x3ce   :  { %v3556_v32 = vadd.f32 %v13255_v25, %v3187_v22  ;;  %v13307_v25 = vunpack.c.l.b16 %v3778_v18 }
 0x3cf   :  { %v3196_v15 = vpop.f32.mrf.mxu2 }
 0x3d0   :  { %v3779_v31 = vpack.c.bf16 %v3556_v32, %v3556_v32  ;;  %v13300_v39 = vpop.f32.mrf.mxu3  ;;  %v13302_v43 = vpop.f32.mrf.mxu0  ;;  %14432 = vst [vmem:[#allocation94_spill] sm:$0xff] %v13307_v25  ;;  %v11336_v32 = vld [vmem:[#allocation2 + $0x72c] sm:$0xf0] }
 0x3d1   :  { %v2820_v21 = vpop.f32.mrf.mxu1 }
 0x3d2   :  { %v2821_v11 = vadd.f32 %v2820_v21, %v13257_v54  ;;  %v13305_v58 = vunpack.c.l.b16 %v3779_v31  ;;  %v11337_v31 = vld [vmem:[#allocation2 + $0x734] sm:$0xf0] }
 0x3d3   :  { %2500 = vmatmul.bf16.gmra.mxu0 %v9347_v63  ;;  %2859 = vmatmul.bf16.gmra.mxu1 %v9319_v57  ;;  %v9372_v63 = vld [vmem:[#allocation2 + $0x738] sm:$0xf0] }
 0x3d4   :  { %14431 = vst [vmem:[#allocation93_spill] sm:$0xff] %v13305_v58  ;;  %v3190_v22 = vadd.f32 %v13268_v61, %v2821_v11  ;;  %3238 = vmatmul.bf16.gmra.mxu2 %v9355_v1  ;;  %v9362_v11 = vld [vmem:[#allocation2 + $0x720] sm:$0xf] }
 0x3d5   :  { %3607 = vmatmul.bf16.gmra.mxu3 %v9359_v12 }
 0x3d6   :  { %v3559_v44 = vadd.f32 %v13270_v2, %v3190_v22  ;;  %v11335_v2 = vld [vmem:[#allocation2 + $0x72c] sm:$0xf]  ;;  %v9363_v22 = vor.u32 %v11336_v32, %v9362_v11 }
 0x3d7   :  { %v13313_v27 = vpop.f32.mrf.mxu2 }
 0x3d8   :  { %v13315_v35 = vpop.f32.mrf.mxu3  ;;  %v13317_v54 = vpop.f32.mrf.mxu0  ;;  %v3780_v57 = vpack.c.bf16 %v3559_v44, %v3559_v44  ;;  %v11395_v44 = vld [vmem:[#allocation4 + $0x8] sm:$0xff] }
 0x3d9   :  { %v2822_v51 = vpop.f32.mrf.mxu1  ;;  %4850 = vmatpush.bf16.msrb.mxu0 %v11395_v44 }
 0x3da   :  { %v2823_v56 = vadd.f32 %v2822_v51, %v13272_v33  ;;  %v9371_v51 = vor.u32 %v11337_v31, %v9370_v46  ;;  %v11330_v31 = vld [vmem:[#allocation2 + $0x704] sm:$0xf] }
 0x3dc   :  { %v3192_v61 = vadd.f32 %v13276_v50, %v2823_v56  ;;  %v9375_v56 = vor.u32 %v11335_v2, %v9372_v63  ;;  %v9348_v2 = vld [vmem:[#allocation2 + $0x710] sm:$0xf0]  ;;  %v9386_v63 = vld [vmem:[#allocation2 + $0x748] sm:$0xf] }
 0x3dd   :  { %v9351_v11 = vor.u32 %v11330_v31, %v9348_v2 }
 0x3de   :  { %v3561_v18 = vadd.f32 %v13278_v20, %v3192_v61  ;;  %v13329_v20 = vunpack.c.l.b16 %v3780_v57 }
 0x3df   :  { %v3201_v1 = vpop.f32.mrf.mxu2 }
 0x3e0   :  { %v3781_v21 = vpack.c.bf16 %v3561_v18, %v3561_v18  ;;  %v13322_v12 = vpop.f32.mrf.mxu3  ;;  %v13324_v33 = vpop.f32.mrf.mxu0  ;;  %14434 = vst [vmem:[#allocation96_spill] sm:$0xff] %v13329_v20  ;;  %v11340_v18 = vld [vmem:[#allocation2 + $0x74c] sm:$0xf0] }
 0x3e1   :  { %v2825_v50 = vpop.f32.mrf.mxu1 }
 0x3e2   :  { %v2826_v25 = vadd.f32 %v2825_v50, %v13280_v29  ;;  %v13327_v58 = vunpack.c.l.b16 %v3781_v21  ;;  %v11341_v21 = vld [vmem:[#allocation2 + $0x754] sm:$0xf0] }
 0x3e3   :  { %2505 = vmatmul.bf16.gmra.mxu0 %v9363_v22  ;;  %2864 = vmatmul.bf16.gmra.mxu1 %v9335_v30  ;;  %v9378_v30 = vld [vmem:[#allocation2 + $0x740] sm:$0xf]  ;;  %v9388_v22 = vld [vmem:[#allocation2 + $0x758] sm:$0xf0] }
 0x3e4   :  { %14433 = vst [vmem:[#allocation95_spill] sm:$0xff] %v13327_v58  ;;  %v3195_v61 = vadd.f32 %v13291_v8, %v2826_v25  ;;  %3243 = vmatmul.bf16.gmra.mxu2 %v9371_v51  ;;  %v9379_v44 = vor.u32 %v11340_v18, %v9378_v30 }
 0x3e5   :  { %3612 = vmatmul.bf16.gmra.mxu3 %v9375_v56 }
 0x3e6   :  { %v3564_v32 = vadd.f32 %v13293_v47, %v3195_v61  ;;  %v11339_v47 = vld [vmem:[#allocation2 + $0x74c] sm:$0xf] }
 0x3e7   :  { %v13335_v52 = vpop.f32.mrf.mxu2 }
 0x3e8   :  { %v13337_v29 = vpop.f32.mrf.mxu3  ;;  %v13339_v59 = vpop.f32.mrf.mxu0  ;;  %v3782_v50 = vpack.c.bf16 %v3564_v32, %v3564_v32 }
 0x3e9   :  { %v2827_v46 = vpop.f32.mrf.mxu1 }
 0x3ea   :  { %v2828_v8 = vadd.f32 %v2827_v46, %v13295_v34  ;;  %v9391_v46 = vor.u32 %v11339_v47, %v9388_v22  ;;  %v9364_v47 = vld [vmem:[#allocation2 + $0x730] sm:$0xf0]  ;;  %v9402_v22 = vld [vmem:[#allocation2 + $0x768] sm:$0xf] }
 0x3ec   :  { %v3197_v25 = vadd.f32 %v3196_v15, %v2828_v8  ;;  %v9387_v15 = vor.u32 %v11341_v21, %v9386_v63  ;;  %v11344_v21 = vld [vmem:[#allocation2 + $0x76c] sm:$0xf0] }
 0x3ee   :  { %v3566_v57 = vadd.f32 %v13300_v39, %v3197_v25  ;;  %v13350_v39 = vunpack.c.l.b16 %v3782_v50 }
 0x3ef   :  { %v3206_v56 = vpop.f32.mrf.mxu2 }
 0x3f0   :  { %v3783_v51 = vpack.c.bf16 %v3566_v57, %v3566_v57  ;;  %v13343_v61 = vpop.f32.mrf.mxu3  ;;  %v13345_v20 = vpop.f32.mrf.mxu0  ;;  %14436 = vst [vmem:[#allocation98_spill] sm:$0xff] %v13350_v39 }
 0x3f1   :  { %v2830_v34 = vpop.f32.mrf.mxu1 }
 0x3f2   :  { %v2831_v8 = vadd.f32 %v2830_v34, %v13302_v43  ;;  %v13348_v58 = vunpack.c.l.b16 %v3783_v51  ;;  %v9404_v34 = vld [vmem:[#allocation2 + $0x778] sm:$0xf0] }
 0x3f3   :  { %2510 = vmatmul.bf16.gmra.mxu0 %v9379_v44  ;;  %2869 = vmatmul.bf16.gmra.mxu1 %v9351_v11  ;;  %v11334_v11 = vld [vmem:[#allocation2 + $0x724] sm:$0xf]  ;;  %v11345_v44 = vld [vmem:[#allocation2 + $0x774] sm:$0xf0] }
 0x3f4   :  { %14435 = vst [vmem:[#allocation97_spill] sm:$0xff] %v13348_v58  ;;  %v3200_v25 = vadd.f32 %v13313_v27, %v2831_v8  ;;  %3248 = vmatmul.bf16.gmra.mxu2 %v9387_v15  ;;  %v9394_v27 = vld [vmem:[#allocation2 + $0x760] sm:$0xf]  ;;  %v9367_v32 = vor.u32 %v11334_v11, %v9364_v47 }
 0x3f5   :  { %3617 = vmatmul.bf16.gmra.mxu3 %v9391_v46 }
 0x3f6   :  { %v3569_v30 = vadd.f32 %v13315_v35, %v3200_v25  ;;  %v11343_v35 = vld [vmem:[#allocation2 + $0x76c] sm:$0xf]  ;;  %v9395_v25 = vor.u32 %v11344_v21, %v9394_v27 }
 0x3f7   :  { %v13356_v18 = vpop.f32.mrf.mxu2 }
 0x3f8   :  { %v13358_v31 = vpop.f32.mrf.mxu3  ;;  %v13360_v43 = vpop.f32.mrf.mxu0  ;;  %v3784_v50 = vpack.c.bf16 %v3569_v30, %v3569_v30 }
 0x3f9   :  { %v2832_v2 = vpop.f32.mrf.mxu1 }
 0x3fa   :  { %v2833_v63 = vadd.f32 %v2832_v2, %v13317_v54  ;;  %v9407_v2 = vor.u32 %v11343_v35, %v9404_v34  ;;  %v11338_v35 = vld [vmem:[#allocation2 + $0x744] sm:$0xf]  ;;  %v9418_v34 = vld [vmem:[#allocation2 + $0x788] sm:$0xf] }
 0x3fc   :  { %v3202_v57 = vadd.f32 %v3201_v1, %v2833_v63  ;;  %v9403_v1 = vor.u32 %v11345_v44, %v9402_v22  ;;  %v13368_v63 = vunpack.c.l.b16 %v3784_v50  ;;  %v11348_v44 = vld [vmem:[#allocation2 + $0x78c] sm:$0xf0] }
 0x3fe   :  { %v3571_v51 = vadd.f32 %v13322_v12, %v3202_v57  ;;  %14437 = vst [vmem:[#allocation99_spill] sm:$0xff] %v13368_v63 }
 0x3ff   :  { %v3211_v46 = vpop.f32.mrf.mxu2 }
 0x400   :  { %v3785_v15 = vpack.c.bf16 %v3571_v51, %v3571_v51  ;;  %v13364_v8 = vpop.f32.mrf.mxu3  ;;  %v13366_v39 = vpop.f32.mrf.mxu0  ;;  %v9410_v51 = vld [vmem:[#allocation2 + $0x780] sm:$0xf] }
 0x401   :  { %v2835_v54 = vpop.f32.mrf.mxu1 }
 0x402   :  { %v13370_v58 = vunpack.c.l.b16 %v3785_v15  ;;  %v2836_v12 = vadd.f32 %v2835_v54, %v13324_v33  ;;  %v11349_v15 = vld [vmem:[#allocation2 + $0x794] sm:$0xf0] }
 0x403   :  { %2515 = vmatmul.bf16.gmra.mxu0 %v9395_v25  ;;  %2874 = vmatmul.bf16.gmra.mxu1 %v9367_v32  ;;  %v11347_v25 = vld [vmem:[#allocation2 + $0x78c] sm:$0xf] }
 0x404   :  { %14438 = vst [vmem:[#allocation100_spill] sm:$0xff] %v13370_v58  ;;  %v3205_v57 = vadd.f32 %v13335_v52, %v2836_v12  ;;  %3253 = vmatmul.bf16.gmra.mxu2 %v9403_v1  ;;  %v9380_v52 = vld [vmem:[#allocation2 + $0x750] sm:$0xf0] }
 0x405   :  { %3622 = vmatmul.bf16.gmra.mxu3 %v9407_v2  ;;  %v9383_v30 = vor.u32 %v11338_v35, %v9380_v52 }
 0x406   :  { %v3574_v27 = vadd.f32 %v13337_v29, %v3205_v57  ;;  %v9420_v29 = vld [vmem:[#allocation2 + $0x798] sm:$0xf0]  ;;  %v9411_v57 = vor.u32 %v11348_v44, %v9410_v51 }
 0x407   :  { %v13377_v21 = vpop.f32.mrf.mxu2 }
 0x408   :  { %v13379_v11 = vpop.f32.mrf.mxu3  ;;  %v13381_v47 = vpop.f32.mrf.mxu0  ;;  %v3786_v54 = vpack.c.bf16 %v3574_v27, %v3574_v27 }
 0x409   :  { %v2837_v22 = vpop.f32.mrf.mxu1 }
 0x40a   :  { %v2838_v33 = vadd.f32 %v2837_v22, %v13339_v59  ;;  %v9423_v22 = vor.u32 %v11347_v25, %v9420_v29  ;;  %v9396_v25 = vld [vmem:[#allocation2 + $0x770] sm:$0xf0]  ;;  %v9434_v29 = vld [vmem:[#allocation2 + $0x7a8] sm:$0xf] }
 0x40c   :  { %v3207_v50 = vadd.f32 %v3206_v56, %v2838_v33  ;;  %v9419_v56 = vor.u32 %v11349_v15, %v9418_v34  ;;  %v11352_v15 = vld [vmem:[#allocation2 + $0x7ac] sm:$0xf0] }
 0x40e   :  { %v3576_v32 = vadd.f32 %v13343_v61, %v3207_v50  ;;  %v13392_v61 = vunpack.c.l.b16 %v3786_v54 }
 0x40f   :  { %v3216_v2 = vpop.f32.mrf.mxu2 }
 0x410   :  { %v3787_v1 = vpack.c.bf16 %v3576_v32, %v3576_v32  ;;  %v13385_v12 = vpop.f32.mrf.mxu3  ;;  %v13387_v13 = vpop.f32.mrf.mxu0  ;;  %14440 = vst [vmem:[#allocation102_spill] sm:$0xff] %v13392_v61 }
 0x411   :  { %v2840_v59 = vpop.f32.mrf.mxu1 }
 0x412   :  { %v2841_v33 = vadd.f32 %v2840_v59, %v13345_v20  ;;  %v13390_v63 = vunpack.c.l.b16 %v3787_v1  ;;  %v11353_v1 = vld [vmem:[#allocation2 + $0x7b4] sm:$0xf0] }
 0x413   :  { %2520 = vmatmul.bf16.gmra.mxu0 %v9411_v57  ;;  %2879 = vmatmul.bf16.gmra.mxu1 %v9383_v30  ;;  %v11342_v30 = vld [vmem:[#allocation2 + $0x764] sm:$0xf]  ;;  %v11351_v57 = vld [vmem:[#allocation2 + $0x7ac] sm:$0xf] }
 0x414   :  { %14439 = vst [vmem:[#allocation101_spill] sm:$0xff] %v13390_v63  ;;  %v3210_v50 = vadd.f32 %v13356_v18, %v2841_v33  ;;  %3258 = vmatmul.bf16.gmra.mxu2 %v9419_v56  ;;  %v9426_v18 = vld [vmem:[#allocation2 + $0x7a0] sm:$0xf]  ;;  %v9399_v27 = vor.u32 %v11342_v30, %v9396_v25 }
 0x415   :  { %3627 = vmatmul.bf16.gmra.mxu3 %v9423_v22 }
 0x416   :  { %v3579_v51 = vadd.f32 %v13358_v31, %v3210_v50  ;;  %v9436_v31 = vld [vmem:[#allocation2 + $0x7b8] sm:$0xf0]  ;;  %v9427_v50 = vor.u32 %v11352_v15, %v9426_v18 }
 0x417   :  { %v13398_v44 = vpop.f32.mrf.mxu2 }
 0x418   :  { %v13400_v35 = vpop.f32.mrf.mxu3  ;;  %v13402_v20 = vpop.f32.mrf.mxu0  ;;  %v3788_v59 = vpack.c.bf16 %v3579_v51, %v3579_v51 }
 0x419   :  { %v2842_v52 = vpop.f32.mrf.mxu1 }
 0x41a   :  { %v2843_v34 = vadd.f32 %v2842_v52, %v13360_v43  ;;  %v9439_v52 = vor.u32 %v11351_v57, %v9436_v31  ;;  %v9412_v57 = vld [vmem:[#allocation2 + $0x790] sm:$0xf0]  ;;  %v9450_v31 = vld [vmem:[#allocation2 + $0x7c8] sm:$0xf] }
 0x41c   :  { %v3212_v32 = vadd.f32 %v3211_v46, %v2843_v34  ;;  %v9435_v46 = vor.u32 %v11353_v1, %v9434_v29  ;;  %v11356_v1 = vld [vmem:[#allocation2 + $0x7cc] sm:$0xf0] }
 0x41e   :  { %v3581_v54 = vadd.f32 %v13364_v8, %v3212_v32  ;;  %v13413_v8 = vunpack.c.l.b16 %v3788_v59 }
 0x41f   :  { %v3221_v22 = vpop.f32.mrf.mxu2 }
 0x420   :  { %v3789_v56 = vpack.c.bf16 %v3581_v54, %v3581_v54  ;;  %v13406_v33 = vpop.f32.mrf.mxu3  ;;  %v13408_v61 = vpop.f32.mrf.mxu0  ;;  %14442 = vst [vmem:[#allocation104_spill] sm:$0xff] %v13413_v8 }
 0x421   :  { %v2845_v43 = vpop.f32.mrf.mxu1 }
 0x422   :  { %v2846_v34 = vadd.f32 %v2845_v43, %v13366_v39  ;;  %v13411_v63 = vunpack.c.l.b16 %v3789_v56  ;;  %v11357_v56 = vld [vmem:[#allocation2 + $0x7d4] sm:$0xf0] }
 0x423   :  { %2525 = vmatmul.bf16.gmra.mxu0 %v9427_v50  ;;  %2884 = vmatmul.bf16.gmra.mxu1 %v9399_v27  ;;  %v11346_v27 = vld [vmem:[#allocation2 + $0x784] sm:$0xf]  ;;  %v11355_v50 = vld [vmem:[#allocation2 + $0x7cc] sm:$0xf] }
 0x424   :  { %14441 = vst [vmem:[#allocation103_spill] sm:$0xff] %v13411_v63  ;;  %v3215_v32 = vadd.f32 %v13377_v21, %v2846_v34  ;;  %3263 = vmatmul.bf16.gmra.mxu2 %v9435_v46  ;;  %v9442_v21 = vld [vmem:[#allocation2 + $0x7c0] sm:$0xf]  ;;  %v9415_v51 = vor.u32 %v11346_v27, %v9412_v57 }
 0x425   :  { %3632 = vmatmul.bf16.gmra.mxu3 %v9439_v52 }
 0x426   :  { %v3584_v18 = vadd.f32 %v13379_v11, %v3215_v32  ;;  %v9452_v11 = vld [vmem:[#allocation2 + $0x7d8] sm:$0xf0]  ;;  %v9443_v32 = vor.u32 %v11356_v1, %v9442_v21 }
 0x427   :  { %v13419_v15 = vpop.f32.mrf.mxu2 }
 0x428   :  { %v13421_v30 = vpop.f32.mrf.mxu3  ;;  %v13423_v39 = vpop.f32.mrf.mxu0  ;;  %v3790_v43 = vpack.c.bf16 %v3584_v18, %v3584_v18 }
 0x429   :  { %v2847_v25 = vpop.f32.mrf.mxu1 }
 0x42a   :  { %v2848_v29 = vadd.f32 %v2847_v25, %v13381_v47  ;;  %v9455_v25 = vor.u32 %v11355_v50, %v9452_v11  ;;  %v9428_v50 = vld [vmem:[#allocation2 + $0x7b0] sm:$0xf0]  ;;  %v9466_v11 = vld [vmem:[#allocation2 + $0x7e8] sm:$0xf] }
 0x42c   :  { %v3217_v54 = vadd.f32 %v3216_v2, %v2848_v29  ;;  %v9451_v2 = vor.u32 %v11357_v56, %v9450_v31  ;;  %v11360_v56 = vld [vmem:[#allocation2 + $0x7ec] sm:$0xf0] }
 0x42e   :  { %v3586_v59 = vadd.f32 %v13385_v12, %v3217_v54  ;;  %v13434_v12 = vunpack.c.l.b16 %v3790_v43 }
 0x42f   :  { %v3226_v52 = vpop.f32.mrf.mxu2 }
 0x430   :  { %v3791_v46 = vpack.c.bf16 %v3586_v59, %v3586_v59  ;;  %v13427_v34 = vpop.f32.mrf.mxu3  ;;  %v13429_v8 = vpop.f32.mrf.mxu0  ;;  %14444 = vst [vmem:[#allocation106_spill] sm:$0xff] %v13434_v12 }
 0x431   :  { %v2850_v47 = vpop.f32.mrf.mxu1 }
 0x432   :  { %v2851_v29 = vadd.f32 %v2850_v47, %v13387_v13  ;;  %v13432_v63 = vunpack.c.l.b16 %v3791_v46  ;;  %v11361_v46 = vld [vmem:[#allocation2 + $0x7f4] sm:$0xf0] }
 0x433   :  { %2530 = vmatmul.bf16.gmra.mxu0 %v9443_v32  ;;  %2889 = vmatmul.bf16.gmra.mxu1 %v9415_v51  ;;  %v11350_v51 = vld [vmem:[#allocation2 + $0x7a4] sm:$0xf]  ;;  %v11359_v32 = vld [vmem:[#allocation2 + $0x7ec] sm:$0xf] }
 0x434   :  { %14443 = vst [vmem:[#allocation105_spill] sm:$0xff] %v13432_v63  ;;  %v3220_v54 = vadd.f32 %v13398_v44, %v2851_v29  ;;  %3268 = vmatmul.bf16.gmra.mxu2 %v9451_v2  ;;  %v9458_v44 = vld [vmem:[#allocation2 + $0x7e0] sm:$0xf]  ;;  %v9431_v18 = vor.u32 %v11350_v51, %v9428_v50 }
 0x435   :  { %3637 = vmatmul.bf16.gmra.mxu3 %v9455_v25 }
 0x436   :  { %v3589_v21 = vadd.f32 %v13400_v35, %v3220_v54  ;;  %v9468_v35 = vld [vmem:[#allocation2 + $0x7f8] sm:$0xf0]  ;;  %v9459_v54 = vor.u32 %v11360_v56, %v9458_v44 }
 0x437   :  { %v13440_v1 = vpop.f32.mrf.mxu2 }
 0x438   :  { %v13442_v27 = vpop.f32.mrf.mxu3  ;;  %v13444_v13 = vpop.f32.mrf.mxu0  ;;  %v3792_v47 = vpack.c.bf16 %v3589_v21, %v3589_v21 }
 0x439   :  { %v2852_v57 = vpop.f32.mrf.mxu1 }
 0x43a   :  { %v2853_v31 = vadd.f32 %v2852_v57, %v13402_v20  ;;  %v9467_v57 = vor.u32 %v11361_v46, %v9466_v11  ;;  %v9444_v46 = vld [vmem:[#allocation2 + $0x7d0] sm:$0xf0] }
 0x43c   :  { %v3222_v59 = vadd.f32 %v3221_v22, %v2853_v31  ;;  %v9471_v31 = vor.u32 %v11359_v32, %v9468_v35  ;;  %v9482_v32 = vld [vmem:[#allocation2 + $0x808] sm:$0xf] }
 0x43e   :  { %v3591_v43 = vadd.f32 %v13406_v33, %v3222_v59  ;;  %v13457_v33 = vunpack.c.l.b16 %v3792_v47  ;;  %v11365_v47 = vld [vmem:[#allocation2 + $0x814] sm:$0xf0] }
 0x43f   :  { %v13448_v25 = vpop.f32.mrf.mxu2 }
 0x440   :  { %v3793_v2 = vpack.c.bf16 %v3591_v43, %v3591_v43  ;;  %v13450_v29 = vpop.f32.mrf.mxu3  ;;  %v13452_v20 = vpop.f32.mrf.mxu0  ;;  %14446 = vst [vmem:[#allocation108_spill] sm:$0xff] %v13457_v33 }
 0x441   :  { %v2855_v22 = vpop.f32.mrf.mxu1 }
 0x442   :  { %v2856_v12 = vadd.f32 %v2855_v22, %v13408_v61  ;;  %v13455_v63 = vunpack.c.l.b16 %v3793_v2  ;;  %v11363_v2 = vld [vmem:[#allocation2 + $0x80c] sm:$0xf] }
 0x443   :  { %2535 = vmatmul.bf16.gmra.mxu0 %v9459_v54  ;;  %2894 = vmatmul.bf16.gmra.mxu1 %v9431_v18  ;;  %v11354_v18 = vld [vmem:[#allocation2 + $0x7c4] sm:$0xf] }
 0x444   :  { %14445 = vst [vmem:[#allocation107_spill] sm:$0xff] %v13455_v63  ;;  %v3225_v21 = vadd.f32 %v13419_v15, %v2856_v12  ;;  %3273 = vmatmul.bf16.gmra.mxu2 %v9467_v57  ;;  %v9474_v15 = vld [vmem:[#allocation2 + $0x800] sm:$0xf]  ;;  %v11364_v12 = vld [vmem:[#allocation2 + $0x80c] sm:$0xf0]  ;;  %v9447_v59 = vor.u32 %v11354_v18, %v9444_v46  ;;  %v9483_v63 = vor.u32 %v11365_v47, %v9482_v32 }
 0x445   :  { %3642 = vmatmul.bf16.gmra.mxu3 %v9471_v31  ;;  %v9490_v47 = vld [vmem:[#allocation2 + $0x820] sm:$0xf] }
 0x446   :  { %v3594_v44 = vadd.f32 %v13421_v30, %v3225_v21  ;;  %v9484_v30 = vld [vmem:[#allocation2 + $0x818] sm:$0xf0]  ;;  %v9475_v21 = vor.u32 %v11364_v12, %v9474_v15 }
 0x447   :  { %v13463_v56 = vpop.f32.mrf.mxu2  ;;  %v9487_v58 = vor.u32 %v11363_v2, %v9484_v30  ;;  %v9498_v2 = vld [vmem:[#allocation2 + $0x828] sm:$0xf] }
 0x448   :  { %v13465_v51 = vpop.f32.mrf.mxu3  ;;  %v13467_v61 = vpop.f32.mrf.mxu0  ;;  %v3794_v54 = vpack.c.bf16 %v3594_v44, %v3594_v44 }
 0x449   :  { %v2857_v50 = vpop.f32.mrf.mxu1 }
 0x44a   :  { %v2858_v11 = vadd.f32 %v2857_v50, %v13423_v39  ;;  %v11411_v39 = vld [vmem:[#allocation4 + $0x88] sm:$0xff] }
 0x44b   :  { %v11403_v50 = vld [vmem:[#allocation4 + $0x48] sm:$0xff]  ;;  %4948 = vmatpush.bf16.msrb.mxu2 %v11411_v39 }
 0x44c   :  { %v3227_v43 = vadd.f32 %v3226_v52, %v2858_v11  ;;  %v11419_v52 = vld [vmem:[#allocation4 + $0xc8] sm:$0xff]  ;;  %4899 = vmatpush.bf16.msra.mxu1 %v11403_v50 }
 0x44d   :  { %4997 = vmatpush.bf16.msrb.mxu3 %v11419_v52 }
 0x44e   :  { %v3596_v35 = vadd.f32 %v13427_v34, %v3227_v43  ;;  %v13480_v43 = vunpack.c.l.b16 %v3794_v54  ;;  %v11369_v54 = vld [vmem:[#allocation2 + $0x834] sm:$0xf0] }
 0x44f   :  { %v13471_v57 = vpop.f32.mrf.mxu2 }
 0x450   :  { %v3795_v22 = vpack.c.bf16 %v3596_v35, %v3596_v35  ;;  %v13473_v31 = vpop.f32.mrf.mxu3  ;;  %v13475_v11 = vpop.f32.mrf.mxu0  ;;  %14448 = vst [vmem:[#allocation110_spill] sm:$0xff] %v13480_v43 }
 0x451   :  { %v2860_v33 = vpop.f32.mrf.mxu1 }
 0x452   :  { %v2861_v34 = vadd.f32 %v2860_v33, %v13429_v8  ;;  %v13478_v44 = vunpack.c.l.b16 %v3795_v22  ;;  %v9500_v22 = vld [vmem:[#allocation2 + $0x838] sm:$0xf0] }
 0x453   :  { %2540 = vmatmul.bf16.gmra.mxu0 %v9475_v21  ;;  %2899 = vmatmul.bf16.gmra.mxu1 %v9447_v59  ;;  %v11368_v59 = vld [vmem:[#allocation2 + $0x82c] sm:$0xf0] }
 0x454   :  { %14447 = vst [vmem:[#allocation109_spill] sm:$0xff] %v13478_v44  ;;  %v3230_v15 = vadd.f32 %v13440_v1, %v2861_v34  ;;  %3278 = vmatmul.bf16.gmra.mxu2 %v9483_v63  ;;  %v11358_v63 = vld [vmem:[#allocation2 + $0x7e4] sm:$0xf]  ;;  %v9491_v34 = vor.u32 %v11368_v59, %v9490_v47 }
 0x455   :  { %3647 = vmatmul.bf16.gmra.mxu3 %v9487_v58  ;;  %v9460_v58 = vld [vmem:[#allocation2 + $0x7f0] sm:$0xf0] }
 0x456   :  { %v3599_v18 = vadd.f32 %v13442_v27, %v3230_v15  ;;  %v11367_v27 = vld [vmem:[#allocation2 + $0x82c] sm:$0xf]  ;;  %v9463_v15 = vor.u32 %v11358_v63, %v9460_v58 }
 0x457   :  { %v13486_v46 = vpop.f32.mrf.mxu2 }
 0x458   :  { %v13488_v8 = vpop.f32.mrf.mxu3  ;;  %v13490_v33 = vpop.f32.mrf.mxu0  ;;  %v3796_v21 = vpack.c.bf16 %v3599_v18, %v3599_v18 }
 0x459   :  { %v2862_v32 = vpop.f32.mrf.mxu1 }
 0x45a   :  { %v2863_v35 = vadd.f32 %v2862_v32, %v13444_v13  ;;  %v9499_v32 = vor.u32 %v11369_v54, %v9498_v2  ;;  %v11362_v54 = vld [vmem:[#allocation2 + $0x804] sm:$0xf] }
 0x45c   :  { %v3232_v1 = vadd.f32 %v13448_v25, %v2863_v35  ;;  %v9503_v35 = vor.u32 %v11367_v27, %v9500_v22  ;;  %v9476_v27 = vld [vmem:[#allocation2 + $0x810] sm:$0xf0]  ;;  %v9514_v22 = vld [vmem:[#allocation2 + $0x848] sm:$0xf] }
 0x45d   :  { %v9479_v18 = vor.u32 %v11362_v54, %v9476_v27 }
 0x45e   :  { %v3601_v30 = vadd.f32 %v13450_v29, %v3232_v1  ;;  %v13502_v29 = vunpack.c.l.b16 %v3796_v21 }
 0x45f   :  { %v3241_v52 = vpop.f32.mrf.mxu2 }
 0x460   :  { %v3797_v39 = vpack.c.bf16 %v3601_v30, %v3601_v30  ;;  %v13495_v50 = vpop.f32.mrf.mxu3  ;;  %v13497_v13 = vpop.f32.mrf.mxu0  ;;  %14450 = vst [vmem:[#allocation112_spill] sm:$0xff] %v13502_v29  ;;  %v11372_v30 = vld [vmem:[#allocation2 + $0x84c] sm:$0xf0] }
 0x461   :  { %v2865_v25 = vpop.f32.mrf.mxu1 }
 0x462   :  { %v2866_v12 = vadd.f32 %v2865_v25, %v13452_v20  ;;  %v13500_v43 = vunpack.c.l.b16 %v3797_v39  ;;  %v11373_v39 = vld [vmem:[#allocation2 + $0x854] sm:$0xf0] }
 0x463   :  { %2545 = vmatmul.bf16.gmra.mxu0 %v9491_v34  ;;  %2904 = vmatmul.bf16.gmra.mxu1 %v9463_v15  ;;  %v9516_v34 = vld [vmem:[#allocation2 + $0x858] sm:$0xf0] }
 0x464   :  { %14449 = vst [vmem:[#allocation111_spill] sm:$0xff] %v13500_v43  ;;  %v3235_v1 = vadd.f32 %v13463_v56, %v2866_v12  ;;  %3283 = vmatmul.bf16.gmra.mxu2 %v9499_v32  ;;  %v9506_v12 = vld [vmem:[#allocation2 + $0x840] sm:$0xf] }
 0x465   :  { %3652 = vmatmul.bf16.gmra.mxu3 %v9503_v35 }
 0x466   :  { %v3604_v47 = vadd.f32 %v13465_v51, %v3235_v1  ;;  %v11371_v51 = vld [vmem:[#allocation2 + $0x84c] sm:$0xf]  ;;  %v9507_v1 = vor.u32 %v11372_v30, %v9506_v12 }
 0x467   :  { %v13508_v59 = vpop.f32.mrf.mxu2  ;;  %v9519_v29 = vor.u32 %v11371_v51, %v9516_v34  ;;  %v9492_v51 = vld [vmem:[#allocation2 + $0x830] sm:$0xf0] }
 0x468   :  { %v13510_v63 = vpop.f32.mrf.mxu3  ;;  %v13512_v20 = vpop.f32.mrf.mxu0  ;;  %v3798_v15 = vpack.c.bf16 %v3604_v47, %v3604_v47 }
 0x469   :  { %v2867_v58 = vpop.f32.mrf.mxu1 }
 0x46a   :  { %v2868_v2 = vadd.f32 %v2867_v58, %v13467_v61  ;;  %v11394_v61 = vld [vmem:[#allocation4] sm:$0xff] }
 0x46b   :  { %4851 = vmatpush.bf16.msrb.mxu0 %v11394_v61 }
 0x46c   :  { %v3237_v56 = vadd.f32 %v13471_v57, %v2868_v2  ;;  %v9515_v2 = vor.u32 %v11373_v39, %v9514_v22 }
 0x46e   :  { %v3606_v21 = vadd.f32 %v13473_v31, %v3237_v56  ;;  %v13524_v56 = vunpack.c.l.b16 %v3798_v15 }
 0x46f   :  { %v3246_v32 = vpop.f32.mrf.mxu2 }
 0x470   :  { %v3799_v25 = vpack.c.bf16 %v3606_v21, %v3606_v21  ;;  %v13517_v35 = vpop.f32.mrf.mxu3  ;;  %v13519_v58 = vpop.f32.mrf.mxu0  ;;  %14452 = vst [vmem:[#allocation114_spill] sm:$0xff] %v13524_v56 }
 0x471   :  { %v2870_v57 = vpop.f32.mrf.mxu1 }
 0x472   :  { %v2871_v43 = vadd.f32 %v2870_v57, %v13475_v11  ;;  %v13522_v31 = vunpack.c.l.b16 %v3799_v25  ;;  %v11377_v25 = vld [vmem:[#allocation2 + $0x874] sm:$0xf0] }
 0x473   :  { %2550 = vmatmul.bf16.gmra.mxu0 %v9507_v1  ;;  %2909 = vmatmul.bf16.gmra.mxu1 %v9479_v18  ;;  %v11366_v18 = vld [vmem:[#allocation2 + $0x824] sm:$0xf]  ;;  %v9532_v1 = vld [vmem:[#allocation2 + $0x878] sm:$0xf0] }
 0x474   :  { %14451 = vst [vmem:[#allocation113_spill] sm:$0xff] %v13522_v31  ;;  %v3240_v47 = vadd.f32 %v13486_v46, %v2871_v43  ;;  %3288 = vmatmul.bf16.gmra.mxu2 %v9515_v2  ;;  %v9522_v43 = vld [vmem:[#allocation2 + $0x860] sm:$0xf]  ;;  %v11376_v46 = vld [vmem:[#allocation2 + $0x86c] sm:$0xf0]  ;;  %v9495_v12 = vor.u32 %v11366_v18, %v9492_v51 }
 0x475   :  { %3657 = vmatmul.bf16.gmra.mxu3 %v9519_v29  ;;  %v9530_v29 = vld [vmem:[#allocation2 + $0x868] sm:$0xf] }
 0x476   :  { %v3609_v30 = vadd.f32 %v13488_v8, %v3240_v47  ;;  %v11375_v8 = vld [vmem:[#allocation2 + $0x86c] sm:$0xf]  ;;  %v9523_v47 = vor.u32 %v11376_v46, %v9522_v43 }
 0x477   :  { %v13530_v54 = vpop.f32.mrf.mxu2 }
 0x478   :  { %v13532_v27 = vpop.f32.mrf.mxu3  ;;  %v13534_v11 = vpop.f32.mrf.mxu0  ;;  %v3800_v34 = vpack.c.bf16 %v3609_v30, %v3609_v30 }
 0x479   :  { %v2872_v22 = vpop.f32.mrf.mxu1 }
 0x47a   :  { %v2873_v21 = vadd.f32 %v2872_v22, %v13490_v33  ;;  %v9535_v22 = vor.u32 %v11375_v8, %v9532_v1  ;;  %v11370_v8 = vld [vmem:[#allocation2 + $0x844] sm:$0xf]  ;;  %v9546_v1 = vld [vmem:[#allocation2 + $0x888] sm:$0xf] }
 0x47c   :  { %v3242_v39 = vadd.f32 %v3241_v52, %v2873_v21  ;;  %v9531_v52 = vor.u32 %v11377_v25, %v9530_v29  ;;  %v13542_v21 = vunpack.c.l.b16 %v3800_v34  ;;  %v11380_v25 = vld [vmem:[#allocation2 + $0x88c] sm:$0xf0] }
 0x47e   :  { %v3611_v15 = vadd.f32 %v13495_v50, %v3242_v39  ;;  %14453 = vst [vmem:[#allocation115_spill] sm:$0xff] %v13542_v21 }
 0x47f   :  { %v3251_v57 = vpop.f32.mrf.mxu2 }
 0x480   :  { %v3801_v61 = vpack.c.bf16 %v3611_v15, %v3611_v15  ;;  %v13538_v2 = vpop.f32.mrf.mxu3  ;;  %v13540_v56 = vpop.f32.mrf.mxu0  ;;  %v9538_v15 = vld [vmem:[#allocation2 + $0x880] sm:$0xf] }
 0x481   :  { %v2875_v33 = vpop.f32.mrf.mxu1 }
 0x482   :  { %v13544_v31 = vunpack.c.l.b16 %v3801_v61  ;;  %v2876_v50 = vadd.f32 %v2875_v33, %v13497_v13  ;;  %v11381_v61 = vld [vmem:[#allocation2 + $0x894] sm:$0xf0] }
 0x483   :  { %2555 = vmatmul.bf16.gmra.mxu0 %v9523_v47  ;;  %2914 = vmatmul.bf16.gmra.mxu1 %v9495_v12  ;;  %v11379_v47 = vld [vmem:[#allocation2 + $0x88c] sm:$0xf] }
 0x484   :  { %14454 = vst [vmem:[#allocation116_spill] sm:$0xff] %v13544_v31  ;;  %v3245_v39 = vadd.f32 %v13508_v59, %v2876_v50  ;;  %3293 = vmatmul.bf16.gmra.mxu2 %v9531_v52  ;;  %v9508_v59 = vld [vmem:[#allocation2 + $0x850] sm:$0xf0] }
 0x485   :  { %3662 = vmatmul.bf16.gmra.mxu3 %v9535_v22  ;;  %v9511_v30 = vor.u32 %v11370_v8, %v9508_v59 }
 0x486   :  { %v3614_v43 = vadd.f32 %v13510_v63, %v3245_v39  ;;  %v9548_v63 = vld [vmem:[#allocation2 + $0x898] sm:$0xf0]  ;;  %v9539_v39 = vor.u32 %v11380_v25, %v9538_v15 }
 0x487   :  { %v13551_v46 = vpop.f32.mrf.mxu2 }
 0x488   :  { %v13553_v18 = vpop.f32.mrf.mxu3  ;;  %v13555_v51 = vpop.f32.mrf.mxu0  ;;  %v3802_v33 = vpack.c.bf16 %v3614_v43, %v3614_v43 }
 0x489   :  { %v2877_v29 = vpop.f32.mrf.mxu1 }
 0x48a   :  { %v2878_v13 = vadd.f32 %v2877_v29, %v13512_v20  ;;  %v9551_v29 = vor.u32 %v11379_v47, %v9548_v63  ;;  %v13564_v31 = vunpack.c.l.b16 %v3802_v33  ;;  %v9562_v47 = vld [vmem:[#allocation2 + $0x8a8] sm:$0xf]  ;;  %v11385_v33 = vld [vmem:[#allocation2 + $0x8b4] sm:$0xf0] }
 0x48c   :  { %v3247_v34 = vadd.f32 %v3246_v32, %v2878_v13  ;;  %v9547_v32 = vor.u32 %v11381_v61, %v9546_v1  ;;  %14455 = vst [vmem:[#allocation117_spill] sm:$0xff] %v13564_v31  ;;  %v9524_v61 = vld [vmem:[#allocation2 + $0x870] sm:$0xf0] }
 0x48e   :  { %v3616_v12 = vadd.f32 %v13517_v35, %v3247_v34 }
 0x48f   :  { %v3256_v22 = vpop.f32.mrf.mxu2 }
 0x490   :  { %v3803_v52 = vpack.c.bf16 %v3616_v12, %v3616_v12  ;;  %v3625_v50 = vpop.f32.mrf.mxu3  ;;  %v13559_v44 = vpop.f32.mrf.mxu0  ;;  %v11384_v12 = vld [vmem:[#allocation2 + $0x8ac] sm:$0xf0] }
 0x491   :  { %v2880_v20 = vpop.f32.mrf.mxu1 }
 0x492   :  { %v2881_v13 = vadd.f32 %v2880_v20, %v13519_v58  ;;  %v13562_v21 = vunpack.c.l.b16 %v3803_v52  ;;  %v11383_v52 = vld [vmem:[#allocation2 + $0x8ac] sm:$0xf] }
 0x493   :  { %2560 = vmatmul.bf16.gmra.mxu0 %v9539_v39  ;;  %2919 = vmatmul.bf16.gmra.mxu1 %v9511_v30  ;;  %v11374_v30 = vld [vmem:[#allocation2 + $0x864] sm:$0xf] }
 0x494   :  { %v3250_v35 = vadd.f32 %v13530_v54, %v2881_v13  ;;  %3298 = vmatmul.bf16.gmra.mxu2 %v9547_v32  ;;  %v9554_v54 = vld [vmem:[#allocation2 + $0x8a0] sm:$0xf] }
 0x495   :  { %3667 = vmatmul.bf16.gmra.mxu3 %v9551_v29  ;;  %v9555_v13 = vor.u32 %v11384_v12, %v9554_v54 }
 0x496   :  { %v3619_v34 = vadd.f32 %v13532_v27, %v3250_v35  ;;  %v9564_v27 = vld [vmem:[#allocation2 + $0x8b8] sm:$0xf0]  ;;  %v9527_v35 = vor.u32 %v11374_v30, %v9524_v61 }
 0x497   :  { %v13570_v15 = vpop.f32.mrf.mxu2 }
 0x498   :  { %v13572_v25 = vpop.f32.mrf.mxu3  ;;  %v13574_v58 = vpop.f32.mrf.mxu0  ;;  %v3804_v39 = vpack.c.bf16 %v3619_v34, %v3619_v34 }
 0x499   :  { %v2882_v8 = vpop.f32.mrf.mxu1 }
 0x49a   :  { %v2883_v59 = vadd.f32 %v2882_v8, %v13534_v11  ;;  %v9567_v8 = vor.u32 %v11383_v52, %v9564_v27  ;;  %v9578_v52 = vld [vmem:[#allocation2 + $0x8c8] sm:$0xf] }
 0x49c   :  { %v3252_v1 = vadd.f32 %v3251_v57, %v2883_v59  ;;  %v9563_v57 = vor.u32 %v11385_v33, %v9562_v47  ;;  %v11378_v33 = vld [vmem:[#allocation2 + $0x884] sm:$0xf] }
 0x49e   :  { %v3621_v63 = vadd.f32 %v13538_v2, %v3252_v1  ;;  %v13585_v2 = vunpack.c.l.b16 %v3804_v39 }
 0x49f   :  { %v3261_v32 = vpop.f32.mrf.mxu2 }
 0x4a0   :  { %v3805_v20 = vpack.c.bf16 %v3621_v63, %v3621_v63  ;;  %v13578_v29 = vpop.f32.mrf.mxu3  ;;  %v13580_v43 = vpop.f32.mrf.mxu0  ;;  %14457 = vst [vmem:[#allocation119_spill] sm:$0xff] %v13585_v2 }
 0x4a1   :  { %v2885_v11 = vpop.f32.mrf.mxu1 }
 0x4a2   :  { %v2886_v59 = vadd.f32 %v2885_v11, %v13540_v56  ;;  %v13583_v31 = vunpack.c.l.b16 %v3805_v20  ;;  %v11389_v20 = vld [vmem:[#allocation2 + $0x8d4] sm:$0xf0] }
 0x4a3   :  { %2565 = vmatmul.bf16.gmra.mxu0 %v9555_v13  ;;  %2924 = vmatmul.bf16.gmra.mxu1 %v9527_v35  ;;  %v11387_v13 = vld [vmem:[#allocation2 + $0x8cc] sm:$0xf]  ;;  %v9580_v35 = vld [vmem:[#allocation2 + $0x8d8] sm:$0xf0] }
 0x4a4   :  { %14456 = vst [vmem:[#allocation118_spill] sm:$0xff] %v13583_v31  ;;  %v3255_v1 = vadd.f32 %v13551_v46, %v2886_v59  ;;  %3303 = vmatmul.bf16.gmra.mxu2 %v9563_v57  ;;  %v9540_v46 = vld [vmem:[#allocation2 + $0x890] sm:$0xf0]  ;;  %v11410_v59 = vld [vmem:[#allocation4 + $0x80] sm:$0xff]  ;;  %v9579_v31 = vor.u32 %v11389_v20, %v9578_v52 }
 0x4a5   :  { %3672 = vmatmul.bf16.gmra.mxu3 %v9567_v8  ;;  %v9543_v8 = vor.u32 %v11378_v33, %v9540_v46  ;;  %4949 = vmatpush.bf16.msrb.mxu2 %v11410_v59  ;;  %v9556_v20 = vld [vmem:[#allocation2 + $0x8b0] sm:$0xf0] }
 0x4a6   :  { %v3624_v54 = vadd.f32 %v13553_v18, %v3255_v1  ;;  %v11418_v1 = vld [vmem:[#allocation4 + $0xc0] sm:$0xff] }
 0x4a7   :  { %v3264_v12 = vpop.f32.mrf.mxu2  ;;  %4998 = vmatpush.bf16.msrb.mxu3 %v11418_v1 }
 0x4a8   :  { %v13591_v30 = vpop.f32.mrf.mxu3  ;;  %v13593_v61 = vpop.f32.mrf.mxu0  ;;  %v3806_v27 = vpack.c.bf16 %v3624_v54, %v3624_v54 }
 0x4a9   :  { %v2887_v56 = vpop.f32.mrf.mxu1 }
 0x4aa   :  { %v2888_v47 = vadd.f32 %v2887_v56, %v13555_v51  ;;  %v9583_v51 = vor.u32 %v11387_v13, %v9580_v35  ;;  %v9594_v13 = vld [vmem:[#allocation2 + $0x8e8] sm:$0xf] }
 0x4ac   :  { %v3257_v63 = vadd.f32 %v3256_v22, %v2888_v47  ;;  %v13598_v22 = vunpack.c.l.b16 %v3806_v27  ;;  %v14458_v47 = vpack.c.b16 %v12331_v24, %v12334_v26  ;;  %v11393_v26 = vld [vmem:[#allocation2 + $0x8f4] sm:$0xf0] }
 0x4ae   :  { %v3626_v39 = vadd.f32 %v3625_v50, %v3257_v63 }
 0x4af   :  { %v3266_v57 = vpop.f32.mrf.mxu2 }
 0x4b0   :  { %v3807_v11 = vpack.c.bf16 %v3626_v39, %v3626_v39  ;;  %v3635_v18 = vpop.f32.mrf.mxu3  ;;  %v13596_v34 = vpop.f32.mrf.mxu0 }
 0x4b1   :  { %v2890_v2 = vpop.f32.mrf.mxu1 }
 0x4b2   :  { %v2891_v56 = vadd.f32 %v2890_v2, %v13559_v44  ;;  %v13601_v50 = vunpack.c.l.b16 %v3807_v11  ;;  %v11391_v11 = vld [vmem:[#allocation2 + $0x8ec] sm:$0xf] }
 0x4b3   :  { %2929 = vmatmul.bf16.gmra.mxu1 %v9543_v8  ;;  %4852 = vmatmul.bf16.vlgmr.msrb.gmra.mxu0 %v14458_v47  ;;  %v9596_v8 = vld [vmem:[#allocation2 + $0x8f8] sm:$0xf0] }
 0x4b4   :  { %v3260_v54 = vadd.f32 %v13570_v15, %v2891_v56  ;;  %3308 = vmatmul.bf16.gmra.mxu2 %v9579_v31  ;;  %v11382_v15 = vld [vmem:[#allocation2 + $0x8a4] sm:$0xf]  ;;  %v9599_v47 = vor.u32 %v11391_v11, %v9596_v8 }
 0x4b5   :  { %3677 = vmatmul.bf16.gmra.mxu3 %v9583_v51 }
 0x4b6   :  { %v3629_v33 = vadd.f32 %v13572_v25, %v3260_v54  ;;  %v9559_v25 = vor.u32 %v11382_v15, %v9556_v20  ;;  %v9595_v54 = vor.u32 %v11393_v26, %v9594_v13 }
 0x4b7   :  { %v3269_v46 = vpop.f32.mrf.mxu2 }
 0x4b8   :  { %v3638_v44 = vpop.f32.mrf.mxu3  ;;  %v2533_v2 = vpop.f32.mrf.mxu0  ;;  %v3808_v35 = vpack.c.bf16 %v3629_v33, %v3629_v33 }
 0x4b9   :  { %v2892_v52 = vpop.f32.mrf.mxu1 }
 0x4ba   :  { %v2893_v27 = vadd.f32 %v2892_v52, %v13574_v58  ;;  %v13612_v63 = vunpack.c.l.b16 %v3808_v35 }
 0x4bc   :  { %v3262_v39 = vadd.f32 %v3261_v32, %v2893_v27 }
 0x4be   :  { %v3631_v24 = vadd.f32 %v13578_v29, %v3262_v39  ;;  %v14459_v29 = vpack.c.b16 %v12352_v60, %v12354_v48 }
 0x4bf   :  { %v3271_v59 = vpop.f32.mrf.mxu2 }
 0x4c0   :  { %v3809_v31 = vpack.c.bf16 %v3631_v24, %v3631_v24  ;;  %v3640_v1 = vpop.f32.mrf.mxu3  ;;  %v2536_v51 = vpop.f32.mrf.mxu0  ;;  %v9572_v24 = vld [vmem:[#allocation2 + $0x8d0] sm:$0xf0] }
 0x4c1   :  { %v2895_v56 = vpop.f32.mrf.mxu1 }
 0x4c2   :  { %v2896_v58 = vadd.f32 %v2895_v56, %v13580_v43  ;;  %v13615_v32 = vunpack.c.l.b16 %v3809_v31 }
 0x4c3   :  { %2934 = vmatmul.bf16.gmra.mxu1 %v9559_v25  ;;  %4857 = vmatmul.bf16.gmra.mxu0 %v14459_v29  ;;  %v11402_v25 = vld [vmem:[#allocation4 + $0x40] sm:$0xff]  ;;  %v14462_v29 = vpack.c.b16 %v12846_v55, %v12849_v19 }
 0x4c4   :  { %v3265_v33 = vadd.f32 %v3264_v12, %v2896_v58  ;;  %v4204_v52 = vpack.c.b16 %v13615_v32, %v13612_v63  ;;  %3313 = vmatmul.bf16.gmra.mxu2 %v9595_v54  ;;  %v11386_v12 = vld [vmem:[#allocation2 + $0x8c4] sm:$0xf]  ;;  %4900 = vmatpush.bf16.msra.mxu1 %v11402_v25 }
 0x4c5   :  { %3682 = vmatmul.bf16.gmra.mxu3 %v9599_v47  ;;  %v9575_v31 = vor.u32 %v11386_v12, %v9572_v24 }
 0x4c6   :  { %v3634_v27 = vadd.f32 %v13591_v30, %v3265_v33  ;;  %v14461_v33 = vpack.c.b16 %v12674_v45, %v12677_v17 }
 0x4c7   :  { %v3274_v39 = vpop.f32.mrf.mxu2 }
 0x4c8   :  { %v3643_v15 = vpop.f32.mrf.mxu3  ;;  %v2538_v20 = vpop.f32.mrf.mxu0  ;;  %v3810_v26 = vpack.c.bf16 %v3634_v27, %v3634_v27 }
 0x4c9   :  { %v2897_v13 = vpop.f32.mrf.mxu1 }
 0x4ca   :  { %v2898_v43 = vadd.f32 %v2897_v13, %v13593_v61  ;;  %v13624_v47 = vunpack.c.l.b16 %v3810_v26 }
 0x4cc   :  { %v3267_v35 = vadd.f32 %v3266_v57, %v2898_v43  ;;  %v14460_v57 = vpack.c.b16 %v12373_v40, %v12375_v16  ;;  %v11390_v40 = vld [vmem:[#allocation2 + $0x8e4] sm:$0xf]  ;;  %v9588_v16 = vld [vmem:[#allocation2 + $0x8f0] sm:$0xf0] }
 0x4cd   :  { %v9591_v45 = vor.u32 %v11390_v40, %v9588_v16 }
 0x4ce   :  { %v3636_v11 = vadd.f32 %v3635_v18, %v3267_v35 }
 0x4cf   :  { %v3276_v48 = vpop.f32.mrf.mxu2 }
 0x4d0   :  { %v3811_v60 = vpack.c.bf16 %v3636_v11, %v3636_v11  ;;  %v3645_v8 = vpop.f32.mrf.mxu3  ;;  %v2541_v56 = vpop.f32.mrf.mxu0 }
 0x4d1   :  { %v2900_v54 = vpop.f32.mrf.mxu1 }
 0x4d2   :  { %v2901_v30 = vadd.f32 %v2900_v54, %v13596_v34  ;;  %v13627_v58 = vunpack.c.l.b16 %v3811_v60 }
 0x4d3   :  { %2939 = vmatmul.bf16.gmra.mxu1 %v9575_v31  ;;  %4862 = vmatmul.bf16.gmra.mxu0 %v14460_v57 }
 0x4d4   :  { %v3270_v61 = vadd.f32 %v3269_v46, %v2901_v30  ;;  %v4205_v18 = vpack.c.b16 %v13627_v58, %v13624_v47  ;;  %4950 = vmatmul.bf16.vlgmr.msrb.gmra.mxu2 %v14461_v33  ;;  %v14465_v30 = vpack.c.b16 %v12870_v38, %v12872_v9 }
 0x4d5   :  { %4999 = vmatmul.bf16.vlgmr.msrb.gmra.mxu3 %v14462_v29 }
 0x4d6   :  { %v3639_v34 = vadd.f32 %v3638_v44, %v3270_v61 }
 0x4d7   :  { %v3279_v27 = vpop.f32.mrf.mxu2 }
 0x4d8   :  { %v3648_v13 = vpop.f32.mrf.mxu3  ;;  %v2543_v46 = vpop.f32.mrf.mxu0  ;;  %v3812_v24 = vpack.c.bf16 %v3639_v34, %v3639_v34 }
 0x4d9   :  { %v2902_v43 = vpop.f32.mrf.mxu1 }
 0x4da   :  { %v2903_v35 = vadd.f32 %v2902_v43, %v2533_v2  ;;  %v13640_v54 = vunpack.c.l.b16 %v3812_v24  ;;  %v14463_v2 = vpack.c.b16 %v12394_v10, %v12396_v53  ;;  %v14468_v24 = vpack.c.b16 %v12720_v28, %v12722_v42 }
 0x4dc   :  { %v3272_v12 = vadd.f32 %v3271_v59, %v2903_v35  ;;  %v14573_v59 = vpack.c.b16 %v13601_v50, %v13598_v22 }
 0x4de   :  { %v3641_v26 = vadd.f32 %v3640_v1, %v3272_v12  ;;  %v14464_v1 = vpack.c.b16 %v12698_v0, %v12700_v7 }
 0x4df   :  { %v3281_v60 = vpop.f32.mrf.mxu2 }
 0x4e0   :  { %v3813_v11 = vpack.c.bf16 %v3641_v26, %v3641_v26  ;;  %v3650_v31 = vpop.f32.mrf.mxu3  ;;  %v2546_v17 = vpop.f32.mrf.mxu0  ;;  %v11432_v26 = vld [vmem:[#allocation4 + $0x130] sm:$0xff] }
 0x4e1   :  { %v2905_v25 = vpop.f32.mrf.mxu1 }
 0x4e2   :  { %v2906_v55 = vadd.f32 %v2905_v25, %v2536_v51  ;;  %v13642_v19 = vunpack.c.l.b16 %v3813_v11  ;;  %v11431_v25 = vld [vmem:[#allocation4 + $0x128] sm:$0xff] }
 0x4e3   :  { %2944 = vmatmul.bf16.gmra.mxu1 %v9591_v45  ;;  %4867 = vmatmul.bf16.gmra.mxu0 %v14463_v2 }
 0x4e4   :  { %v3275_v44 = vadd.f32 %v3274_v39, %v2906_v55  ;;  %4955 = vmatmul.bf16.gmra.mxu2 %v14464_v1 }
 0x4e5   :  { %5004 = vmatmul.bf16.gmra.mxu3 %v14465_v30 }
 0x4e6   :  { %v3644_v51 = vadd.f32 %v3643_v15, %v3275_v44  ;;  %v14466_v15 = vpack.c.b16 %v12415_v37, %v12417_v23 }
 0x4e7   :  { %v3284_v61 = vpop.f32.mrf.mxu2 }
 0x4e8   :  { %v3653_v57 = vpop.f32.mrf.mxu3  ;;  %v2548_v39 = vpop.f32.mrf.mxu0  ;;  %v3814_v10 = vpack.c.bf16 %v3644_v51, %v3644_v51 }
 0x4e9   :  { %v2907_v33 = vpop.f32.mrf.mxu1 }
 0x4ea   :  { %v2908_v29 = vadd.f32 %v2907_v33, %v2538_v20  ;;  %v13657_v7 = vunpack.c.l.b16 %v3814_v10  ;;  %v14467_v20 = vpack.c.b16 %v12504_v14, %v12502_v36  ;;  %v14471_v33 = vpack.c.b16 %v12525_v3, %v12527_v62 }
 0x4ec   :  { %v3277_v34 = vadd.f32 %v3276_v48, %v2908_v29  ;;  %v11433_v48 = vld [vmem:[#allocation4 + $0x138] sm:$0xff] }
 0x4ed   :  { %5040 = vmatpush.bf16.msra.mxu0 %v11433_v48  ;;  %v11429_v29 = vld [vmem:[#allocation4 + $0x118] sm:$0xff] }
 0x4ee   :  { %v3646_v53 = vadd.f32 %v3645_v8, %v3277_v34  ;;  %v14472_v34 = vld [vmem:[#allocation48_spill] sm:$0xff] }
 0x4ef   :  { %v3286_v35 = vpop.f32.mrf.mxu2  ;;  %v14473_v10 = vpack.c.b16 %v12742_v41, %v14472_v34  ;;  %v14559_v8 = vld [vmem:[#allocation104_spill] sm:$0xff] }
 0x4f0   :  { %v3815_v43 = vpack.c.bf16 %v3646_v53, %v3646_v53  ;;  %v3655_v12 = vpop.f32.mrf.mxu3  ;;  %v13655_v40 = vpop.f32.mrf.mxu0  ;;  %v14474_v53 = vld [vmem:[#allocation57_spill] sm:$0xff] }
 0x4f1   :  { %v2910_v0 = vpop.f32.mrf.mxu1  ;;  %5041 = vmatpush.bf16.msra.mxu0 %v11432_v26 }
 0x4f2   :  { %v2911_v16 = vadd.f32 %v2910_v0, %v2541_v56  ;;  %v13659_v38 = vunpack.c.l.b16 %v3815_v43  ;;  %v14469_v56 = vpack.c.b16 %v12893_v49, %v12895_v6  ;;  %v11430_v49 = vld [vmem:[#allocation4 + $0x120] sm:$0xff] }
 0x4f3   :  { %4872 = vmatmul.bf16.gmra.mxu0 %v14466_v15  ;;  %4901 = vmatmul.bf16.vlgmr.msra.gmra.mxu1 %v14467_v20  ;;  %v11427_v15 = vld [vmem:[#allocation4 + $0x108] sm:$0xff] }
 0x4f4   :  { %v3280_v9 = vadd.f32 %v3279_v27, %v2911_v16  ;;  %4960 = vmatmul.bf16.gmra.mxu2 %v14468_v24 }
 0x4f5   :  { %5009 = vmatmul.bf16.gmra.mxu3 %v14469_v56  ;;  %5042 = vmatpush.bf16.msra.mxu0 %v11431_v25 }
 0x4f6   :  { %v3649_v27 = vadd.f32 %v3648_v13, %v3280_v9 }
 0x4f7   :  { %v3289_v37 = vpop.f32.mrf.mxu2 }
 0x4f8   :  { %v3658_v23 = vpop.f32.mrf.mxu3  ;;  %v13675_v11 = vpop.f32.mrf.mxu0  ;;  %v3816_v55 = vpack.c.bf16 %v3649_v27, %v3649_v27 }
 0x4f9   :  { %v2912_v36 = vpop.f32.mrf.mxu1  ;;  %5043 = vmatpush.bf16.msra.mxu0 %v11430_v49  ;;  %v11449_v49 = vld [vmem:[#allocation4 + $0x1b8] sm:$0xff] }
 0x4fa   :  { %v2913_v14 = vadd.f32 %v2912_v36, %v2543_v46  ;;  %v13681_v1 = vunpack.c.l.b16 %v3816_v55  ;;  %v14480_v55 = vld [vmem:[#allocation36_spill] sm:$0xff]  ;;  %5138 = vmatpush.bf16.msra.mxu2 %v11449_v49  ;;  %v14493_v49 = vld [vmem:[#allocation39_spill] sm:$0xff] }
 0x4fc   :  { %v3282_v45 = vadd.f32 %v3281_v60, %v2913_v14 }
 0x4fd   :  { %5044 = vmatpush.bf16.msra.mxu0 %v11429_v29  ;;  %v14487_v29 = vld [vmem:[#allocation60_spill] sm:$0xff] }
 0x4fe   :  { %v3651_v44 = vadd.f32 %v3650_v31, %v3282_v45  ;;  %v14470_v31 = vpack.c.b16 %v12436_v4, %v12438_v5  ;;  %v11428_v4 = vld [vmem:[#allocation4 + $0x110] sm:$0xff]  ;;  %v14477_v45 = vld [vmem:[#allocation32_spill] sm:$0xff] }
 0x4ff   :  { %v3291_v42 = vpop.f32.mrf.mxu2 }
 0x500   :  { %v3817_v28 = vpack.c.bf16 %v3651_v44, %v3651_v44  ;;  %v13677_v2 = vpop.f32.mrf.mxu3  ;;  %v13679_v6 = vpop.f32.mrf.mxu0  ;;  %v14481_v44 = vld [vmem:[#allocation37_spill] sm:$0xff] }
 0x501   :  { %v2915_v13 = vpop.f32.mrf.mxu1  ;;  %5045 = vmatpush.bf16.msra.mxu0 %v11428_v4 }
 0x502   :  { %v13683_v30 = vunpack.c.l.b16 %v3817_v28  ;;  %v2916_v51 = vadd.f32 %v2915_v13, %v2546_v17  ;;  %v14475_v17 = vld [vmem:[#allocation58_spill] sm:$0xff]  ;;  %v14482_v28 = vpack.c.b16 %v14480_v55, %v14481_v44  ;;  %v11457_v13 = vld [vmem:[#allocation4 + $0x1f8] sm:$0xff] }
 0x503   :  { %4877 = vmatmul.bf16.gmra.mxu0 %v14470_v31  ;;  %4906 = vmatmul.bf16.gmra.mxu1 %v14471_v33  ;;  %v14476_v43 = vpack.c.b16 %v14474_v53, %v14475_v17  ;;  %v14484_v31 = vld [vmem:[#allocation50_spill] sm:$0xff]  ;;  %v14486_v33 = vld [vmem:[#allocation59_spill] sm:$0xff] }
 0x504   :  { %v4248_v46 = vpack.c.b16 %v13683_v30, %v13681_v1  ;;  %v3285_v60 = vadd.f32 %v3284_v61, %v2916_v51  ;;  %4965 = vmatmul.bf16.gmra.mxu2 %v14473_v10  ;;  %5187 = vmatpush.bf16.msra.mxu3 %v11457_v13  ;;  %v11448_v17 = vld [vmem:[#allocation4 + $0x1b0] sm:$0xff]  ;;  %v14564_v51 = vld [vmem:[#allocation77_spill] sm:$0xff] }
 0x505   :  { %5014 = vmatmul.bf16.gmra.mxu3 %v14476_v43  ;;  %5046 = vmatpush.bf16.msra.mxu0 %v11427_v15  ;;  %v11456_v43 = vld [vmem:[#allocation4 + $0x1f0] sm:$0xff]  ;;  %v11455_v15 = vld [vmem:[#allocation4 + $0x1e8] sm:$0xff] }
 0x506   :  { %v3654_v0 = vadd.f32 %v3653_v57, %v3285_v60  ;;  %v11426_v57 = vld [vmem:[#allocation4 + $0x100] sm:$0xff]  ;;  %5139 = vmatpush.bf16.msra.mxu2 %v11448_v17  ;;  %v14490_v55 = vld [vmem:[#allocation35_spill] sm:$0xff] }
 0x507   :  { %v3294_v61 = vpop.f32.mrf.mxu2  ;;  %v14483_v60 = vld [vmem:[#allocation49_spill] sm:$0xff] }
 0x508   :  { %v13699_v16 = vpop.f32.mrf.mxu3  ;;  %v13701_v5 = vpop.f32.mrf.mxu0  ;;  %v3818_v20 = vpack.c.bf16 %v3654_v0, %v3654_v0  ;;  %5188 = vmatpush.bf16.msra.mxu3 %v11456_v43 }
 0x509   :  { %v2917_v9 = vpop.f32.mrf.mxu1  ;;  %5047 = vmatpush.bf16.msra.mxu0 %v11426_v57 }
 0x50a   :  { %v2918_v3 = vadd.f32 %v2917_v9, %v2548_v39  ;;  %v13709_v36 = vunpack.c.l.b16 %v3818_v20 }
 0x50c   :  { %v3287_v62 = vadd.f32 %v3286_v35, %v2918_v3  ;;  %5189 = vmatpush.bf16.msra.mxu3 %v11455_v15 }
 0x50e   :  { %v3656_v41 = vadd.f32 %v3655_v12, %v3287_v62  ;;  %v14478_v12 = vld [vmem:[#allocation33_spill] sm:$0xff] }
 0x50f   :  { %v13703_v24 = vpop.f32.mrf.mxu2  ;;  %v14479_v25 = vpack.c.b16 %v14477_v45, %v14478_v12  ;;  %v11447_v62 = vld [vmem:[#allocation4 + $0x1a8] sm:$0xff] }
 0x510   :  { %v3819_v48 = vpack.c.bf16 %v3656_v41, %v3656_v41  ;;  %v13705_v56 = vpop.f32.mrf.mxu3  ;;  %v13707_v27 = vpop.f32.mrf.mxu0  ;;  %5140 = vmatpush.bf16.msra.mxu2 %v11447_v62 }
 0x511   :  { %v2920_v26 = vpop.f32.mrf.mxu1 }
 0x512   :  { %v2921_v14 = vadd.f32 %v2920_v26, %v13655_v40  ;;  %v13712_v39 = vunpack.c.l.b16 %v3819_v48  ;;  %v14485_v40 = vpack.c.b16 %v14483_v60, %v14484_v31  ;;  %v11446_v26 = vld [vmem:[#allocation4 + $0x1a0] sm:$0xff]  ;;  %v11445_v60 = vld [vmem:[#allocation4 + $0x198] sm:$0xff] }
 0x513   :  { %4882 = vmatmul.bf16.gmra.mxu0 %v14479_v25  ;;  %4911 = vmatmul.bf16.gmra.mxu1 %v14482_v28  ;;  %v14489_v25 = vld [vmem:[#allocation34_spill] sm:$0xff]  ;;  %v11453_v31 = vld [vmem:[#allocation4 + $0x1d8] sm:$0xff] }
 0x514   :  { %v3290_v35 = vadd.f32 %v3289_v37, %v2921_v14  ;;  %4970 = vmatmul.bf16.gmra.mxu2 %v14485_v40  ;;  %v14488_v37 = vpack.c.b16 %v14486_v33, %v14487_v29  ;;  %v11454_v14 = vld [vmem:[#allocation4 + $0x1e0] sm:$0xff]  ;;  %v14491_v44 = vpack.c.b16 %v14489_v25, %v14490_v55  ;;  %v14492_v28 = vld [vmem:[#allocation38_spill] sm:$0xff]  ;;  %v14495_v33 = vld [vmem:[#allocation51_spill] sm:$0xff] }
 0x515   :  { %5141 = vmatpush.bf16.msra.mxu2 %v11446_v26  ;;  %5190 = vmatpush.bf16.msra.mxu3 %v11454_v14  ;;  %v14494_v13 = vpack.c.b16 %v14492_v28, %v14493_v49  ;;  %v11451_v26 = vld [vmem:[#allocation4 + $0x1c8] sm:$0xff]  ;;  %v11442_v25 = vld [vmem:[#allocation4 + $0x180] sm:$0xff] }
 0x516   :  { %5019 = vmatmul.bf16.gmra.mxu3 %v14488_v37  ;;  %v3659_v34 = vadd.f32 %v3658_v23, %v3290_v35  ;;  %v14498_v37 = vld [vmem:[#allocation61_spill] sm:$0xff]  ;;  %v14553_v40 = vld [vmem:[#allocation76_spill] sm:$0xff] }
 0x517   :  { %v13728_v10 = vpop.f32.mrf.mxu2  ;;  %v11450_v55 = vld [vmem:[#allocation4 + $0x1c0] sm:$0xff] }
 0x518   :  { %v13730_v53 = vpop.f32.mrf.mxu3  ;;  %v13732_v0 = vpop.f32.mrf.mxu0  ;;  %v3820_v20 = vpack.c.bf16 %v3659_v34, %v3659_v34  ;;  %v14499_v34 = vld [vmem:[#allocation62_spill] sm:$0xff] }
 0x519   :  { %v2922_v4 = vpop.f32.mrf.mxu1  ;;  %5142 = vmatpush.bf16.msra.mxu2 %v11445_v60  ;;  %5191 = vmatpush.bf16.msra.mxu3 %v11453_v31  ;;  %v14502_v60 = vld [vmem:[#allocation41_spill] sm:$0xff] }
 0x51a   :  { %v2923_v9 = vadd.f32 %v2922_v4, %v13675_v11  ;;  %v13742_v45 = vunpack.c.l.b16 %v3820_v20 }
 0x51c   :  { %v3292_v3 = vadd.f32 %v3291_v42, %v2923_v9  ;;  %v11444_v9 = vld [vmem:[#allocation4 + $0x190] sm:$0xff] }
 0x51d   :  { %5143 = vmatpush.bf16.msra.mxu2 %v11444_v9  ;;  %v14510_v9 = vld [vmem:[#allocation63_spill] sm:$0xff] }
 0x51e   :  { %v3661_v23 = vadd.f32 %v13677_v2, %v3292_v3  ;;  %v11452_v3 = vld [vmem:[#allocation4 + $0x1d0] sm:$0xff] }
 0x51f   :  { %v13736_v48 = vpop.f32.mrf.mxu2  ;;  %5192 = vmatpush.bf16.msra.mxu3 %v11452_v3  ;;  %v14511_v3 = vld [vmem:[#allocation64_spill] sm:$0xff] }
 0x520   :  { %v3821_v41 = vpack.c.bf16 %v3661_v23, %v3661_v23  ;;  %v13738_v57 = vpop.f32.mrf.mxu3  ;;  %v13740_v35 = vpop.f32.mrf.mxu0 }
 0x521   :  { %v2925_v11 = vpop.f32.mrf.mxu1 }
 0x522   :  { %v2926_v42 = vadd.f32 %v2925_v11, %v13679_v6  ;;  %v13745_v12 = vunpack.c.l.b16 %v3821_v41  ;;  %v14496_v6 = vld [vmem:[#allocation52_spill] sm:$0xff]  ;;  %v11443_v41 = vld [vmem:[#allocation4 + $0x188] sm:$0xff] }
 0x523   :  { %4887 = vmatmul.bf16.gmra.mxu0 %v14491_v44  ;;  %4916 = vmatmul.bf16.gmra.mxu1 %v14494_v13  ;;  %v14497_v29 = vpack.c.b16 %v14495_v33, %v14496_v6  ;;  %v14501_v13 = vld [vmem:[#allocation40_spill] sm:$0xff]  ;;  %v14505_v6 = vld [vmem:[#allocation67_spill] sm:$0xff] }
 0x524   :  { %v3295_v2 = vadd.f32 %v3294_v61, %v2926_v42  ;;  %v14500_v61 = vpack.c.b16 %v14498_v37, %v14499_v34  ;;  %5144 = vmatpush.bf16.msra.mxu2 %v11443_v41  ;;  %5193 = vmatpush.bf16.msra.mxu3 %v11451_v26  ;;  %v14503_v31 = vpack.c.b16 %v14501_v13, %v14502_v60  ;;  %v14504_v33 = vld [vmem:[#allocation68_spill] sm:$0xff]  ;;  %v11440_v41 = vld [vmem:[#allocation4 + $0x170] sm:$0xff] }
 0x525   :  { %4975 = vmatmul.bf16.gmra.mxu2 %v14497_v29  ;;  %v14506_v29 = vpack.c.b16 %v14504_v33, %v14505_v6  ;;  %v11441_v37 = vld [vmem:[#allocation4 + $0x178] sm:$0xff] }
 0x526   :  { %5024 = vmatmul.bf16.gmra.mxu3 %v14500_v61  ;;  %v3664_v17 = vadd.f32 %v13699_v16, %v3295_v2  ;;  %v14507_v61 = vld [vmem:[#allocation53_spill] sm:$0xff]  ;;  %5089 = vmatpush.bf16.msrb.mxu1 %v11441_v37  ;;  %v14514_v37 = vld [vmem:[#allocation43_spill] sm:$0xff] }
 0x527   :  { %v3304_v43 = vpop.f32.mrf.mxu2 }
 0x528   :  { %v13762_v4 = vpop.f32.mrf.mxu3  ;;  %v13764_v62 = vpop.f32.mrf.mxu0  ;;  %v3822_v14 = vpack.c.bf16 %v3664_v17, %v3664_v17  ;;  %5145 = vmatpush.bf16.msra.mxu2 %v11442_v25  ;;  %5194 = vmatpush.bf16.msra.mxu3 %v11450_v55  ;;  %v11439_v25 = vld [vmem:[#allocation4 + $0x168] sm:$0xff] }
 0x529   :  { %v2927_v15 = vpop.f32.mrf.mxu1 }
 0x52a   :  { %v2928_v20 = vadd.f32 %v2927_v15, %v13701_v5  ;;  %v13771_v5 = vunpack.c.l.b16 %v3822_v14  ;;  %v14512_v15 = vpack.c.b16 %v14510_v9, %v14511_v3  ;;  %5090 = vmatpush.bf16.msrb.mxu1 %v11440_v41  ;;  %v11437_v9 = vld [vmem:[#allocation4 + $0x158] sm:$0xff] }
 0x52b   :  { %v14541_v3 = vld [vmem:[#allocation47_spill] sm:$0xff] }
 0x52c   :  { %v3297_v23 = vadd.f32 %v13703_v24, %v2928_v20 }
 0x52e   :  { %v3666_v16 = vadd.f32 %v13705_v56, %v3297_v23  ;;  %5091 = vmatpush.bf16.msrb.mxu1 %v11439_v25 }
 0x52f   :  { %v3306_v42 = vpop.f32.mrf.mxu2 }
 0x530   :  { %v3823_v11 = vpack.c.bf16 %v3666_v16, %v3666_v16  ;;  %v3675_v2 = vpop.f32.mrf.mxu3  ;;  %v13769_v28 = vpop.f32.mrf.mxu0 }
 0x531   :  { %v2930_v44 = vpop.f32.mrf.mxu1 }
 0x532   :  { %v2931_v49 = vadd.f32 %v2930_v44, %v13707_v27  ;;  %v13774_v24 = vunpack.c.l.b16 %v3823_v11  ;;  %v14508_v27 = vld [vmem:[#allocation54_spill] sm:$0xff] }
 0x533   :  { %4921 = vmatmul.bf16.gmra.mxu1 %v14503_v31  ;;  %5048 = vmatmul.bf16.vlgmr.msra.gmra.mxu0 %v14506_v29  ;;  %v14509_v17 = vpack.c.b16 %v14507_v61, %v14508_v27  ;;  %v14513_v29 = vld [vmem:[#allocation42_spill] sm:$0xff] }
 0x534   :  { %v3300_v56 = vadd.f32 %v13728_v10, %v2931_v49  ;;  %v14515_v61 = vpack.c.b16 %v14513_v29, %v14514_v37  ;;  %v14517_v27 = vld [vmem:[#allocation70_spill] sm:$0xff] }
 0x535   :  { %4980 = vmatmul.bf16.gmra.mxu2 %v14509_v17 }
 0x536   :  { %5029 = vmatmul.bf16.gmra.mxu3 %v14512_v15  ;;  %v3669_v10 = vadd.f32 %v13730_v53, %v3300_v56  ;;  %v11438_v56 = vld [vmem:[#allocation4 + $0x160] sm:$0xff]  ;;  %v14519_v15 = vld [vmem:[#allocation55_spill] sm:$0xff] }
 0x537   :  { %v3309_v20 = vpop.f32.mrf.mxu2  ;;  %5092 = vmatpush.bf16.msrb.mxu1 %v11438_v56 }
 0x538   :  { %v3678_v23 = vpop.f32.mrf.mxu3  ;;  %v13792_v14 = vpop.f32.mrf.mxu0  ;;  %v3824_v55 = vpack.c.bf16 %v3669_v10, %v3669_v10  ;;  %v14520_v10 = vld [vmem:[#allocation56_spill] sm:$0xff] }
 0x539   :  { %v2932_v26 = vpop.f32.mrf.mxu1  ;;  %v14521_v41 = vpack.c.b16 %v14519_v15, %v14520_v10  ;;  %v14525_v15 = vld [vmem:[#allocation28_spill] sm:$0xff] }
 0x53a   :  { %v2933_v16 = vadd.f32 %v2932_v26, %v13732_v0  ;;  %v13799_v33 = vunpack.c.l.b16 %v3824_v55  ;;  %v14523_v26 = vld [vmem:[#allocation66_spill] sm:$0xff] }
 0x53b   :  { %5093 = vmatpush.bf16.msrb.mxu1 %v11437_v9  ;;  %v11436_v55 = vld [vmem:[#allocation4 + $0x150] sm:$0xff] }
 0x53c   :  { %v3302_v11 = vadd.f32 %v13736_v48, %v2933_v16 }
 0x53e   :  { %v3671_v44 = vadd.f32 %v13738_v57, %v3302_v11  ;;  %v14516_v57 = vld [vmem:[#allocation69_spill] sm:$0xff] }
 0x53f   :  { %v3311_v13 = vpop.f32.mrf.mxu2  ;;  %v14518_v17 = vpack.c.b16 %v14516_v57, %v14517_v27  ;;  %5094 = vmatpush.bf16.msrb.mxu1 %v11436_v55 }
 0x540   :  { %v3825_v49 = vpack.c.bf16 %v3671_v44, %v3671_v44  ;;  %v3680_v53 = vpop.f32.mrf.mxu3  ;;  %v13797_v31 = vpop.f32.mrf.mxu0 }
 0x541   :  { %v2935_v60 = vpop.f32.mrf.mxu1 }
 0x542   :  { %v2936_v6 = vadd.f32 %v2935_v60, %v13740_v35  ;;  %v13802_v0 = vunpack.c.l.b16 %v3825_v49  ;;  %v14522_v35 = vld [vmem:[#allocation65_spill] sm:$0xff] }
 0x543   :  { %4926 = vmatmul.bf16.gmra.mxu1 %v14515_v61  ;;  %5053 = vmatmul.bf16.gmra.mxu0 %v14518_v17  ;;  %v14524_v16 = vpack.c.b16 %v14522_v35, %v14523_v26  ;;  %v11434_v17 = vld [vmem:[#allocation4 + $0x140] sm:$0xff] }
 0x544   :  { %v3305_v48 = vadd.f32 %v3304_v43, %v2936_v6  ;;  %v11435_v6 = vld [vmem:[#allocation4 + $0x148] sm:$0xff] }
 0x545   :  { %4985 = vmatmul.bf16.gmra.mxu2 %v14521_v41  ;;  %5095 = vmatpush.bf16.msrb.mxu1 %v11435_v6  ;;  %v14527_v35 = vld [vmem:[#allocation45_spill] sm:$0xff]  ;;  %v14535_v6 = vld [vmem:[#allocation116_spill] sm:$0xff] }
 0x546   :  { %5034 = vmatmul.bf16.gmra.mxu3 %v14524_v16  ;;  %v3674_v43 = vadd.f32 %v13762_v4, %v3305_v48  ;;  %v14530_v16 = vld [vmem:[#allocation72_spill] sm:$0xff] }
 0x547   :  { %v3314_v11 = vpop.f32.mrf.mxu2 }
 0x548   :  { %v3683_v25 = vpop.f32.mrf.mxu3  ;;  %v13819_v49 = vpop.f32.mrf.mxu0  ;;  %v3826_v29 = vpack.c.bf16 %v3674_v43, %v3674_v43 }
 0x549   :  { %v2937_v44 = vpop.f32.mrf.mxu1  ;;  %5096 = vmatpush.bf16.msrb.mxu1 %v11434_v17 }
 0x54a   :  { %v2938_v56 = vadd.f32 %v2937_v44, %v13764_v62  ;;  %v13824_v9 = vunpack.c.l.b16 %v3826_v29  ;;  %v14532_v44 = vld [vmem:[#allocation100_spill] sm:$0xff]  ;;  %v14536_v29 = vld [vmem:[#allocation115_spill] sm:$0xff] }
 0x54c   :  { %v3307_v60 = vadd.f32 %v3306_v42, %v2938_v56  ;;  %v14526_v42 = vld [vmem:[#allocation44_spill] sm:$0xff]  ;;  %v14533_v56 = vld [vmem:[#allocation99_spill] sm:$0xff] }
 0x54d   :  { %v14528_v26 = vpack.c.b16 %v14526_v42, %v14527_v35 }
 0x54e   :  { %v3676_v37 = vadd.f32 %v3675_v2, %v3307_v60  ;;  %v14529_v2 = vld [vmem:[#allocation71_spill] sm:$0xff]  ;;  %v14534_v60 = vpack.c.b16 %v14532_v44, %v14533_v56 }
 0x54f   :  { %v3316_v57 = vpop.f32.mrf.mxu2  ;;  %v14531_v43 = vpack.c.b16 %v14529_v2, %v14530_v16 }
 0x550   :  { %v3827_v61 = vpack.c.bf16 %v3676_v37, %v3676_v37  ;;  %v3685_v27 = vpop.f32.mrf.mxu3  ;;  %v13822_v48 = vpop.f32.mrf.mxu0  ;;  %v14537_v37 = vpack.c.b16 %v14535_v6, %v14536_v29  ;;  %v14539_v6 = vld [vmem:[#allocation30_spill] sm:$0xff] }
 0x551   :  { %v2940_v4 = vpop.f32.mrf.mxu1 }
 0x552   :  { %v2941_v10 = vadd.f32 %v2940_v4, %v14525_v15  ;;  %v13827_v41 = vunpack.c.l.b16 %v3827_v61 }
 0x553   :  { %4931 = vmatmul.bf16.gmra.mxu1 %v14528_v26  ;;  %5058 = vmatmul.bf16.gmra.mxu0 %v14531_v43 }
 0x554   :  { %v3310_v62 = vadd.f32 %v3309_v20, %v2941_v10  ;;  %v14538_v10 = vld [vmem:[#allocation29_spill] sm:$0xff] }
 0x555   :  { %5146 = vmatmul.bf16.vlgmr.msra.gmra.mxu2 %v14534_v60 }
 0x556   :  { %5195 = vmatmul.bf16.vlgmr.msra.gmra.mxu3 %v14537_v37  ;;  %v3679_v20 = vadd.f32 %v3678_v23, %v3310_v62  ;;  %v14540_v37 = vld [vmem:[#allocation46_spill] sm:$0xff] }
 0x557   :  { %v4951_v61 = vpop.f32.mrf.mxu2  ;;  %v14542_v34 = vpack.c.b16 %v14540_v37, %v14541_v3  ;;  %v13870_v37 = vld [vmem:[#allocation6] ss:$0 sm:$0xff] }
 0x558   :  { %v5000_v17 = vpop.f32.mrf.mxu3  ;;  %v13843_v15 = vpop.f32.mrf.mxu0  ;;  %v3828_v26 = vpack.c.bf16 %v3679_v20, %v3679_v20  ;;  %v14544_v20 = vld [vmem:[#allocation74_spill] sm:$0xff]  ;;  %v4864_v22 = vadd.f32 %v13870_v37, %v13822_v48 }
 0x559   :  { %v2942_v4 = vpop.f32.mrf.mxu1 }
 0x55a   :  { %v2943_v42 = vadd.f32 %v2942_v4, %v14538_v10  ;;  %v13848_v60 = vunpack.c.l.b16 %v3828_v26  ;;  %v14546_v10 = vld [vmem:[#allocation101_spill] sm:$0xff] }
 0x55b   :  { %v14549_v26 = vld [vmem:[#allocation117_spill] sm:$0xff] }
 0x55c   :  { %v3312_v35 = vadd.f32 %v3311_v13, %v2943_v42  ;;  %v14543_v13 = vld [vmem:[#allocation73_spill] sm:$0xff]  ;;  %v14547_v42 = vld [vmem:[#allocation102_spill] sm:$0xff] }
 0x55e   :  { %v3681_v2 = vadd.f32 %v3680_v53, %v3312_v35  ;;  %v14545_v53 = vpack.c.b16 %v14543_v13, %v14544_v20  ;;  %v14548_v35 = vpack.c.b16 %v14546_v10, %v14547_v42  ;;  %v4854_v10 = vadd.f32 %v13870_v37, %v13769_v28  ;;  %v11465_v28 = vld [vmem:[#allocation4 + $0x238] sm:$0xff] }
 0x55f   :  { %v4953_v43 = vpop.f32.mrf.mxu2  ;;  %5236 = vmatpush.bf16.msrb.mxu0 %v11465_v28 }
 0x560   :  { %v3829_v16 = vpack.c.bf16 %v3681_v2, %v3681_v2  ;;  %v5002_v55 = vpop.f32.mrf.mxu3  ;;  %v13846_v56 = vpop.f32.mrf.mxu0  ;;  %v14550_v2 = vpack.c.b16 %v13562_v21, %v14549_v26 }
 0x561   :  { %v2945_v44 = vpop.f32.mrf.mxu1 }
 0x562   :  { %v2946_v23 = vadd.f32 %v2945_v44, %v14539_v6  ;;  %v13851_v62 = vunpack.c.l.b16 %v3829_v16  ;;  %v14551_v6 = vld [vmem:[#allocation31_spill] sm:$0xff] }
 0x563   :  { %4936 = vmatmul.bf16.gmra.mxu1 %v14542_v34  ;;  %5063 = vmatmul.bf16.gmra.mxu0 %v14545_v53 }
 0x564   :  { %v3315_v29 = vadd.f32 %v3314_v11, %v2946_v23 }
 0x565   :  { %5151 = vmatmul.bf16.gmra.mxu2 %v14548_v35 }
 0x566   :  { %5200 = vmatmul.bf16.gmra.mxu3 %v14550_v2  ;;  %v3684_v11 = vadd.f32 %v3683_v25, %v3315_v29 }
 0x567   :  { %v4956_v16 = vpop.f32.mrf.mxu2 }
 0x568   :  { %v5005_v44 = vpop.f32.mrf.mxu3  ;;  %v13867_v34 = vpop.f32.mrf.mxu0  ;;  %v3830_v20 = vpack.c.bf16 %v3684_v11, %v3684_v11  ;;  %v14556_v11 = vld [vmem:[#allocation83_spill] sm:$0xff] }
 0x569   :  { %v2947_v3 = vpop.f32.mrf.mxu1 }
 0x56a   :  { %v2948_v23 = vadd.f32 %v2947_v3, %v14551_v6  ;;  %v13876_v29 = vunpack.c.l.b16 %v3830_v20  ;;  %v14552_v6 = vld [vmem:[#allocation75_spill] sm:$0xff] }
 0x56c   :  { %v3317_v13 = vadd.f32 %v3316_v57, %v2948_v23  ;;  %v14554_v57 = vpack.c.b16 %v14552_v6, %v14553_v40  ;;  %v4856_v40 = vadd.f32 %v13870_v37, %v13792_v14 }
 0x56e   :  { %v3686_v53 = vadd.f32 %v3685_v27, %v3317_v13  ;;  %v14555_v27 = vld [vmem:[#allocation84_spill] sm:$0xff] }
 0x56f   :  { %v4958_v35 = vpop.f32.mrf.mxu2  ;;  %v14557_v23 = vpack.c.b16 %v14555_v27, %v14556_v11 }
 0x570   :  { %v3831_v42 = vpack.c.bf16 %v3686_v53, %v3686_v53  ;;  %v5007_v21 = vpop.f32.mrf.mxu3  ;;  %v13874_v26 = vpop.f32.mrf.mxu0  ;;  %v14558_v53 = vld [vmem:[#allocation103_spill] sm:$0xff] }
 0x571   :  { %v4902_v25 = vpop.f32.mrf.mxu1  ;;  %v14560_v20 = vpack.c.b16 %v14558_v53, %v14559_v8  ;;  %v11463_v53 = vld [vmem:[#allocation4 + $0x228] sm:$0xff] }
 0x572   :  { %v4903_v2 = vadd.f32 %v4902_v25, %v4854_v10  ;;  %v13878_v4 = vunpack.c.l.b16 %v3831_v42  ;;  %v14561_v10 = vld [vmem:[#allocation118_spill] sm:$0xff]  ;;  %v14562_v42 = vld [vmem:[#allocation119_spill] sm:$0xff] }
 0x573   :  { %5068 = vmatmul.bf16.gmra.mxu0 %v14554_v57  ;;  %5097 = vmatmul.bf16.vlgmr.msrb.gmra.mxu1 %v14557_v23  ;;  %v14563_v25 = vpack.c.b16 %v14561_v10, %v14562_v42  ;;  %v11464_v57 = vld [vmem:[#allocation4 + $0x230] sm:$0xff]  ;;  %v11462_v10 = vld [vmem:[#allocation4 + $0x220] sm:$0xff] }
 0x574   :  { %v4952_v3 = vadd.f32 %v4951_v61, %v4903_v2  ;;  %5237 = vmatpush.bf16.msrb.mxu0 %v11464_v57 }
 0x575   :  { %5156 = vmatmul.bf16.gmra.mxu2 %v14560_v20 }
 0x576   :  { %5205 = vmatmul.bf16.gmra.mxu3 %v14563_v25  ;;  %v13894_v61 = vadd.f32 %v5000_v17, %v4952_v3  ;;  %v4859_v17 = vadd.f32 %v13870_v37, %v13797_v31  ;;  %v14571_v31 = vld [vmem:[#allocation106_spill] sm:$0xff] }
 0x577   :  { %v4961_v2 = vpop.f32.mrf.mxu2 }
 0x578   :  { %v5010_v6 = vpop.f32.mrf.mxu3  ;;  %v13898_v27 = vpop.f32.mrf.mxu0  ;;  %5238 = vmatpush.bf16.msrb.mxu0 %v11463_v53 }
 0x579   :  { %v4904_v11 = vpop.f32.mrf.mxu1 }
 0x57a   :  { %v4905_v23 = vadd.f32 %v4904_v11, %v4856_v40  ;;  %v14565_v40 = vld [vmem:[#allocation78_spill] sm:$0xff] }
 0x57b   :  { %v14566_v57 = vpack.c.b16 %v14564_v51, %v14565_v40  ;;  %v14568_v11 = vld [vmem:[#allocation86_spill] sm:$0xff]  ;;  %v4861_v51 = vadd.f32 %v13870_v37, %v13819_v49 }
 0x57c   :  { %v4954_v8 = vadd.f32 %v4953_v43, %v4905_v23  ;;  %5239 = vmatpush.bf16.msrb.mxu0 %v11462_v10  ;;  %v14567_v43 = vld [vmem:[#allocation85_spill] sm:$0xff]  ;;  %v11461_v23 = vld [vmem:[#allocation4 + $0x218] sm:$0xff] }
 0x57e   :  { %v13900_v20 = vadd.f32 %v5002_v55, %v4954_v8  ;;  %v14569_v55 = vpack.c.b16 %v14567_v43, %v14568_v11  ;;  %v14570_v8 = vld [vmem:[#allocation105_spill] sm:$0xff] }
 0x57f   :  { %v4963_v3 = vpop.f32.mrf.mxu2  ;;  %v14572_v53 = vpack.c.b16 %v14570_v8, %v14571_v31  ;;  %v11459_v11 = vld [vmem:[#allocation4 + $0x208] sm:$0xff]  ;;  %v14574_v31 = vld [vmem:[#allocation79_spill] sm:$0xff] }
 0x580   :  { %v5012_v28 = vpop.f32.mrf.mxu3  ;;  %v13904_v14 = vpop.f32.mrf.mxu0  ;;  %5240 = vmatpush.bf16.msrb.mxu0 %v11461_v23 }
 0x581   :  { %v4907_v42 = vpop.f32.mrf.mxu1  ;;  %v4879_v1 = vadd.f32 %v13870_v37, %v13904_v14  ;;  %v14606_v14 = vpack.c.b16 %v13659_v38, %v13657_v7 }
 0x582   :  { %v4908_v25 = vadd.f32 %v4907_v42, %v4859_v17  ;;  %v11460_v42 = vld [vmem:[#allocation4 + $0x210] sm:$0xff] }
 0x583   :  { %5073 = vmatmul.bf16.gmra.mxu0 %v14566_v57  ;;  %5102 = vmatmul.bf16.gmra.mxu1 %v14569_v55 }
 0x584   :  { %v4957_v13 = vadd.f32 %v4956_v16, %v4908_v25  ;;  %5241 = vmatpush.bf16.msrb.mxu0 %v11460_v42  ;;  %v14578_v42 = vld [vmem:[#allocation88_spill] sm:$0xff] }
 0x585   :  { %5161 = vmatmul.bf16.gmra.mxu2 %v14572_v53  ;;  %v14575_v53 = vld [vmem:[#allocation80_spill] sm:$0xff] }
 0x586   :  { %5210 = vmatmul.bf16.gmra.mxu3 %v14573_v59  ;;  %v13918_v17 = vadd.f32 %v5005_v44, %v4957_v13  ;;  %v11458_v44 = vld [vmem:[#allocation4 + $0x200] sm:$0xff] }
 0x587   :  { %v4966_v16 = vpop.f32.mrf.mxu2 }
 0x588   :  { %v5015_v10 = vpop.f32.mrf.mxu3  ;;  %v13922_v25 = vpop.f32.mrf.mxu0  ;;  %5242 = vmatpush.bf16.msrb.mxu0 %v11459_v11 }
 0x589   :  { %v4909_v40 = vpop.f32.mrf.mxu1 }
 0x58a   :  { %v4910_v57 = vadd.f32 %v4909_v40, %v4861_v51  ;;  %v14576_v51 = vpack.c.b16 %v14574_v31, %v14575_v53  ;;  %v14580_v40 = vld [vmem:[#allocation107_spill] sm:$0xff] }
 0x58c   :  { %v4959_v43 = vadd.f32 %v4958_v35, %v4910_v57  ;;  %5243 = vmatpush.bf16.msrb.mxu0 %v11458_v44  ;;  %v14577_v35 = vld [vmem:[#allocation87_spill] sm:$0xff]  ;;  %v14581_v57 = vld [vmem:[#allocation108_spill] sm:$0xff] }
 0x58d   :  { %v14582_v48 = vpack.c.b16 %v14580_v40, %v14581_v57  ;;  %v14586_v40 = vld [vmem:[#allocation89_spill] sm:$0xff] }
 0x58e   :  { %v13924_v55 = vadd.f32 %v5007_v21, %v4959_v43  ;;  %v14579_v21 = vpack.c.b16 %v14577_v35, %v14578_v42  ;;  %v14584_v42 = vld [vmem:[#allocation82_spill] sm:$0xff]  ;;  %v14589_v57 = vld [vmem:[#allocation109_spill] sm:$0xff] }
 0x58f   :  { %v4968_v50 = vpop.f32.mrf.mxu2 }
 0x590   :  { %v5017_v59 = vpop.f32.mrf.mxu3  ;;  %v13928_v49 = vpop.f32.mrf.mxu0 }
 0x591   :  { %v4912_v13 = vpop.f32.mrf.mxu1 }
 0x592   :  { %v4913_v23 = vadd.f32 %v4912_v13, %v4864_v22 }
 0x593   :  { %5078 = vmatmul.bf16.gmra.mxu0 %v14576_v51  ;;  %5107 = vmatmul.bf16.gmra.mxu1 %v14579_v21  ;;  %v4869_v51 = vadd.f32 %v13870_v37, %v13846_v56 }
 0x594   :  { %v4962_v8 = vadd.f32 %v4961_v2, %v4913_v23  ;;  %v4866_v2 = vadd.f32 %v13870_v37, %v13843_v15 }
 0x595   :  { %5166 = vmatmul.bf16.gmra.mxu2 %v14582_v48  ;;  %v14590_v48 = vld [vmem:[#allocation110_spill] sm:$0xff] }
 0x596   :  { %5215 = vmatmul.bf16.gmra.mxu3 %v4204_v52  ;;  %v13942_v43 = vadd.f32 %v5010_v6, %v4962_v8  ;;  %v14583_v8 = vld [vmem:[#allocation81_spill] sm:$0xff]  ;;  %v14591_v56 = vpack.c.b16 %v14589_v57, %v14590_v48  ;;  %v14598_v57 = vpack.c.b16 %v13642_v19, %v13640_v54 }
 0x597   :  { %v4971_v11 = vpop.f32.mrf.mxu2  ;;  %v14585_v21 = vpack.c.b16 %v14583_v8, %v14584_v42  ;;  %v4874_v42 = vadd.f32 %v13870_v37, %v13874_v26  ;;  %v14595_v26 = vld [vmem:[#allocation111_spill] sm:$0xff]  ;;  %v14599_v19 = vld [vmem:[#allocation93_spill] sm:$0xff] }
 0x598   :  { %v13946_v44 = vpop.f32.mrf.mxu0 }
 0x599   :  { %v5020_v22 = vpop.f32.mrf.mxu3  ;;  %v4914_v13 = vpop.f32.mrf.mxu1 }
 0x59a   :  { %v4915_v23 = vadd.f32 %v4914_v13, %v4866_v2 }
 0x59c   :  { %v4964_v31 = vadd.f32 %v4963_v3, %v4915_v23  ;;  %v14587_v3 = vld [vmem:[#allocation90_spill] sm:$0xff] }
 0x59e   :  { %v13948_v53 = vadd.f32 %v5012_v28, %v4964_v31  ;;  %v14588_v28 = vpack.c.b16 %v14586_v40, %v14587_v3  ;;  %v14592_v40 = vld [vmem:[#allocation91_spill] sm:$0xff]  ;;  %v14593_v3 = vld [vmem:[#allocation92_spill] sm:$0xff] }
 0x59f   :  { %v13952_v35 = vpop.f32.mrf.mxu2 }
 0x5a0   :  { %v13956_v32 = vpop.f32.mrf.mxu0 }
 0x5a1   :  { %v13954_v63 = vpop.f32.mrf.mxu3  ;;  %v4917_v52 = vpop.f32.mrf.mxu1 }
 0x5a2   :  { %v4918_v15 = vadd.f32 %v4917_v52, %v4869_v51 }
 0x5a3   :  { %5083 = vmatmul.bf16.gmra.mxu0 %v14585_v21  ;;  %5112 = vmatmul.bf16.gmra.mxu1 %v14588_v28  ;;  %v14594_v28 = vpack.c.b16 %v14592_v40, %v14593_v3 }
 0x5a4   :  { %v4967_v6 = vadd.f32 %v4966_v16, %v4918_v15  ;;  %v4871_v16 = vadd.f32 %v13870_v37, %v13867_v34 }
 0x5a5   :  { %5171 = vmatmul.bf16.gmra.mxu2 %v14591_v56 }
 0x5a6   :  { %5220 = vmatmul.bf16.gmra.mxu3 %v4205_v18  ;;  %v13970_v2 = vadd.f32 %v5015_v10, %v4967_v6 }
 0x5a8   :  { %v4976_v13 = vpop.f32.mrf.mxu2  ;;  %v13974_v31 = vpop.f32.mrf.mxu0 }
 0x5a9   :  { %v5025_v23 = vpop.f32.mrf.mxu3  ;;  %v4919_v51 = vpop.f32.mrf.mxu1 }
 0x5aa   :  { %v4920_v52 = vadd.f32 %v4919_v51, %v4871_v16 }
 0x5ac   :  { %v4969_v15 = vadd.f32 %v4968_v50, %v4920_v52  ;;  %v14596_v50 = vld [vmem:[#allocation112_spill] sm:$0xff] }
 0x5ae   :  { %v13976_v8 = vadd.f32 %v5017_v59, %v4969_v15  ;;  %v14597_v59 = vpack.c.b16 %v14595_v26, %v14596_v50 }
 0x5b0   :  { %v13980_v21 = vpop.f32.mrf.mxu2  ;;  %v5049_v58 = vpop.f32.mrf.mxu0 }
 0x5b1   :  { %v4922_v47 = vpop.f32.mrf.mxu1  ;;  %v13982_v18 = vpop.f32.mrf.mxu3  ;;  %v13985_v34 = vadd.f32 %v5049_v58, %v13894_v61  ;;  %v14603_v58 = vld [vmem:[#allocation113_spill] sm:$0xff] }
 0x5b2   :  { %v4923_v10 = vadd.f32 %v4922_v47, %v4874_v42 }
 0x5b3   :  { %5117 = vmatmul.bf16.gmra.mxu1 %v14594_v28  ;;  %5244 = vmatmul.bf16.vlgmr.msrb.gmra.mxu0 %v4248_v46 }
 0x5b4   :  { %v4972_v6 = vadd.f32 %v4971_v11, %v4923_v10  ;;  %v14604_v10 = vld [vmem:[#allocation114_spill] sm:$0xff] }
 0x5b5   :  { %5176 = vmatmul.bf16.gmra.mxu2 %v14597_v59 }
 0x5b6   :  { %5225 = vmatmul.bf16.gmra.mxu3 %v14598_v57  ;;  %v5021_v48 = vadd.f32 %v5020_v22, %v4972_v6  ;;  %v14600_v22 = vld [vmem:[#allocation94_spill] sm:$0xff]  ;;  %v14605_v6 = vpack.c.b16 %v14603_v58, %v14604_v10  ;;  %v14611_v58 = vld [vmem:[#allocation97_spill] sm:$0xff] }
 0x5b7   :  { %v14601_v47 = vpack.c.b16 %v14599_v19, %v14600_v22  ;;  %v14612_v10 = vld [vmem:[#allocation98_spill] sm:$0xff] }
 0x5b8   :  { %v5051_v11 = vpop.f32.mrf.mxu0  ;;  %v4981_v56 = vpop.f32.mrf.mxu2 }
 0x5b9   :  { %v13999_v61 = vpop.f32.mrf.mxu1  ;;  %v14002_v16 = vadd.f32 %v5051_v11, %v13900_v20  ;;  %v5030_v51 = vpop.f32.mrf.mxu3  ;;  %v14602_v20 = vpack.c.b16 %v13712_v39, %v13709_v36  ;;  %v4884_v36 = vadd.f32 %v13870_v37, %v13928_v49  ;;  %v14607_v11 = vld [vmem:[#allocation95_spill] sm:$0xff] }
 0x5c0   :  { %v5054_v46 = vpop.f32.mrf.mxu0  ;;  %v14007_v42 = vpop.f32.mrf.mxu2 }
 0x5c1   :  { %v4927_v30 = vpop.f32.mrf.mxu1  ;;  %v5055_v15 = vadd.f32 %v5054_v46, %v13918_v17  ;;  %v14021_v17 = vpop.f32.mrf.mxu3 }
 0x5c2   :  { %v4928_v52 = vadd.f32 %v4927_v30, %v4879_v1  ;;  %v14608_v1 = vld [vmem:[#allocation96_spill] sm:$0xff]  ;;  %v14610_v30 = vpack.c.b16 %v13745_v12, %v13742_v45 }
 0x5c3   :  { %5122 = vmatmul.bf16.gmra.mxu1 %v14601_v47  ;;  %5249 = vmatmul.bf16.gmra.mxu0 %v14602_v20 }
 0x5c4   :  { %v4977_v54 = vadd.f32 %v4976_v13, %v4928_v52 }
 0x5c5   :  { %5181 = vmatmul.bf16.gmra.mxu2 %v14605_v6  ;;  %v14613_v6 = vpack.c.b16 %v14611_v58, %v14612_v10 }
 0x5c6   :  { %5230 = vmatmul.bf16.gmra.mxu3 %v14606_v14  ;;  %v5026_v40 = vadd.f32 %v5025_v23, %v4977_v54  ;;  %v14609_v23 = vpack.c.b16 %v14607_v11, %v14608_v1  ;;  %v14614_v14 = vpack.c.b16 %v13774_v24, %v13771_v5  ;;  %v14615_v1 = vpack.c.b16 %v13802_v0, %v13799_v33 }
 0x5c8   :  { %v5056_v3 = vpop.f32.mrf.mxu0  ;;  %v4986_v26 = vpop.f32.mrf.mxu2 }
 0x5c9   :  { %v14023_v13 = vpop.f32.mrf.mxu1  ;;  %v14026_v28 = vadd.f32 %v5056_v3, %v13924_v55  ;;  %v5035_v39 = vpop.f32.mrf.mxu3 }
 0x5d0   :  { %v5059_v59 = vpop.f32.mrf.mxu0  ;;  %v14037_v46 = vpop.f32.mrf.mxu2 }
 0x5d1   :  { %v4932_v50 = vpop.f32.mrf.mxu1  ;;  %v5060_v7 = vadd.f32 %v5059_v59, %v13942_v43  ;;  %v14041_v54 = vpop.f32.mrf.mxu3  ;;  %v4889_v43 = vadd.f32 %v13870_v37, %v13956_v32 }
 0x5d2   :  { %v4933_v57 = vadd.f32 %v4932_v50, %v4884_v36 }
 0x5d3   :  { %5127 = vmatmul.bf16.gmra.mxu1 %v14609_v23  ;;  %5254 = vmatmul.bf16.gmra.mxu0 %v14610_v30 }
 0x5d4   :  { %v4982_v38 = vadd.f32 %v4981_v56, %v4933_v57 }
 0x5d6   :  { %v5031_v55 = vadd.f32 %v5030_v51, %v4982_v38 }
 0x5d8   :  { %v5061_v49 = vpop.f32.mrf.mxu0  ;;  %v5147_v47 = vpop.f32.mrf.mxu2 }
 0x5d9   :  { %v14039_v52 = vpop.f32.mrf.mxu1  ;;  %v14044_v19 = vadd.f32 %v5061_v49, %v13948_v53  ;;  %v5196_v12 = vpop.f32.mrf.mxu3 }
 0x5e0   :  { %v5064_v22 = vpop.f32.mrf.mxu0  ;;  %v5149_v50 = vpop.f32.mrf.mxu2 }
 0x5e1   :  { %v4937_v56 = vpop.f32.mrf.mxu1  ;;  %v5065_v45 = vadd.f32 %v5064_v22, %v13970_v2  ;;  %v5198_v59 = vpop.f32.mrf.mxu3 }
 0x5e2   :  { %v4938_v20 = vadd.f32 %v4937_v56, %v4889_v43 }
 0x5e3   :  { %5132 = vmatmul.bf16.gmra.mxu1 %v14613_v6  ;;  %5259 = vmatmul.bf16.gmra.mxu0 %v14614_v14 }
 0x5e4   :  { %v4987_v51 = vadd.f32 %v4986_v26, %v4938_v20 }
 0x5e6   :  { %v5036_v53 = vadd.f32 %v5035_v39, %v4987_v51 }
 0x5e8   :  { %v5066_v32 = vpop.f32.mrf.mxu0  ;;  %v5152_v5 = vpop.f32.mrf.mxu2 }
 0x5e9   :  { %v14055_v3 = vpop.f32.mrf.mxu1  ;;  %v14058_v36 = vadd.f32 %v5066_v32, %v13976_v8  ;;  %v5201_v39 = vpop.f32.mrf.mxu3 }
 0x5f0   :  { %v5069_v2 = vpop.f32.mrf.mxu0  ;;  %v5154_v8 = vpop.f32.mrf.mxu2 }
 0x5f1   :  { %v5098_v57 = vpop.f32.mrf.mxu1  ;;  %v5070_v26 = vadd.f32 %v5069_v2, %v5021_v48  ;;  %v5203_v56 = vpop.f32.mrf.mxu3 }
 0x5f2   :  { %v5099_v38 = vadd.f32 %v5098_v57, %v13985_v34  ;;  %v14616_v34 = vpack.c.b16 %v13827_v41, %v13824_v9 }
 0x5f3   :  { %5264 = vmatmul.bf16.gmra.mxu0 %v14615_v1 }
 0x5f4   :  { %v5148_v11 = vadd.f32 %v5147_v47, %v5099_v38 }
 0x5f6   :  { %v5197_v24 = vadd.f32 %v5196_v12, %v5148_v11 }
 0x5f8   :  { %v14064_v23 = vpop.f32.mrf.mxu0  ;;  %v5157_v12 = vpop.f32.mrf.mxu2 }
 0x5f9   :  { %v5100_v30 = vpop.f32.mrf.mxu1  ;;  %v5206_v51 = vpop.f32.mrf.mxu3 }
 0x600   :  { %v5074_v49 = vpop.f32.mrf.mxu0  ;;  %v5159_v32 = vpop.f32.mrf.mxu2 }
 0x601   :  { %v5103_v43 = vpop.f32.mrf.mxu1  ;;  %v14066_v22 = vadd.f32 %v5074_v49, %v5026_v40  ;;  %v5208_v2 = vpop.f32.mrf.mxu3 }
 0x602   :  { %v5104_v48 = vadd.f32 %v5103_v43, %v5055_v15  ;;  %v14617_v15 = vpack.c.b16 %v13851_v62, %v13848_v60 }
 0x603   :  { %5269 = vmatmul.bf16.gmra.mxu0 %v14616_v34  ;;  %v5101_v34 = vadd.f32 %v5100_v30, %v14002_v16 }
 0x604   :  { %v5153_v20 = vadd.f32 %v5152_v5, %v5104_v48 }
 0x606   :  { %v5202_v33 = vadd.f32 %v5201_v39, %v5153_v20 }
 0x608   :  { %v14071_v0 = vpop.f32.mrf.mxu0  ;;  %v5162_v38 = vpop.f32.mrf.mxu2 }
 0x609   :  { %v5105_v47 = vpop.f32.mrf.mxu1  ;;  %v5211_v11 = vpop.f32.mrf.mxu3 }
 0x610   :  { %v5079_v58 = vpop.f32.mrf.mxu0  ;;  %v5164_v60 = vpop.f32.mrf.mxu2 }
 0x611   :  { %v5108_v10 = vpop.f32.mrf.mxu1  ;;  %v14073_v6 = vadd.f32 %v5079_v58, %v5031_v55  ;;  %v5213_v20 = vpop.f32.mrf.mxu3 }
 0x612   :  { %v5109_v14 = vadd.f32 %v5108_v10, %v5060_v7  ;;  %v14618_v7 = vpack.c.b16 %v13878_v4, %v13876_v29 }
 0x613   :  { %5274 = vmatmul.bf16.gmra.mxu0 %v14617_v15 }
 0x614   :  { %v5158_v40 = vadd.f32 %v5157_v12, %v5109_v14  ;;  %v5150_v14 = vadd.f32 %v5149_v50, %v5101_v34  ;;  %v5106_v50 = vadd.f32 %v5105_v47, %v14026_v28 }
 0x616   :  { %v5207_v9 = vadd.f32 %v5206_v51, %v5158_v40  ;;  %v5199_v4 = vadd.f32 %v5198_v59, %v5150_v14 }
 0x618   :  { %v14078_v41 = vpop.f32.mrf.mxu0 }
 0x619   :  { %v5110_v57 = vpop.f32.mrf.mxu1  ;;  %v5216_v40 = vpop.f32.mrf.mxu3 }
 0x620   :  { %v5084_v1 = vpop.f32.mrf.mxu0 }
 0x621   :  { %v5113_v5 = vpop.f32.mrf.mxu1  ;;  %v14080_v39 = vadd.f32 %v5084_v1, %v5036_v53  ;;  %v5167_v53 = vpop.f32.mrf.mxu2 }
 0x622   :  { %v5114_v55 = vadd.f32 %v5113_v5, %v5065_v45 }
 0x623   :  { %5279 = vmatmul.bf16.gmra.mxu0 %v14618_v7 }
 0x624   :  { %v5163_v49 = vadd.f32 %v5162_v38, %v5114_v55  ;;  %v5155_v55 = vadd.f32 %v5154_v8, %v5106_v50 }
 0x626   :  { %v5212_v43 = vadd.f32 %v5211_v11, %v5163_v49  ;;  %v5204_v49 = vadd.f32 %v5203_v56, %v5155_v55 }
 0x628   :  { %v14085_v62 = vpop.f32.mrf.mxu0 }
 0x629   :  { %v5115_v48 = vpop.f32.mrf.mxu1  ;;  %v5169_v50 = vpop.f32.mrf.mxu2 }
 0x630   :  { %v5245_v51 = vpop.f32.mrf.mxu0 }
 0x631   :  { %v5118_v12 = vpop.f32.mrf.mxu1  ;;  %v5246_v10 = vadd.f32 %v5245_v51, %v5197_v24 }
 0x632   :  { %v5119_v58 = vadd.f32 %v5118_v12, %v5070_v26 }
 0x633   :  { %v5301_v38 = vmul.f32 0.01, %v5246_v10  ;;  %vm5285_vm0 = vcmp.ge.f32.partialorder %v5246_v10, 0.0 }
 0x634   :  { %v5168_v45 = vadd.f32 %v5167_v53, %v5119_v58  ;;  %v5111_v53 = vadd.f32 %v5110_v57, %v14044_v19 }
 0x635   :  { %v14090_v5 = vsel %vm5285_vm0, %v5246_v10, %v5301_v38 }
 0x636   :  { %v14088_v15 = vadd.f32 %v5216_v40, %v5168_v45 }
 0x638   :  { %v5247_v29 = vpop.f32.mrf.mxu0 }
 0x639   :  { %v5248_v11 = vadd.f32 %v5247_v29, %v5199_v4  ;;  %v5120_v19 = vpop.f32.mrf.mxu1 }
 0x63b   :  { %vm5286_vm1 = vcmp.ge.f32.partialorder %v5248_v11, 0.0  ;;  %v5302_v1 = vmul.f32 0.01, %v5248_v11 }
 0x63d   :  { %v14092_v16 = vsel %vm5286_vm1, %v5248_v11, %v5302_v1  ;;  %v5116_v11 = vadd.f32 %v5115_v48, %v14058_v36 }
 0x63e   :  { %v5333_v26 = vpack.c.bf16 %v14092_v16, %v14090_v5  ;;  %v11472_v5 = vld [vmem:[#allocation7 + $0x30] sm:$0xff]  ;;  %v11487_v16 = vld [vmem:[#allocation9 + $0x18] sm:$0xff] }
 0x63f   :  { %v5165_v1 = vadd.f32 %v5164_v60, %v5116_v11 }
 0x640   :  { %v5250_v24 = vpop.f32.mrf.mxu0 }
 0x641   :  { %v5251_v30 = vadd.f32 %v5250_v24, %v5202_v33  ;;  %v5160_v33 = vadd.f32 %v5159_v32, %v5111_v53  ;;  %v4876_v32 = vadd.f32 %v13870_v37, %v13898_v27  ;;  %v4881_v53 = vadd.f32 %v13870_v37, %v13922_v25 }
 0x643   :  { %v5303_v7 = vmul.f32 0.01, %v5251_v30  ;;  %vm5287_vm2 = vcmp.ge.f32.partialorder %v5251_v30, 0.0  ;;  %v5209_v8 = vadd.f32 %v5208_v2, %v5160_v33 }
 0x645   :  { %v14097_v51 = vsel %vm5287_vm2, %v5251_v30, %v5303_v7  ;;  %v5214_v30 = vadd.f32 %v5213_v20, %v5165_v1  ;;  %v5172_v20 = vpop.f32.mrf.mxu2 }
 0x648   :  { %v5252_v59 = vpop.f32.mrf.mxu0 }
 0x649   :  { %v5253_v34 = vadd.f32 %v5252_v59, %v5204_v49  ;;  %v5218_v49 = vpop.f32.mrf.mxu3 }
 0x64b   :  { %vm5288_vm3 = vcmp.ge.f32.partialorder %v5253_v34, 0.0  ;;  %v5304_v12 = vmul.f32 0.01, %v5253_v34 }
 0x64d   :  { %v14099_v58 = vsel %vm5288_vm3, %v5253_v34, %v5304_v12  ;;  %v5123_v34 = vpop.f32.mrf.mxu1  ;;  %v5174_v11 = vpop.f32.mrf.mxu2 }
 0x64e   :  { %v5334_v10 = vpack.c.bf16 %v14099_v58, %v14097_v51  ;;  %v11490_v51 = vld [vmem:[#allocation9 + $0x30] sm:$0xff]  ;;  %v11489_v58 = vld [vmem:[#allocation9 + $0x28] sm:$0xff] }
 0x650   :  { %v5255_v28 = vpop.f32.mrf.mxu0 }
 0x651   :  { %v5256_v47 = vadd.f32 %v5255_v28, %v5207_v9  ;;  %v4925_v9 = vadd.f32 %v13999_v61, %v4876_v32 }
 0x653   :  { %v5305_v14 = vmul.f32 0.01, %v5256_v47  ;;  %vm5289_vm4 = vcmp.ge.f32.partialorder %v5256_v47, 0.0  ;;  %v4974_v24 = vadd.f32 %v13952_v35, %v4925_v9 }
 0x655   :  { %v14104_v4 = vsel %vm5289_vm4, %v5256_v47, %v5305_v14  ;;  %v5023_v36 = vadd.f32 %v13954_v63, %v4974_v24  ;;  %v4930_v63 = vadd.f32 %v14023_v13, %v4881_v53  ;;  %v5221_v47 = vpop.f32.mrf.mxu3  ;;  %vm6556_vm4 = vcmask 261120  }
 0x657   :  { %v5072_v27 = vadd.f32 %v14064_v23, %v5023_v36  ;;  %v5125_v23 = vpop.f32.mrf.mxu1 }
 0x658   :  { %v5257_v56 = vpop.f32.mrf.mxu0 }
 0x659   :  { %v5258_v45 = vadd.f32 %v5257_v56, %v5209_v8  ;;  %v5121_v60 = vadd.f32 %v5120_v19, %v5072_v27  ;;  %v4979_v8 = vadd.f32 %v13980_v21, %v4930_v63 }
 0x65b   :  { %vm5290_vm5 = vcmp.ge.f32.partialorder %v5258_v45, 0.0  ;;  %v5306_v40 = vmul.f32 0.01, %v5258_v45  ;;  %v5170_v33 = vadd.f32 %v5169_v50, %v5121_v60  ;;  %v5028_v19 = vadd.f32 %v13982_v18, %v4979_v8 }
 0x65c   :  { %v4886_v18 = vadd.f32 %v13870_v37, %v13946_v44  ;;  %v4891_v8 = vadd.f32 %v13870_v37, %v13974_v31 }
 0x65d   :  { %v14106_v29 = vsel %vm5290_vm5, %v5258_v45, %v5306_v40  ;;  %v5219_v56 = vadd.f32 %v5218_v49, %v5170_v33  ;;  %v5223_v13 = vpop.f32.mrf.mxu3 }
 0x65e   :  { %v5335_v38 = vpack.c.bf16 %v14106_v29, %v14104_v4  ;;  %v11471_v4 = vld [vmem:[#allocation7 + $0x28] sm:$0xff] }
 0x65f   :  { %v5128_v21 = vpop.f32.mrf.mxu1  ;;  %v11491_v29 = vld [vmem:[#allocation9 + $0x38] sm:$0xff] }
 0x660   :  { %v5260_v57 = vpop.f32.mrf.mxu0  ;;  %6308 = vmatpush.bf16.msrb.mxu2 %v11491_v29 }
 0x661   :  { %v5261_v2 = vadd.f32 %v5260_v57, %v5212_v43  ;;  %v5124_v57 = vadd.f32 %v5123_v34, %v14066_v22  ;;  %v4935_v22 = vadd.f32 %v14039_v52, %v4886_v18 }
 0x663   :  { %v5307_v59 = vmul.f32 0.01, %v5261_v2  ;;  %vm5291_vm6 = vcmp.ge.f32.partialorder %v5261_v2, 0.0  ;;  %v5173_v1 = vadd.f32 %v5172_v20, %v5124_v57 }
 0x664   :  { %6309 = vmatpush.bf16.msrb.mxu2 %v11490_v51  ;;  %v11510_v51 = vld [vmem:[#allocation9 + $0xd0] sm:$0xff] }
 0x665   :  { %v14117_v43 = vsel %vm5291_vm6, %v5261_v2, %v5307_v59  ;;  %v4984_v59 = vadd.f32 %v14007_v42, %v4935_v22 }
 0x667   :  { %v5130_v36 = vpop.f32.mrf.mxu1  ;;  %v5033_v20 = vadd.f32 %v14021_v17, %v4984_v59  ;;  %v4940_v17 = vadd.f32 %v14055_v3, %v4891_v8 }
 0x668   :  { %v5262_v55 = vpop.f32.mrf.mxu0  ;;  %6310 = vmatpush.bf16.msrb.mxu2 %v11489_v58 }
 0x669   :  { %v5263_v7 = vadd.f32 %v5262_v55, %v5214_v30  ;;  %v5222_v55 = vadd.f32 %v5221_v47, %v5173_v1  ;;  %v5082_v52 = vadd.f32 %v14078_v41, %v5033_v20  ;;  %v11466_v20 = vld [vmem:[#allocation7] sm:$0xff] }
 0x66b   :  { %vm5292_vm7 = vcmp.ge.f32.partialorder %v5263_v7, 0.0  ;;  %v5308_v48 = vmul.f32 0.01, %v5263_v7  ;;  %v5131_v33 = vadd.f32 %v5130_v36, %v5082_v52  ;;  %v11497_v52 = vld [vmem:[#allocation9 + $0x68] sm:$0xff] }
 0x66d   :  { %v14119_v61 = vsel %vm5292_vm7, %v5263_v7, %v5308_v48  ;;  %v5226_v7 = vpop.f32.mrf.mxu3  ;;  %vm7486_vm7 = vcmask 130048  }
 0x66e   :  { %v5336_v35 = vpack.c.bf16 %v14119_v61, %v14117_v43  ;;  %v11469_v43 = vld [vmem:[#allocation7 + $0x18] sm:$0xff]  ;;  %v11470_v61 = vld [vmem:[#allocation7 + $0x20] sm:$0xff] }
 0x670   :  { %v5265_v12 = vpop.f32.mrf.mxu0 }
 0x671   :  { %v5266_v28 = vadd.f32 %v5265_v12, %v14088_v15  ;;  %v5077_v15 = vadd.f32 %v14071_v0, %v5028_v19  ;;  %v5177_v0 = vpop.f32.mrf.mxu2  ;;  %v5129_v12 = vadd.f32 %v5128_v21, %v14073_v6 }
 0x673   :  { %v5309_v45 = vmul.f32 0.01, %v5266_v28  ;;  %vm5293_vm8 = vcmp.ge.f32.partialorder %v5266_v28, 0.0  ;;  %v5126_v50 = vadd.f32 %v5125_v23, %v5077_v15  ;;  %v5178_v42 = vadd.f32 %v5177_v0, %v5129_v12  ;;  %v11499_v12 = vld [vmem:[#allocation9 + $0x78] sm:$0xff] }
 0x674   :  { %6327 = vmatpush.bf16.msrb.mxu3 %v11499_v12  ;;  %v11479_v12 = vld [vmem:[#allocation7 + $0x68] sm:$0xff] }
 0x675   :  { %v14131_v32 = vsel %vm5293_vm8, %v5266_v28, %v5309_v45  ;;  %v5175_v30 = vadd.f32 %v5174_v11, %v5126_v50  ;;  %v5227_v6 = vadd.f32 %v5226_v7, %v5178_v42  ;;  %v4989_v11 = vadd.f32 %v14037_v46, %v4940_v17  ;;  %v11494_v42 = vld [vmem:[#allocation9 + $0x50] sm:$0xff] }
 0x677   :  { %v5224_v34 = vadd.f32 %v5223_v13, %v5175_v30  ;;  %v5038_v13 = vadd.f32 %v14041_v54, %v4989_v11  ;;  %v11507_v11 = vld [vmem:[#allocation9 + $0xb8] sm:$0xff] }
 0x678   :  { %v5267_v14 = vpop.f32.mrf.mxu0 }
 0x679   :  { %v5268_v40 = vadd.f32 %v5267_v14, %v5219_v56  ;;  %v5179_v63 = vpop.f32.mrf.mxu2  ;;  %v5228_v56 = vpop.f32.mrf.mxu3  ;;  %v5087_v3 = vadd.f32 %v14085_v62, %v5038_v13 }
 0x67a   :  { %v5133_v14 = vpop.f32.mrf.mxu1  ;;  %v5180_v45 = vadd.f32 %v5179_v63, %v5131_v33  ;;  %v11495_v63 = vld [vmem:[#allocation9 + $0x58] sm:$0xff] }
 0x67b   :  { %vm5294_vm9 = vcmp.ge.f32.partialorder %v5268_v40, 0.0  ;;  %v5310_v25 = vmul.f32 0.01, %v5268_v40  ;;  %v5134_v21 = vadd.f32 %v5133_v14, %v14080_v39 }
 0x67c   :  { %v5229_v41 = vadd.f32 %v5228_v56, %v5180_v45  ;;  %v11492_v45 = vld [vmem:[#allocation9 + $0x40] sm:$0xff] }
 0x67d   :  { %v14133_v2 = vsel %vm5294_vm9, %v5268_v40, %v5310_v25 }
 0x67e   :  { %v5337_v9 = vpack.c.bf16 %v14133_v2, %v14131_v32  ;;  %v11467_v32 = vld [vmem:[#allocation7 + $0x8] sm:$0xff]  ;;  %v11468_v2 = vld [vmem:[#allocation7 + $0x10] sm:$0xff] }
 0x680   :  { %v5270_v24 = vpop.f32.mrf.mxu0 }
 0x681   :  { %v5271_v49 = vadd.f32 %v5270_v24, %v5222_v55  ;;  %v5182_v19 = vpop.f32.mrf.mxu2  ;;  %v5231_v31 = vpop.f32.mrf.mxu3 }
 0x682   :  { %v5135_v1 = vpop.f32.mrf.mxu1  ;;  %v5183_v46 = vadd.f32 %v5182_v19, %v5134_v21  ;;  %v11506_v19 = vld [vmem:[#allocation9 + $0xb0] sm:$0xff] }
 0x683   :  { %v5311_v27 = vmul.f32 0.01, %v5271_v49  ;;  %vm5295_vm10 = vcmp.ge.f32.partialorder %v5271_v49, 0.0  ;;  %v5136_v22 = vadd.f32 %v5135_v1, %v5087_v3  ;;  %v11476_v3 = vld [vmem:[#allocation7 + $0x50] sm:$0xff] }
 0x685   :  { %v5327_v53 = vsel %vm5295_vm10, %v5271_v49, %v5311_v27  ;;  %v5232_v49 = vadd.f32 %v5231_v31, %v5183_v46  ;;  %v11504_v31 = vld [vmem:[#allocation9 + $0xa0] sm:$0xff] }
 0x688   :  { %v5272_v48 = vpop.f32.mrf.mxu0 }
 0x689   :  { %v5273_v60 = vadd.f32 %v5272_v48, %v5224_v34  ;;  %v5184_v55 = vpop.f32.mrf.mxu2  ;;  %v5233_v7 = vpop.f32.mrf.mxu3 }
 0x68a   :  { %v5185_v0 = vadd.f32 %v5184_v55, %v5136_v22  ;;  %v11501_v22 = vld [vmem:[#allocation9 + $0x88] sm:$0xff] }
 0x68b   :  { %vm5296_vm11 = vcmp.ge.f32.partialorder %v5273_v60, 0.0  ;;  %v5312_v44 = vmul.f32 0.01, %v5273_v60 }
 0x68c   :  { %v5234_v54 = vadd.f32 %v5233_v7, %v5185_v0 }
 0x68d   :  { %v5328_v28 = vsel %vm5296_vm11, %v5273_v60, %v5312_v44  ;;  %v11498_v44 = vld [vmem:[#allocation9 + $0x70] sm:$0xff] }
 0x68e   :  { %v5338_v47 = vpack.c.bf16 %v5328_v28, %v5327_v53  ;;  %6328 = vmatpush.bf16.msrb.mxu3 %v11498_v44  ;;  %v11496_v53 = vld [vmem:[#allocation9 + $0x60] sm:$0xff]  ;;  %v11474_v28 = vld [vmem:[#allocation7 + $0x40] sm:$0xff]  ;;  %v11523_v44 = vld [vmem:[#allocation9 + $0x138] sm:$0xff] }
 0x690   :  { %v5275_v23 = vpop.f32.mrf.mxu0 }
 0x691   :  { %v5276_v40 = vadd.f32 %v5275_v23, %v5227_v6  ;;  %v11493_v23 = vld [vmem:[#allocation9 + $0x48] sm:$0xff] }
 0x692   :  { %6329 = vmatpush.bf16.msrb.mxu3 %v11497_v52 }
 0x693   :  { %v5313_v25 = vmul.f32 0.01, %v5276_v40  ;;  %vm5297_vm12 = vcmp.ge.f32.partialorder %v5276_v40, 0.0 }
 0x695   :  { %v5329_v50 = vsel %vm5297_vm12, %v5276_v40, %v5313_v25  ;;  %v11475_v40 = vld [vmem:[#allocation7 + $0x48] sm:$0xff]  ;;  %v11505_v25 = vld [vmem:[#allocation9 + $0xa8] sm:$0xff] }
 0x696   :  { %6330 = vmatpush.bf16.msrb.mxu3 %v11496_v53  ;;  %v11522_v53 = vld [vmem:[#allocation9 + $0x130] sm:$0xff] }
 0x698   :  { %v5277_v57 = vpop.f32.mrf.mxu0 }
 0x699   :  { %v5278_v15 = vadd.f32 %v5277_v57, %v5229_v41 }
 0x69a   :  { %6331 = vmatpush.bf16.msrb.mxu3 %v11495_v63  ;;  %v11521_v63 = vld [vmem:[#allocation9 + $0x128] sm:$0xff] }
 0x69b   :  { %vm5298_vm13 = vcmp.ge.f32.partialorder %v5278_v15, 0.0  ;;  %v5314_v37 = vmul.f32 0.01, %v5278_v15 }
 0x69d   :  { %v5330_v24 = vsel %vm5298_vm13, %v5278_v15, %v5314_v37 }
 0x69e   :  { %v5339_v18 = vpack.c.bf16 %v5330_v24, %v5329_v50  ;;  %6332 = vmatpush.bf16.msrb.mxu3 %v11494_v42  ;;  %v11503_v50 = vld [vmem:[#allocation9 + $0x98] sm:$0xff] }
 0x6a0   :  { %v5280_v30 = vpop.f32.mrf.mxu0 }
 0x6a1   :  { %v5281_v59 = vadd.f32 %v5280_v30, %v5232_v49 }
 0x6a2   :  { %6333 = vmatpush.bf16.msrb.mxu3 %v11493_v23 }
 0x6a3   :  { %v5315_v39 = vmul.f32 0.01, %v5281_v59  ;;  %vm5299_vm14 = vcmp.ge.f32.partialorder %v5281_v59, 0.0 }
 0x6a5   :  { %v5331_v27 = vsel %vm5299_vm14, %v5281_v59, %v5315_v39  ;;  %v11500_v59 = vld [vmem:[#allocation9 + $0x80] sm:$0xff] }
 0x6a6   :  { %6334 = vmatpush.bf16.msrb.mxu3 %v11492_v45 }
 0x6a8   :  { %v5282_v34 = vpop.f32.mrf.mxu0 }
 0x6a9   :  { %v5283_v36 = vadd.f32 %v5282_v34, %v5234_v54  ;;  %v11477_v54 = vld [vmem:[#allocation7 + $0x58] sm:$0xff]  ;;  %v11515_v34 = vld [vmem:[#allocation9 + $0xf8] sm:$0xff] }
 0x6aa   :  { %6365 = vmatpush.bf16.msra.mxu3 %v11515_v34  ;;  %v11525_v34 = vld [vmem:[#allocation9 + $0x148] sm:$0xff] }
 0x6ab   :  { %vm5300_vm15 = vcmp.ge.f32.partialorder %v5283_v36, 0.0  ;;  %v5316_v48 = vmul.f32 0.01, %v5283_v36 }
 0x6ad   :  { %v5332_v62 = vsel %vm5300_vm15, %v5283_v36, %v5316_v48  ;;  %v11514_v36 = vld [vmem:[#allocation9 + $0xf0] sm:$0xff] }
 0x6ae   :  { %v5340_v60 = vpack.c.bf16 %v5332_v62, %v5331_v27  ;;  %6366 = vmatpush.bf16.msra.mxu3 %v11514_v36  ;;  %v11513_v27 = vld [vmem:[#allocation9 + $0xe8] sm:$0xff] }
 0x6b0   :  { %5485 = vmatpush.bf16.msra.mxu1 %v5340_v60 }
 0x6b2   :  { %6367 = vmatpush.bf16.msra.mxu3 %v11513_v27 }
 0x6b4   :  { %5486 = vmatpush.bf16.msra.mxu1 %v5339_v18  ;;  %v11502_v18 = vld [vmem:[#allocation9 + $0x90] sm:$0xff] }
 0x6b8   :  { %5487 = vmatpush.bf16.msra.mxu1 %v5338_v47 }
 0x6bc   :  { %5488 = vmatpush.bf16.msra.mxu1 %v5337_v9  ;;  %v11473_v9 = vld [vmem:[#allocation7 + $0x38] sm:$0xff] }
 0x6c0   :  { %5489 = vmatpush.bf16.msra.mxu1 %v5336_v35  ;;  %v11484_v35 = vld [vmem:[#allocation9] sm:$0xff] }
 0x6c4   :  { %5490 = vmatpush.bf16.msra.mxu1 %v5335_v38  ;;  %v11485_v38 = vld [vmem:[#allocation9 + $0x8] sm:$0xff] }
 0x6c8   :  { %5491 = vmatpush.bf16.msra.mxu1 %v5334_v10  ;;  %v11488_v10 = vld [vmem:[#allocation9 + $0x20] sm:$0xff] }
 0x6c9   :  { %6311 = vmatpush.bf16.msrb.mxu2 %v11488_v10  ;;  %v11509_v10 = vld [vmem:[#allocation9 + $0xc8] sm:$0xff] }
 0x6cc   :  { %5492 = vmatpush.bf16.msra.mxu1 %v5333_v26  ;;  %v11486_v26 = vld [vmem:[#allocation9 + $0x10] sm:$0xff] }
 0x6cd   :  { %6312 = vmatpush.bf16.msrb.mxu2 %v11487_v16 }
 0x6cf   :  { %5493 = vmatmul.bf16.vlgmr.msra.gmra.mxu1 %v11466_v20 }
 0x6d1   :  { %6313 = vmatpush.bf16.msrb.mxu2 %v11486_v26 }
 0x6d5   :  { %6314 = vmatpush.bf16.msrb.mxu2 %v11485_v38 }
 0x6d9   :  { %6315 = vmatpush.bf16.msrb.mxu2 %v11484_v35  ;;  %v11508_v35 = vld [vmem:[#allocation9 + $0xc0] sm:$0xff] }
 0x6dd   :  { %6346 = vmatpush.bf16.msra.mxu2 %v11507_v11  ;;  %v11517_v11 = vld [vmem:[#allocation9 + $0x108] sm:$0xff] }
 0x6df   :  { %5498 = vmatmul.bf16.gmra.mxu1 %v11467_v32 }
 0x6e1   :  { %6347 = vmatpush.bf16.msra.mxu2 %v11506_v19 }
 0x6e5   :  { %6348 = vmatpush.bf16.msra.mxu2 %v11505_v25 }
 0x6e9   :  { %6349 = vmatpush.bf16.msra.mxu2 %v11504_v31 }
 0x6ed   :  { %6350 = vmatpush.bf16.msra.mxu2 %v11503_v50  ;;  %v11529_v50 = vld [vmem:[#allocation9 + $0x168] sm:$0xff] }
 0x6ef   :  { %5503 = vmatmul.bf16.gmra.mxu1 %v11468_v2  ;;  %v11512_v2 = vld [vmem:[#allocation9 + $0xe0] sm:$0xff] }
 0x6f0   :  { %6368 = vmatpush.bf16.msra.mxu3 %v11512_v2 }
 0x6f1   :  { %6351 = vmatpush.bf16.msra.mxu2 %v11502_v18 }
 0x6f5   :  { %6352 = vmatpush.bf16.msra.mxu2 %v11501_v22 }
 0x6f9   :  { %6353 = vmatpush.bf16.msra.mxu2 %v11500_v59 }
 0x6ff   :  { %5508 = vmatmul.bf16.gmra.mxu1 %v11469_v43 }
 0x70f   :  { %5513 = vmatmul.bf16.gmra.mxu1 %v11470_v61  ;;  %v11478_v61 = vld [vmem:[#allocation7 + $0x60] sm:$0xff] }
 0x71f   :  { %5518 = vmatmul.bf16.gmra.mxu1 %v11471_v4  ;;  %v11511_v4 = vld [vmem:[#allocation9 + $0xd8] sm:$0xff] }
 0x720   :  { %6369 = vmatpush.bf16.msra.mxu3 %v11511_v4  ;;  %v11537_v4 = vld [vmem:[#allocation9 + $0x1a8] sm:$0xff] }
 0x724   :  { %6370 = vmatpush.bf16.msra.mxu3 %v11510_v51 }
 0x728   :  { %6371 = vmatpush.bf16.msra.mxu3 %v11509_v10 }
 0x72c   :  { %6372 = vmatpush.bf16.msra.mxu3 %v11508_v35  ;;  %v11534_v35 = vld [vmem:[#allocation9 + $0x190] sm:$0xff] }
 0x72f   :  { %5523 = vmatmul.bf16.gmra.mxu1 %v11472_v5 }
 0x73f   :  { %5528 = vmatmul.bf16.gmra.mxu1 %v11473_v9 }
 0x74c   :  { %v5494_v47 = vpop.f32.mrf.mxu1 }
 0x74d   :  { %v5584_v33 = vpack.c.bf16 %v5494_v47, %v5494_v47 }
 0x74f   :  { %5533 = vmatmul.bf16.gmra.mxu1 %v11474_v28  ;;  %v5624_v14 = vunpack.c.l.b16 %v5584_v33 }
 0x754   :  { %v5496_v8 = vpop.f32.mrf.mxu1 }
 0x755   :  { %v5585_v56 = vpack.c.bf16 %v5496_v8, %v5496_v8  ;;  %v11520_v8 = vld [vmem:[#allocation9 + $0x120] sm:$0xff] }
 0x757   :  { %v5625_v17 = vunpack.c.l.b16 %v5585_v56 }
 0x759   :  { %v5628_v6 = vpack.c.b16 %v5625_v17, %v5624_v14  ;;  %v11480_v14 = vld [vmem:[#allocation7 + $0x70] sm:$0xff]  ;;  %v11519_v17 = vld [vmem:[#allocation9 + $0x118] sm:$0xff] }
 0x75b   :  { %6316 = vmatmul.bf16.vlgmr.msrb.gmra.mxu2 %v5628_v6  ;;  %v11518_v6 = vld [vmem:[#allocation9 + $0x110] sm:$0xff] }
 0x75c   :  { %v5499_v41 = vpop.f32.mrf.mxu1  ;;  %6384 = vmatpush.bf16.msrb.mxu2 %v11523_v44 }
 0x75d   :  { %v5586_v57 = vpack.c.bf16 %v5499_v41, %v5499_v41 }
 0x75f   :  { %5538 = vmatmul.bf16.gmra.mxu1 %v11475_v40  ;;  %v5626_v21 = vunpack.c.l.b16 %v5586_v57 }
 0x760   :  { %6385 = vmatpush.bf16.msrb.mxu2 %v11522_v53 }
 0x764   :  { %v5501_v15 = vpop.f32.mrf.mxu1  ;;  %6386 = vmatpush.bf16.msrb.mxu2 %v11521_v63 }
 0x765   :  { %v5587_v13 = vpack.c.bf16 %v5501_v15, %v5501_v15  ;;  %v11516_v15 = vld [vmem:[#allocation9 + $0x100] sm:$0xff] }
 0x767   :  { %v5627_v37 = vunpack.c.l.b16 %v5587_v13 }
 0x768   :  { %6387 = vmatpush.bf16.msrb.mxu2 %v11520_v8 }
 0x769   :  { %v5629_v1 = vpack.c.b16 %v5627_v37, %v5626_v21  ;;  %v11481_v21 = vld [vmem:[#allocation7 + $0x78] sm:$0xff]  ;;  %v11531_v37 = vld [vmem:[#allocation9 + $0x178] sm:$0xff] }
 0x76b   :  { %6321 = vmatmul.bf16.gmra.mxu2 %v5629_v1  ;;  %v11530_v1 = vld [vmem:[#allocation9 + $0x170] sm:$0xff] }
 0x76c   :  { %v5504_v24 = vpop.f32.mrf.mxu1  ;;  %6388 = vmatpush.bf16.msrb.mxu2 %v11519_v17 }
 0x76d   :  { %v5588_v46 = vpack.c.bf16 %v5504_v24, %v5504_v24 }
 0x76f   :  { %5543 = vmatmul.bf16.gmra.mxu1 %v11476_v3  ;;  %v5636_v0 = vunpack.c.l.b16 %v5588_v46 }
 0x770   :  { %6389 = vmatpush.bf16.msrb.mxu2 %v11518_v6 }
 0x774   :  { %v5506_v30 = vpop.f32.mrf.mxu1  ;;  %6390 = vmatpush.bf16.msrb.mxu2 %v11517_v11  ;;  %v11545_v11 = vld [vmem:[#allocation9 + $0x1e8] sm:$0xff] }
 0x775   :  { %v5589_v55 = vpack.c.bf16 %v5506_v30, %v5506_v30  ;;  %v11528_v30 = vld [vmem:[#allocation9 + $0x160] sm:$0xff] }
 0x777   :  { %v5637_v49 = vunpack.c.l.b16 %v5589_v55 }
 0x778   :  { %6391 = vmatpush.bf16.msrb.mxu2 %v11516_v15 }
 0x779   :  { %v5640_v7 = vpack.c.b16 %v5637_v49, %v5636_v0  ;;  %v11482_v0 = vld [vmem:[#allocation7 + $0x80] sm:$0xff]  ;;  %v11527_v49 = vld [vmem:[#allocation9 + $0x158] sm:$0xff] }
 0x77b   :  { %6335 = vmatmul.bf16.vlgmr.msrb.gmra.mxu3 %v5640_v7  ;;  %v11526_v7 = vld [vmem:[#allocation9 + $0x150] sm:$0xff] }
 0x77c   :  { %v5509_v39 = vpop.f32.mrf.mxu1  ;;  %6403 = vmatpush.bf16.msrb.mxu3 %v11531_v37 }
 0x77d   :  { %v5590_v48 = vpack.c.bf16 %v5509_v39, %v5509_v39 }
 0x77f   :  { %5548 = vmatmul.bf16.gmra.mxu1 %v11477_v54  ;;  %v5638_v20 = vunpack.c.l.b16 %v5590_v48 }
 0x780   :  { %6404 = vmatpush.bf16.msrb.mxu3 %v11530_v1 }
 0x784   :  { %v5511_v62 = vpop.f32.mrf.mxu1  ;;  %6405 = vmatpush.bf16.msrb.mxu3 %v11529_v50 }
 0x785   :  { %v5591_v60 = vpack.c.bf16 %v5511_v62, %v5511_v62  ;;  %v11524_v62 = vld [vmem:[#allocation9 + $0x140] sm:$0xff] }
 0x787   :  { %v5639_v32 = vunpack.c.l.b16 %v5591_v60 }
 0x788   :  { %6406 = vmatpush.bf16.msrb.mxu3 %v11528_v30 }
 0x789   :  { %v5641_v43 = vpack.c.b16 %v5639_v32, %v5638_v20  ;;  %v11483_v20 = vld [vmem:[#allocation7 + $0x88] sm:$0xff] }
 0x78a   :  { %v11539_v32 = vld [vmem:[#allocation9 + $0x1b8] sm:$0xff] }
 0x78b   :  { %6340 = vmatmul.bf16.gmra.mxu3 %v5641_v43  ;;  %v11538_v43 = vld [vmem:[#allocation9 + $0x1b0] sm:$0xff] }
 0x78c   :  { %v5514_v29 = vpop.f32.mrf.mxu1  ;;  %6407 = vmatpush.bf16.msrb.mxu3 %v11527_v49 }
 0x78d   :  { %v5592_v58 = vpack.c.bf16 %v5514_v29, %v5514_v29 }
 0x78f   :  { %5553 = vmatmul.bf16.gmra.mxu1 %v11478_v61  ;;  %v5648_v26 = vunpack.c.l.b16 %v5592_v58 }
 0x790   :  { %6408 = vmatpush.bf16.msrb.mxu3 %v11526_v7  ;;  %v11540_v7 = vld [vmem:[#allocation9 + $0x1c0] sm:$0xff] }
 0x794   :  { %v5516_v5 = vpop.f32.mrf.mxu1  ;;  %6409 = vmatpush.bf16.msrb.mxu3 %v11525_v34  ;;  %v11555_v34 = vld [vmem:[#allocation9 + $0x238] sm:$0xff] }
 0x795   :  { %v5593_v16 = vpack.c.bf16 %v5516_v5, %v5516_v5  ;;  %v11536_v5 = vld [vmem:[#allocation9 + $0x1a0] sm:$0xff]  ;;  %6460 = vmatpush.bf16.msra.mxu0 %v11555_v34 }
 0x797   :  { %v5649_v38 = vunpack.c.l.b16 %v5593_v16 }
 0x798   :  { %6410 = vmatpush.bf16.msrb.mxu3 %v11524_v62 }
 0x799   :  { %v5652_v9 = vpack.c.b16 %v5649_v38, %v5648_v26  ;;  %v11535_v26 = vld [vmem:[#allocation9 + $0x198] sm:$0xff] }
 0x79b   :  { %6354 = vmatmul.bf16.vlgmr.msra.gmra.mxu2 %v5652_v9 }
 0x79c   :  { %v5519_v52 = vpop.f32.mrf.mxu1  ;;  %6422 = vmatpush.bf16.msra.mxu2 %v11539_v32 }
 0x79d   :  { %v5594_v28 = vpack.c.bf16 %v5519_v52, %v5519_v52 }
 0x79f   :  { %5558 = vmatmul.bf16.gmra.mxu1 %v11479_v12  ;;  %v5650_v33 = vunpack.c.l.b16 %v5594_v28  ;;  %v11533_v12 = vld [vmem:[#allocation9 + $0x188] sm:$0xff] }
 0x7a0   :  { %6423 = vmatpush.bf16.msra.mxu2 %v11538_v43 }
 0x7a4   :  { %v5521_v47 = vpop.f32.mrf.mxu1  ;;  %6424 = vmatpush.bf16.msra.mxu2 %v11537_v4  ;;  %v11552_v4 = vld [vmem:[#allocation9 + $0x220] sm:$0xff] }
 0x7a5   :  { %v5595_v42 = vpack.c.bf16 %v5521_v47, %v5521_v47  ;;  %v11532_v47 = vld [vmem:[#allocation9 + $0x180] sm:$0xff] }
 0x7a7   :  { %v5651_v23 = vunpack.c.l.b16 %v5595_v42 }
 0x7a8   :  { %6425 = vmatpush.bf16.msra.mxu2 %v11536_v5 }
 0x7a9   :  { %v5653_v56 = vpack.c.b16 %v5651_v23, %v5650_v33  ;;  %v14166_v33 = vld [vmem:[#allocation10] ss:$0 sm:$0xff]  ;;  %v11547_v23 = vld [vmem:[#allocation9 + $0x1f8] sm:$0xff] }
 0x7ab   :  { %6359 = vmatmul.bf16.gmra.mxu2 %v5653_v56 }
 0x7ac   :  { %v5524_v45 = vpop.f32.mrf.mxu1  ;;  %6426 = vmatpush.bf16.msra.mxu2 %v11535_v26 }
 0x7ad   :  { %v5596_v40 = vpack.c.bf16 %v5524_v45, %v5524_v45  ;;  %v11546_v45 = vld [vmem:[#allocation9 + $0x1f0] sm:$0xff] }
 0x7af   :  { %5563 = vmatmul.bf16.gmra.mxu1 %v11480_v14  ;;  %v5660_v57 = vunpack.c.l.b16 %v5596_v40 }
 0x7b0   :  { %6427 = vmatpush.bf16.msra.mxu2 %v11534_v35 }
 0x7b4   :  { %v5526_v41 = vpop.f32.mrf.mxu1  ;;  %6428 = vmatpush.bf16.msra.mxu2 %v11533_v12 }
 0x7b5   :  { %v5597_v19 = vpack.c.bf16 %v5526_v41, %v5526_v41 }
 0x7b7   :  { %v5661_v25 = vunpack.c.l.b16 %v5597_v19 }
 0x7b8   :  { %6429 = vmatpush.bf16.msra.mxu2 %v11532_v47 }
 0x7b9   :  { %v5664_v13 = vpack.c.b16 %v5661_v25, %v5660_v57 }
 0x7bb   :  { %6373 = vmatmul.bf16.vlgmr.msra.gmra.mxu3 %v5664_v13  ;;  %v11544_v13 = vld [vmem:[#allocation9 + $0x1e0] sm:$0xff] }
 0x7bc   :  { %v5529_v31 = vpop.f32.mrf.mxu1  ;;  %6441 = vmatpush.bf16.msra.mxu3 %v11547_v23 }
 0x7bd   :  { %v5598_v3 = vpack.c.bf16 %v5529_v31, %v5529_v31  ;;  %v11543_v31 = vld [vmem:[#allocation9 + $0x1d8] sm:$0xff] }
 0x7bf   :  { %5568 = vmatmul.bf16.gmra.mxu1 %v11481_v21  ;;  %v5662_v46 = vunpack.c.l.b16 %v5598_v3 }
 0x7c0   :  { %6442 = vmatpush.bf16.msra.mxu3 %v11546_v45 }
 0x7c4   :  { %v5531_v24 = vpop.f32.mrf.mxu1  ;;  %6443 = vmatpush.bf16.msra.mxu3 %v11545_v11 }
 0x7c5   :  { %v5599_v18 = vpack.c.bf16 %v5531_v24, %v5531_v24 }
 0x7c7   :  { %v5663_v22 = vunpack.c.l.b16 %v5599_v18  ;;  %v11542_v18 = vld [vmem:[#allocation9 + $0x1d0] sm:$0xff] }
 0x7c8   :  { %6444 = vmatpush.bf16.msra.mxu3 %v11544_v13 }
 0x7c9   :  { %v5665_v55 = vpack.c.b16 %v5663_v22, %v5662_v46  ;;  %v11541_v22 = vld [vmem:[#allocation9 + $0x1c8] sm:$0xff] }
 0x7cb   :  { %6378 = vmatmul.bf16.gmra.mxu3 %v5665_v55 }
 0x7cc   :  { %v5534_v59 = vpop.f32.mrf.mxu1  ;;  %6445 = vmatpush.bf16.msra.mxu3 %v11543_v31 }
 0x7cd   :  { %v5600_v54 = vpack.c.bf16 %v5534_v59, %v5534_v59 }
 0x7cf   :  { %5573 = vmatmul.bf16.gmra.mxu1 %v11482_v0  ;;  %v5672_v48 = vunpack.c.l.b16 %v5600_v54 }
 0x7d0   :  { %6446 = vmatpush.bf16.msra.mxu3 %v11542_v18 }
 0x7d4   :  { %v5536_v39 = vpop.f32.mrf.mxu1  ;;  %6447 = vmatpush.bf16.msra.mxu3 %v11541_v22 }
 0x7d5   :  { %v5601_v36 = vpack.c.bf16 %v5536_v39, %v5536_v39 }
 0x7d7   :  { %v5673_v27 = vunpack.c.l.b16 %v5601_v36 }
 0x7d8   :  { %6448 = vmatpush.bf16.msra.mxu3 %v11540_v7 }
 0x7d9   :  { %v5676_v60 = vpack.c.b16 %v5673_v27, %v5672_v48  ;;  %v11554_v27 = vld [vmem:[#allocation9 + $0x230] sm:$0xff] }
 0x7da   :  { %6461 = vmatpush.bf16.msra.mxu0 %v11554_v27 }
 0x7db   :  { %6392 = vmatmul.bf16.vlgmr.msrb.gmra.mxu2 %v5676_v60  ;;  %v11553_v60 = vld [vmem:[#allocation9 + $0x228] sm:$0xff] }
 0x7dc   :  { %v5539_v2 = vpop.f32.mrf.mxu1 }
 0x7dd   :  { %v5602_v61 = vpack.c.bf16 %v5539_v2, %v5539_v2 }
 0x7de   :  { %v6317_v53 = vpop.f32.mrf.mxu2  ;;  %6462 = vmatpush.bf16.msra.mxu0 %v11553_v60 }
 0x7df   :  { %5578 = vmatmul.bf16.gmra.mxu1 %v11483_v20  ;;  %v5674_v58 = vunpack.c.l.b16 %v5602_v61  ;;  %v6318_v56 = vadd.f32 %v14166_v33, %v6317_v53  ;;  %v11548_v53 = vld [vmem:[#allocation9 + $0x200] sm:$0xff] }
 0x7e2   :  { %6463 = vmatpush.bf16.msra.mxu0 %v11552_v4 }
 0x7e4   :  { %v5541_v29 = vpop.f32.mrf.mxu1 }
 0x7e5   :  { %v5603_v51 = vpack.c.bf16 %v5541_v29, %v5541_v29 }
 0x7e6   :  { %v14169_v6 = vpop.f32.mrf.mxu2 }
 0x7e7   :  { %v5675_v10 = vunpack.c.l.b16 %v5603_v51  ;;  %v11551_v51 = vld [vmem:[#allocation9 + $0x218] sm:$0xff] }
 0x7e8   :  { %6464 = vmatpush.bf16.msra.mxu0 %v11551_v51 }
 0x7e9   :  { %v5677_v16 = vpack.c.b16 %v5675_v10, %v5674_v58 }
 0x7eb   :  { %6397 = vmatmul.bf16.gmra.mxu2 %v5677_v16  ;;  %v11550_v16 = vld [vmem:[#allocation9 + $0x210] sm:$0xff] }
 0x7ec   :  { %v5544_v38 = vpop.f32.mrf.mxu1  ;;  %6465 = vmatpush.bf16.msra.mxu0 %v11550_v16 }
 0x7ed   :  { %v5604_v9 = vpack.c.bf16 %v5544_v38, %v5544_v38  ;;  %v11549_v38 = vld [vmem:[#allocation9 + $0x208] sm:$0xff] }
 0x7ee   :  { %v6322_v37 = vpop.f32.mrf.mxu2 }
 0x7ef   :  { %v5684_v28 = vunpack.c.l.b16 %v5604_v9  ;;  %v6323_v3 = vadd.f32 %v14166_v33, %v6322_v37 }
 0x7f0   :  { %6466 = vmatpush.bf16.msra.mxu0 %v11549_v38 }
 0x7f4   :  { %v5546_v44 = vpop.f32.mrf.mxu1  ;;  %6467 = vmatpush.bf16.msra.mxu0 %v11548_v53 }
 0x7f5   :  { %v5605_v52 = vpack.c.bf16 %v5546_v44, %v5546_v44 }
 0x7f6   :  { %v14174_v0 = vpop.f32.mrf.mxu2 }
 0x7f7   :  { %v5685_v63 = vunpack.c.l.b16 %v5605_v52 }
 0x7f9   :  { %v5688_v42 = vpack.c.b16 %v5685_v63, %v5684_v28 }
 0x7fb   :  { %6411 = vmatmul.bf16.vlgmr.msrb.gmra.mxu3 %v5688_v42 }
 0x7fc   :  { %v5549_v8 = vpop.f32.mrf.mxu1 }
 0x7fd   :  { %v5606_v40 = vpack.c.bf16 %v5549_v8, %v5549_v8 }
 0x7fe   :  { %v6336_v14 = vpop.f32.mrf.mxu3 }
 0x7ff   :  { %v6337_v17 = vadd.f32 %v6336_v14, %v6318_v56  ;;  %v5686_v25 = vunpack.c.l.b16 %v5606_v40 }
 0x804   :  { %v5551_v41 = vpop.f32.mrf.mxu1 }
 0x805   :  { %v5607_v19 = vpack.c.bf16 %v5551_v41, %v5551_v41 }
 0x806   :  { %v14171_v57 = vpop.f32.mrf.mxu3 }
 0x807   :  { %v5687_v15 = vunpack.c.l.b16 %v5607_v19 }
 0x809   :  { %v5689_v21 = vpack.c.b16 %v5687_v15, %v5686_v25 }
 0x80b   :  { %6416 = vmatmul.bf16.gmra.mxu3 %v5689_v21 }
 0x80c   :  { %v5554_v1 = vpop.f32.mrf.mxu1 }
 0x80d   :  { %v5608_v46 = vpack.c.bf16 %v5554_v1, %v5554_v1 }
 0x80e   :  { %v6341_v50 = vpop.f32.mrf.mxu3 }
 0x80f   :  { %v6342_v24 = vadd.f32 %v6341_v50, %v6323_v3  ;;  %v5696_v49 = vunpack.c.l.b16 %v5608_v46 }
 0x814   :  { %v5556_v30 = vpop.f32.mrf.mxu1 }
 0x815   :  { %v5609_v55 = vpack.c.bf16 %v5556_v30, %v5556_v30 }
 0x816   :  { %v6343_v12 = vpop.f32.mrf.mxu3 }
 0x817   :  { %v5697_v59 = vunpack.c.l.b16 %v5609_v55 }
 0x819   :  { %v5700_v54 = vpack.c.b16 %v5697_v59, %v5696_v49 }
 0x81b   :  { %6430 = vmatmul.bf16.vlgmr.msra.gmra.mxu2 %v5700_v54 }
 0x81c   :  { %v5559_v39 = vpop.f32.mrf.mxu1 }
 0x81d   :  { %v5610_v62 = vpack.c.bf16 %v5559_v39, %v5559_v39 }
 0x81e   :  { %v6355_v36 = vpop.f32.mrf.mxu2 }
 0x81f   :  { %v6356_v48 = vadd.f32 %v6355_v36, %v6337_v17  ;;  %v5698_v43 = vunpack.c.l.b16 %v5610_v62 }
 0x824   :  { %v5561_v20 = vpop.f32.mrf.mxu1 }
 0x825   :  { %v5611_v32 = vpack.c.bf16 %v5561_v20, %v5561_v20 }
 0x826   :  { %v14176_v2 = vpop.f32.mrf.mxu2 }
 0x827   :  { %v5699_v61 = vunpack.c.l.b16 %v5611_v32 }
 0x829   :  { %v5701_v29 = vpack.c.b16 %v5699_v61, %v5698_v43  ;;  %v6320_v43 = vadd.f32 %v14166_v33, %v14169_v6 }
 0x82b   :  { %6435 = vmatmul.bf16.gmra.mxu2 %v5701_v29  ;;  %v6325_v29 = vadd.f32 %v14166_v33, %v14174_v0  ;;  %v6339_v51 = vadd.f32 %v14171_v57, %v6320_v43  ;;  %v11577_v43 = vld [vmem:[#allocation12 + $0x60] sm:$0xff] }
 0x82c   :  { %v5564_v58 = vpop.f32.mrf.mxu1 }
 0x82d   :  { %v5612_v26 = vpack.c.bf16 %v5564_v58, %v5564_v58 }
 0x82e   :  { %v6360_v10 = vpop.f32.mrf.mxu2 }
 0x82f   :  { %v6361_v5 = vadd.f32 %v6360_v10, %v6342_v24  ;;  %v5708_v44 = vunpack.c.l.b16 %v5612_v26  ;;  %v6358_v10 = vadd.f32 %v14176_v2, %v6339_v51  ;;  %v11575_v51 = vld [vmem:[#allocation12 + $0x50] sm:$0xff] }
 0x834   :  { %v5566_v35 = vpop.f32.mrf.mxu1 }
 0x835   :  { %v5613_v9 = vpack.c.bf16 %v5566_v35, %v5566_v35 }
 0x836   :  { %v6362_v30 = vpop.f32.mrf.mxu2 }
 0x837   :  { %v5709_v52 = vunpack.c.l.b16 %v5613_v9 }
 0x839   :  { %v5712_v28 = vpack.c.b16 %v5709_v52, %v5708_v44 }
 0x83b   :  { %6449 = vmatmul.bf16.vlgmr.msra.gmra.mxu3 %v5712_v28 }
 0x83c   :  { %v5569_v63 = vpop.f32.mrf.mxu1 }
 0x83d   :  { %v5614_v23 = vpack.c.bf16 %v5569_v63, %v5569_v63 }
 0x83e   :  { %v6374_v47 = vpop.f32.mrf.mxu3 }
 0x83f   :  { %v6375_v42 = vadd.f32 %v6374_v47, %v6356_v48  ;;  %v5710_v17 = vunpack.c.l.b16 %v5614_v23 }
 0x844   :  { %v5571_v8 = vpop.f32.mrf.mxu1 }
 0x845   :  { %v5615_v56 = vpack.c.bf16 %v5571_v8, %v5571_v8 }
 0x846   :  { %v6376_v14 = vpop.f32.mrf.mxu3 }
 0x847   :  { %v5711_v45 = vunpack.c.l.b16 %v5615_v56  ;;  %v6377_v26 = vadd.f32 %v6376_v14, %v6358_v10  ;;  %v11574_v10 = vld [vmem:[#allocation12 + $0x48] sm:$0xff] }
 0x849   :  { %v5713_v40 = vpack.c.b16 %v5711_v45, %v5710_v17 }
 0x84b   :  { %6454 = vmatmul.bf16.gmra.mxu3 %v5713_v40 }
 0x84c   :  { %v5574_v11 = vpop.f32.mrf.mxu1 }
 0x84d   :  { %v5616_v25 = vpack.c.bf16 %v5574_v11, %v5574_v11 }
 0x84e   :  { %v6379_v41 = vpop.f32.mrf.mxu3 }
 0x84f   :  { %v6380_v19 = vadd.f32 %v6379_v41, %v6361_v5  ;;  %v5720_v21 = vunpack.c.l.b16 %v5616_v25  ;;  %v6344_v5 = vadd.f32 %v6343_v12, %v6325_v29  ;;  %v11587_v29 = vld [vmem:[#allocation12 + $0xb0] sm:$0xff] }
 0x851   :  { %v6363_v16 = vadd.f32 %v6362_v30, %v6344_v5  ;;  %v11560_v30 = vld [vmem:[%s14269_s7 + $0x20] sm:$0xff] }
 0x852   :  { %v11564_v5 = vld [vmem:[%s14269_s7 + $0x40] sm:$0xff] }
 0x854   :  { %v5576_v15 = vpop.f32.mrf.mxu1 }
 0x855   :  { %v5617_v13 = vpack.c.bf16 %v5576_v15, %v5576_v15 }
 0x856   :  { %v6381_v55 = vpop.f32.mrf.mxu3 }
 0x857   :  { %v5721_v37 = vunpack.c.l.b16 %v5617_v13  ;;  %v6382_v35 = vadd.f32 %v6381_v55, %v6363_v16  ;;  %v11561_v55 = vld [vmem:[%s14269_s7 + $0x28] sm:$0xff]  ;;  %v11585_v16 = vld [vmem:[#allocation12 + $0xa0] sm:$0xff] }
 0x859   :  { %v5724_v31 = vpack.c.b16 %v5721_v37, %v5720_v21 }
 0x85b   :  { %6468 = vmatmul.bf16.vlgmr.msra.gmra.mxu0 %v5724_v31 }
 0x85c   :  { %v5579_v1 = vpop.f32.mrf.mxu1 }
 0x85d   :  { %v5618_v3 = vpack.c.bf16 %v5579_v1, %v5579_v1 }
 0x85e   :  { %v6393_v49 = vpop.f32.mrf.mxu2 }
 0x85f   :  { %v5722_v18 = vunpack.c.l.b16 %v5618_v3  ;;  %v6394_v53 = vadd.f32 %v6393_v49, %v6375_v42  ;;  %v11572_v49 = vld [vmem:[#allocation12 + $0x38] sm:$0xff] }
 0x860   :  { %7290 = vmatpush.bf16.msrb.mxu3 %v11572_v49 }
 0x864   :  { %v5581_v50 = vpop.f32.mrf.mxu1 }
 0x865   :  { %v5619_v24 = vpack.c.bf16 %v5581_v50, %v5581_v50 }
 0x866   :  { %v6395_v7 = vpop.f32.mrf.mxu2 }
 0x867   :  { %v5723_v46 = vunpack.c.l.b16 %v5619_v24  ;;  %v6396_v9 = vadd.f32 %v6395_v7, %v6377_v26  ;;  %v11556_v24 = vld [vmem:[%s14269_s7] sm:$0xff]  ;;  %v11573_v26 = vld [vmem:[#allocation12 + $0x40] sm:$0xff] }
 0x868   :  { %v11570_v7 = vld [vmem:[#allocation12 + $0x28] sm:$0xff] }
 0x869   :  { %v5725_v22 = vpack.c.b16 %v5723_v46, %v5722_v18  ;;  %v11557_v18 = vld [vmem:[%s14269_s7 + $0x8] sm:$0xff]  ;;  %v11558_v46 = vld [vmem:[%s14269_s7 + $0x10] sm:$0xff] }
 0x86b   :  { %6473 = vmatmul.bf16.gmra.mxu0 %v5725_v22  ;;  %v11559_v22 = vld [vmem:[%s14269_s7 + $0x18] sm:$0xff] }
 0x86e   :  { %v6398_v34 = vpop.f32.mrf.mxu2 }
 0x86f   :  { %v6399_v38 = vadd.f32 %v6398_v34, %v6380_v19  ;;  %v11569_v34 = vld [vmem:[#allocation12 + $0x20] sm:$0xff] }
 0x876   :  { %v6400_v36 = vpop.f32.mrf.mxu2 }
 0x877   :  { %v6401_v6 = vadd.f32 %v6400_v36, %v6382_v35  ;;  %v11580_v36 = vld [vmem:[#allocation12 + $0x78] sm:$0xff] }
 0x878   :  { %7304 = vmatpush.bf16.msrb.mxu0 %v11580_v36  ;;  %v11596_v35 = vld [vmem:[#allocation12 + $0xf8] sm:$0xff] }
 0x87e   :  { %v6412_v59 = vpop.f32.mrf.mxu3 }
 0x87f   :  { %v6413_v23 = vadd.f32 %v6412_v59, %v6394_v53  ;;  %v11571_v59 = vld [vmem:[#allocation12 + $0x30] sm:$0xff] }
 0x880   :  { %7291 = vmatpush.bf16.msrb.mxu3 %v11571_v59  ;;  %v11597_v59 = vld [vmem:[#allocation12 + $0x100] sm:$0xff] }
 0x884   :  { %7292 = vmatpush.bf16.msrb.mxu3 %v11570_v7  ;;  %v11609_v7 = vld [vmem:[#allocation12 + $0x160] sm:$0xff] }
 0x886   :  { %v6414_v54 = vpop.f32.mrf.mxu3 }
 0x887   :  { %v6415_v28 = vadd.f32 %v6414_v54, %v6396_v9  ;;  %v11562_v54 = vld [vmem:[%s14269_s7 + $0x30] sm:$0xff] }
 0x888   :  { %7293 = vmatpush.bf16.msrb.mxu3 %v11569_v34  ;;  %v11620_v34 = vld [vmem:[#allocation12 + $0x1b8] sm:$0xff] }
 0x88e   :  { %v6417_v39 = vpop.f32.mrf.mxu3 }
 0x88f   :  { %v6418_v44 = vadd.f32 %v6417_v39, %v6399_v38  ;;  %v11568_v39 = vld [vmem:[#allocation12 + $0x18] sm:$0xff] }
 0x890   :  { %7294 = vmatpush.bf16.msrb.mxu3 %v11568_v39  ;;  %v11584_v38 = vld [vmem:[#allocation12 + $0x98] sm:$0xff] }
 0x891   :  { %v11608_v39 = vld [vmem:[#allocation12 + $0x158] sm:$0xff] }
 0x896   :  { %v6419_v48 = vpop.f32.mrf.mxu3 }
 0x897   :  { %v6420_v33 = vadd.f32 %v6419_v48, %v6401_v6  ;;  %v11567_v48 = vld [vmem:[#allocation12 + $0x10] sm:$0xff]  ;;  %v11582_v6 = vld [vmem:[#allocation12 + $0x88] sm:$0xff] }
 0x898   :  { %7295 = vmatpush.bf16.msrb.mxu3 %v11567_v48  ;;  %v11619_v48 = vld [vmem:[#allocation12 + $0x1b0] sm:$0xff] }
 0x89e   :  { %v6431_v27 = vpop.f32.mrf.mxu2 }
 0x89f   :  { %v6432_v56 = vadd.f32 %v6431_v27, %v6413_v23  ;;  %v11579_v27 = vld [vmem:[#allocation12 + $0x70] sm:$0xff] }
 0x8a0   :  { %7305 = vmatpush.bf16.msrb.mxu0 %v11579_v27  ;;  %v11607_v27 = vld [vmem:[#allocation12 + $0x150] sm:$0xff] }
 0x8a6   :  { %v6433_v60 = vpop.f32.mrf.mxu2 }
 0x8a7   :  { %v6434_v0 = vadd.f32 %v6433_v60, %v6415_v28  ;;  %v11578_v60 = vld [vmem:[#allocation12 + $0x68] sm:$0xff] }
 0x8a8   :  { %7306 = vmatpush.bf16.msrb.mxu0 %v11578_v60  ;;  %v11594_v28 = vld [vmem:[#allocation12 + $0xe8] sm:$0xff] }
 0x8a9   :  { %v11618_v60 = vld [vmem:[#allocation12 + $0x1a8] sm:$0xff] }
 0x8ac   :  { %7307 = vmatpush.bf16.msrb.mxu0 %v11577_v43 }
 0x8ae   :  { %v6436_v61 = vpop.f32.mrf.mxu2 }
 0x8af   :  { %v6437_v63 = vadd.f32 %v6436_v61, %v6418_v44  ;;  %v11588_v61 = vld [vmem:[#allocation12 + $0xb8] sm:$0xff]  ;;  %v11583_v44 = vld [vmem:[#allocation12 + $0x90] sm:$0xff] }
 0x8b6   :  { %v6438_v47 = vpop.f32.mrf.mxu2 }
 0x8b7   :  { %v6439_v2 = vadd.f32 %v6438_v47, %v6420_v33 }
 0x8be   :  { %v6450_v62 = vpop.f32.mrf.mxu3 }
 0x8bf   :  { %v6451_v14 = vadd.f32 %v6450_v62, %v6432_v56  ;;  %v11566_v62 = vld [vmem:[#allocation12 + $0x8] sm:$0xff]  ;;  %v11604_v56 = vld [vmem:[#allocation12 + $0x138] sm:$0xff] }
 0x8c0   :  { %7296 = vmatpush.bf16.msrb.mxu3 %v11566_v62 }
 0x8c6   :  { %v6452_v20 = vpop.f32.mrf.mxu3 }
 0x8c7   :  { %v6453_v12 = vadd.f32 %v6452_v20, %v6434_v0  ;;  %v11563_v20 = vld [vmem:[%s14269_s7 + $0x38] sm:$0xff] }
 0x8c8   :  { %v11581_v0 = vld [vmem:[#allocation12 + $0x80] sm:$0xff] }
 0x8ce   :  { %v6455_v58 = vpop.f32.mrf.mxu3 }
 0x8cf   :  { %v6456_v57 = vadd.f32 %v6455_v58, %v6437_v63  ;;  %v11586_v58 = vld [vmem:[#allocation12 + $0xa8] sm:$0xff] }
 0x8d6   :  { %v6457_v8 = vpop.f32.mrf.mxu3 }
 0x8d7   :  { %v6458_v45 = vadd.f32 %v6457_v8, %v6439_v2  ;;  %v11592_v2 = vld [vmem:[#allocation12 + $0xd8] sm:$0xff] }
 0x8d8   :  { %v6469_v32 = vpop.f32.mrf.mxu0 }
 0x8d9   :  { %v6470_v41 = vadd.f32 %v6469_v32, %v6451_v14  ;;  %v11565_v32 = vld [vmem:[#allocation12] sm:$0xff]  ;;  %v11591_v14 = vld [vmem:[#allocation12 + $0xd0] sm:$0xff] }
 0x8da   :  { %7297 = vmatpush.bf16.msrb.mxu3 %v11565_v32 }
 0x8db   :  { %v6483_v13 = vmul.f32 0.01, %v6470_v41  ;;  %vm6479_vm3 = vcmp.ge.f32.partialorder %v6470_v41, 0.0 }
 0x8dd   :  { %v6487_v3 = vsel %vm6479_vm3, %v6470_v41, %v6483_v13  ;;  %v11589_v13 = vld [vmem:[#allocation12 + $0xc0] sm:$0xff] }
 0x8de   :  { %7318 = vmatpush.bf16.msra.mxu3 %v11588_v61 }
 0x8e0   :  { %v6471_v4 = vpop.f32.mrf.mxu0 }
 0x8e1   :  { %v6472_v40 = vadd.f32 %v6471_v4, %v6453_v12  ;;  %v11576_v4 = vld [vmem:[#allocation12 + $0x58] sm:$0xff] }
 0x8e2   :  { %7308 = vmatpush.bf16.msrb.mxu0 %v11576_v4  ;;  %7319 = vmatpush.bf16.msra.mxu3 %v11587_v29  ;;  %v11617_v29 = vld [vmem:[#allocation12 + $0x1a0] sm:$0xff] }
 0x8e3   :  { %v6484_v25 = vmul.f32 0.01, %v6472_v40  ;;  %vm6480_vm2 = vcmp.ge.f32.partialorder %v6472_v40, 0.0 }
 0x8e5   :  { %v6488_v1 = vsel %vm6480_vm2, %v6472_v40, %v6484_v25  ;;  %v11602_v40 = vld [vmem:[#allocation12 + $0x128] sm:$0xff] }
 0x8e6   :  { %v6491_v50 = vpack.c.bf16 %v6488_v1, %v6487_v3  ;;  %7309 = vmatpush.bf16.msrb.mxu0 %v11575_v51  ;;  %7320 = vmatpush.bf16.msra.mxu3 %v11586_v58  ;;  %v11599_v3 = vld [vmem:[#allocation12 + $0x110] sm:$0xff]  ;;  %v11605_v51 = vld [vmem:[#allocation12 + $0x140] sm:$0xff] }
 0x8e8   :  { %v6474_v52 = vpop.f32.mrf.mxu0 }
 0x8e9   :  { %v6475_v17 = vadd.f32 %v6474_v52, %v6456_v57  ;;  %v11595_v52 = vld [vmem:[#allocation12 + $0xf0] sm:$0xff]  ;;  %v11593_v57 = vld [vmem:[#allocation12 + $0xe0] sm:$0xff] }
 0x8ea   :  { %7310 = vmatpush.bf16.msrb.mxu0 %v11574_v10  ;;  %7321 = vmatpush.bf16.msra.mxu3 %v11585_v16  ;;  %v11616_v10 = vld [vmem:[#allocation12 + $0x198] sm:$0xff] }
 0x8eb   :  { %v6485_v19 = vmul.f32 0.01, %v6475_v17  ;;  %vm6481_vm0 = vcmp.ge.f32.partialorder %v6475_v17, 0.0 }
 0x8ed   :  { %v6489_v21 = vsel %vm6481_vm0, %v6475_v17, %v6485_v19  ;;  %v11603_v17 = vld [vmem:[#allocation12 + $0x130] sm:$0xff] }
 0x8ee   :  { %7311 = vmatpush.bf16.msrb.mxu0 %v11573_v26  ;;  %7322 = vmatpush.bf16.msra.mxu3 %v11584_v38  ;;  %v11615_v26 = vld [vmem:[#allocation12 + $0x190] sm:$0xff] }
 0x8ef   :  { %v11627_v38 = vld [vmem:[#allocation12 + $0x1f0] sm:$0xff] }
 0x8f0   :  { %v6476_v11 = vpop.f32.mrf.mxu0 }
 0x8f1   :  { %v6477_v42 = vadd.f32 %v6476_v11, %v6458_v45  ;;  %v11590_v11 = vld [vmem:[#allocation12 + $0xc8] sm:$0xff] }
 0x8f2   :  { %7332 = vmatpush.bf16.msra.mxu0 %v11596_v35  ;;  %7323 = vmatpush.bf16.msra.mxu3 %v11583_v44  ;;  %v11626_v44 = vld [vmem:[#allocation12 + $0x1e8] sm:$0xff] }
 0x8f3   :  { %vm6482_vm1 = vcmp.ge.f32.partialorder %v6477_v42, 0.0  ;;  %v6486_v15 = vmul.f32 0.01, %v6477_v42 }
 0x8f5   :  { %v6490_v37 = vsel %vm6482_vm1, %v6477_v42, %v6486_v15  ;;  %v11601_v15 = vld [vmem:[#allocation12 + $0x120] sm:$0xff] }
 0x8f6   :  { %v6492_v31 = vpack.c.bf16 %v6490_v37, %v6489_v21  ;;  %7333 = vmatpush.bf16.msra.mxu0 %v11595_v52  ;;  %7324 = vmatpush.bf16.msra.mxu3 %v11582_v6  ;;  %v11600_v37 = vld [vmem:[#allocation12 + $0x118] sm:$0xff] }
 0x8f8   :  { %6590 = vmatpush.bf16.msrb.mxu2 %v6492_v31  ;;  %v11612_v31 = vld [vmem:[#allocation12 + $0x178] sm:$0xff] }
 0x8fa   :  { %7334 = vmatpush.bf16.msra.mxu0 %v11594_v28  ;;  %7325 = vmatpush.bf16.msra.mxu3 %v11581_v0  ;;  %v11636_v0 = vld [vmem:[#allocation12 + $0x238] sm:$0xff] }
 0x8fc   :  { %6591 = vmatpush.bf16.msrb.mxu2 %v6491_v50  ;;  %v11611_v50 = vld [vmem:[#allocation12 + $0x170] sm:$0xff] }
 0x8fe   :  { %7335 = vmatpush.bf16.msra.mxu0 %v11593_v57 }
 0x8ff   :  { %10412 = vmatmul.msk.bf16.vlgmr.msrb.gmra.mxu2 %vm6556_vm4, %v11556_v24 }
 0x902   :  { %7336 = vmatpush.bf16.msra.mxu0 %v11592_v2 }
 0x906   :  { %7337 = vmatpush.bf16.msra.mxu0 %v11591_v14 }
 0x90a   :  { %7338 = vmatpush.bf16.msra.mxu0 %v11590_v11 }
 0x90e   :  { %7339 = vmatpush.bf16.msra.mxu0 %v11589_v13  ;;  %v11631_v13 = vld [vmem:[#allocation12 + $0x210] sm:$0xff] }
 0x90f   :  { %10413 = vmatmul.msk.bf16.gmra.mxu2 %vm6556_vm4, %v11557_v18  ;;  %v11598_v18 = vld [vmem:[#allocation12 + $0x108] sm:$0xff] }
 0x91f   :  { %10414 = vmatmul.msk.bf16.gmra.mxu2 %vm6556_vm4, %v11558_v46  ;;  %v11610_v46 = vld [vmem:[#allocation12 + $0x168] sm:$0xff] }
 0x92f   :  { %10415 = vmatmul.msk.bf16.gmra.mxu2 %vm6556_vm4, %v11559_v22 }
 0x93f   :  { %10416 = vmatmul.msk.bf16.gmra.mxu2 %vm6556_vm4, %v11560_v30 }
 0x94f   :  { %10417 = vmatmul.msk.bf16.gmra.mxu2 %vm6556_vm4, %v11561_v55 }
 0x95f   :  { %10418 = vmatmul.msk.bf16.gmra.mxu2 %vm6556_vm4, %v11562_v54 }
 0x96f   :  { %10419 = vmatmul.msk.bf16.gmra.mxu2 %vm6556_vm4, %v11563_v20  ;;  %v11606_v20 = vld [vmem:[#allocation12 + $0x148] sm:$0xff] }
 0x97f   :  { %10420 = vmatmul.msk.bf16.gmra.mxu2 %vm6556_vm4, %v11564_v5  ;;  %v11628_v5 = vld [vmem:[#allocation12 + $0x1f8] sm:$0xff] }
 0x982   :  { %v6593_v9 = vpop.f32.mrf.mxu2 }
 0x983   :  { %v6638_v53 = vpack.c.bf16 %v6593_v9, %v6593_v9  ;;  %v11614_v9 = vld [vmem:[#allocation12 + $0x188] sm:$0xff] }
 0x985   :  { %v6658_v23 = vunpack.c.l.b16 %v6638_v53 }
 0x98a   :  { %v6595_v63 = vpop.f32.mrf.mxu2 }
 0x98b   :  { %v6639_v47 = vpack.c.bf16 %v6595_v63, %v6595_v63  ;;  %v11613_v63 = vld [vmem:[#allocation12 + $0x180] sm:$0xff] }
 0x98d   :  { %v6659_v33 = vunpack.c.l.b16 %v6639_v47  ;;  %v11625_v47 = vld [vmem:[#allocation12 + $0x1e0] sm:$0xff] }
 0x98f   :  { %v6660_v8 = vpack.c.b16 %v6659_v33, %v6658_v23  ;;  %v11624_v33 = vld [vmem:[#allocation12 + $0x1d8] sm:$0xff] }
 0x991   :  { %7298 = vmatmul.bf16.vlgmr.msrb.gmra.mxu3 %v6660_v8  ;;  %v11623_v8 = vld [vmem:[#allocation12 + $0x1d0] sm:$0xff] }
 0x992   :  { %v6598_v12 = vpop.f32.mrf.mxu2  ;;  %7346 = vmatpush.bf16.msrb.mxu3 %v11604_v56  ;;  %v11635_v56 = vld [vmem:[#allocation12 + $0x230] sm:$0xff] }
 0x993   :  { %v6640_v45 = vpack.c.bf16 %v6598_v12, %v6598_v12  ;;  %v11622_v12 = vld [vmem:[#allocation12 + $0x1c8] sm:$0xff] }
 0x995   :  { %v6664_v42 = vunpack.c.l.b16 %v6640_v45 }
 0x996   :  { %7347 = vmatpush.bf16.msrb.mxu3 %v11603_v17  ;;  %v11634_v17 = vld [vmem:[#allocation12 + $0x228] sm:$0xff] }
 0x99a   :  { %v6600_v41 = vpop.f32.mrf.mxu2  ;;  %7348 = vmatpush.bf16.msrb.mxu3 %v11602_v40 }
 0x99b   :  { %v6641_v19 = vpack.c.bf16 %v6600_v41, %v6600_v41  ;;  %v11621_v41 = vld [vmem:[#allocation12 + $0x1c0] sm:$0xff] }
 0x99d   :  { %v6665_v25 = vunpack.c.l.b16 %v6641_v19  ;;  %v11633_v19 = vld [vmem:[#allocation12 + $0x220] sm:$0xff] }
 0x99e   :  { %7349 = vmatpush.bf16.msrb.mxu3 %v11601_v15 }
 0x99f   :  { %v6666_v21 = vpack.c.b16 %v6665_v25, %v6664_v42  ;;  %v11632_v25 = vld [vmem:[#allocation12 + $0x218] sm:$0xff] }
 0x9a1   :  { %7312 = vmatmul.bf16.vlgmr.msrb.gmra.mxu0 %v6666_v21 }
 0x9a2   :  { %v6603_v1 = vpop.f32.mrf.mxu2  ;;  %7350 = vmatpush.bf16.msrb.mxu3 %v11600_v37  ;;  %7360 = vmatpush.bf16.msrb.mxu0 %v11612_v31  ;;  %v11630_v37 = vld [vmem:[#allocation12 + $0x208] sm:$0xff] }
 0x9a3   :  { %v6642_v24 = vpack.c.bf16 %v6603_v1, %v6603_v1 }
 0x9a5   :  { %v6670_v55 = vunpack.c.l.b16 %v6642_v24  ;;  %v11629_v24 = vld [vmem:[#allocation12 + $0x200] sm:$0xff] }
 0x9a6   :  { %7351 = vmatpush.bf16.msrb.mxu3 %v11599_v3  ;;  %7361 = vmatpush.bf16.msrb.mxu0 %v11611_v50 }
 0x9aa   :  { %v6605_v22 = vpop.f32.mrf.mxu2  ;;  %7352 = vmatpush.bf16.msrb.mxu3 %v11598_v18  ;;  %7362 = vmatpush.bf16.msrb.mxu0 %v11610_v46 }
 0x9ab   :  { %v6643_v30 = vpack.c.bf16 %v6605_v22, %v6605_v22 }
 0x9ad   :  { %v6671_v49 = vunpack.c.l.b16 %v6643_v30 }
 0x9ae   :  { %7353 = vmatpush.bf16.msrb.mxu3 %v11597_v59  ;;  %7363 = vmatpush.bf16.msrb.mxu0 %v11609_v7 }
 0x9af   :  { %v6672_v54 = vpack.c.b16 %v6671_v49, %v6670_v55 }
 0x9b1   :  { %7326 = vmatmul.bf16.vlgmr.msra.gmra.mxu3 %v6672_v54 }
 0x9b2   :  { %v6608_v36 = vpop.f32.mrf.mxu2  ;;  %7374 = vmatpush.bf16.msra.mxu3 %v11620_v34  ;;  %7364 = vmatpush.bf16.msrb.mxu0 %v11608_v39 }
 0x9b3   :  { %v6644_v62 = vpack.c.bf16 %v6608_v36, %v6608_v36 }
 0x9b5   :  { %v6676_v61 = vunpack.c.l.b16 %v6644_v62 }
 0x9b6   :  { %7375 = vmatpush.bf16.msra.mxu3 %v11619_v48  ;;  %7365 = vmatpush.bf16.msrb.mxu0 %v11607_v27 }
 0x9ba   :  { %v6610_v32 = vpop.f32.mrf.mxu2  ;;  %7376 = vmatpush.bf16.msra.mxu3 %v11618_v60  ;;  %7366 = vmatpush.bf16.msrb.mxu0 %v11606_v20 }
 0x9bb   :  { %v6645_v43 = vpack.c.bf16 %v6610_v32, %v6610_v32 }
 0x9bd   :  { %v6677_v4 = vunpack.c.l.b16 %v6645_v43 }
 0x9be   :  { %7377 = vmatpush.bf16.msra.mxu3 %v11617_v29  ;;  %7367 = vmatpush.bf16.msrb.mxu0 %v11605_v51 }
 0x9bf   :  { %v6678_v58 = vpack.c.b16 %v6677_v4, %v6676_v61 }
 0x9c1   :  { %7340 = vmatmul.bf16.vlgmr.msra.gmra.mxu0 %v6678_v58 }
 0x9c2   :  { %v6613_v16 = vpop.f32.mrf.mxu2  ;;  %7378 = vmatpush.bf16.msra.mxu3 %v11616_v10  ;;  %7388 = vmatpush.bf16.msra.mxu0 %v11628_v5 }
 0x9c3   :  { %v6646_v35 = vpack.c.bf16 %v6613_v16, %v6613_v16 }
 0x9c5   :  { %v6682_v6 = vunpack.c.l.b16 %v6646_v35 }
 0x9c6   :  { %7379 = vmatpush.bf16.msra.mxu3 %v11615_v26  ;;  %7389 = vmatpush.bf16.msra.mxu0 %v11627_v38  ;;  %v11752_v26 = vld [vmem:[#allocation13] ss:$0 sm:$0xff] }
 0x9ca   :  { %v6615_v52 = vpop.f32.mrf.mxu2  ;;  %7380 = vmatpush.bf16.msra.mxu3 %v11614_v9  ;;  %7390 = vmatpush.bf16.msra.mxu0 %v11626_v44 }
 0x9cb   :  { %v6647_v53 = vpack.c.bf16 %v6615_v52, %v6615_v52 }
 0x9cd   :  { %v6683_v28 = vunpack.c.l.b16 %v6647_v53 }
 0x9ce   :  { %7381 = vmatpush.bf16.msra.mxu3 %v11613_v63  ;;  %7391 = vmatpush.bf16.msra.mxu0 %v11625_v47 }
 0x9cf   :  { %v6684_v23 = vpack.c.b16 %v6683_v28, %v6682_v6 }
 0x9d1   :  { %7354 = vmatmul.bf16.vlgmr.msrb.gmra.mxu3 %v6684_v23 }
 0x9d2   :  { %v6618_v57 = vpop.f32.mrf.mxu2  ;;  %7392 = vmatpush.bf16.msra.mxu0 %v11624_v33  ;;  %7402 = vmatpush.bf16.msrb.mxu3 %v11636_v0 }
 0x9d3   :  { %v6648_v2 = vpack.c.bf16 %v6618_v57, %v6618_v57 }
 0x9d5   :  { %v6688_v40 = vunpack.c.l.b16 %v6648_v2 }
 0x9d6   :  { %7393 = vmatpush.bf16.msra.mxu0 %v11623_v8  ;;  %7403 = vmatpush.bf16.msrb.mxu3 %v11635_v56 }
 0x9da   :  { %v6620_v14 = vpop.f32.mrf.mxu2  ;;  %7394 = vmatpush.bf16.msra.mxu0 %v11622_v12  ;;  %7404 = vmatpush.bf16.msrb.mxu3 %v11634_v17 }
 0x9db   :  { %v6649_v45 = vpack.c.bf16 %v6620_v14, %v6620_v14 }
 0x9dd   :  { %v6689_v11 = vunpack.c.l.b16 %v6649_v45 }
 0x9de   :  { %7395 = vmatpush.bf16.msra.mxu0 %v11621_v41  ;;  %7405 = vmatpush.bf16.msrb.mxu3 %v11633_v19 }
 0x9df   :  { %v6690_v42 = vpack.c.b16 %v6689_v11, %v6688_v40 }
 0x9e1   :  { %7368 = vmatmul.bf16.vlgmr.msrb.gmra.mxu0 %v6690_v42 }
 0x9e2   :  { %v6623_v15 = vpop.f32.mrf.mxu2  ;;  %7406 = vmatpush.bf16.msrb.mxu3 %v11632_v25 }
 0x9e3   :  { %v6650_v21 = vpack.c.bf16 %v6623_v15, %v6623_v15 }
 0x9e5   :  { %v6694_v3 = vunpack.c.l.b16 %v6650_v21  ;;  %v11637_v21 = vld [vmem:[%s14272_s10] sm:$0xff] }
 0x9e6   :  { %7407 = vmatpush.bf16.msrb.mxu3 %v11631_v13 }
 0x9ea   :  { %v6625_v31 = vpop.f32.mrf.mxu2  ;;  %7408 = vmatpush.bf16.msrb.mxu3 %v11630_v37  ;;  %v11638_v37 = vld [vmem:[%s14272_s10 + $0x8] sm:$0xff] }
 0x9eb   :  { %v6651_v1 = vpack.c.bf16 %v6625_v31, %v6625_v31  ;;  %v11661_v31 = vld [vmem:[#allocation15 + $0x78] sm:$0xff] }
 0x9ec   :  { %8234 = vmatpush.bf16.msrb.mxu1 %v11661_v31  ;;  %v11679_v31 = vld [vmem:[#allocation15 + $0x108] sm:$0xff] }
 0x9ed   :  { %v6695_v50 = vunpack.c.l.b16 %v6651_v1  ;;  %v11639_v1 = vld [vmem:[%s14272_s10 + $0x10] sm:$0xff] }
 0x9ee   :  { %7409 = vmatpush.bf16.msrb.mxu3 %v11629_v24  ;;  %v11641_v24 = vld [vmem:[%s14272_s10 + $0x20] sm:$0xff] }
 0x9ef   :  { %v6696_v18 = vpack.c.b16 %v6695_v50, %v6694_v3  ;;  %v11640_v3 = vld [vmem:[%s14272_s10 + $0x18] sm:$0xff]  ;;  %v11660_v50 = vld [vmem:[#allocation15 + $0x70] sm:$0xff] }
 0x9f0   :  { %8235 = vmatpush.bf16.msrb.mxu1 %v11660_v50 }
 0x9f1   :  { %7382 = vmatmul.bf16.vlgmr.msra.gmra.mxu3 %v6696_v18  ;;  %v11642_v18 = vld [vmem:[%s14272_s10 + $0x28] sm:$0xff] }
 0x9f2   :  { %v6628_v46 = vpop.f32.mrf.mxu2 }
 0x9f3   :  { %v6652_v22 = vpack.c.bf16 %v6628_v46, %v6628_v46  ;;  %v11653_v46 = vld [vmem:[#allocation15 + $0x38] sm:$0xff] }
 0x9f4   :  { %8220 = vmatpush.bf16.msra.mxu2 %v11653_v46  ;;  %v11678_v46 = vld [vmem:[#allocation15 + $0x100] sm:$0xff] }
 0x9f5   :  { %v6700_v49 = vunpack.c.l.b16 %v6652_v22  ;;  %v11659_v22 = vld [vmem:[#allocation15 + $0x68] sm:$0xff] }
 0x9f6   :  { %8236 = vmatpush.bf16.msrb.mxu1 %v11659_v22 }
 0x9fa   :  { %v6630_v30 = vpop.f32.mrf.mxu2 }
 0x9fb   :  { %v6653_v55 = vpack.c.bf16 %v6630_v30, %v6630_v30  ;;  %v11652_v30 = vld [vmem:[#allocation15 + $0x30] sm:$0xff] }
 0x9fc   :  { %8221 = vmatpush.bf16.msra.mxu2 %v11652_v30  ;;  %v11701_v30 = vld [vmem:[#allocation15 + $0x1b8] sm:$0xff] }
 0x9fd   :  { %v6701_v59 = vunpack.c.l.b16 %v6653_v55  ;;  %v11651_v55 = vld [vmem:[#allocation15 + $0x28] sm:$0xff] }
 0x9ff   :  { %v6702_v7 = vpack.c.b16 %v6701_v59, %v6700_v49  ;;  %v11650_v49 = vld [vmem:[#allocation15 + $0x20] sm:$0xff] }
 0xa00   :  { %8222 = vmatpush.bf16.msra.mxu2 %v11651_v55  ;;  %v11643_v59 = vld [vmem:[%s14272_s10 + $0x30] sm:$0xff] }
 0xa01   :  { %7396 = vmatmul.bf16.vlgmr.msra.gmra.mxu0 %v6702_v7  ;;  %v11649_v7 = vld [vmem:[#allocation15 + $0x18] sm:$0xff] }
 0xa02   :  { %v6633_v54 = vpop.f32.mrf.mxu2  ;;  %v11689_v55 = vld [vmem:[#allocation15 + $0x158] sm:$0xff] }
 0xa03   :  { %v6654_v34 = vpack.c.bf16 %v6633_v54, %v6633_v54  ;;  %v11648_v54 = vld [vmem:[#allocation15 + $0x10] sm:$0xff] }
 0xa04   :  { %8223 = vmatpush.bf16.msra.mxu2 %v11650_v49 }
 0xa05   :  { %v6706_v48 = vunpack.c.l.b16 %v6654_v34  ;;  %v11647_v34 = vld [vmem:[#allocation15 + $0x8] sm:$0xff] }
 0xa08   :  { %8224 = vmatpush.bf16.msra.mxu2 %v11649_v7  ;;  %v11688_v7 = vld [vmem:[#allocation15 + $0x150] sm:$0xff] }
 0xa0a   :  { %v6635_v39 = vpop.f32.mrf.mxu2 }
 0xa0b   :  { %v6655_v36 = vpack.c.bf16 %v6635_v39, %v6635_v39  ;;  %v11658_v39 = vld [vmem:[#allocation15 + $0x60] sm:$0xff] }
 0xa0c   :  { %8225 = vmatpush.bf16.msra.mxu2 %v11648_v54  ;;  %8237 = vmatpush.bf16.msrb.mxu1 %v11658_v39  ;;  %v11687_v39 = vld [vmem:[#allocation15 + $0x148] sm:$0xff] }
 0xa0d   :  { %v6707_v27 = vunpack.c.l.b16 %v6655_v36  ;;  %v11646_v36 = vld [vmem:[#allocation15] sm:$0xff] }
 0xa0f   :  { %v6708_v62 = vpack.c.b16 %v6707_v27, %v6706_v48  ;;  %v11644_v48 = vld [vmem:[%s14272_s10 + $0x38] sm:$0xff]  ;;  %v11669_v27 = vld [vmem:[#allocation15 + $0xb8] sm:$0xff] }
 0xa10   :  { %8226 = vmatpush.bf16.msra.mxu2 %v11647_v34  ;;  %8248 = vmatpush.bf16.msra.mxu3 %v11669_v27  ;;  %v11699_v34 = vld [vmem:[#allocation15 + $0x1a8] sm:$0xff] }
 0xa11   :  { %7410 = vmatmul.bf16.vlgmr.msrb.gmra.mxu3 %v6708_v62  ;;  %v11657_v62 = vld [vmem:[#allocation15 + $0x58] sm:$0xff] }
 0xa12   :  { %8238 = vmatpush.bf16.msrb.mxu1 %v11657_v62 }
 0xa14   :  { %v7299_v60 = vpop.f32.mrf.mxu3  ;;  %8227 = vmatpush.bf16.msra.mxu2 %v11646_v36 }
 0xa15   :  { %v7300_v35 = vadd.f32 %v11752_v26, %v7299_v60  ;;  %v11668_v60 = vld [vmem:[#allocation15 + $0xb0] sm:$0xff] }
 0xa16   :  { %8249 = vmatpush.bf16.msra.mxu3 %v11668_v60  ;;  %v11698_v60 = vld [vmem:[#allocation15 + $0x1a0] sm:$0xff] }
 0xa1c   :  { %v7301_v20 = vpop.f32.mrf.mxu3 }
 0xa1d   :  { %v7302_v52 = vadd.f32 %v11752_v26, %v7301_v20  ;;  %v11656_v20 = vld [vmem:[#allocation15 + $0x50] sm:$0xff] }
 0xa1e   :  { %v7313_v32 = vpop.f32.mrf.mxu0  ;;  %8239 = vmatpush.bf16.msrb.mxu1 %v11656_v20  ;;  %v11686_v20 = vld [vmem:[#allocation15 + $0x140] sm:$0xff] }
 0xa1f   :  { %v7314_v9 = vadd.f32 %v7313_v32, %v7300_v35  ;;  %v11667_v32 = vld [vmem:[#allocation15 + $0xa8] sm:$0xff] }
 0xa20   :  { %8250 = vmatpush.bf16.msra.mxu3 %v11667_v32  ;;  %v11663_v35 = vld [vmem:[#allocation15 + $0x88] sm:$0xff] }
 0xa26   :  { %v7315_v61 = vpop.f32.mrf.mxu0 }
 0xa27   :  { %v7316_v28 = vadd.f32 %v7315_v61, %v7302_v52  ;;  %v11666_v61 = vld [vmem:[#allocation15 + $0xa0] sm:$0xff] }
 0xa28   :  { %8251 = vmatpush.bf16.msra.mxu3 %v11666_v61  ;;  %v11709_v61 = vld [vmem:[#allocation15 + $0x1f8] sm:$0xff] }
 0xa34   :  { %v7327_v43 = vpop.f32.mrf.mxu3 }
 0xa35   :  { %v7328_v53 = vadd.f32 %v7327_v43, %v7314_v9  ;;  %v11655_v43 = vld [vmem:[#allocation15 + $0x48] sm:$0xff] }
 0xa36   :  { %8240 = vmatpush.bf16.msrb.mxu1 %v11655_v43  ;;  %v11697_v43 = vld [vmem:[#allocation15 + $0x198] sm:$0xff] }
 0xa3c   :  { %v7329_v4 = vpop.f32.mrf.mxu3 }
 0xa3d   :  { %v7330_v47 = vadd.f32 %v7329_v4, %v7316_v28  ;;  %v11654_v4 = vld [vmem:[#allocation15 + $0x40] sm:$0xff] }
 0xa3e   :  { %v7341_v29 = vpop.f32.mrf.mxu0  ;;  %8241 = vmatpush.bf16.msrb.mxu1 %v11654_v4  ;;  %v11662_v28 = vld [vmem:[#allocation15 + $0x80] sm:$0xff] }
 0xa3f   :  { %v7342_v63 = vadd.f32 %v7341_v29, %v7328_v53  ;;  %v11645_v29 = vld [vmem:[%s14272_s10 + $0x40] sm:$0xff] }
 0xa46   :  { %v7343_v58 = vpop.f32.mrf.mxu0 }
 0xa47   :  { %v7344_v33 = vadd.f32 %v7343_v58, %v7330_v47  ;;  %v11665_v58 = vld [vmem:[#allocation15 + $0x98] sm:$0xff] }
 0xa48   :  { %8252 = vmatpush.bf16.msra.mxu3 %v11665_v58  ;;  %v11673_v47 = vld [vmem:[#allocation15 + $0xd8] sm:$0xff] }
 0xa54   :  { %v7355_v51 = vpop.f32.mrf.mxu3 }
 0xa55   :  { %v7356_v23 = vadd.f32 %v7355_v51, %v7342_v63  ;;  %v11677_v51 = vld [vmem:[#allocation15 + $0xf8] sm:$0xff] }
 0xa56   :  { %8262 = vmatpush.bf16.msrb.mxu2 %v11677_v51  ;;  %v11708_v51 = vld [vmem:[#allocation15 + $0x1f0] sm:$0xff] }
 0xa5c   :  { %v7357_v10 = vpop.f32.mrf.mxu3 }
 0xa5d   :  { %v7358_v8 = vadd.f32 %v7357_v10, %v7344_v33 }
 0xa5e   :  { %v7369_v5 = vpop.f32.mrf.mxu0 }
 0xa5f   :  { %v7370_v0 = vadd.f32 %v7369_v5, %v7356_v23  ;;  %v11676_v5 = vld [vmem:[#allocation15 + $0xf0] sm:$0xff]  ;;  %v11685_v23 = vld [vmem:[#allocation15 + $0x138] sm:$0xff] }
 0xa60   :  { %8263 = vmatpush.bf16.msrb.mxu2 %v11676_v5  ;;  %8276 = vmatpush.bf16.msra.mxu1 %v11685_v23  ;;  %v11707_v5 = vld [vmem:[#allocation15 + $0x1e8] sm:$0xff] }
 0xa66   :  { %v7371_v38 = vpop.f32.mrf.mxu0 }
 0xa67   :  { %v7372_v2 = vadd.f32 %v7371_v38, %v7358_v8  ;;  %v11675_v38 = vld [vmem:[#allocation15 + $0xe8] sm:$0xff] }
 0xa68   :  { %8264 = vmatpush.bf16.msrb.mxu2 %v11675_v38 }
 0xa74   :  { %v7383_v16 = vpop.f32.mrf.mxu3 }
 0xa75   :  { %v7384_v56 = vadd.f32 %v7383_v16, %v7370_v0  ;;  %v11664_v16 = vld [vmem:[#allocation15 + $0x90] sm:$0xff] }
 0xa76   :  { %8253 = vmatpush.bf16.msra.mxu3 %v11664_v16  ;;  %v11672_v0 = vld [vmem:[#allocation15 + $0xd0] sm:$0xff] }
 0xa7a   :  { %8254 = vmatpush.bf16.msra.mxu3 %v11663_v35 }
 0xa7c   :  { %v7385_v44 = vpop.f32.mrf.mxu3 }
 0xa7d   :  { %v7386_v14 = vadd.f32 %v7385_v44, %v7372_v2  ;;  %v11683_v2 = vld [vmem:[#allocation15 + $0x128] sm:$0xff] }
 0xa7e   :  { %v7397_v6 = vpop.f32.mrf.mxu0  ;;  %8255 = vmatpush.bf16.msra.mxu3 %v11662_v28 }
 0xa7f   :  { %v7398_v12 = vadd.f32 %v7397_v6, %v7384_v56  ;;  %v11674_v6 = vld [vmem:[#allocation15 + $0xe0] sm:$0xff]  ;;  %v11671_v56 = vld [vmem:[#allocation15 + $0xc8] sm:$0xff] }
 0xa80   :  { %8265 = vmatpush.bf16.msrb.mxu2 %v11674_v6  ;;  %v11717_v6 = vld [vmem:[#allocation15 + $0x238] sm:$0xff] }
 0xa84   :  { %8266 = vmatpush.bf16.msrb.mxu2 %v11673_v47  ;;  %v11716_v47 = vld [vmem:[#allocation15 + $0x230] sm:$0xff] }
 0xa86   :  { %v7399_v17 = vpop.f32.mrf.mxu0 }
 0xa87   :  { %v7400_v40 = vadd.f32 %v7399_v17, %v7386_v14 }
 0xa88   :  { %8267 = vmatpush.bf16.msrb.mxu2 %v11672_v0  ;;  %v11715_v0 = vld [vmem:[#allocation15 + $0x228] sm:$0xff] }
 0xa8c   :  { %8268 = vmatpush.bf16.msrb.mxu2 %v11671_v56 }
 0xa94   :  { %v7411_v57 = vpop.f32.mrf.mxu3 }
 0xa95   :  { %v7412_v45 = vadd.f32 %v7411_v57, %v7398_v12  ;;  %v11684_v57 = vld [vmem:[#allocation15 + $0x130] sm:$0xff] }
 0xa96   :  { %8277 = vmatpush.bf16.msra.mxu1 %v11684_v57 }
 0xa97   :  { %v7418_v41 = vmul.f32 0.01, %v7412_v45  ;;  %vm7416_vm5 = vcmp.ge.f32.partialorder %v7412_v45, 0.0 }
 0xa99   :  { %v7420_v25 = vsel %vm7416_vm5, %v7412_v45, %v7418_v41 }
 0xa9a   :  { %8278 = vmatpush.bf16.msra.mxu1 %v11683_v2 }
 0xa9c   :  { %v7413_v11 = vpop.f32.mrf.mxu3 }
 0xa9d   :  { %v7414_v19 = vadd.f32 %v7413_v11, %v7400_v40  ;;  %v11670_v40 = vld [vmem:[#allocation15 + $0xc0] sm:$0xff] }
 0xa9e   :  { %v11682_v11 = vld [vmem:[#allocation15 + $0x120] sm:$0xff]  ;;  %8269 = vmatpush.bf16.msrb.mxu2 %v11670_v40 }
 0xa9f   :  { %vm7417_vm6 = vcmp.ge.f32.partialorder %v7414_v19, 0.0  ;;  %v7419_v42 = vmul.f32 0.01, %v7414_v19  ;;  %8279 = vmatpush.bf16.msra.mxu1 %v11682_v11  ;;  %v11712_v11 = vld [vmem:[#allocation15 + $0x210] sm:$0xff] }
 0xaa1   :  { %v7421_v15 = vsel %vm7417_vm6, %v7414_v19, %v7419_v42  ;;  %v11693_v19 = vld [vmem:[#allocation15 + $0x178] sm:$0xff] }
 0xaa2   :  { %v7422_v13 = vpack.c.bf16 %v7421_v15, %v7420_v25  ;;  %v11681_v42 = vld [vmem:[#allocation15 + $0x118] sm:$0xff]  ;;  %8290 = vmatpush.bf16.msrb.mxu3 %v11693_v19  ;;  %v11692_v15 = vld [vmem:[#allocation15 + $0x170] sm:$0xff]  ;;  %v11711_v19 = vld [vmem:[#allocation15 + $0x208] sm:$0xff] }
 0xaa3   :  { %8280 = vmatpush.bf16.msra.mxu1 %v11681_v42 }
 0xaa4   :  { %7521 = vmatpush.bf16.msrb.mxu0 %v7422_v13  ;;  %v11680_v13 = vld [vmem:[#allocation15 + $0x110] sm:$0xff] }
 0xaa6   :  { %8291 = vmatpush.bf16.msrb.mxu3 %v11692_v15 }
 0xaa7   :  { %10745 = vmatmul.msk.bf16.vlgmr.msrb.gmra.mxu0 %vm7486_vm7, %v11637_v21  ;;  %8281 = vmatpush.bf16.msra.mxu1 %v11680_v13 }
 0xaab   :  { %8282 = vmatpush.bf16.msra.mxu1 %v11679_v31 }
 0xaaf   :  { %8283 = vmatpush.bf16.msra.mxu1 %v11678_v46 }
 0xab7   :  { %10746 = vmatmul.msk.bf16.gmra.mxu0 %vm7486_vm7, %v11638_v37  ;;  %v11691_v37 = vld [vmem:[#allocation15 + $0x168] sm:$0xff] }
 0xab8   :  { %8292 = vmatpush.bf16.msrb.mxu3 %v11691_v37 }
 0xac7   :  { %10747 = vmatmul.msk.bf16.gmra.mxu0 %vm7486_vm7, %v11639_v1 }
 0xad7   :  { %10748 = vmatmul.msk.bf16.gmra.mxu0 %vm7486_vm7, %v11640_v3 }
 0xae7   :  { %10749 = vmatmul.msk.bf16.gmra.mxu0 %vm7486_vm7, %v11641_v24 }
 0xaf7   :  { %10750 = vmatmul.msk.bf16.gmra.mxu0 %vm7486_vm7, %v11642_v18  ;;  %v11690_v18 = vld [vmem:[#allocation15 + $0x160] sm:$0xff] }
 0xaf8   :  { %8293 = vmatpush.bf16.msrb.mxu3 %v11690_v18 }
 0xafc   :  { %8294 = vmatpush.bf16.msrb.mxu3 %v11689_v55 }
 0xb00   :  { %8295 = vmatpush.bf16.msrb.mxu3 %v11688_v7 }
 0xb04   :  { %8296 = vmatpush.bf16.msrb.mxu3 %v11687_v39  ;;  %v11724_v39 = vld [vmem:[#allocation18 + $0x30] sm:$0xff] }
 0xb07   :  { %10751 = vmatmul.msk.bf16.gmra.mxu0 %vm7486_vm7, %v11643_v59  ;;  %v11700_v59 = vld [vmem:[#allocation15 + $0x1b0] sm:$0xff] }
 0xb08   :  { %8297 = vmatpush.bf16.msrb.mxu3 %v11686_v20 }
 0xb17   :  { %10752 = vmatmul.msk.bf16.gmra.mxu0 %vm7486_vm7, %v11644_v48 }
 0xb24   :  { %v7523_v10 = vpop.f32.mrf.mxu0 }
 0xb25   :  { %v7568_v26 = vpack.c.bf16 %v7523_v10, %v7523_v10  ;;  %v11695_v10 = vld [vmem:[#allocation15 + $0x188] sm:$0xff] }
 0xb27   :  { %10753 = vmatmul.msk.bf16.gmra.mxu0 %vm7486_vm7, %v11645_v29  ;;  %v7588_v52 = vunpack.c.l.b16 %v7568_v26  ;;  %v11696_v29 = vld [vmem:[#allocation15 + $0x190] sm:$0xff] }
 0xb2c   :  { %v7525_v9 = vpop.f32.mrf.mxu0 }
 0xb2d   :  { %v7569_v44 = vpack.c.bf16 %v7525_v9, %v7525_v9  ;;  %v11694_v9 = vld [vmem:[#allocation15 + $0x180] sm:$0xff] }
 0xb2f   :  { %v7589_v53 = vunpack.c.l.b16 %v7569_v44  ;;  %v11706_v44 = vld [vmem:[#allocation15 + $0x1e0] sm:$0xff] }
 0xb31   :  { %v7590_v63 = vpack.c.b16 %v7589_v53, %v7588_v52  ;;  %v11705_v53 = vld [vmem:[#allocation15 + $0x1d8] sm:$0xff] }
 0xb33   :  { %8228 = vmatmul.bf16.vlgmr.msra.gmra.mxu2 %v7590_v63  ;;  %v11704_v63 = vld [vmem:[#allocation15 + $0x1d0] sm:$0xff] }
 0xb34   :  { %v7528_v33 = vpop.f32.mrf.mxu0  ;;  %8304 = vmatpush.bf16.msra.mxu2 %v11701_v30 }
 0xb35   :  { %v7570_v8 = vpack.c.bf16 %v7528_v33, %v7528_v33  ;;  %v11703_v33 = vld [vmem:[#allocation15 + $0x1c8] sm:$0xff] }
 0xb37   :  { %v7594_v14 = vunpack.c.l.b16 %v7570_v8 }
 0xb38   :  { %8305 = vmatpush.bf16.msra.mxu2 %v11700_v59 }
 0xb3c   :  { %v7530_v12 = vpop.f32.mrf.mxu0  ;;  %8306 = vmatpush.bf16.msra.mxu2 %v11699_v34  ;;  %v11725_v34 = vld [vmem:[#allocation18 + $0x38] sm:$0xff] }
 0xb3d   :  { %v7571_v17 = vpack.c.bf16 %v7530_v12, %v7530_v12  ;;  %v11702_v12 = vld [vmem:[#allocation15 + $0x1c0] sm:$0xff] }
 0xb3f   :  { %v7595_v45 = vunpack.c.l.b16 %v7571_v17  ;;  %v11714_v17 = vld [vmem:[#allocation15 + $0x220] sm:$0xff] }
 0xb40   :  { %8307 = vmatpush.bf16.msra.mxu2 %v11698_v60 }
 0xb41   :  { %v7596_v41 = vpack.c.b16 %v7595_v45, %v7594_v14  ;;  %v11713_v45 = vld [vmem:[#allocation15 + $0x218] sm:$0xff] }
 0xb43   :  { %8242 = vmatmul.bf16.vlgmr.msrb.gmra.mxu1 %v7596_v41 }
 0xb44   :  { %v7533_v25 = vpop.f32.mrf.mxu0  ;;  %8308 = vmatpush.bf16.msra.mxu2 %v11697_v43  ;;  %8318 = vmatpush.bf16.msrb.mxu1 %v11709_v61  ;;  %v11721_v43 = vld [vmem:[#allocation18 + $0x18] sm:$0xff]  ;;  %v11720_v61 = vld [vmem:[#allocation18 + $0x10] sm:$0xff] }
 0xb45   :  { %v7572_v21 = vpack.c.bf16 %v7533_v25, %v7533_v25 }
 0xb47   :  { %v7600_v50 = vunpack.c.l.b16 %v7572_v21  ;;  %v11710_v21 = vld [vmem:[#allocation15 + $0x200] sm:$0xff] }
 0xb48   :  { %8309 = vmatpush.bf16.msra.mxu2 %v11696_v29  ;;  %8319 = vmatpush.bf16.msrb.mxu1 %v11708_v51 }
 0xb4c   :  { %v7535_v1 = vpop.f32.mrf.mxu0  ;;  %8310 = vmatpush.bf16.msra.mxu2 %v11695_v10  ;;  %8320 = vmatpush.bf16.msrb.mxu1 %v11707_v5  ;;  %v11718_v10 = vld [vmem:[#allocation18] sm:$0xff] }
 0xb4d   :  { %v7573_v3 = vpack.c.bf16 %v7535_v1, %v7535_v1 }
 0xb4f   :  { %v7601_v24 = vunpack.c.l.b16 %v7573_v3 }
 0xb50   :  { %8311 = vmatpush.bf16.msra.mxu2 %v11694_v9  ;;  %8321 = vmatpush.bf16.msrb.mxu1 %v11706_v44 }
 0xb51   :  { %v7602_v22 = vpack.c.b16 %v7601_v24, %v7600_v50 }
 0xb53   :  { %8256 = vmatmul.bf16.vlgmr.msra.gmra.mxu3 %v7602_v22 }
 0xb54   :  { %v7538_v49 = vpop.f32.mrf.mxu0  ;;  %8322 = vmatpush.bf16.msrb.mxu1 %v11705_v53  ;;  %8332 = vmatpush.bf16.msra.mxu3 %v11717_v6 }
 0xb55   :  { %v7574_v54 = vpack.c.bf16 %v7538_v49, %v7538_v49 }
 0xb57   :  { %v7606_v27 = vunpack.c.l.b16 %v7574_v54 }
 0xb58   :  { %8323 = vmatpush.bf16.msrb.mxu1 %v11704_v63  ;;  %8333 = vmatpush.bf16.msra.mxu3 %v11716_v47 }
 0xb5c   :  { %v7540_v36 = vpop.f32.mrf.mxu0  ;;  %8324 = vmatpush.bf16.msrb.mxu1 %v11703_v33  ;;  %8334 = vmatpush.bf16.msra.mxu3 %v11715_v0 }
 0xb5d   :  { %v7575_v48 = vpack.c.bf16 %v7540_v36, %v7540_v36 }
 0xb5f   :  { %v7607_v62 = vunpack.c.l.b16 %v7575_v48  ;;  %v11723_v48 = vld [vmem:[#allocation18 + $0x28] sm:$0xff] }
 0xb60   :  { %8325 = vmatpush.bf16.msrb.mxu1 %v11702_v12  ;;  %8335 = vmatpush.bf16.msra.mxu3 %v11714_v17 }
 0xb61   :  { %v7608_v32 = vpack.c.b16 %v7607_v62, %v7606_v27  ;;  %v11722_v62 = vld [vmem:[#allocation18 + $0x20] sm:$0xff] }
 0xb63   :  { %8270 = vmatmul.bf16.vlgmr.msrb.gmra.mxu2 %v7608_v32 }
 0xb64   :  { %v7543_v4 = vpop.f32.mrf.mxu0  ;;  %8336 = vmatpush.bf16.msra.mxu3 %v11713_v45  ;;  %8421 = vmatpush.bf16.msrb.mxu2 %v11725_v34 }
 0xb65   :  { %v7576_v58 = vpack.c.bf16 %v7543_v4, %v7543_v4 }
 0xb67   :  { %v7612_v38 = vunpack.c.l.b16 %v7576_v58  ;;  %v11719_v58 = vld [vmem:[#allocation18 + $0x8] sm:$0xff] }
 0xb68   :  { %8337 = vmatpush.bf16.msra.mxu3 %v11712_v11  ;;  %8422 = vmatpush.bf16.msrb.mxu2 %v11724_v39 }
 0xb6c   :  { %v7545_v16 = vpop.f32.mrf.mxu0  ;;  %8338 = vmatpush.bf16.msra.mxu3 %v11711_v19  ;;  %8423 = vmatpush.bf16.msrb.mxu2 %v11723_v48 }
 0xb6d   :  { %v7577_v26 = vpack.c.bf16 %v7545_v16, %v7545_v16 }
 0xb6f   :  { %v7613_v35 = vunpack.c.l.b16 %v7577_v26  ;;  %v11753_v26 = vld [vmem:[#allocation16] ss:$0 sm:$0xff] }
 0xb70   :  { %8339 = vmatpush.bf16.msra.mxu3 %v11710_v21  ;;  %8424 = vmatpush.bf16.msrb.mxu2 %v11722_v62 }
 0xb71   :  { %v7614_v52 = vpack.c.b16 %v7613_v35, %v7612_v38 }
 0xb73   :  { %8284 = vmatmul.bf16.vlgmr.msra.gmra.mxu1 %v7614_v52 }
 0xb74   :  { %v7548_v28 = vpop.f32.mrf.mxu0  ;;  %8425 = vmatpush.bf16.msrb.mxu2 %v11721_v43 }
 0xb75   :  { %v7578_v23 = vpack.c.bf16 %v7548_v28, %v7548_v28 }
 0xb77   :  { %v7618_v56 = vunpack.c.l.b16 %v7578_v23 }
 0xb78   :  { %8426 = vmatpush.bf16.msrb.mxu2 %v11720_v61 }
 0xb7c   :  { %v7550_v57 = vpop.f32.mrf.mxu0  ;;  %8427 = vmatpush.bf16.msrb.mxu2 %v11719_v58 }
 0xb7d   :  { %v7579_v8 = vpack.c.bf16 %v7550_v57, %v7550_v57 }
 0xb7f   :  { %v7619_v2 = vunpack.c.l.b16 %v7579_v8 }
 0xb80   :  { %8428 = vmatpush.bf16.msrb.mxu2 %v11718_v10 }
 0xb81   :  { %v7620_v14 = vpack.c.b16 %v7619_v2, %v7618_v56 }
 0xb83   :  { %8298 = vmatmul.bf16.vlgmr.msrb.gmra.mxu3 %v7620_v14 }
 0xb84   :  { %v7553_v40 = vpop.f32.mrf.mxu0 }
 0xb85   :  { %v7580_v41 = vpack.c.bf16 %v7553_v40, %v7553_v40 }
 0xb87   :  { %v7624_v15 = vunpack.c.l.b16 %v7580_v41 }
 0xb8c   :  { %v7555_v42 = vpop.f32.mrf.mxu0 }
 0xb8d   :  { %v7581_v25 = vpack.c.bf16 %v7555_v42, %v7555_v42 }
 0xb8f   :  { %v7625_v13 = vunpack.c.l.b16 %v7581_v25 }
 0xb91   :  { %v7626_v37 = vpack.c.b16 %v7625_v13, %v7624_v15 }
 0xb93   :  { %8312 = vmatmul.bf16.vlgmr.msra.gmra.mxu2 %v7626_v37 }
 0xb94   :  { %v7558_v31 = vpop.f32.mrf.mxu0 }
 0xb95   :  { %v7582_v1 = vpack.c.bf16 %v7558_v31, %v7558_v31  ;;  %v11754_v31 = vld [vmem:[#allocation19] ss:$0 sm:$0xff] }
 0xb97   :  { %v7630_v24 = vunpack.c.l.b16 %v7582_v1 }
 0xb9c   :  { %v7560_v3 = vpop.f32.mrf.mxu0 }
 0xb9d   :  { %v7583_v50 = vpack.c.bf16 %v7560_v3, %v7560_v3 }
 0xb9f   :  { %v7631_v18 = vunpack.c.l.b16 %v7583_v50 }
 0xba1   :  { %v7632_v46 = vpack.c.b16 %v7631_v18, %v7630_v24 }
 0xba3   :  { %8326 = vmatmul.bf16.vlgmr.msrb.gmra.mxu1 %v7632_v46 }
 0xba4   :  { %v7563_v22 = vpop.f32.mrf.mxu0 }
 0xba5   :  { %v7584_v30 = vpack.c.bf16 %v7563_v22, %v7563_v22 }
 0xba7   :  { %v7636_v59 = vunpack.c.l.b16 %v7584_v30 }
 0xbac   :  { %v7565_v55 = vpop.f32.mrf.mxu0 }
 0xbad   :  { %v7585_v49 = vpack.c.bf16 %v7565_v55, %v7565_v55 }
 0xbaf   :  { %v7637_v7 = vunpack.c.l.b16 %v7585_v49 }
 0xbb1   :  { %v7638_v54 = vpack.c.b16 %v7637_v7, %v7636_v59 }
 0xbb3   :  { %8340 = vmatmul.bf16.vlgmr.msra.gmra.mxu3 %v7638_v54 }
 0xbb6   :  { %v8229_v36 = vpop.f32.mrf.mxu2 }
 0xbb7   :  { %v8230_v35 = vadd.f32 %v11753_v26, %v8229_v36 }
 0xbbe   :  { %v8231_v20 = vpop.f32.mrf.mxu2 }
 0xbbf   :  { %v8232_v53 = vadd.f32 %v11753_v26, %v8231_v20 }
 0xbc0   :  { %v8243_v27 = vpop.f32.mrf.mxu1 }
 0xbc1   :  { %v8244_v9 = vadd.f32 %v8243_v27, %v8230_v35 }
 0xbc8   :  { %v8245_v32 = vpop.f32.mrf.mxu1 }
 0xbc9   :  { %v8246_v47 = vadd.f32 %v8245_v32, %v8232_v53 }
 0xbd6   :  { %v8257_v60 = vpop.f32.mrf.mxu3 }
 0xbd7   :  { %v8258_v6 = vadd.f32 %v8257_v60, %v8244_v9 }
 0xbde   :  { %v8259_v29 = vpop.f32.mrf.mxu3 }
 0xbdf   :  { %v8260_v23 = vadd.f32 %v8259_v29, %v8246_v47 }
 0xbe6   :  { %v8271_v4 = vpop.f32.mrf.mxu2 }
 0xbe7   :  { %v8272_v63 = vadd.f32 %v8271_v4, %v8258_v6 }
 0xbee   :  { %v8273_v16 = vpop.f32.mrf.mxu2 }
 0xbef   :  { %v8274_v0 = vadd.f32 %v8273_v16, %v8260_v23 }
 0xbf0   :  { %v8285_v51 = vpop.f32.mrf.mxu1 }
 0xbf1   :  { %v8286_v33 = vadd.f32 %v8285_v51, %v8272_v63 }
 0xbf8   :  { %v8287_v38 = vpop.f32.mrf.mxu1 }
 0xbf9   :  { %v8288_v2 = vadd.f32 %v8287_v38, %v8274_v0 }
 0xc06   :  { %v8299_v5 = vpop.f32.mrf.mxu3 }
 0xc07   :  { %v8300_v57 = vadd.f32 %v8299_v5, %v8286_v33 }
 0xc0e   :  { %v8301_v52 = vpop.f32.mrf.mxu3 }
 0xc0f   :  { %v8302_v17 = vadd.f32 %v8301_v52, %v8288_v2 }
 0xc16   :  { %v8313_v44 = vpop.f32.mrf.mxu2 }
 0xc17   :  { %v8314_v56 = vadd.f32 %v8313_v44, %v8300_v57 }
 0xc1e   :  { %v8315_v12 = vpop.f32.mrf.mxu2 }
 0xc1f   :  { %v8316_v40 = vadd.f32 %v8315_v12, %v8302_v17 }
 0xc20   :  { %v8327_v28 = vpop.f32.mrf.mxu1 }
 0xc21   :  { %v8328_v14 = vadd.f32 %v8327_v28, %v8314_v56 }
 0xc28   :  { %v8329_v45 = vpop.f32.mrf.mxu1 }
 0xc29   :  { %v8330_v41 = vadd.f32 %v8329_v45, %v8316_v40 }
 0xc36   :  { %v8341_v8 = vpop.f32.mrf.mxu3 }
 0xc37   :  { %v8342_v11 = vadd.f32 %v8341_v8, %v8328_v14 }
 0xc39   :  { %v8348_v42 = vmul.f32 0.01, %v8342_v11  ;;  %vm8346_vm8 = vcmp.ge.f32.partialorder %v8342_v11, 0.0 }
 0xc3b   :  { %v8350_v13 = vsel %vm8346_vm8, %v8342_v11, %v8348_v42 }
 0xc3e   :  { %v8343_v19 = vpop.f32.mrf.mxu3 }
 0xc3f   :  { %v8344_v25 = vadd.f32 %v8343_v19, %v8330_v41 }
 0xc41   :  { %vm8347_vm9 = vcmp.ge.f32.partialorder %v8344_v25, 0.0  ;;  %v8349_v15 = vmul.f32 0.01, %v8344_v25 }
 0xc43   :  { %v8351_v21 = vsel %vm8347_vm9, %v8344_v25, %v8349_v15 }
 0xc44   :  { %v8352_v37 = vpack.c.bf16 %v8351_v21, %v8350_v13 }
 0xc46   :  { %8429 = vmatmul.bf16.vlgmr.msrb.gmra.mxu2 %v8352_v37 }
 0xcc9   :  { %v8430_v1 = vpop.f32.mrf.mxu2 }
 0xcca   :  { %v8431_v3 = vadd.f32 %v11754_v31, %v8430_v1 }
 0xccc   :  { %8435 = vst [vmem:[%s14277_s15] sm:$0xff] %v8431_v3 }
 0xcd1   :  { %v8432_v50 = vpop.f32.mrf.mxu2 }
 0xcd2   :  { %v8433_v24 = vadd.f32 %v11754_v31, %v8432_v50 }
 0xcd4   :  { %8436 = vst [vmem:[%s14277_s15 + $0x8] sm:$0xff] %v8433_v24 }
 0xcd5   :  { %8441 = vsyncpa [#allocation3], 1 }
 0xcd6   :  { %8442 = vsyncpa [#allocation5], 1 }
 0xcd7   :  { %8443 = vsyncpa [#allocation8], 1 }
 0xcd8   :  { %8444 = vsyncpa [#allocation11], 1 }
 0xcd9   :  { %8445 = vsyncpa [#allocation14], 1 }
 0xcda   :  { %8446 = vsyncpa [#allocation17], 1 }
 0xcdb   :  { %8447 = vsyncpa [#allocation20], 1 }

</bundles_post_ra>
